<compile_context>
chip_gen: v7x
topology: tpu7x:2x2x1
jax: 0.10.0
libtpu: 0.0.40
codegen_flags: <defaults>
</compile_context>

<pallas_src>
import functools

import jax
import jax.numpy as jnp
from jax.experimental import pallas as pl
from jax.experimental.pallas import tpu as pltpu

# lane / MXU friendly padded sizes
CONV1_K = 5 * 5 * 3               # 75 real (tap x channel) entries for conv1
CONV1_K_PAD = 128                 # K-folded im2col width, padded to one K tile
C1_OUT, C1_OUT_PAD = 220, 256     # conv1 output channels 220 -> 256
C2_OUT, C2_OUT_PAD = 216, 256     # conv2 output channels 216 -> 256
RES_IN_PAD = 128                  # GAP features 3 -> 128 (resnet stand-in input)
VMEM_LIMIT = 32 * 1024 * 1024     # explicit scoped-VMEM budget (safe on v5e/v6e/v7x)


# ---------------------------------------------------------------------------
# conv1: K-folded im2col matmul + fused bias / ReLU / 2x2 max-pool
# ---------------------------------------------------------------------------
def _im2col_pool_kernel(p_ref, w_ref, b_ref, o_ref):
    # p_ref: (4, M, K) bf16  -- im2col patches; leading axis enumerates the 4
    #        conv outputs (dr, dc) that 2x2-max-pool together; M = pooled
    #        rows*cols in this block.
    # w_ref: (K, Cout) bf16,  b_ref: (1, Cout) f32,  o_ref: (M, Cout) bf16.
    w = w_ref[...]

    def mm(q):
        return jnp.dot(p_ref[q], w, preferred_element_type=jnp.float32)

    pooled = jnp.maximum(jnp.maximum(mm(0), mm(1)), jnp.maximum(mm(2), mm(3)))
    # bias+ReLU after pooling == pool(ReLU(conv+bias)): per-channel bias,
    # monotone ReLU -- keep this invariant if the epilogue changes.
    o_ref[...] = jnp.maximum(pooled + b_ref[...], 0.0).astype(o_ref.dtype)


def _pick_m_block(m_total, k, cout, budget_bytes):
    """Largest pooled-row block (multiple of 8, or the full extent) fitting VMEM."""
    def cost(m):  # double-buffered bf16 patch block + output block
        return 2 * 2 * (4 * m * k + m * cout)
    if cost(m_total) <= budget_bytes:
        return m_total
    cands = [m for m in range(8, m_total, 8)
             if m_total % m == 0 and cost(m) <= budget_bytes]
    return max(cands) if cands else m_total


def conv1_im2col_pool(patches, w, b):
    """patches: (B, 4, M, K) bf16 with M = OH2*OW2 pooled positions."""
    B, four, M, K = patches.shape
    assert four == 4 and w.shape[0] == K
    cout = w.shape[1]
    m_blk = _pick_m_block(M, K, cout, budget_bytes=8 * 1024 * 1024)
    return pl.pallas_call(
        _im2col_pool_kernel,
        out_shape=jax.ShapeDtypeStruct((B, M, cout), jnp.bfloat16),
        grid=(B, M // m_blk),
        in_specs=[
            pl.BlockSpec((None, 4, m_blk, K), lambda bi, i: (bi, 0, i, 0)),
            pl.BlockSpec((K, cout), lambda bi, i: (0, 0)),
            pl.BlockSpec((1, cout), lambda bi, i: (0, 0)),
        ],
        out_specs=pl.BlockSpec((None, m_blk, cout), lambda bi, i: (bi, i, 0)),
        compiler_params=pltpu.CompilerParams(
            dimension_semantics=("parallel", "arbitrary"),
            vmem_limit_bytes=VMEM_LIMIT),
    )(patches, w, b)


def _im2col_pool_split(x, KH, KW, k_pad):
    """K-folded im2col with the conv1 tap/channel padding folded in (XLA side).

    Returns (B, 4, OH2*OW2, k_pad) bf16 where axis 1 enumerates the 2x2
    pool-mates (dr, dc), so the kernel's pooling is a pure elementwise max.
    """
    # TODO(synk): at very large inputs the patches could be built in-kernel
    # from the raw 3-channel slab to cut HBM traffic further.
    B, H, W, C = x.shape
    OH, OW = H - KH + 1, W - KW + 1
    OH2, OW2 = OH // 2, OW // 2
    taps = [x[:, kh:kh + 2 * OH2, kw:kw + 2 * OW2, :]
            for kh in range(KH) for kw in range(KW)]
    p = jnp.concatenate(taps, axis=-1)                 # (B, 2*OH2, 2*OW2, KH*KW*C)
    p = p.reshape(B, OH2, 2, OW2, 2, KH * KW * C)
    p = jnp.transpose(p, (0, 2, 4, 1, 3, 5))           # (B, 2, 2, OH2, OW2, K)
    p = p.reshape(B, 4, OH2 * OW2, KH * KW * C)
    if k_pad > KH * KW * C:
        p = jnp.pad(p, ((0, 0), (0, 0), (0, 0), (0, k_pad - KH * KW * C)))
    return p


# ---------------------------------------------------------------------------
# conv2: fused per-tap Conv2d(5x5, valid) + ReLU + MaxPool2d(2, 2)
# ---------------------------------------------------------------------------
def _conv_tap_pool_kernel(x_ref, w_ref, b_ref, o_ref, *, KH, KW, OW2):
    # x_ref: (H1, W1, Cin) bf16 -- one batch element, resident in VMEM
    # w_ref: (KH*KW, Cin, Cout) bf16,  b_ref: (1, Cout) f32
    # o_ref: (OW2, Cout) bf16 -- pooled output row `i` of batch element `b`
    i = pl.program_id(1)
    OWu = 2 * OW2                              # conv columns used by floor pooling
    cout = w_ref.shape[-1]
    r0 = 2 * i

    # two separate accumulators for the even/odd conv rows: the final row-pool
    # is an elementwise max, so no non-8-aligned accumulator split is needed.
    acc_e = jnp.zeros((OWu, cout), jnp.float32)
    acc_o = jnp.zeros((OWu, cout), jnp.float32)
    for kh in range(KH):
        row_e = x_ref[r0 + kh]                 # (W1, Cin) bf16, reused across kw
        row_o = x_ref[r0 + kh + 1]
        for kw in range(KW):
            w_tap = w_ref[kh * KW + kw]        # (Cin, Cout) bf16
            acc_e = acc_e + jnp.dot(row_e[kw:kw + OWu, :], w_tap,
                                    preferred_element_type=jnp.float32)
            acc_o = acc_o + jnp.dot(row_o[kw:kw + OWu, :], w_tap,
                                    preferred_element_type=jnp.float32)

    rowmax = jnp.maximum(acc_e, acc_o)                          # (OWu, Cout)
    if OW2 == 1:
        colmax = jnp.maximum(rowmax[0:1, :], rowmax[1:2, :])    # (1, Cout)
    else:
        colmax = jnp.max(rowmax.reshape(OW2, 2, cout), axis=1)  # (OW2, Cout)
    o_ref[...] = jnp.maximum(colmax + b_ref[...], 0.0).astype(o_ref.dtype)


def conv_tap_relu_pool(x_nhwc, w_taps, bias, *, KH, KW):
    """Fused valid conv + ReLU + 2x2 max-pool (per-tap MXU matmuls, bf16)."""
    B, H, W, Cin = x_nhwc.shape
    T, Cin_w, Cout = w_taps.shape
    assert T == KH * KW and Cin_w == Cin
    OH, OW = H - KH + 1, W - KW + 1
    OH2, OW2 = OH // 2, OW // 2               # floor mode (PyTorch MaxPool default)
    kernel = functools.partial(_conv_tap_pool_kernel, KH=KH, KW=KW, OW2=OW2)
    return pl.pallas_call(
        kernel,
        out_shape=jax.ShapeDtypeStruct((B, OH2, OW2, Cout), jnp.bfloat16),
        grid=(B, OH2),
        in_specs=[
            pl.BlockSpec((None, H, W, Cin), lambda b, i: (b, 0, 0, 0)),
            pl.BlockSpec((T, Cin, Cout), lambda b, i: (0, 0, 0)),
            pl.BlockSpec((1, Cout), lambda b, i: (0, 0)),
        ],
        out_specs=pl.BlockSpec((None, None, OW2, Cout), lambda b, i: (b, i, 0, 0)),
        compiler_params=pltpu.CompilerParams(
            dimension_semantics=("parallel", "arbitrary"),
            vmem_limit_bytes=VMEM_LIMIT),
    )(x_nhwc, w_taps, bias)


# ---------------------------------------------------------------------------
# fused FC tail: feat fc1/fc2, resnet stand-in projection, fused heads
# ---------------------------------------------------------------------------
def _fc_tail_kernel(feat_ref, gap_ref,
                    wf1_ref, bf1_ref, wf2_ref, bf2_ref,
                    wr_ref, br_ref,
                    wha_ref, whb_ref, bh_ref, wh2_ref, bh2_ref,
                    out_ref):
    bf16 = jnp.bfloat16

    def dot(a, b):
        return jnp.dot(a, b, preferred_element_type=jnp.float32)

    def relu(v):
        return jnp.maximum(v, 0.0)

    def dot_k2(x2, w_ref):
        # (B,2) @ (2,N) via broadcasts (avoids a degenerate K=2 MXU op)
        w = w_ref[...].astype(jnp.float32)
        return x2[:, 0:1] * w[0:1, :] + x2[:, 1:2] * w[1:2, :]

    # custom-features FC head
    h = relu(dot(feat_ref[...], wf1_ref[...]) + bf1_ref[...])          # (B, 256)
    x_custom = dot(h.astype(bf16), wf2_ref[...]) + bf2_ref[...]        # (B, 2)
    # resnet stand-in projection (GAP features -> 512)
    x_res = relu(dot(gap_ref[...], wr_ref[...]) + br_ref[...])         # (B, 512)

    # both heads' fc1 fused into one (2+512) x 768 matmul over the concat
    hh = relu(dot_k2(x_custom, wha_ref)
              + dot(x_res.astype(bf16), whb_ref[...]) + bh_ref[...])   # (B, 768)
    # both heads' fc2 fused into one block-diagonal 768 x (2+nc) matmul
    out_ref[...] = dot(hh.astype(bf16), wh2_ref[...]) + bh2_ref[...]   # (B, 2+nc)


def _zero_map(ndim):
    return lambda i: (0,) * ndim


def fc_tail(feat, gap, p):
    # TODO(synk): at the reference's real input size feat_fc1_w (~667 MiB bf16)
    # cannot stay VMEM-resident; a K-tiled grid with an f32 accumulator would
    # be needed, not exercised at these small shapes.
    B = feat.shape[0]
    n_out = p["head_fc2_w"].shape[1]
    args = (feat, gap,
            p["feat_fc1_w"], p["feat_fc1_b"], p["feat_fc2_w"], p["feat_fc2_b"],
            p["res_w"], p["res_b"],
            p["head_fc1_wa"], p["head_fc1_wb"], p["head_fc1_b"],
            p["head_fc2_w"], p["head_fc2_b"])
    in_specs = [pl.BlockSpec(a.shape, _zero_map(a.ndim)) for a in args]
    return pl.pallas_call(
        _fc_tail_kernel,
        out_shape=jax.ShapeDtypeStruct((B, n_out), jnp.float32),
        grid=(1,),
        in_specs=in_specs,
        out_specs=pl.BlockSpec((B, n_out), lambda i: (0, 0)),
        compiler_params=pltpu.CompilerParams(
            dimension_semantics=("arbitrary",)),
    )(*args)


# ---------------------------------------------------------------------------
# parameters (deterministic, synthetic; zero-padded to lane-friendly sizes)
# ---------------------------------------------------------------------------
def init_params(key, H, W, num_classes=10):
    # spatial sizes through conv5/pool2/conv5/pool2
    h1p, w1p = (H - 4) // 2, (W - 4) // 2
    h2p, w2p = (h1p - 4) // 2, (w1p - 4) // 2
    ks = jax.random.split(key, 9)
    n = lambda k, shape, s: s * jax.random.normal(k, shape, dtype=jnp.float32)
    bf16 = jnp.bfloat16

    # conv1: K-folded (kh, kw, cin) -> K, padded 75 -> 128, cout 220 -> 256
    conv1 = n(ks[0], (5, 5, 3, C1_OUT), 0.05)
    conv1_w = jnp.zeros((CONV1_K_PAD, C1_OUT_PAD), jnp.float32)
    conv1_w = conv1_w.at[:CONV1_K, :C1_OUT].set(conv1.reshape(CONV1_K, C1_OUT))

    # conv2: per-tap (25, Cin_pad, Cout_pad)
    conv2 = n(ks[1], (5, 5, C1_OUT, C2_OUT), 0.02)
    c2w = jnp.zeros((5, 5, C1_OUT_PAD, C2_OUT_PAD), jnp.float32)
    c2w = c2w.at[:, :, :C1_OUT, :C2_OUT].set(conv2)
    conv2_w = c2w.reshape(25, C1_OUT_PAD, C2_OUT_PAD)

    # TODO(synk): reference hard-codes nn.Linear(216*32*159, 216) (only valid
    # for one large input size); first FC is sized to the actual flatten width,
    # TODO(synk): and flatten uses NHWC (channel-last) order, not PyTorch NCHW.
    f1 = n(ks[2], (h2p, w2p, C2_OUT, C2_OUT), 0.02)
    f1p = jnp.zeros((h2p, w2p, C2_OUT_PAD, C2_OUT_PAD), jnp.float32)
    f1p = f1p.at[:, :, :C2_OUT, :C2_OUT].set(f1)
    feat_fc1_w = f1p.reshape(h2p * w2p * C2_OUT_PAD, C2_OUT_PAD)

    f2 = n(ks[3], (C2_OUT, 2), 0.02)
    feat_fc2_w = jnp.zeros((C2_OUT_PAD, 2), jnp.float32).at[:C2_OUT, :].set(f2)

    rw = n(ks[4], (3, 512), 0.05)
    res_w = jnp.zeros((RES_IN_PAD, 512), jnp.float32).at[:3, :].set(rw)

    # TODO(synk): reference applies AdaptiveAvgPool2d(1) / Linear(512,..) and
    # Linear(32*16*16,512) to a 2-D (B, 514) tensor (invalid); heads are sized
    # to 514 and split into the 2-wide custom part + 512-wide resnet part.
    l1 = n(ks[5], (514, 256), 0.01)        # localization init: N(0, 0.01)
    l2 = n(ks[6], (256, 2), 0.01)
    c1 = n(ks[7], (514, 512), 0.02)
    c2 = n(ks[8], (512, num_classes), 0.02)

    # fused head fc1: N-concat of loc (->256) and cls (->512) parts
    head_fc1_wa = jnp.concatenate([l1[:2, :], c1[:2, :]], axis=1)      # (2, 768)
    head_fc1_wb = jnp.concatenate([l1[2:, :], c1[2:, :]], axis=1)      # (512, 768)
    # fused head fc2: block-diagonal (768, 2 + num_classes)
    head_fc2_w = jnp.zeros((768, 2 + num_classes), jnp.float32)
    head_fc2_w = head_fc2_w.at[:256, :2].set(l2).at[256:, 2:].set(c2)

    return {
        "conv1_w": conv1_w.astype(bf16),
        "conv1_b": jnp.zeros((1, C1_OUT_PAD), jnp.float32),
        "conv2_w": conv2_w.astype(bf16),
        "conv2_b": jnp.zeros((1, C2_OUT_PAD), jnp.float32),
        "feat_fc1_w": feat_fc1_w.astype(bf16),
        "feat_fc1_b": jnp.zeros((1, C2_OUT_PAD), jnp.float32),
        "feat_fc2_w": feat_fc2_w.astype(bf16),
        "feat_fc2_b": jnp.zeros((1, 2), jnp.float32),
        "res_w": res_w.astype(bf16),
        "res_b": jnp.zeros((1, 512), jnp.float32),
        "head_fc1_wa": head_fc1_wa.astype(bf16),
        "head_fc1_wb": head_fc1_wb.astype(bf16),
        "head_fc1_b": jnp.zeros((1, 768), jnp.float32),
        "head_fc2_w": head_fc2_w.astype(bf16),
        "head_fc2_b": jnp.zeros((1, 2 + num_classes), jnp.float32),
    }


# ---------------------------------------------------------------------------
# forward pass (mirrors ObjectLocalizationCNN.forward)
# ---------------------------------------------------------------------------
def forward(params, x_nchw):
    B, C, H, W = x_nchw.shape
    x_nhwc = jnp.transpose(x_nchw, (0, 2, 3, 1)).astype(jnp.float32)   # NCHW->NHWC
    OH2, OW2 = (H - 4) // 2, (W - 4) // 2

    # --- conv1: K-folded im2col (padding folded in; no 128-channel x_pad) ---
    patches = _im2col_pool_split(x_nhwc.astype(jnp.bfloat16),
                                 KH=5, KW=5, k_pad=CONV1_K_PAD)
    h1 = conv1_im2col_pool(patches, params["conv1_w"], params["conv1_b"])
    h1 = h1.reshape(B, OH2, OW2, C1_OUT_PAD)

    # --- conv2: fused per-tap conv + ReLU + pool kernel ---
    h2 = conv_tap_relu_pool(h1, params["conv2_w"], params["conv2_b"], KH=5, KW=5)
    feat = h2.reshape(B, -1)                                # (B, h2p*w2p*256) bf16

    # --- resnet branch ---
    # TODO(synk): pretrained torchvision resnet18 backbone cannot be reproduced
    # in-script; stand-in = global average pool + linear projection to 512
    # (the projection itself runs inside the fused FC-tail kernel).
    gap = jnp.mean(x_nhwc, axis=(1, 2))                     # (B, 3)
    gap_pad = jnp.zeros((B, RES_IN_PAD), jnp.bfloat16).at[:, :C].set(
        gap.astype(jnp.bfloat16))

    # --- fused FC tail: feat fcs, resnet projection, concat, fused heads ---
    combined = fc_tail(feat, gap_pad, params)               # (B, 2 + num_classes)
    localization = combined[:, :2]
    classification = combined[:, 2:]
    return classification, localization


if __name__ == "__main__":
    key = jax.random.PRNGKey(0)
    kx, kp = jax.random.split(key)
    x = jax.random.normal(kx, (2, 3, 16, 16), dtype=jnp.float32)  # NCHW like PyTorch
    params = init_params(kp, 16, 16, num_classes=10)

    fwd = jax.jit(forward)
    classification, localization = fwd(params, x)
    jax.block_until_ready((classification, localization))

    assert classification.shape == (2, 10), classification.shape
    assert localization.shape == (2, 2), localization.shape
    print("KERNEL_OK")
</pallas_src>

<mosaic_0001>
module attributes {stable_mosaic.version = 11 : i64} {
  func.func @_im2col_pool_kernel(%arg0: i32, %arg1: i32, %arg2: memref<1x4x36x128xbf16, #tpu.memory_space<vmem>>, %arg3: memref<128x256xbf16, #tpu.memory_space<vmem>>, %arg4: memref<1x256xf32, #tpu.memory_space<vmem>>, %arg5: memref<1x36x256xbf16, #tpu.memory_space<vmem>>) attributes {dimension_semantics = [#tpu.dimension_semantics<parallel>, #tpu.dimension_semantics<arbitrary>], iteration_bounds = array<i64: 2, 1>, scalar_prefetch = 0 : i64, scratch_operands = 0 : i64, tpu.core_type = #tpu.core_type<tc>, window_params = [{transform_indices = @transform_0, window_bounds = array<i64: 1, 4, 36, 128>}, {pipeline_mode = #tpu.pipeline_mode<synchronous>, transform_indices = @transform_1, window_bounds = array<i64: 128, 256>}, {pipeline_mode = #tpu.pipeline_mode<synchronous>, transform_indices = @transform_2, window_bounds = array<i64: 1, 256>}, {transform_indices = @transform_3, window_bounds = array<i64: 1, 36, 256>}]} {
    %c0 = arith.constant 0 : index
    %c0_0 = arith.constant 0 : index
    %0 = vector.load %arg3[%c0, %c0_0] : memref<128x256xbf16, #tpu.memory_space<vmem>>, vector<128x256xbf16>
    %c0_1 = arith.constant 0 : index
    %c0_2 = arith.constant 0 : index
    %c0_3 = arith.constant 0 : index
    %c0_4 = arith.constant 0 : index
    %1 = vector.load %arg2[%c0_1, %c0_2, %c0_3, %c0_4] : memref<1x4x36x128xbf16, #tpu.memory_space<vmem>>, vector<1x1x36x128xbf16>
    %2 = vector.shape_cast %1 : vector<1x1x36x128xbf16> to vector<36x128xbf16>
    %cst = arith.constant dense<0.000000e+00> : vector<36x256xf32>
    %3 = tpu.matmul %2, %0, %cst {dimension_numbers = #tpu.dot_dimension_numbers<[1], [0], [0], [1], [0, 0, 1, 1], [], []>} : vector<36x128xbf16>, vector<128x256xbf16>, vector<36x256xf32> -> vector<36x256xf32>
    %c0_5 = arith.constant 0 : index
    %c1 = arith.constant 1 : index
    %c0_6 = arith.constant 0 : index
    %c0_7 = arith.constant 0 : index
    %4 = vector.load %arg2[%c0_5, %c1, %c0_6, %c0_7] : memref<1x4x36x128xbf16, #tpu.memory_space<vmem>>, vector<1x1x36x128xbf16>
    %5 = vector.shape_cast %4 : vector<1x1x36x128xbf16> to vector<36x128xbf16>
    %cst_8 = arith.constant dense<0.000000e+00> : vector<36x256xf32>
    %6 = tpu.matmul %5, %0, %cst_8 {dimension_numbers = #tpu.dot_dimension_numbers<[1], [0], [0], [1], [0, 0, 1, 1], [], []>} : vector<36x128xbf16>, vector<128x256xbf16>, vector<36x256xf32> -> vector<36x256xf32>
    %7 = arith.maximumf %3, %6 : vector<36x256xf32>
    %c0_9 = arith.constant 0 : index
    %c2 = arith.constant 2 : index
    %c0_10 = arith.constant 0 : index
    %c0_11 = arith.constant 0 : index
    %8 = vector.load %arg2[%c0_9, %c2, %c0_10, %c0_11] : memref<1x4x36x128xbf16, #tpu.memory_space<vmem>>, vector<1x1x36x128xbf16>
    %9 = vector.shape_cast %8 : vector<1x1x36x128xbf16> to vector<36x128xbf16>
    %cst_12 = arith.constant dense<0.000000e+00> : vector<36x256xf32>
    %10 = tpu.matmul %9, %0, %cst_12 {dimension_numbers = #tpu.dot_dimension_numbers<[1], [0], [0], [1], [0, 0, 1, 1], [], []>} : vector<36x128xbf16>, vector<128x256xbf16>, vector<36x256xf32> -> vector<36x256xf32>
    %c0_13 = arith.constant 0 : index
    %c3 = arith.constant 3 : index
    %c0_14 = arith.constant 0 : index
    %c0_15 = arith.constant 0 : index
    %11 = vector.load %arg2[%c0_13, %c3, %c0_14, %c0_15] : memref<1x4x36x128xbf16, #tpu.memory_space<vmem>>, vector<1x1x36x128xbf16>
    %12 = vector.shape_cast %11 : vector<1x1x36x128xbf16> to vector<36x128xbf16>
    %cst_16 = arith.constant dense<0.000000e+00> : vector<36x256xf32>
    %13 = tpu.matmul %12, %0, %cst_16 {dimension_numbers = #tpu.dot_dimension_numbers<[1], [0], [0], [1], [0, 0, 1, 1], [], []>} : vector<36x128xbf16>, vector<128x256xbf16>, vector<36x256xf32> -> vector<36x256xf32>
    %14 = arith.maximumf %10, %13 : vector<36x256xf32>
    %15 = arith.maximumf %7, %14 : vector<36x256xf32>
    %c0_17 = arith.constant 0 : index
    %c0_18 = arith.constant 0 : index
    %16 = vector.load %arg4[%c0_17, %c0_18] : memref<1x256xf32, #tpu.memory_space<vmem>>, vector<1x256xf32>
    %17 = vector.broadcast %16 : vector<1x256xf32> to vector<36x256xf32>
    %18 = arith.addf %15, %17 : vector<36x256xf32>
    %cst_19 = arith.constant 0.000000e+00 : f32
    %19 = vector.broadcast %cst_19 : f32 to vector<36x256xf32>
    %20 = arith.maximumf %18, %19 : vector<36x256xf32>
    %21 = arith.truncf %20 : vector<36x256xf32> to vector<36x256xbf16>
    %c0_20 = arith.constant 0 : index
    %c0_21 = arith.constant 0 : index
    %c0_22 = arith.constant 0 : index
    %22 = vector.load %arg5[%c0_20, %c0_21, %c0_22] : memref<1x36x256xbf16, #tpu.memory_space<vmem>>, vector<1x36x256xbf16>
    %23 = vector.shape_cast %22 : vector<1x36x256xbf16> to vector<36x256xbf16>
    %24 = vector.shape_cast %21 : vector<36x256xbf16> to vector<1x36x256xbf16>
    tpu.vector_store %arg5[%c0_20, %c0_21, %c0_22], %24 {strides = array<i32>} : memref<1x36x256xbf16, #tpu.memory_space<vmem>>, vector<1x36x256xbf16>,
    return
  }
  func.func @transform_0(%arg0: i32, %arg1: i32) -> (i32, i32, i32, i32) {
    %c0_i32 = arith.constant 0 : i32
    %c0_i32_0 = arith.constant 0 : i32
    %c0_i32_1 = arith.constant 0 : i32
    return %arg0, %c0_i32, %arg1, %c0_i32_0 : i32, i32, i32, i32
  }
  func.func @transform_1(%arg0: i32, %arg1: i32) -> (i32, i32) {
    %c0_i32 = arith.constant 0 : i32
    %c0_i32_0 = arith.constant 0 : i32
    %c0_i32_1 = arith.constant 0 : i32
    return %c0_i32, %c0_i32_0 : i32, i32
  }
  func.func @transform_2(%arg0: i32, %arg1: i32) -> (i32, i32) {
    %c0_i32 = arith.constant 0 : i32
    %c0_i32_0 = arith.constant 0 : i32
    %c0_i32_1 = arith.constant 0 : i32
    return %c0_i32, %c0_i32_0 : i32, i32
  }
  func.func @transform_3(%arg0: i32, %arg1: i32) -> (i32, i32, i32) {
    %c0_i32 = arith.constant 0 : i32
    %c0_i32_0 = arith.constant 0 : i32
    return %arg0, %arg1, %c0_i32 : i32, i32, i32
  }
}

module attributes {stable_mosaic.version = 11 : i64} {
  func.func @_conv_tap_pool_kernel(%arg0: i32, %arg1: i32, %arg2: memref<1x6x6x256xbf16, #tpu.memory_space<vmem>>, %arg3: memref<25x256x256xbf16, #tpu.memory_space<vmem>>, %arg4: memref<1x256xf32, #tpu.memory_space<vmem>>, %arg5: memref<1x1x1x256xbf16, #tpu.memory_space<vmem>>) attributes {dimension_semantics = [#tpu.dimension_semantics<parallel>, #tpu.dimension_semantics<arbitrary>], iteration_bounds = array<i64: 2, 1>, scalar_prefetch = 0 : i64, scratch_operands = 0 : i64, tpu.core_type = #tpu.core_type<tc>, window_params = [{transform_indices = @transform_0, window_bounds = array<i64: 1, 6, 6, 256>}, {pipeline_mode = #tpu.pipeline_mode<synchronous>, transform_indices = @transform_1, window_bounds = array<i64: 25, 256, 256>}, {pipeline_mode = #tpu.pipeline_mode<synchronous>, transform_indices = @transform_2, window_bounds = array<i64: 1, 256>}, {transform_indices = @transform_3, window_bounds = array<i64: 1, 1, 1, 256>}]} {
    %c2_i32 = arith.constant 2 : i32
    %0 = arith.muli %c2_i32, %arg1 : i32
    %cst = arith.constant 0.000000e+00 : f32
    %1 = vector.broadcast %cst : f32 to vector<2x256xf32>
    %cst_0 = arith.constant 0.000000e+00 : f32
    %2 = vector.broadcast %cst_0 : f32 to vector<2x256xf32>
    %c0_i32 = arith.constant 0 : i32
    %3 = arith.addi %0, %c0_i32 : i32
    %c0 = arith.constant 0 : index
    %4 = arith.index_cast %3 : i32 to index
    %c0_1 = arith.constant 0 : index
    %c0_2 = arith.constant 0 : index
    %5 = vector.load %arg2[%c0, %4, %c0_1, %c0_2] : memref<1x6x6x256xbf16, #tpu.memory_space<vmem>>, vector<1x1x6x256xbf16>
    %6 = vector.shape_cast %5 : vector<1x1x6x256xbf16> to vector<6x256xbf16>
    %c0_i32_3 = arith.constant 0 : i32
    %7 = arith.addi %0, %c0_i32_3 : i32
    %c1_i32 = arith.constant 1 : i32
    %8 = arith.addi %7, %c1_i32 : i32
    %c0_4 = arith.constant 0 : index
    %9 = arith.index_cast %8 : i32 to index
    %c0_5 = arith.constant 0 : index
    %c0_6 = arith.constant 0 : index
    %10 = vector.load %arg2[%c0_4, %9, %c0_5, %c0_6] : memref<1x6x6x256xbf16, #tpu.memory_space<vmem>>, vector<1x1x6x256xbf16>
    %11 = vector.shape_cast %10 : vector<1x1x6x256xbf16> to vector<6x256xbf16>
    %c0_7 = arith.constant 0 : index
    %c0_8 = arith.constant 0 : index
    %c0_9 = arith.constant 0 : index
    %12 = vector.load %arg3[%c0_7, %c0_8, %c0_9] : memref<25x256x256xbf16, #tpu.memory_space<vmem>>, vector<1x256x256xbf16>
    %13 = vector.shape_cast %12 : vector<1x256x256xbf16> to vector<256x256xbf16>
    %14 = vector.extract_strided_slice %6 {offsets = [0, 0], sizes = [2, 256], strides = [1, 1]} : vector<6x256xbf16> to vector<2x256xbf16>
    %cst_10 = arith.constant dense<0.000000e+00> : vector<2x256xf32>
    %15 = tpu.matmul %14, %13, %cst_10 {dimension_numbers = #tpu.dot_dimension_numbers<[1], [0], [0], [1], [0, 0, 1, 1], [], []>} : vector<2x256xbf16>, vector<256x256xbf16>, vector<2x256xf32> -> vector<2x256xf32>
    %16 = arith.addf %1, %15 : vector<2x256xf32>
    %17 = vector.extract_strided_slice %11 {offsets = [0, 0], sizes = [2, 256], strides = [1, 1]} : vector<6x256xbf16> to vector<2x256xbf16>
    %cst_11 = arith.constant dense<0.000000e+00> : vector<2x256xf32>
    %18 = tpu.matmul %17, %13, %cst_11 {dimension_numbers = #tpu.dot_dimension_numbers<[1], [0], [0], [1], [0, 0, 1, 1], [], []>} : vector<2x256xbf16>, vector<256x256xbf16>, vector<2x256xf32> -> vector<2x256xf32>
    %19 = arith.addf %2, %18 : vector<2x256xf32>
    %c1 = arith.constant 1 : index
    %c0_12 = arith.constant 0 : index
    %c0_13 = arith.constant 0 : index
    %20 = vector.load %arg3[%c1, %c0_12, %c0_13] : memref<25x256x256xbf16, #tpu.memory_space<vmem>>, vector<1x256x256xbf16>
    %21 = vector.shape_cast %20 : vector<1x256x256xbf16> to vector<256x256xbf16>
    %22 = vector.extract_strided_slice %6 {offsets = [1, 0], sizes = [2, 256], strides = [1, 1]} : vector<6x256xbf16> to vector<2x256xbf16>
    %cst_14 = arith.constant dense<0.000000e+00> : vector<2x256xf32>
    %23 = tpu.matmul %22, %21, %cst_14 {dimension_numbers = #tpu.dot_dimension_numbers<[1], [0], [0], [1], [0, 0, 1, 1], [], []>} : vector<2x256xbf16>, vector<256x256xbf16>, vector<2x256xf32> -> vector<2x256xf32>
    %24 = arith.addf %16, %23 : vector<2x256xf32>
    %25 = vector.extract_strided_slice %11 {offsets = [1, 0], sizes = [2, 256], strides = [1, 1]} : vector<6x256xbf16> to vector<2x256xbf16>
    %cst_15 = arith.constant dense<0.000000e+00> : vector<2x256xf32>
    %26 = tpu.matmul %25, %21, %cst_15 {dimension_numbers = #tpu.dot_dimension_numbers<[1], [0], [0], [1], [0, 0, 1, 1], [], []>} : vector<2x256xbf16>, vector<256x256xbf16>, vector<2x256xf32> -> vector<2x256xf32>
    %27 = arith.addf %19, %26 : vector<2x256xf32>
    %c2 = arith.constant 2 : index
    %c0_16 = arith.constant 0 : index
    %c0_17 = arith.constant 0 : index
    %28 = vector.load %arg3[%c2, %c0_16, %c0_17] : memref<25x256x256xbf16, #tpu.memory_space<vmem>>, vector<1x256x256xbf16>
    %29 = vector.shape_cast %28 : vector<1x256x256xbf16> to vector<256x256xbf16>
    %30 = vector.extract_strided_slice %6 {offsets = [2, 0], sizes = [2, 256], strides = [1, 1]} : vector<6x256xbf16> to vector<2x256xbf16>
    %cst_18 = arith.constant dense<0.000000e+00> : vector<2x256xf32>
    %31 = tpu.matmul %30, %29, %cst_18 {dimension_numbers = #tpu.dot_dimension_numbers<[1], [0], [0], [1], [0, 0, 1, 1], [], []>} : vector<2x256xbf16>, vector<256x256xbf16>, vector<2x256xf32> -> vector<2x256xf32>
    %32 = arith.addf %24, %31 : vector<2x256xf32>
    %33 = vector.extract_strided_slice %11 {offsets = [2, 0], sizes = [2, 256], strides = [1, 1]} : vector<6x256xbf16> to vector<2x256xbf16>
    %cst_19 = arith.constant dense<0.000000e+00> : vector<2x256xf32>
    %34 = tpu.matmul %33, %29, %cst_19 {dimension_numbers = #tpu.dot_dimension_numbers<[1], [0], [0], [1], [0, 0, 1, 1], [], []>} : vector<2x256xbf16>, vector<256x256xbf16>, vector<2x256xf32> -> vector<2x256xf32>
    %35 = arith.addf %27, %34 : vector<2x256xf32>
    %c3 = arith.constant 3 : index
    %c0_20 = arith.constant 0 : index
    %c0_21 = arith.constant 0 : index
    %36 = vector.load %arg3[%c3, %c0_20, %c0_21] : memref<25x256x256xbf16, #tpu.memory_space<vmem>>, vector<1x256x256xbf16>
    %37 = vector.shape_cast %36 : vector<1x256x256xbf16> to vector<256x256xbf16>
    %38 = vector.extract_strided_slice %6 {offsets = [3, 0], sizes = [2, 256], strides = [1, 1]} : vector<6x256xbf16> to vector<2x256xbf16>
    %cst_22 = arith.constant dense<0.000000e+00> : vector<2x256xf32>
    %39 = tpu.matmul %38, %37, %cst_22 {dimension_numbers = #tpu.dot_dimension_numbers<[1], [0], [0], [1], [0, 0, 1, 1], [], []>} : vector<2x256xbf16>, vector<256x256xbf16>, vector<2x256xf32> -> vector<2x256xf32>
    %40 = arith.addf %32, %39 : vector<2x256xf32>
    %41 = vector.extract_strided_slice %11 {offsets = [3, 0], sizes = [2, 256], strides = [1, 1]} : vector<6x256xbf16> to vector<2x256xbf16>
    %cst_23 = arith.constant dense<0.000000e+00> : vector<2x256xf32>
    %42 = tpu.matmul %41, %37, %cst_23 {dimension_numbers = #tpu.dot_dimension_numbers<[1], [0], [0], [1], [0, 0, 1, 1], [], []>} : vector<2x256xbf16>, vector<256x256xbf16>, vector<2x256xf32> -> vector<2x256xf32>
    %43 = arith.addf %35, %42 : vector<2x256xf32>
    %c4 = arith.constant 4 : index
    %c0_24 = arith.constant 0 : index
    %c0_25 = arith.constant 0 : index
    %44 = vector.load %arg3[%c4, %c0_24, %c0_25] : memref<25x256x256xbf16, #tpu.memory_space<vmem>>, vector<1x256x256xbf16>
    %45 = vector.shape_cast %44 : vector<1x256x256xbf16> to vector<256x256xbf16>
    %46 = vector.extract_strided_slice %6 {offsets = [4, 0], sizes = [2, 256], strides = [1, 1]} : vector<6x256xbf16> to vector<2x256xbf16>
    %cst_26 = arith.constant dense<0.000000e+00> : vector<2x256xf32>
    %47 = tpu.matmul %46, %45, %cst_26 {dimension_numbers = #tpu.dot_dimension_numbers<[1], [0], [0], [1], [0, 0, 1, 1], [], []>} : vector<2x256xbf16>, vector<256x256xbf16>, vector<2x256xf32> -> vector<2x256xf32>
    %48 = arith.addf %40, %47 : vector<2x256xf32>
    %49 = vector.extract_strided_slice %11 {offsets = [4, 0], sizes = [2, 256], strides = [1, 1]} : vector<6x256xbf16> to vector<2x256xbf16>
    %cst_27 = arith.constant dense<0.000000e+00> : vector<2x256xf32>
    %50 = tpu.matmul %49, %45, %cst_27 {dimension_numbers = #tpu.dot_dimension_numbers<[1], [0], [0], [1], [0, 0, 1, 1], [], []>} : vector<2x256xbf16>, vector<256x256xbf16>, vector<2x256xf32> -> vector<2x256xf32>
    %51 = arith.addf %43, %50 : vector<2x256xf32>
    %c1_i32_28 = arith.constant 1 : i32
    %52 = arith.addi %0, %c1_i32_28 : i32
    %c0_29 = arith.constant 0 : index
    %53 = arith.index_cast %52 : i32 to index
    %c0_30 = arith.constant 0 : index
    %c0_31 = arith.constant 0 : index
    %54 = vector.load %arg2[%c0_29, %53, %c0_30, %c0_31] : memref<1x6x6x256xbf16, #tpu.memory_space<vmem>>, vector<1x1x6x256xbf16>
    %55 = vector.shape_cast %54 : vector<1x1x6x256xbf16> to vector<6x256xbf16>
    %c1_i32_32 = arith.constant 1 : i32
    %56 = arith.addi %0, %c1_i32_32 : i32
    %c1_i32_33 = arith.constant 1 : i32
    %57 = arith.addi %56, %c1_i32_33 : i32
    %c0_34 = arith.constant 0 : index
    %58 = arith.index_cast %57 : i32 to index
    %c0_35 = arith.constant 0 : index
    %c0_36 = arith.constant 0 : index
    %59 = vector.load %arg2[%c0_34, %58, %c0_35, %c0_36] : memref<1x6x6x256xbf16, #tpu.memory_space<vmem>>, vector<1x1x6x256xbf16>
    %60 = vector.shape_cast %59 : vector<1x1x6x256xbf16> to vector<6x256xbf16>
    %c5 = arith.constant 5 : index
    %c0_37 = arith.constant 0 : index
    %c0_38 = arith.constant 0 : index
    %61 = vector.load %arg3[%c5, %c0_37, %c0_38] : memref<25x256x256xbf16, #tpu.memory_space<vmem>>, vector<1x256x256xbf16>
    %62 = vector.shape_cast %61 : vector<1x256x256xbf16> to vector<256x256xbf16>
    %63 = vector.extract_strided_slice %55 {offsets = [0, 0], sizes = [2, 256], strides = [1, 1]} : vector<6x256xbf16> to vector<2x256xbf16>
    %cst_39 = arith.constant dense<0.000000e+00> : vector<2x256xf32>
    %64 = tpu.matmul %63, %62, %cst_39 {dimension_numbers = #tpu.dot_dimension_numbers<[1], [0], [0], [1], [0, 0, 1, 1], [], []>} : vector<2x256xbf16>, vector<256x256xbf16>, vector<2x256xf32> -> vector<2x256xf32>
    %65 = arith.addf %48, %64 : vector<2x256xf32>
    %66 = vector.extract_strided_slice %60 {offsets = [0, 0], sizes = [2, 256], strides = [1, 1]} : vector<6x256xbf16> to vector<2x256xbf16>
    %cst_40 = arith.constant dense<0.000000e+00> : vector<2x256xf32>
    %67 = tpu.matmul %66, %62, %cst_40 {dimension_numbers = #tpu.dot_dimension_numbers<[1], [0], [0], [1], [0, 0, 1, 1], [], []>} : vector<2x256xbf16>, vector<256x256xbf16>, vector<2x256xf32> -> vector<2x256xf32>
    %68 = arith.addf %51, %67 : vector<2x256xf32>
    %c6 = arith.constant 6 : index
    %c0_41 = arith.constant 0 : index
    %c0_42 = arith.constant 0 : index
    %69 = vector.load %arg3[%c6, %c0_41, %c0_42] : memref<25x256x256xbf16, #tpu.memory_space<vmem>>, vector<1x256x256xbf16>
    %70 = vector.shape_cast %69 : vector<1x256x256xbf16> to vector<256x256xbf16>
    %71 = vector.extract_strided_slice %55 {offsets = [1, 0], sizes = [2, 256], strides = [1, 1]} : vector<6x256xbf16> to vector<2x256xbf16>
    %cst_43 = arith.constant dense<0.000000e+00> : vector<2x256xf32>
    %72 = tpu.matmul %71, %70, %cst_43 {dimension_numbers = #tpu.dot_dimension_numbers<[1], [0], [0], [1], [0, 0, 1, 1], [], []>} : vector<2x256xbf16>, vector<256x256xbf16>, vector<2x256xf32> -> vector<2x256xf32>
    %73 = arith.addf %65, %72 : vector<2x256xf32>
    %74 = vector.extract_strided_slice %60 {offsets = [1, 0], sizes = [2, 256], strides = [1, 1]} : vector<6x256xbf16> to vector<2x256xbf16>
    %cst_44 = arith.constant dense<0.000000e+00> : vector<2x256xf32>
    %75 = tpu.matmul %74, %70, %cst_44 {dimension_numbers = #tpu.dot_dimension_numbers<[1], [0], [0], [1], [0, 0, 1, 1], [], []>} : vector<2x256xbf16>, vector<256x256xbf16>, vector<2x256xf32> -> vector<2x256xf32>
    %76 = arith.addf %68, %75 : vector<2x256xf32>
    %c7 = arith.constant 7 : index
    %c0_45 = arith.constant 0 : index
    %c0_46 = arith.constant 0 : index
    %77 = vector.load %arg3[%c7, %c0_45, %c0_46] : memref<25x256x256xbf16, #tpu.memory_space<vmem>>, vector<1x256x256xbf16>
    %78 = vector.shape_cast %77 : vector<1x256x256xbf16> to vector<256x256xbf16>
    %79 = vector.extract_strided_slice %55 {offsets = [2, 0], sizes = [2, 256], strides = [1, 1]} : vector<6x256xbf16> to vector<2x256xbf16>
    %cst_47 = arith.constant dense<0.000000e+00> : vector<2x256xf32>
    %80 = tpu.matmul %79, %78, %cst_47 {dimension_numbers = #tpu.dot_dimension_numbers<[1], [0], [0], [1], [0, 0, 1, 1], [], []>} : vector<2x256xbf16>, vector<256x256xbf16>, vector<2x256xf32> -> vector<2x256xf32>
    %81 = arith.addf %73, %80 : vector<2x256xf32>
    %82 = vector.extract_strided_slice %60 {offsets = [2, 0], sizes = [2, 256], strides = [1, 1]} : vector<6x256xbf16> to vector<2x256xbf16>
    %cst_48 = arith.constant dense<0.000000e+00> : vector<2x256xf32>
    %83 = tpu.matmul %82, %78, %cst_48 {dimension_numbers = #tpu.dot_dimension_numbers<[1], [0], [0], [1], [0, 0, 1, 1], [], []>} : vector<2x256xbf16>, vector<256x256xbf16>, vector<2x256xf32> -> vector<2x256xf32>
    %84 = arith.addf %76, %83 : vector<2x256xf32>
    %c8 = arith.constant 8 : index
    %c0_49 = arith.constant 0 : index
    %c0_50 = arith.constant 0 : index
    %85 = vector.load %arg3[%c8, %c0_49, %c0_50] : memref<25x256x256xbf16, #tpu.memory_space<vmem>>, vector<1x256x256xbf16>
    %86 = vector.shape_cast %85 : vector<1x256x256xbf16> to vector<256x256xbf16>
    %87 = vector.extract_strided_slice %55 {offsets = [3, 0], sizes = [2, 256], strides = [1, 1]} : vector<6x256xbf16> to vector<2x256xbf16>
    %cst_51 = arith.constant dense<0.000000e+00> : vector<2x256xf32>
    %88 = tpu.matmul %87, %86, %cst_51 {dimension_numbers = #tpu.dot_dimension_numbers<[1], [0], [0], [1], [0, 0, 1, 1], [], []>} : vector<2x256xbf16>, vector<256x256xbf16>, vector<2x256xf32> -> vector<2x256xf32>
    %89 = arith.addf %81, %88 : vector<2x256xf32>
    %90 = vector.extract_strided_slice %60 {offsets = [3, 0], sizes = [2, 256], strides = [1, 1]} : vector<6x256xbf16> to vector<2x256xbf16>
    %cst_52 = arith.constant dense<0.000000e+00> : vector<2x256xf32>
    %91 = tpu.matmul %90, %86, %cst_52 {dimension_numbers = #tpu.dot_dimension_numbers<[1], [0], [0], [1], [0, 0, 1, 1], [], []>} : vector<2x256xbf16>, vector<256x256xbf16>, vector<2x256xf32> -> vector<2x256xf32>
    %92 = arith.addf %84, %91 : vector<2x256xf32>
    %c9 = arith.constant 9 : index
    %c0_53 = arith.constant 0 : index
    %c0_54 = arith.constant 0 : index
    %93 = vector.load %arg3[%c9, %c0_53, %c0_54] : memref<25x256x256xbf16, #tpu.memory_space<vmem>>, vector<1x256x256xbf16>
    %94 = vector.shape_cast %93 : vector<1x256x256xbf16> to vector<256x256xbf16>
    %95 = vector.extract_strided_slice %55 {offsets = [4, 0], sizes = [2, 256], strides = [1, 1]} : vector<6x256xbf16> to vector<2x256xbf16>
    %cst_55 = arith.constant dense<0.000000e+00> : vector<2x256xf32>
    %96 = tpu.matmul %95, %94, %cst_55 {dimension_numbers = #tpu.dot_dimension_numbers<[1], [0], [0], [1], [0, 0, 1, 1], [], []>} : vector<2x256xbf16>, vector<256x256xbf16>, vector<2x256xf32> -> vector<2x256xf32>
    %97 = arith.addf %89, %96 : vector<2x256xf32>
    %98 = vector.extract_strided_slice %60 {offsets = [4, 0], sizes = [2, 256], strides = [1, 1]} : vector<6x256xbf16> to vector<2x256xbf16>
    %cst_56 = arith.constant dense<0.000000e+00> : vector<2x256xf32>
    %99 = tpu.matmul %98, %94, %cst_56 {dimension_numbers = #tpu.dot_dimension_numbers<[1], [0], [0], [1], [0, 0, 1, 1], [], []>} : vector<2x256xbf16>, vector<256x256xbf16>, vector<2x256xf32> -> vector<2x256xf32>
    %100 = arith.addf %92, %99 : vector<2x256xf32>
    %c2_i32_57 = arith.constant 2 : i32
    %101 = arith.addi %0, %c2_i32_57 : i32
    %c0_58 = arith.constant 0 : index
    %102 = arith.index_cast %101 : i32 to index
    %c0_59 = arith.constant 0 : index
    %c0_60 = arith.constant 0 : index
    %103 = vector.load %arg2[%c0_58, %102, %c0_59, %c0_60] : memref<1x6x6x256xbf16, #tpu.memory_space<vmem>>, vector<1x1x6x256xbf16>
    %104 = vector.shape_cast %103 : vector<1x1x6x256xbf16> to vector<6x256xbf16>
    %c2_i32_61 = arith.constant 2 : i32
    %105 = arith.addi %0, %c2_i32_61 : i32
    %c1_i32_62 = arith.constant 1 : i32
    %106 = arith.addi %105, %c1_i32_62 : i32
    %c0_63 = arith.constant 0 : index
    %107 = arith.index_cast %106 : i32 to index
    %c0_64 = arith.constant 0 : index
    %c0_65 = arith.constant 0 : index
    %108 = vector.load %arg2[%c0_63, %107, %c0_64, %c0_65] : memref<1x6x6x256xbf16, #tpu.memory_space<vmem>>, vector<1x1x6x256xbf16>
    %109 = vector.shape_cast %108 : vector<1x1x6x256xbf16> to vector<6x256xbf16>
    %c10 = arith.constant 10 : index
    %c0_66 = arith.constant 0 : index
    %c0_67 = arith.constant 0 : index
    %110 = vector.load %arg3[%c10, %c0_66, %c0_67] : memref<25x256x256xbf16, #tpu.memory_space<vmem>>, vector<1x256x256xbf16>
    %111 = vector.shape_cast %110 : vector<1x256x256xbf16> to vector<256x256xbf16>
    %112 = vector.extract_strided_slice %104 {offsets = [0, 0], sizes = [2, 256], strides = [1, 1]} : vector<6x256xbf16> to vector<2x256xbf16>
    %cst_68 = arith.constant dense<0.000000e+00> : vector<2x256xf32>
    %113 = tpu.matmul %112, %111, %cst_68 {dimension_numbers = #tpu.dot_dimension_numbers<[1], [0], [0], [1], [0, 0, 1, 1], [], []>} : vector<2x256xbf16>, vector<256x256xbf16>, vector<2x256xf32> -> vector<2x256xf32>
    %114 = arith.addf %97, %113 : vector<2x256xf32>
    %115 = vector.extract_strided_slice %109 {offsets = [0, 0], sizes = [2, 256], strides = [1, 1]} : vector<6x256xbf16> to vector<2x256xbf16>
    %cst_69 = arith.constant dense<0.000000e+00> : vector<2x256xf32>
    %116 = tpu.matmul %115, %111, %cst_69 {dimension_numbers = #tpu.dot_dimension_numbers<[1], [0], [0], [1], [0, 0, 1, 1], [], []>} : vector<2x256xbf16>, vector<256x256xbf16>, vector<2x256xf32> -> vector<2x256xf32>
    %117 = arith.addf %100, %116 : vector<2x256xf32>
    %c11 = arith.constant 11 : index
    %c0_70 = arith.constant 0 : index
    %c0_71 = arith.constant 0 : index
    %118 = vector.load %arg3[%c11, %c0_70, %c0_71] : memref<25x256x256xbf16, #tpu.memory_space<vmem>>, vector<1x256x256xbf16>
    %119 = vector.shape_cast %118 : vector<1x256x256xbf16> to vector<256x256xbf16>
    %120 = vector.extract_strided_slice %104 {offsets = [1, 0], sizes = [2, 256], strides = [1, 1]} : vector<6x256xbf16> to vector<2x256xbf16>
    %cst_72 = arith.constant dense<0.000000e+00> : vector<2x256xf32>
    %121 = tpu.matmul %120, %119, %cst_72 {dimension_numbers = #tpu.dot_dimension_numbers<[1], [0], [0], [1], [0, 0, 1, 1], [], []>} : vector<2x256xbf16>, vector<256x256xbf16>, vector<2x256xf32> -> vector<2x256xf32>
    %122 = arith.addf %114, %121 : vector<2x256xf32>
    %123 = vector.extract_strided_slice %109 {offsets = [1, 0], sizes = [2, 256], strides = [1, 1]} : vector<6x256xbf16> to vector<2x256xbf16>
    %cst_73 = arith.constant dense<0.000000e+00> : vector<2x256xf32>
    %124 = tpu.matmul %123, %119, %cst_73 {dimension_numbers = #tpu.dot_dimension_numbers<[1], [0], [0], [1], [0, 0, 1, 1], [], []>} : vector<2x256xbf16>, vector<256x256xbf16>, vector<2x256xf32> -> vector<2x256xf32>
    %125 = arith.addf %117, %124 : vector<2x256xf32>
    %c12 = arith.constant 12 : index
    %c0_74 = arith.constant 0 : index
    %c0_75 = arith.constant 0 : index
    %126 = vector.load %arg3[%c12, %c0_74, %c0_75] : memref<25x256x256xbf16, #tpu.memory_space<vmem>>, vector<1x256x256xbf16>
    %127 = vector.shape_cast %126 : vector<1x256x256xbf16> to vector<256x256xbf16>
    %128 = vector.extract_strided_slice %104 {offsets = [2, 0], sizes = [2, 256], strides = [1, 1]} : vector<6x256xbf16> to vector<2x256xbf16>
    %cst_76 = arith.constant dense<0.000000e+00> : vector<2x256xf32>
    %129 = tpu.matmul %128, %127, %cst_76 {dimension_numbers = #tpu.dot_dimension_numbers<[1], [0], [0], [1], [0, 0, 1, 1], [], []>} : vector<2x256xbf16>, vector<256x256xbf16>, vector<2x256xf32> -> vector<2x256xf32>
    %130 = arith.addf %122, %129 : vector<2x256xf32>
    %131 = vector.extract_strided_slice %109 {offsets = [2, 0], sizes = [2, 256], strides = [1, 1]} : vector<6x256xbf16> to vector<2x256xbf16>
    %cst_77 = arith.constant dense<0.000000e+00> : vector<2x256xf32>
    %132 = tpu.matmul %131, %127, %cst_77 {dimension_numbers = #tpu.dot_dimension_numbers<[1], [0], [0], [1], [0, 0, 1, 1], [], []>} : vector<2x256xbf16>, vector<256x256xbf16>, vector<2x256xf32> -> vector<2x256xf32>
    %133 = arith.addf %125, %132 : vector<2x256xf32>
    %c13 = arith.constant 13 : index
    %c0_78 = arith.constant 0 : index
    %c0_79 = arith.constant 0 : index
    %134 = vector.load %arg3[%c13, %c0_78, %c0_79] : memref<25x256x256xbf16, #tpu.memory_space<vmem>>, vector<1x256x256xbf16>
    %135 = vector.shape_cast %134 : vector<1x256x256xbf16> to vector<256x256xbf16>
    %136 = vector.extract_strided_slice %104 {offsets = [3, 0], sizes = [2, 256], strides = [1, 1]} : vector<6x256xbf16> to vector<2x256xbf16>
    %cst_80 = arith.constant dense<0.000000e+00> : vector<2x256xf32>
    %137 = tpu.matmul %136, %135, %cst_80 {dimension_numbers = #tpu.dot_dimension_numbers<[1], [0], [0], [1], [0, 0, 1, 1], [], []>} : vector<2x256xbf16>, vector<256x256xbf16>, vector<2x256xf32> -> vector<2x256xf32>
    %138 = arith.addf %130, %137 : vector<2x256xf32>
    %139 = vector.extract_strided_slice %109 {offsets = [3, 0], sizes = [2, 256], strides = [1, 1]} : vector<6x256xbf16> to vector<2x256xbf16>
    %cst_81 = arith.constant dense<0.000000e+00> : vector<2x256xf32>
    %140 = tpu.matmul %139, %135, %cst_81 {dimension_numbers = #tpu.dot_dimension_numbers<[1], [0], [0], [1], [0, 0, 1, 1], [], []>} : vector<2x256xbf16>, vector<256x256xbf16>, vector<2x256xf32> -> vector<2x256xf32>
    %141 = arith.addf %133, %140 : vector<2x256xf32>
    %c14 = arith.constant 14 : index
    %c0_82 = arith.constant 0 : index
    %c0_83 = arith.constant 0 : index
    %142 = vector.load %arg3[%c14, %c0_82, %c0_83] : memref<25x256x256xbf16, #tpu.memory_space<vmem>>, vector<1x256x256xbf16>
    %143 = vector.shape_cast %142 : vector<1x256x256xbf16> to vector<256x256xbf16>
    %144 = vector.extract_strided_slice %104 {offsets = [4, 0], sizes = [2, 256], strides = [1, 1]} : vector<6x256xbf16> to vector<2x256xbf16>
    %cst_84 = arith.constant dense<0.000000e+00> : vector<2x256xf32>
    %145 = tpu.matmul %144, %143, %cst_84 {dimension_numbers = #tpu.dot_dimension_numbers<[1], [0], [0], [1], [0, 0, 1, 1], [], []>} : vector<2x256xbf16>, vector<256x256xbf16>, vector<2x256xf32> -> vector<2x256xf32>
    %146 = arith.addf %138, %145 : vector<2x256xf32>
    %147 = vector.extract_strided_slice %109 {offsets = [4, 0], sizes = [2, 256], strides = [1, 1]} : vector<6x256xbf16> to vector<2x256xbf16>
    %cst_85 = arith.constant dense<0.000000e+00> : vector<2x256xf32>
    %148 = tpu.matmul %147, %143, %cst_85 {dimension_numbers = #tpu.dot_dimension_numbers<[1], [0], [0], [1], [0, 0, 1, 1], [], []>} : vector<2x256xbf16>, vector<256x256xbf16>, vector<2x256xf32> -> vector<2x256xf32>
    %149 = arith.addf %141, %148 : vector<2x256xf32>
    %c3_i32 = arith.constant 3 : i32
    %150 = arith.addi %0, %c3_i32 : i32
    %c0_86 = arith.constant 0 : index
    %151 = arith.index_cast %150 : i32 to index
    %c0_87 = arith.constant 0 : index
    %c0_88 = arith.constant 0 : index
    %152 = vector.load %arg2[%c0_86, %151, %c0_87, %c0_88] : memref<1x6x6x256xbf16, #tpu.memory_space<vmem>>, vector<1x1x6x256xbf16>
    %153 = vector.shape_cast %152 : vector<1x1x6x256xbf16> to vector<6x256xbf16>
    %c3_i32_89 = arith.constant 3 : i32
    %154 = arith.addi %0, %c3_i32_89 : i32
    %c1_i32_90 = arith.constant 1 : i32
    %155 = arith.addi %154, %c1_i32_90 : i32
    %c0_91 = arith.constant 0 : index
    %156 = arith.index_cast %155 : i32 to index
    %c0_92 = arith.constant 0 : index
    %c0_93 = arith.constant 0 : index
    %157 = vector.load %arg2[%c0_91, %156, %c0_92, %c0_93] : memref<1x6x6x256xbf16, #tpu.memory_space<vmem>>, vector<1x1x6x256xbf16>
    %158 = vector.shape_cast %157 : vector<1x1x6x256xbf16> to vector<6x256xbf16>
    %c15 = arith.constant 15 : index
    %c0_94 = arith.constant 0 : index
    %c0_95 = arith.constant 0 : index
    %159 = vector.load %arg3[%c15, %c0_94, %c0_95] : memref<25x256x256xbf16, #tpu.memory_space<vmem>>, vector<1x256x256xbf16>
    %160 = vector.shape_cast %159 : vector<1x256x256xbf16> to vector<256x256xbf16>
    %161 = vector.extract_strided_slice %153 {offsets = [0, 0], sizes = [2, 256], strides = [1, 1]} : vector<6x256xbf16> to vector<2x256xbf16>
    %cst_96 = arith.constant dense<0.000000e+00> : vector<2x256xf32>
    %162 = tpu.matmul %161, %160, %cst_96 {dimension_numbers = #tpu.dot_dimension_numbers<[1], [0], [0], [1], [0, 0, 1, 1], [], []>} : vector<2x256xbf16>, vector<256x256xbf16>, vector<2x256xf32> -> vector<2x256xf32>
    %163 = arith.addf %146, %162 : vector<2x256xf32>
    %164 = vector.extract_strided_slice %158 {offsets = [0, 0], sizes = [2, 256], strides = [1, 1]} : vector<6x256xbf16> to vector<2x256xbf16>
    %cst_97 = arith.constant dense<0.000000e+00> : vector<2x256xf32>
    %165 = tpu.matmul %164, %160, %cst_97 {dimension_numbers = #tpu.dot_dimension_numbers<[1], [0], [0], [1], [0, 0, 1, 1], [], []>} : vector<2x256xbf16>, vector<256x256xbf16>, vector<2x256xf32> -> vector<2x256xf32>
    %166 = arith.addf %149, %165 : vector<2x256xf32>
    %c16 = arith.constant 16 : index
    %c0_98 = arith.constant 0 : index
    %c0_99 = arith.constant 0 : index
    %167 = vector.load %arg3[%c16, %c0_98, %c0_99] : memref<25x256x256xbf16, #tpu.memory_space<vmem>>, vector<1x256x256xbf16>
    %168 = vector.shape_cast %167 : vector<1x256x256xbf16> to vector<256x256xbf16>
    %169 = vector.extract_strided_slice %153 {offsets = [1, 0], sizes = [2, 256], strides = [1, 1]} : vector<6x256xbf16> to vector<2x256xbf16>
    %cst_100 = arith.constant dense<0.000000e+00> : vector<2x256xf32>
    %170 = tpu.matmul %169, %168, %cst_100 {dimension_numbers = #tpu.dot_dimension_numbers<[1], [0], [0], [1], [0, 0, 1, 1], [], []>} : vector<2x256xbf16>, vector<256x256xbf16>, vector<2x256xf32> -> vector<2x256xf32>
    %171 = arith.addf %163, %170 : vector<2x256xf32>
    %172 = vector.extract_strided_slice %158 {offsets = [1, 0], sizes = [2, 256], strides = [1, 1]} : vector<6x256xbf16> to vector<2x256xbf16>
    %cst_101 = arith.constant dense<0.000000e+00> : vector<2x256xf32>
    %173 = tpu.matmul %172, %168, %cst_101 {dimension_numbers = #tpu.dot_dimension_numbers<[1], [0], [0], [1], [0, 0, 1, 1], [], []>} : vector<2x256xbf16>, vector<256x256xbf16>, vector<2x256xf32> -> vector<2x256xf32>
    %174 = arith.addf %166, %173 : vector<2x256xf32>
    %c17 = arith.constant 17 : index
    %c0_102 = arith.constant 0 : index
    %c0_103 = arith.constant 0 : index
    %175 = vector.load %arg3[%c17, %c0_102, %c0_103] : memref<25x256x256xbf16, #tpu.memory_space<vmem>>, vector<1x256x256xbf16>
    %176 = vector.shape_cast %175 : vector<1x256x256xbf16> to vector<256x256xbf16>
    %177 = vector.extract_strided_slice %153 {offsets = [2, 0], sizes = [2, 256], strides = [1, 1]} : vector<6x256xbf16> to vector<2x256xbf16>
    %cst_104 = arith.constant dense<0.000000e+00> : vector<2x256xf32>
    %178 = tpu.matmul %177, %176, %cst_104 {dimension_numbers = #tpu.dot_dimension_numbers<[1], [0], [0], [1], [0, 0, 1, 1], [], []>} : vector<2x256xbf16>, vector<256x256xbf16>, vector<2x256xf32> -> vector<2x256xf32>
    %179 = arith.addf %171, %178 : vector<2x256xf32>
    %180 = vector.extract_strided_slice %158 {offsets = [2, 0], sizes = [2, 256], strides = [1, 1]} : vector<6x256xbf16> to vector<2x256xbf16>
    %cst_105 = arith.constant dense<0.000000e+00> : vector<2x256xf32>
    %181 = tpu.matmul %180, %176, %cst_105 {dimension_numbers = #tpu.dot_dimension_numbers<[1], [0], [0], [1], [0, 0, 1, 1], [], []>} : vector<2x256xbf16>, vector<256x256xbf16>, vector<2x256xf32> -> vector<2x256xf32>
    %182 = arith.addf %174, %181 : vector<2x256xf32>
    %c18 = arith.constant 18 : index
    %c0_106 = arith.constant 0 : index
    %c0_107 = arith.constant 0 : index
    %183 = vector.load %arg3[%c18, %c0_106, %c0_107] : memref<25x256x256xbf16, #tpu.memory_space<vmem>>, vector<1x256x256xbf16>
    %184 = vector.shape_cast %183 : vector<1x256x256xbf16> to vector<256x256xbf16>
    %185 = vector.extract_strided_slice %153 {offsets = [3, 0], sizes = [2, 256], strides = [1, 1]} : vector<6x256xbf16> to vector<2x256xbf16>
    %cst_108 = arith.constant dense<0.000000e+00> : vector<2x256xf32>
    %186 = tpu.matmul %185, %184, %cst_108 {dimension_numbers = #tpu.dot_dimension_numbers<[1], [0], [0], [1], [0, 0, 1, 1], [], []>} : vector<2x256xbf16>, vector<256x256xbf16>, vector<2x256xf32> -> vector<2x256xf32>
    %187 = arith.addf %179, %186 : vector<2x256xf32>
    %188 = vector.extract_strided_slice %158 {offsets = [3, 0], sizes = [2, 256], strides = [1, 1]} : vector<6x256xbf16> to vector<2x256xbf16>
    %cst_109 = arith.constant dense<0.000000e+00> : vector<2x256xf32>
    %189 = tpu.matmul %188, %184, %cst_109 {dimension_numbers = #tpu.dot_dimension_numbers<[1], [0], [0], [1], [0, 0, 1, 1], [], []>} : vector<2x256xbf16>, vector<256x256xbf16>, vector<2x256xf32> -> vector<2x256xf32>
    %190 = arith.addf %182, %189 : vector<2x256xf32>
    %c19 = arith.constant 19 : index
    %c0_110 = arith.constant 0 : index
    %c0_111 = arith.constant 0 : index
    %191 = vector.load %arg3[%c19, %c0_110, %c0_111] : memref<25x256x256xbf16, #tpu.memory_space<vmem>>, vector<1x256x256xbf16>
    %192 = vector.shape_cast %191 : vector<1x256x256xbf16> to vector<256x256xbf16>
    %193 = vector.extract_strided_slice %153 {offsets = [4, 0], sizes = [2, 256], strides = [1, 1]} : vector<6x256xbf16> to vector<2x256xbf16>
    %cst_112 = arith.constant dense<0.000000e+00> : vector<2x256xf32>
    %194 = tpu.matmul %193, %192, %cst_112 {dimension_numbers = #tpu.dot_dimension_numbers<[1], [0], [0], [1], [0, 0, 1, 1], [], []>} : vector<2x256xbf16>, vector<256x256xbf16>, vector<2x256xf32> -> vector<2x256xf32>
    %195 = arith.addf %187, %194 : vector<2x256xf32>
    %196 = vector.extract_strided_slice %158 {offsets = [4, 0], sizes = [2, 256], strides = [1, 1]} : vector<6x256xbf16> to vector<2x256xbf16>
    %cst_113 = arith.constant dense<0.000000e+00> : vector<2x256xf32>
    %197 = tpu.matmul %196, %192, %cst_113 {dimension_numbers = #tpu.dot_dimension_numbers<[1], [0], [0], [1], [0, 0, 1, 1], [], []>} : vector<2x256xbf16>, vector<256x256xbf16>, vector<2x256xf32> -> vector<2x256xf32>
    %198 = arith.addf %190, %197 : vector<2x256xf32>
    %c4_i32 = arith.constant 4 : i32
    %199 = arith.addi %0, %c4_i32 : i32
    %c0_114 = arith.constant 0 : index
    %200 = arith.index_cast %199 : i32 to index
    %c0_115 = arith.constant 0 : index
    %c0_116 = arith.constant 0 : index
    %201 = vector.load %arg2[%c0_114, %200, %c0_115, %c0_116] : memref<1x6x6x256xbf16, #tpu.memory_space<vmem>>, vector<1x1x6x256xbf16>
    %202 = vector.shape_cast %201 : vector<1x1x6x256xbf16> to vector<6x256xbf16>
    %c4_i32_117 = arith.constant 4 : i32
    %203 = arith.addi %0, %c4_i32_117 : i32
    %c1_i32_118 = arith.constant 1 : i32
    %204 = arith.addi %203, %c1_i32_118 : i32
    %c0_119 = arith.constant 0 : index
    %205 = arith.index_cast %204 : i32 to index
    %c0_120 = arith.constant 0 : index
    %c0_121 = arith.constant 0 : index
    %206 = vector.load %arg2[%c0_119, %205, %c0_120, %c0_121] : memref<1x6x6x256xbf16, #tpu.memory_space<vmem>>, vector<1x1x6x256xbf16>
    %207 = vector.shape_cast %206 : vector<1x1x6x256xbf16> to vector<6x256xbf16>
    %c20 = arith.constant 20 : index
    %c0_122 = arith.constant 0 : index
    %c0_123 = arith.constant 0 : index
    %208 = vector.load %arg3[%c20, %c0_122, %c0_123] : memref<25x256x256xbf16, #tpu.memory_space<vmem>>, vector<1x256x256xbf16>
    %209 = vector.shape_cast %208 : vector<1x256x256xbf16> to vector<256x256xbf16>
    %210 = vector.extract_strided_slice %202 {offsets = [0, 0], sizes = [2, 256], strides = [1, 1]} : vector<6x256xbf16> to vector<2x256xbf16>
    %cst_124 = arith.constant dense<0.000000e+00> : vector<2x256xf32>
    %211 = tpu.matmul %210, %209, %cst_124 {dimension_numbers = #tpu.dot_dimension_numbers<[1], [0], [0], [1], [0, 0, 1, 1], [], []>} : vector<2x256xbf16>, vector<256x256xbf16>, vector<2x256xf32> -> vector<2x256xf32>
    %212 = arith.addf %195, %211 : vector<2x256xf32>
    %213 = vector.extract_strided_slice %207 {offsets = [0, 0], sizes = [2, 256], strides = [1, 1]} : vector<6x256xbf16> to vector<2x256xbf16>
    %cst_125 = arith.constant dense<0.000000e+00> : vector<2x256xf32>
    %214 = tpu.matmul %213, %209, %cst_125 {dimension_numbers = #tpu.dot_dimension_numbers<[1], [0], [0], [1], [0, 0, 1, 1], [], []>} : vector<2x256xbf16>, vector<256x256xbf16>, vector<2x256xf32> -> vector<2x256xf32>
    %215 = arith.addf %198, %214 : vector<2x256xf32>
    %c21 = arith.constant 21 : index
    %c0_126 = arith.constant 0 : index
    %c0_127 = arith.constant 0 : index
    %216 = vector.load %arg3[%c21, %c0_126, %c0_127] : memref<25x256x256xbf16, #tpu.memory_space<vmem>>, vector<1x256x256xbf16>
    %217 = vector.shape_cast %216 : vector<1x256x256xbf16> to vector<256x256xbf16>
    %218 = vector.extract_strided_slice %202 {offsets = [1, 0], sizes = [2, 256], strides = [1, 1]} : vector<6x256xbf16> to vector<2x256xbf16>
    %cst_128 = arith.constant dense<0.000000e+00> : vector<2x256xf32>
    %219 = tpu.matmul %218, %217, %cst_128 {dimension_numbers = #tpu.dot_dimension_numbers<[1], [0], [0], [1], [0, 0, 1, 1], [], []>} : vector<2x256xbf16>, vector<256x256xbf16>, vector<2x256xf32> -> vector<2x256xf32>
    %220 = arith.addf %212, %219 : vector<2x256xf32>
    %221 = vector.extract_strided_slice %207 {offsets = [1, 0], sizes = [2, 256], strides = [1, 1]} : vector<6x256xbf16> to vector<2x256xbf16>
    %cst_129 = arith.constant dense<0.000000e+00> : vector<2x256xf32>
    %222 = tpu.matmul %221, %217, %cst_129 {dimension_numbers = #tpu.dot_dimension_numbers<[1], [0], [0], [1], [0, 0, 1, 1], [], []>} : vector<2x256xbf16>, vector<256x256xbf16>, vector<2x256xf32> -> vector<2x256xf32>
    %223 = arith.addf %215, %222 : vector<2x256xf32>
    %c22 = arith.constant 22 : index
    %c0_130 = arith.constant 0 : index
    %c0_131 = arith.constant 0 : index
    %224 = vector.load %arg3[%c22, %c0_130, %c0_131] : memref<25x256x256xbf16, #tpu.memory_space<vmem>>, vector<1x256x256xbf16>
    %225 = vector.shape_cast %224 : vector<1x256x256xbf16> to vector<256x256xbf16>
    %226 = vector.extract_strided_slice %202 {offsets = [2, 0], sizes = [2, 256], strides = [1, 1]} : vector<6x256xbf16> to vector<2x256xbf16>
    %cst_132 = arith.constant dense<0.000000e+00> : vector<2x256xf32>
    %227 = tpu.matmul %226, %225, %cst_132 {dimension_numbers = #tpu.dot_dimension_numbers<[1], [0], [0], [1], [0, 0, 1, 1], [], []>} : vector<2x256xbf16>, vector<256x256xbf16>, vector<2x256xf32> -> vector<2x256xf32>
    %228 = arith.addf %220, %227 : vector<2x256xf32>
    %229 = vector.extract_strided_slice %207 {offsets = [2, 0], sizes = [2, 256], strides = [1, 1]} : vector<6x256xbf16> to vector<2x256xbf16>
    %cst_133 = arith.constant dense<0.000000e+00> : vector<2x256xf32>
    %230 = tpu.matmul %229, %225, %cst_133 {dimension_numbers = #tpu.dot_dimension_numbers<[1], [0], [0], [1], [0, 0, 1, 1], [], []>} : vector<2x256xbf16>, vector<256x256xbf16>, vector<2x256xf32> -> vector<2x256xf32>
    %231 = arith.addf %223, %230 : vector<2x256xf32>
    %c23 = arith.constant 23 : index
    %c0_134 = arith.constant 0 : index
    %c0_135 = arith.constant 0 : index
    %232 = vector.load %arg3[%c23, %c0_134, %c0_135] : memref<25x256x256xbf16, #tpu.memory_space<vmem>>, vector<1x256x256xbf16>
    %233 = vector.shape_cast %232 : vector<1x256x256xbf16> to vector<256x256xbf16>
    %234 = vector.extract_strided_slice %202 {offsets = [3, 0], sizes = [2, 256], strides = [1, 1]} : vector<6x256xbf16> to vector<2x256xbf16>
    %cst_136 = arith.constant dense<0.000000e+00> : vector<2x256xf32>
    %235 = tpu.matmul %234, %233, %cst_136 {dimension_numbers = #tpu.dot_dimension_numbers<[1], [0], [0], [1], [0, 0, 1, 1], [], []>} : vector<2x256xbf16>, vector<256x256xbf16>, vector<2x256xf32> -> vector<2x256xf32>
    %236 = arith.addf %228, %235 : vector<2x256xf32>
    %237 = vector.extract_strided_slice %207 {offsets = [3, 0], sizes = [2, 256], strides = [1, 1]} : vector<6x256xbf16> to vector<2x256xbf16>
    %cst_137 = arith.constant dense<0.000000e+00> : vector<2x256xf32>
    %238 = tpu.matmul %237, %233, %cst_137 {dimension_numbers = #tpu.dot_dimension_numbers<[1], [0], [0], [1], [0, 0, 1, 1], [], []>} : vector<2x256xbf16>, vector<256x256xbf16>, vector<2x256xf32> -> vector<2x256xf32>
    %239 = arith.addf %231, %238 : vector<2x256xf32>
    %c24 = arith.constant 24 : index
    %c0_138 = arith.constant 0 : index
    %c0_139 = arith.constant 0 : index
    %240 = vector.load %arg3[%c24, %c0_138, %c0_139] : memref<25x256x256xbf16, #tpu.memory_space<vmem>>, vector<1x256x256xbf16>
    %241 = vector.shape_cast %240 : vector<1x256x256xbf16> to vector<256x256xbf16>
    %242 = vector.extract_strided_slice %202 {offsets = [4, 0], sizes = [2, 256], strides = [1, 1]} : vector<6x256xbf16> to vector<2x256xbf16>
    %cst_140 = arith.constant dense<0.000000e+00> : vector<2x256xf32>
    %243 = tpu.matmul %242, %241, %cst_140 {dimension_numbers = #tpu.dot_dimension_numbers<[1], [0], [0], [1], [0, 0, 1, 1], [], []>} : vector<2x256xbf16>, vector<256x256xbf16>, vector<2x256xf32> -> vector<2x256xf32>
    %244 = arith.addf %236, %243 : vector<2x256xf32>
    %245 = vector.extract_strided_slice %207 {offsets = [4, 0], sizes = [2, 256], strides = [1, 1]} : vector<6x256xbf16> to vector<2x256xbf16>
    %cst_141 = arith.constant dense<0.000000e+00> : vector<2x256xf32>
    %246 = tpu.matmul %245, %241, %cst_141 {dimension_numbers = #tpu.dot_dimension_numbers<[1], [0], [0], [1], [0, 0, 1, 1], [], []>} : vector<2x256xbf16>, vector<256x256xbf16>, vector<2x256xf32> -> vector<2x256xf32>
    %247 = arith.addf %239, %246 : vector<2x256xf32>
    %248 = arith.maximumf %244, %247 : vector<2x256xf32>
    %249 = vector.extract_strided_slice %248 {offsets = [0, 0], sizes = [1, 256], strides = [1, 1]} : vector<2x256xf32> to vector<1x256xf32>
    %250 = vector.extract_strided_slice %248 {offsets = [1, 0], sizes = [1, 256], strides = [1, 1]} : vector<2x256xf32> to vector<1x256xf32>
    %251 = arith.maximumf %249, %250 : vector<1x256xf32>
    %c0_142 = arith.constant 0 : index
    %c0_143 = arith.constant 0 : index
    %252 = vector.load %arg4[%c0_142, %c0_143] : memref<1x256xf32, #tpu.memory_space<vmem>>, vector<1x256xf32>
    %253 = arith.addf %251, %252 : vector<1x256xf32>
    %cst_144 = arith.constant 0.000000e+00 : f32
    %254 = vector.broadcast %cst_144 : f32 to vector<1x256xf32>
    %255 = arith.maximumf %253, %254 : vector<1x256xf32>
    %256 = arith.truncf %255 : vector<1x256xf32> to vector<1x256xbf16>
    %c0_145 = arith.constant 0 : index
    %c0_146 = arith.constant 0 : index
    %c0_147 = arith.constant 0 : index
    %c0_148 = arith.constant 0 : index
    %257 = vector.load %arg5[%c0_145, %c0_146, %c0_147, %c0_148] : memref<1x1x1x256xbf16, #tpu.memory_space<vmem>>, vector<1x1x1x256xbf16>
    %258 = vector.shape_cast %257 : vector<1x1x1x256xbf16> to vector<1x256xbf16>
    %259 = vector.shape_cast %256 : vector<1x256xbf16> to vector<1x1x1x256xbf16>
    tpu.vector_store %arg5[%c0_145, %c0_146, %c0_147, %c0_148], %259 {strides = array<i32>} : memref<1x1x1x256xbf16, #tpu.memory_space<vmem>>, vector<1x1x1x256xbf16>,
    return
  }
  func.func @transform_0(%arg0: i32, %arg1: i32) -> (i32, i32, i32, i32) {
    %c0_i32 = arith.constant 0 : i32
    %c0_i32_0 = arith.constant 0 : i32
    %c0_i32_1 = arith.constant 0 : i32
    %c0_i32_2 = arith.constant 0 : i32
    return %arg0, %c0_i32, %c0_i32_0, %c0_i32_1 : i32, i32, i32, i32
  }
  func.func @transform_1(%arg0: i32, %arg1: i32) -> (i32, i32, i32) {
    %c0_i32 = arith.constant 0 : i32
    %c0_i32_0 = arith.constant 0 : i32
    %c0_i32_1 = arith.constant 0 : i32
    %c0_i32_2 = arith.constant 0 : i32
    return %c0_i32, %c0_i32_0, %c0_i32_1 : i32, i32, i32
  }
  func.func @transform_2(%arg0: i32, %arg1: i32) -> (i32, i32) {
    %c0_i32 = arith.constant 0 : i32
    %c0_i32_0 = arith.constant 0 : i32
    %c0_i32_1 = arith.constant 0 : i32
    return %c0_i32, %c0_i32_0 : i32, i32
  }
  func.func @transform_3(%arg0: i32, %arg1: i32) -> (i32, i32, i32, i32) {
    %c0_i32 = arith.constant 0 : i32
    %c0_i32_0 = arith.constant 0 : i32
    %c0_i32_1 = arith.constant 0 : i32
    return %arg0, %arg1, %c0_i32, %c0_i32_0 : i32, i32, i32, i32
  }
}

module attributes {stable_mosaic.version = 11 : i64} {
  func.func @_fc_tail_kernel(%arg0: i32, %arg1: memref<2x256xbf16, #tpu.memory_space<vmem>>, %arg2: memref<2x128xbf16, #tpu.memory_space<vmem>>, %arg3: memref<256x256xbf16, #tpu.memory_space<vmem>>, %arg4: memref<1x256xf32, #tpu.memory_space<vmem>>, %arg5: memref<256x2xbf16, #tpu.memory_space<vmem>>, %arg6: memref<1x2xf32, #tpu.memory_space<vmem>>, %arg7: memref<128x512xbf16, #tpu.memory_space<vmem>>, %arg8: memref<1x512xf32, #tpu.memory_space<vmem>>, %arg9: memref<2x768xbf16, #tpu.memory_space<vmem>>, %arg10: memref<512x768xbf16, #tpu.memory_space<vmem>>, %arg11: memref<1x768xf32, #tpu.memory_space<vmem>>, %arg12: memref<768x12xbf16, #tpu.memory_space<vmem>>, %arg13: memref<1x12xf32, #tpu.memory_space<vmem>>, %arg14: memref<2x12xf32, #tpu.memory_space<vmem>>) attributes {dimension_semantics = [#tpu.dimension_semantics<arbitrary>], iteration_bounds = array<i64: 1>, scalar_prefetch = 0 : i64, scratch_operands = 0 : i64, tpu.core_type = #tpu.core_type<tc>, window_params = [{pipeline_mode = #tpu.pipeline_mode<synchronous>, transform_indices = @transform_0, window_bounds = array<i64: 2, 256>}, {pipeline_mode = #tpu.pipeline_mode<synchronous>, transform_indices = @transform_1, window_bounds = array<i64: 2, 128>}, {pipeline_mode = #tpu.pipeline_mode<synchronous>, transform_indices = @transform_2, window_bounds = array<i64: 256, 256>}, {pipeline_mode = #tpu.pipeline_mode<synchronous>, transform_indices = @transform_3, window_bounds = array<i64: 1, 256>}, {pipeline_mode = #tpu.pipeline_mode<synchronous>, transform_indices = @transform_4, window_bounds = array<i64: 256, 2>}, {pipeline_mode = #tpu.pipeline_mode<synchronous>, transform_indices = @transform_5, window_bounds = array<i64: 1, 2>}, {pipeline_mode = #tpu.pipeline_mode<synchronous>, transform_indices = @transform_6, window_bounds = array<i64: 128, 512>}, {pipeline_mode = #tpu.pipeline_mode<synchronous>, transform_indices = @transform_7, window_bounds = array<i64: 1, 512>}, {pipeline_mode = #tpu.pipeline_mode<synchronous>, transform_indices = @transform_8, window_bounds = array<i64: 2, 768>}, {pipeline_mode = #tpu.pipeline_mode<synchronous>, transform_indices = @transform_9, window_bounds = array<i64: 512, 768>}, {pipeline_mode = #tpu.pipeline_mode<synchronous>, transform_indices = @transform_10, window_bounds = array<i64: 1, 768>}, {pipeline_mode = #tpu.pipeline_mode<synchronous>, transform_indices = @transform_11, window_bounds = array<i64: 768, 12>}, {pipeline_mode = #tpu.pipeline_mode<synchronous>, transform_indices = @transform_12, window_bounds = array<i64: 1, 12>}, {pipeline_mode = #tpu.pipeline_mode<synchronous>, transform_indices = @transform_13, window_bounds = array<i64: 2, 12>}]} {
    %c0 = arith.constant 0 : index
    %c0_0 = arith.constant 0 : index
    %0 = vector.load %arg1[%c0, %c0_0] : memref<2x256xbf16, #tpu.memory_space<vmem>>, vector<2x256xbf16>
    %c0_1 = arith.constant 0 : index
    %c0_2 = arith.constant 0 : index
    %1 = vector.load %arg3[%c0_1, %c0_2] : memref<256x256xbf16, #tpu.memory_space<vmem>>, vector<256x256xbf16>
    %cst = arith.constant dense<0.000000e+00> : vector<2x256xf32>
    %2 = tpu.matmul %0, %1, %cst {dimension_numbers = #tpu.dot_dimension_numbers<[1], [0], [0], [1], [0, 0, 1, 1], [], []>} : vector<2x256xbf16>, vector<256x256xbf16>, vector<2x256xf32> -> vector<2x256xf32>
    %c0_3 = arith.constant 0 : index
    %c0_4 = arith.constant 0 : index
    %3 = vector.load %arg4[%c0_3, %c0_4] : memref<1x256xf32, #tpu.memory_space<vmem>>, vector<1x256xf32>
    %4 = vector.broadcast %3 : vector<1x256xf32> to vector<2x256xf32>
    %5 = arith.addf %2, %4 : vector<2x256xf32>
    %cst_5 = arith.constant 0.000000e+00 : f32
    %6 = vector.broadcast %cst_5 : f32 to vector<2x256xf32>
    %7 = arith.maximumf %5, %6 : vector<2x256xf32>
    %8 = arith.truncf %7 : vector<2x256xf32> to vector<2x256xbf16>
    %c0_6 = arith.constant 0 : index
    %c0_7 = arith.constant 0 : index
    %9 = vector.load %arg5[%c0_6, %c0_7] : memref<256x2xbf16, #tpu.memory_space<vmem>>, vector<256x2xbf16>
    %cst_8 = arith.constant dense<0.000000e+00> : vector<2x2xf32>
    %10 = tpu.matmul %8, %9, %cst_8 {dimension_numbers = #tpu.dot_dimension_numbers<[1], [0], [0], [1], [0, 0, 1, 1], [], []>} : vector<2x256xbf16>, vector<256x2xbf16>, vector<2x2xf32> -> vector<2x2xf32>
    %c0_9 = arith.constant 0 : index
    %c0_10 = arith.constant 0 : index
    %11 = vector.load %arg6[%c0_9, %c0_10] : memref<1x2xf32, #tpu.memory_space<vmem>>, vector<1x2xf32>
    %12 = vector.broadcast %11 : vector<1x2xf32> to vector<2x2xf32>
    %13 = arith.addf %10, %12 : vector<2x2xf32>
    %c0_11 = arith.constant 0 : index
    %c0_12 = arith.constant 0 : index
    %14 = vector.load %arg2[%c0_11, %c0_12] : memref<2x128xbf16, #tpu.memory_space<vmem>>, vector<2x128xbf16>
    %c0_13 = arith.constant 0 : index
    %c0_14 = arith.constant 0 : index
    %15 = vector.load %arg7[%c0_13, %c0_14] : memref<128x512xbf16, #tpu.memory_space<vmem>>, vector<128x512xbf16>
    %cst_15 = arith.constant dense<0.000000e+00> : vector<2x512xf32>
    %16 = tpu.matmul %14, %15, %cst_15 {dimension_numbers = #tpu.dot_dimension_numbers<[1], [0], [0], [1], [0, 0, 1, 1], [], []>} : vector<2x128xbf16>, vector<128x512xbf16>, vector<2x512xf32> -> vector<2x512xf32>
    %c0_16 = arith.constant 0 : index
    %c0_17 = arith.constant 0 : index
    %17 = vector.load %arg8[%c0_16, %c0_17] : memref<1x512xf32, #tpu.memory_space<vmem>>, vector<1x512xf32>
    %18 = vector.broadcast %17 : vector<1x512xf32> to vector<2x512xf32>
    %19 = arith.addf %16, %18 : vector<2x512xf32>
    %cst_18 = arith.constant 0.000000e+00 : f32
    %20 = vector.broadcast %cst_18 : f32 to vector<2x512xf32>
    %21 = arith.maximumf %19, %20 : vector<2x512xf32>
    %c0_19 = arith.constant 0 : index
    %c0_20 = arith.constant 0 : index
    %22 = vector.load %arg9[%c0_19, %c0_20] : memref<2x768xbf16, #tpu.memory_space<vmem>>, vector<2x768xbf16>
    %23 = arith.extf %22 : vector<2x768xbf16> to vector<2x768xf32>
    %24 = vector.extract_strided_slice %13 {offsets = [0, 0], sizes = [2, 1], strides = [1, 1]} : vector<2x2xf32> to vector<2x1xf32>
    %25 = vector.extract_strided_slice %23 {offsets = [0, 0], sizes = [1, 768], strides = [1, 1]} : vector<2x768xf32> to vector<1x768xf32>
    %26 = vector.broadcast %24 : vector<2x1xf32> to vector<2x768xf32>
    %27 = vector.broadcast %25 : vector<1x768xf32> to vector<2x768xf32>
    %28 = arith.mulf %26, %27 : vector<2x768xf32>
    %29 = vector.extract_strided_slice %13 {offsets = [0, 1], sizes = [2, 1], strides = [1, 1]} : vector<2x2xf32> to vector<2x1xf32>
    %30 = vector.extract_strided_slice %23 {offsets = [1, 0], sizes = [1, 768], strides = [1, 1]} : vector<2x768xf32> to vector<1x768xf32>
    %31 = vector.broadcast %29 : vector<2x1xf32> to vector<2x768xf32>
    %32 = vector.broadcast %30 : vector<1x768xf32> to vector<2x768xf32>
    %33 = arith.mulf %31, %32 : vector<2x768xf32>
    %34 = arith.addf %28, %33 : vector<2x768xf32>
    %35 = arith.truncf %21 : vector<2x512xf32> to vector<2x512xbf16>
    %c0_21 = arith.constant 0 : index
    %c0_22 = arith.constant 0 : index
    %36 = vector.load %arg10[%c0_21, %c0_22] : memref<512x768xbf16, #tpu.memory_space<vmem>>, vector<512x768xbf16>
    %cst_23 = arith.constant dense<0.000000e+00> : vector<2x768xf32>
    %37 = tpu.matmul %35, %36, %cst_23 {dimension_numbers = #tpu.dot_dimension_numbers<[1], [0], [0], [1], [0, 0, 1, 1], [], []>} : vector<2x512xbf16>, vector<512x768xbf16>, vector<2x768xf32> -> vector<2x768xf32>
    %38 = arith.addf %34, %37 : vector<2x768xf32>
    %c0_24 = arith.constant 0 : index
    %c0_25 = arith.constant 0 : index
    %39 = vector.load %arg11[%c0_24, %c0_25] : memref<1x768xf32, #tpu.memory_space<vmem>>, vector<1x768xf32>
    %40 = vector.broadcast %39 : vector<1x768xf32> to vector<2x768xf32>
    %41 = arith.addf %38, %40 : vector<2x768xf32>
    %cst_26 = arith.constant 0.000000e+00 : f32
    %42 = vector.broadcast %cst_26 : f32 to vector<2x768xf32>
    %43 = arith.maximumf %41, %42 : vector<2x768xf32>
    %44 = arith.truncf %43 : vector<2x768xf32> to vector<2x768xbf16>
    %c0_27 = arith.constant 0 : index
    %c0_28 = arith.constant 0 : index
    %45 = vector.load %arg12[%c0_27, %c0_28] : memref<768x12xbf16, #tpu.memory_space<vmem>>, vector<768x12xbf16>
    %cst_29 = arith.constant dense<0.000000e+00> : vector<2x12xf32>
    %46 = tpu.matmul %44, %45, %cst_29 {dimension_numbers = #tpu.dot_dimension_numbers<[1], [0], [0], [1], [0, 0, 1, 1], [], []>} : vector<2x768xbf16>, vector<768x12xbf16>, vector<2x12xf32> -> vector<2x12xf32>
    %c0_30 = arith.constant 0 : index
    %c0_31 = arith.constant 0 : index
    %47 = vector.load %arg13[%c0_30, %c0_31] : memref<1x12xf32, #tpu.memory_space<vmem>>, vector<1x12xf32>
    %48 = vector.broadcast %47 : vector<1x12xf32> to vector<2x12xf32>
    %49 = arith.addf %46, %48 : vector<2x12xf32>
    %c0_32 = arith.constant 0 : index
    %c0_33 = arith.constant 0 : index
    %50 = vector.load %arg14[%c0_32, %c0_33] : memref<2x12xf32, #tpu.memory_space<vmem>>, vector<2x12xf32>
    tpu.vector_store %arg14[%c0_32, %c0_33], %49 {strides = array<i32>} : memref<2x12xf32, #tpu.memory_space<vmem>>, vector<2x12xf32>,
    return
  }
  func.func @transform_0(%arg0: i32) -> (i32, i32) {
    %c0_i32 = arith.constant 0 : i32
    %c0_i32_0 = arith.constant 0 : i32
    %c0_i32_1 = arith.constant 0 : i32
    return %c0_i32, %c0_i32_0 : i32, i32
  }
  func.func @transform_1(%arg0: i32) -> (i32, i32) {
    %c0_i32 = arith.constant 0 : i32
    %c0_i32_0 = arith.constant 0 : i32
    %c0_i32_1 = arith.constant 0 : i32
    return %c0_i32, %c0_i32_0 : i32, i32
  }
  func.func @transform_2(%arg0: i32) -> (i32, i32) {
    %c0_i32 = arith.constant 0 : i32
    %c0_i32_0 = arith.constant 0 : i32
    %c0_i32_1 = arith.constant 0 : i32
    return %c0_i32, %c0_i32_0 : i32, i32
  }
  func.func @transform_3(%arg0: i32) -> (i32, i32) {
    %c0_i32 = arith.constant 0 : i32
    %c0_i32_0 = arith.constant 0 : i32
    %c0_i32_1 = arith.constant 0 : i32
    return %c0_i32, %c0_i32_0 : i32, i32
  }
  func.func @transform_4(%arg0: i32) -> (i32, i32) {
    %c0_i32 = arith.constant 0 : i32
    %c0_i32_0 = arith.constant 0 : i32
    %c0_i32_1 = arith.constant 0 : i32
    return %c0_i32, %c0_i32_0 : i32, i32
  }
  func.func @transform_5(%arg0: i32) -> (i32, i32) {
    %c0_i32 = arith.constant 0 : i32
    %c0_i32_0 = arith.constant 0 : i32
    %c0_i32_1 = arith.constant 0 : i32
    return %c0_i32, %c0_i32_0 : i32, i32
  }
  func.func @transform_6(%arg0: i32) -> (i32, i32) {
    %c0_i32 = arith.constant 0 : i32
    %c0_i32_0 = arith.constant 0 : i32
    %c0_i32_1 = arith.constant 0 : i32
    return %c0_i32, %c0_i32_0 : i32, i32
  }
  func.func @transform_7(%arg0: i32) -> (i32, i32) {
    %c0_i32 = arith.constant 0 : i32
    %c0_i32_0 = arith.constant 0 : i32
    %c0_i32_1 = arith.constant 0 : i32
    return %c0_i32, %c0_i32_0 : i32, i32
  }
  func.func @transform_8(%arg0: i32) -> (i32, i32) {
    %c0_i32 = arith.constant 0 : i32
    %c0_i32_0 = arith.constant 0 : i32
    %c0_i32_1 = arith.constant 0 : i32
    return %c0_i32, %c0_i32_0 : i32, i32
  }
  func.func @transform_9(%arg0: i32) -> (i32, i32) {
    %c0_i32 = arith.constant 0 : i32
    %c0_i32_0 = arith.constant 0 : i32
    %c0_i32_1 = arith.constant 0 : i32
    return %c0_i32, %c0_i32_0 : i32, i32
  }
  func.func @transform_10(%arg0: i32) -> (i32, i32) {
    %c0_i32 = arith.constant 0 : i32
    %c0_i32_0 = arith.constant 0 : i32
    %c0_i32_1 = arith.constant 0 : i32
    return %c0_i32, %c0_i32_0 : i32, i32
  }
  func.func @transform_11(%arg0: i32) -> (i32, i32) {
    %c0_i32 = arith.constant 0 : i32
    %c0_i32_0 = arith.constant 0 : i32
    %c0_i32_1 = arith.constant 0 : i32
    return %c0_i32, %c0_i32_0 : i32, i32
  }
  func.func @transform_12(%arg0: i32) -> (i32, i32) {
    %c0_i32 = arith.constant 0 : i32
    %c0_i32_0 = arith.constant 0 : i32
    %c0_i32_1 = arith.constant 0 : i32
    return %c0_i32, %c0_i32_0 : i32, i32
  }
  func.func @transform_13(%arg0: i32) -> (i32, i32) {
    %c0_i32 = arith.constant 0 : i32
    %c0_i32_0 = arith.constant 0 : i32
    %c0_i32_1 = arith.constant 0 : i32
    return %c0_i32, %c0_i32_0 : i32, i32
  }
}

</mosaic_0001>

<bundles_post_ra>
// kernel: forward.3
= control target key start
LH: loop header
LB: loop body
LE: loop exit
PB: predicated region body
PF: predicated region fallthrough
CT: control target
= control target key end

     0   :  { %s1002_s12 = smov 0   ;;  %s1004_s13 = smov 0   ;;  %s1188_s0 = inlined_call_operand.vmem [shape: bf16[2,4,36,128], index: 0, kind: input, shape index: {}]   ;;  %s1189_s1 = inlined_call_operand.vmem [shape: bf16[128,256], index: 1, kind: input, shape index: {}]   ;;  %s1190_s2 = inlined_call_operand.vmem [shape: f32[1,256], index: 2, kind: input, shape index: {}]   ;;  %s1191_s3 = inlined_call_operand.vmem [shape: bf16[2,36,256], index: 3, kind: output, shape index: {}]  }
   0x1   :  { %s1006_s14 = smov 0  }
   0x2 LB: > { %s25_s15 = sadd.s32 1, %s975_s13  ;;  %p836_p0 = scmp.ge.s32.totalorder %s979_s14, 1  ;;  %s979_s14 = sphi %s1006_s14, %s13_s14   ;;  %s975_s13 = sphi %s1004_s13, %s1193_s13   ;;  %s971_s12 = sphi %s1002_s12, %s1192_s12  }
   0x3   : > { %p27_p1 = scmp.ge.s32.totalorder %s25_s15, 2  ;;  %p158_p2 = scmp.lt.s32.totalorder %s979_s14, 3 }
   0x5   : > { %s1195_s15 = smov (%p27_p1, %s25_s15), 0  ;;  %p159_p3 = pnand %p836_p0, %p158_p2 }
   0x6   : > { %v921_v0 = vld [vmem:[%s1189_s1 + $0x4] ss:$8 sps:$4 sm:$0xff] (!%p159_p3)   ;;  %p192_p4 = scmp.lt.s32.totalorder (!%p159_p3), %s971_s12, 1  ;;  %v923_v1 = vld [vmem:[%s1189_s1] ss:$8 sps:$4 sm:$0xff] (!%p159_p3)   ;;  %v981_v2 = vmov (!%p159_p3), 0   ;;  %v672_v63 = vlaneseq (!%p159_p3) }
   0x7   : > { %162 = sbr.rel (%p159_p3) target bundleno = 312 (0x138), region = 32  ;;  %362 = vmatprep.mubr.bf16.mxu0 (!%p159_p3), %v981_v2  ;;  %445 = vmatprep.mubr.bf16.mxu1 (!%p159_p3), %v981_v2  ;;  %v924_v3 = vld [vmem:[%s1189_s1 + $0x14] ss:$8 sps:$4 sm:$0xff] (!%p159_p3)   ;;  %v926_v4 = vld [vmem:[%s1189_s1 + $0x10] ss:$8 sps:$4 sm:$0xff] (!%p159_p3)  }
   0x8   : > { %330 = vmatprep.subr.bf16.mxu0 (!%p159_p3), %v921_v0  ;;  %413 = vmatprep.subr.bf16.mxu1 (!%p159_p3), %v921_v0  ;;  %v927_v5 = vld [vmem:[%s1189_s1 + $0x24] ss:$8 sps:$4 sm:$0xff] (!%p159_p3)   ;;  %v929_v6 = vld [vmem:[%s1189_s1 + $0x20] ss:$8 sps:$4 sm:$0xff] (!%p159_p3)   ;;  %v930_v7 = vld [vmem:[%s1189_s1 + $0x34] ss:$8 sps:$4 sm:$0xff] (!%p159_p3)  }
   0x9   : > { %331 = vmatpush1.bf16.msra.mxu0 (!%p159_p3), %v923_v1  ;;  %414 = vmatpush1.bf16.msra.mxu1 (!%p159_p3), %v923_v1  ;;  %v932_v8 = vld [vmem:[%s1189_s1 + $0x30] ss:$8 sps:$4 sm:$0xff] (!%p159_p3)   ;;  %v933_v9 = vld [vmem:[%s1189_s1 + $0x44] ss:$8 sps:$4 sm:$0xff] (!%p159_p3)   ;;  %v935_v10 = vld [vmem:[%s1189_s1 + $0x40] ss:$8 sps:$4 sm:$0xff] (!%p159_p3)  }
   0xa   : > { %332 = vmatprep.subr.bf16.mxu0 (!%p159_p3), %v924_v3  ;;  %415 = vmatprep.subr.bf16.mxu1 (!%p159_p3), %v924_v3  ;;  %v936_v11 = vld [vmem:[%s1189_s1 + $0x54] ss:$8 sps:$4 sm:$0xff] (!%p159_p3)   ;;  %v938_v12 = vld [vmem:[%s1189_s1 + $0x50] ss:$8 sps:$4 sm:$0xff] (!%p159_p3)   ;;  %v939_v13 = vld [vmem:[%s1189_s1 + $0x64] ss:$8 sps:$4 sm:$0xff] (!%p159_p3)  }
   0xb   : > { %v941_v14 = vld [vmem:[%s1189_s1 + $0x60] ss:$8 sps:$4 sm:$0xff] (!%p159_p3)   ;;  %v942_v15 = vld [vmem:[%s1189_s1 + $0x74] ss:$8 sps:$4 sm:$0xff] (!%p159_p3)   ;;  %v944_v16 = vld [vmem:[%s1189_s1 + $0x70] ss:$8 sps:$4 sm:$0xff] (!%p159_p3)  }
   0xd   : > { %333 = vmatpush1.bf16.msra.mxu0 (!%p159_p3), %v926_v4  ;;  %416 = vmatpush1.bf16.msra.mxu1 (!%p159_p3), %v926_v4 }
   0xe   : > { %s1197_s12 = smov (!%p192_p4, %s971_s12), 1  ;;  %334 = vmatprep.subr.bf16.mxu0 %v927_v5  ;;  %417 = vmatprep.subr.bf16.mxu1 %v927_v5 }
   0xf   : > { %s894_s26 = smul.u32 80, %s1197_s12 }
  0x10   : > { %s895_s4 = smul.u32 40, %s1197_s12 }
  0x11   : > { %s1049_s6 = scalar_lea.vmem %s1188_s0, %s894_s26  ;;  %335 = vmatpush1.bf16.msra.mxu0 %v929_v6  ;;  %418 = vmatpush1.bf16.msra.mxu1 %v929_v6 }
  0x12   : > { %336 = vmatprep.subr.bf16.mxu0 %v930_v7  ;;  %419 = vmatprep.subr.bf16.mxu1 %v930_v7  ;;  %v945_v17 = vld [vmem:[%s1049_s6] sm:$0xff]   ;;  %v946_v18 = vld [vmem:[%s1049_s6 + $0x14] sm:$0xff]   ;;  %v947_v19 = vld [vmem:[%s1049_s6 + $0x8] sm:$0xff]   ;;  %s1151_s7 = scalar_lea.vmem %s1191_s3, %s895_s4 }
  0x13   : > { %v948_v20 = vld [vmem:[%s1049_s6 + $0x1c] sm:$0xff]   ;;  %v949_v21 = vld [vmem:[%s1049_s6 + $0x10] ss:$0 sps:$4 sm:$0x33]   ;;  %v951_v23 = vld [vmem:[%s1049_s6 + $0x28] sm:$0xff]  }
  0x14   : > { %v950_v22 = vld [vmem:[%s1049_s6 + $0x24] ss:$0 sps:$4 sm:$0x33]   ;;  %v952_v24 = vld [vmem:[%s1049_s6 + $0x3c] sm:$0xff]   ;;  %v953_v25 = vld [vmem:[%s1049_s6 + $0x30] sm:$0xff]  }
  0x15   : > { %337 = vmatpush1.bf16.msra.mxu0 %v932_v8  ;;  %420 = vmatpush1.bf16.msra.mxu1 %v932_v8  ;;  %v954_v26 = vld [vmem:[%s1049_s6 + $0x44] sm:$0xff]   ;;  %v955_v27 = vld [vmem:[%s1049_s6 + $0x38] ss:$0 sps:$4 sm:$0x33]  }
  0x16   : > { %338 = vmatprep.subr.bf16.mxu0 %v933_v9  ;;  %421 = vmatprep.subr.bf16.mxu1 %v933_v9  ;;  %v956_v28 = vld [vmem:[%s1049_s6 + $0x4c] ss:$0 sps:$4 sm:$0x33]  }
  0x19   : > { %339 = vmatpush1.bf16.msra.mxu0 %v935_v10  ;;  %422 = vmatpush1.bf16.msra.mxu1 %v935_v10 }
  0x1a   : > { %340 = vmatprep.subr.bf16.mxu0 %v936_v11  ;;  %423 = vmatprep.subr.bf16.mxu1 %v936_v11 }
  0x1d   : > { %341 = vmatpush1.bf16.msra.mxu0 %v938_v12  ;;  %424 = vmatpush1.bf16.msra.mxu1 %v938_v12 }
  0x1e   : > { %342 = vmatprep.subr.bf16.mxu0 %v939_v13  ;;  %425 = vmatprep.subr.bf16.mxu1 %v939_v13 }
  0x21   : > { %343 = vmatpush1.bf16.msra.mxu0 %v941_v14  ;;  %426 = vmatpush1.bf16.msra.mxu1 %v941_v14 }
  0x22   : > { %344 = vmatprep.subr.bf16.mxu0 %v942_v15  ;;  %427 = vmatprep.subr.bf16.mxu1 %v942_v15 }
  0x25   : > { %345 = vmatpush1.bf16.msra.mxu0 %v944_v16  ;;  %428 = vmatpush1.bf16.msra.mxu1 %v944_v16 }
  0x26   : > { %506 = vmatprep.subr.bf16.mxu0 %v921_v0  ;;  %589 = vmatprep.subr.bf16.mxu1 %v921_v0  ;;  %v673_v0 = vshrl.u32 %v672_v63, 7 }
  0x28   : > { %363 = vmatmul.mubr.bf16.vlgmr.msra.gmra.mrb[0].mxu0 %v945_v17  ;;  %446 = vmatmul.mubr.bf16.vlgmr.msra.gmra.mrb[0].mxu1 %v946_v18 }
  0x29   : > { %507 = vmatpush1.bf16.msra.mxu0 %v923_v1  ;;  %590 = vmatpush1.bf16.msra.mxu1 %v923_v1  ;;  %v674_v1 = vsub.s32 0, %v673_v0 }
  0x2a   : > { %508 = vmatprep.subr.bf16.mxu0 %v924_v3  ;;  %591 = vmatprep.subr.bf16.mxu1 %v924_v3  ;;  %v678_v3 = vsub.s32 1, %v673_v0 }
  0x2b   : > { %372 = vmatprep.mubr.bf16.mxu0 %v981_v2  ;;  %455 = vmatprep.mubr.bf16.mxu1 %v981_v2 }
  0x2d   : > { %509 = vmatpush1.bf16.msra.mxu0 %v926_v4  ;;  %592 = vmatpush1.bf16.msra.mxu1 %v926_v4 }
  0x2e   : > { %510 = vmatprep.subr.bf16.mxu0 %v927_v5  ;;  %593 = vmatprep.subr.bf16.mxu1 %v927_v5 }
  0x30   : > { %373 = vmatmul.mubr.bf16.gmra.mrb[4].mxu0 %v947_v19  ;;  %456 = vmatmul.mubr.bf16.gmra.mrb[4].mxu1 %v948_v20 }
  0x31   : > { %511 = vmatpush1.bf16.msra.mxu0 %v929_v6  ;;  %594 = vmatpush1.bf16.msra.mxu1 %v929_v6 }
  0x32   : > { %512 = vmatprep.subr.bf16.mxu0 %v930_v7  ;;  %595 = vmatprep.subr.bf16.mxu1 %v930_v7 }
  0x33   : > { %382 = vmatprep.mubr.bf16.mxu0 %v981_v2  ;;  %465 = vmatprep.mubr.bf16.mxu1 %v981_v2 }
  0x35   : > { %513 = vmatpush1.bf16.msra.mxu0 %v932_v8  ;;  %596 = vmatpush1.bf16.msra.mxu1 %v932_v8 }
  0x36   : > { %514 = vmatprep.subr.bf16.mxu0 %v933_v9  ;;  %597 = vmatprep.subr.bf16.mxu1 %v933_v9 }
  0x38   : > { %383 = vmatmul.mubr.bf16.gmra.mrb[8].mxu0 %v949_v21  ;;  %466 = vmatmul.mubr.bf16.gmra.mrb[8].mxu1 %v950_v22 }
  0x39   : > { %515 = vmatpush1.bf16.msra.mxu0 %v935_v10  ;;  %598 = vmatpush1.bf16.msra.mxu1 %v935_v10 }
  0x3a   : > { %516 = vmatprep.subr.bf16.mxu0 %v936_v11  ;;  %599 = vmatprep.subr.bf16.mxu1 %v936_v11 }
  0x3b   : > { %538 = vmatprep.mubr.bf16.mxu0 %v981_v2  ;;  %621 = vmatprep.mubr.bf16.mxu1 %v981_v2 }
  0x3d   : > { %517 = vmatpush1.bf16.msra.mxu0 %v938_v12  ;;  %600 = vmatpush1.bf16.msra.mxu1 %v938_v12 }
  0x3e   : > { %518 = vmatprep.subr.bf16.mxu0 %v939_v13  ;;  %601 = vmatprep.subr.bf16.mxu1 %v939_v13 }
  0x41   : > { %519 = vmatpush1.bf16.msra.mxu0 %v941_v14  ;;  %602 = vmatpush1.bf16.msra.mxu1 %v941_v14 }
  0x42   : > { %520 = vmatprep.subr.bf16.mxu0 %v942_v15  ;;  %603 = vmatprep.subr.bf16.mxu1 %v942_v15 }
  0x45   : > { %521 = vmatpush1.bf16.msra.mxu0 %v944_v16  ;;  %604 = vmatpush1.bf16.msra.mxu1 %v944_v16 }
  0x48   : > { %539 = vmatmul.mubr.bf16.vlgmr.msra.gmra.mrb[12].mxu0 %v951_v23  ;;  %622 = vmatmul.mubr.bf16.vlgmr.msra.gmra.mrb[12].mxu1 %v952_v24 }
  0x49   : > { %548 = vmatprep.mubr.bf16.mxu0 %v981_v2  ;;  %631 = vmatprep.mubr.bf16.mxu1 %v981_v2 }
  0x50   : > { %549 = vmatmul.mubr.bf16.gmra.mrb[16].mxu0 %v953_v25  ;;  %632 = vmatmul.mubr.bf16.gmra.mrb[16].mxu1 %v954_v26 }
  0x51   : > { %558 = vmatprep.mubr.bf16.mxu0 %v981_v2  ;;  %641 = vmatprep.mubr.bf16.mxu1 %v981_v2  ;;  %v670_v2 = vld [vmem:[%s1190_s2] sm:$0x3] }
  0x52   : > { %v1139_v7 = vrot.slane %v670_v2, %v674_v1  ;;  %v1141_v11 = vrot.slane %v670_v2, %v678_v3 }
  0x58   : > { %559 = vmatmul.mubr.bf16.gmra.mrb[20].mxu0 %v955_v27  ;;  %642 = vmatmul.mubr.bf16.gmra.mrb[20].mxu1 %v956_v28 }
  0xfb   : > { %v364_v29 = vpop.f32.mrb[0].mxu0  ;;  %v447_v30 = vpop.f32.mrb[0].mxu1 }
  0xfc   : > { %v474_v31 = vmax.f32 %v364_v29, %v447_v30  ;;  %v366_v32 = vpop.f32.mrb[1].mxu0  ;;  %v449_v33 = vpop.f32.mrb[1].mxu1 }
  0xfd   : > { %v475_v34 = vmax.f32 %v366_v32, %v449_v33  ;;  %v368_v35 = vpop.f32.mrb[2].mxu0  ;;  %v451_v36 = vpop.f32.mrb[2].mxu1 }
  0xfe   : > { %v476_v37 = vmax.f32 %v368_v35, %v451_v36  ;;  %v370_v38 = vpop.f32.mrb[3].mxu0  ;;  %v453_v39 = vpop.f32.mrb[3].mxu1 }
  0xff   : > { %v477_v40 = vmax.f32 %v370_v38, %v453_v39 }
 0x103   : > { %v1100_v41 = vpop.f32.mrb[4].mxu0  ;;  %v1102_v42 = vpop.f32.mrb[4].mxu1 }
 0x104   : > { %v478_v43 = vmax.f32 %v1100_v41, %v1102_v42  ;;  %v1106_v44 = vpop.f32.mrb[5].mxu0  ;;  %v1108_v45 = vpop.f32.mrb[5].mxu1 }
 0x105   : > { %v479_v46 = vmax.f32 %v1106_v44, %v1108_v45  ;;  %v1112_v47 = vpop.f32.mrb[6].mxu0  ;;  %v1114_v48 = vpop.f32.mrb[6].mxu1 }
 0x106   : > { %v480_v49 = vmax.f32 %v1112_v47, %v1114_v48  ;;  %v1118_v50 = vpop.f32.mrb[7].mxu0  ;;  %v1120_v51 = vpop.f32.mrb[7].mxu1 }
 0x107   : > { %v481_v52 = vmax.f32 %v1118_v50, %v1120_v51 }
 0x10b   : > { %v1124_v53 = vpop.f32.mrb[8].mxu0  ;;  %v1126_v54 = vpop.f32.mrb[8].mxu1 }
 0x10c   : > { %v482_v55 = vmax.f32 %v1124_v53, %v1126_v54  ;;  %v1130_v56 = vpop.f32.mrb[9].mxu0  ;;  %v1132_v57 = vpop.f32.mrb[9].mxu1 }
 0x10d   : > { %v483_v58 = vmax.f32 %v1130_v56, %v1132_v57  ;;  %v388_v59 = vpop.f32.mrb[10].mxu0  ;;  %v471_v60 = vpop.f32.mrb[10].mxu1 }
 0x10e   : > { %v389_v61 = vpop.f32.mrb[11].mxu0  ;;  %v472_v62 = vpop.f32.mrb[11].mxu1 }
 0x11b   : > { %v540_v4 = vpop.f32.mrb[12].mxu0  ;;  %v623_v5 = vpop.f32.mrb[12].mxu1 }
 0x11c   : > { %v650_v6 = vmax.f32 %v540_v4, %v623_v5  ;;  %v542_v8 = vpop.f32.mrb[13].mxu0  ;;  %v625_v9 = vpop.f32.mrb[13].mxu1 }
 0x11d   : > { %v651_v10 = vmax.f32 %v542_v8, %v625_v9  ;;  %v544_v12 = vpop.f32.mrb[14].mxu0  ;;  %v627_v13 = vpop.f32.mrb[14].mxu1 }
 0x11e   : > { %v660_v14 = vmax.f32 %v474_v31, %v650_v6  ;;  %v652_v15 = vmax.f32 %v544_v12, %v627_v13  ;;  %v546_v16 = vpop.f32.mrb[15].mxu0  ;;  %v629_v17 = vpop.f32.mrb[15].mxu1 }
 0x11f   : > { %v661_v18 = vmax.f32 %v475_v34, %v651_v10  ;;  %v653_v19 = vmax.f32 %v546_v16, %v629_v17 }
 0x120   : > { %v682_v20 = vadd.f32 %v1139_v7, %v660_v14  ;;  %v662_v21 = vmax.f32 %v476_v37, %v652_v15 }
 0x121   : > { %v683_v22 = vadd.f32 %v1141_v11, %v661_v18  ;;  %v663_v23 = vmax.f32 %v477_v40, %v653_v19 }
 0x122   : > { %v692_v24 = vmax.f32 %v682_v20, 0.0  ;;  %v684_v25 = vadd.f32 %v1139_v7, %v662_v21 }
 0x123   : > { %v693_v26 = vmax.f32 %v683_v22, 0.0  ;;  %v685_v27 = vadd.f32 %v1141_v11, %v663_v23  ;;  %v550_v28 = vpop.f32.mrb[16].mxu0  ;;  %v633_v29 = vpop.f32.mrb[16].mxu1 }
 0x124   : > { %v694_v30 = vmax.f32 %v684_v25, 0.0  ;;  %v654_v31 = vmax.f32 %v550_v28, %v633_v29  ;;  %v552_v32 = vpop.f32.mrb[17].mxu0  ;;  %v635_v33 = vpop.f32.mrb[17].mxu1 }
 0x125   : > { %v889_v34 = vpack.c.bf16 %v693_v26, %v692_v24  ;;  %v695_v35 = vmax.f32 %v685_v27, 0.0  ;;  %v655_v36 = vmax.f32 %v552_v32, %v635_v33  ;;  %v554_v37 = vpop.f32.mrb[18].mxu0  ;;  %v637_v38 = vpop.f32.mrb[18].mxu1 }
 0x126   : > { %v664_v39 = vmax.f32 %v478_v43, %v654_v31  ;;  %v656_v40 = vmax.f32 %v554_v37, %v637_v38  ;;  %v556_v41 = vpop.f32.mrb[19].mxu0  ;;  %v639_v42 = vpop.f32.mrb[19].mxu1 }
 0x127   : > { %734 = vst [vmem:[%s1151_s7] sm:$0xff] %v889_v34  ;;  %v890_v59 = vpack.c.bf16 %v695_v35, %v694_v30  ;;  %v665_v60 = vmax.f32 %v479_v46, %v655_v36  ;;  %v657_v61 = vmax.f32 %v556_v41, %v639_v42 }
 0x128   : > { %v686_v62 = vadd.f32 %v1139_v7, %v664_v39  ;;  %v666_v63 = vmax.f32 %v480_v49, %v656_v40 }
 0x129   : > { %735 = vst [vmem:[%s1151_s7 + $0x8] sm:$0xff] %v890_v59  ;;  %v687_v0 = vadd.f32 %v1141_v11, %v665_v60  ;;  %v667_v43 = vmax.f32 %v481_v52, %v657_v61 }
 0x12a   : > { %v696_v1 = vmax.f32 %v686_v62, 0.0  ;;  %v688_v2 = vadd.f32 %v1139_v7, %v666_v63 }
 0x12b   : > { %v697_v3 = vmax.f32 %v687_v0, 0.0  ;;  %v689_v44 = vadd.f32 %v1141_v11, %v667_v43  ;;  %v560_v45 = vpop.f32.mrb[20].mxu0  ;;  %v643_v46 = vpop.f32.mrb[20].mxu1 }
 0x12c   : > { %v698_v4 = vmax.f32 %v688_v2, 0.0  ;;  %v658_v47 = vmax.f32 %v560_v45, %v643_v46  ;;  %v562_v48 = vpop.f32.mrb[21].mxu0  ;;  %v645_v49 = vpop.f32.mrb[21].mxu1 }
 0x12d   : > { %v891_v5 = vpack.c.bf16 %v697_v3, %v696_v1  ;;  %v699_v6 = vmax.f32 %v689_v44, 0.0  ;;  %v659_v8 = vmax.f32 %v562_v48, %v645_v49  ;;  %v564_v50 = vpop.f32.mrb[22].mxu0  ;;  %v647_v51 = vpop.f32.mrb[22].mxu1 }
 0x12e   : > { %v668_v52 = vmax.f32 %v482_v55, %v658_v47  ;;  %v565_v9 = vpop.f32.mrb[23].mxu0  ;;  %v648_v10 = vpop.f32.mrb[23].mxu1 }
 0x12f   : > { %736 = vst [vmem:[%s1151_s7 + $0x10] sm:$0xff] %v891_v5  ;;  %v892_v12 = vpack.c.bf16 %v699_v6, %v698_v4  ;;  %v669_v13 = vmax.f32 %v483_v58, %v659_v8 }
 0x130   : > { %v690_v14 = vadd.f32 %v1139_v7, %v668_v52 }
 0x131   : > { %737 = vst [vmem:[%s1151_s7 + $0x18] sm:$0xff] %v892_v12  ;;  %v691_v15 = vadd.f32 %v1141_v11, %v669_v13 }
 0x132   : > { %v700_v16 = vmax.f32 %v690_v14, 0.0 }
 0x133   : > { %v701_v17 = vmax.f32 %v691_v15, 0.0 }
 0x135   : > { %v893_v18 = vpack.c.bf16 %v701_v17, %v700_v16 }
 0x137   : > { %738 = vst [vmem:[%s1151_s7 + $0x20] sm:$0x33] %v893_v18 }
 0x138 PF: > { %s13_s14 = sadd.s32 1, %s979_s14   ;;  %s1192_s12 = smov %s975_s13 }
 0x139   : > { %p10_p5 = scmp.ge.s32.totalorder %s13_s14, 4   ;;  %s1193_s13 = smov %s1195_s15 }
 0x13b   :  { %12 = sbr.rel (!%p10_p5) target bundleno = 2 (0x2), region = 65 }

// kernel: forward.5
= control target key start
LH: loop header
LB: loop body
LE: loop exit
PB: predicated region body
PF: predicated region fallthrough
CT: control target
= control target key end

     0   :  { %v3775_v1 = vmov 0   ;;  %v80_v10 = vlaneseq  ;;  %v3776_v11 = vmov 1966171168   ;;  %vm2905_vm0 = vcmask 91136   ;;  %s4998_s2 = inlined_call_operand.vmem [shape: bf16[256,256], index: 2, kind: input, shape index: {}]   ;;  %s4999_s0 = inlined_call_operand.vmem [shape: bf16[2,256], index: 0, kind: input, shape index: {}]   ;;  %s5000_s6 = inlined_call_operand.vmem [shape: bf16[128,512], index: 6, kind: input, shape index: {}]   ;;  %s5001_s4 = inlined_call_operand.vmem [shape: bf16[256,2], index: 4, kind: input, shape index: {}]   ;;  %s5002_s1 = inlined_call_operand.vmem [shape: bf16[2,128], index: 1, kind: input, shape index: {}]   ;;  %s5003_s9 = inlined_call_operand.vmem [shape: bf16[512,768], index: 9, kind: input, shape index: {}]   ;;  %s5004_s3 = inlined_call_operand.vmem [shape: f32[1,256], index: 3, kind: input, shape index: {}]   ;;  %s5005_s7 = inlined_call_operand.vmem [shape: f32[1,512], index: 7, kind: input, shape index: {}]   ;;  %s5006_s5 = inlined_call_operand.vmem [shape: f32[1,2], index: 5, kind: input, shape index: {}]   ;;  %s5007_s11 = inlined_call_operand.vmem [shape: bf16[768,12], index: 11, kind: input, shape index: {}]   ;;  %s5008_s8 = inlined_call_operand.vmem [shape: bf16[2,768], index: 8, kind: input, shape index: {}]   ;;  %s5009_s10 = inlined_call_operand.vmem [shape: f32[1,768], index: 10, kind: input, shape index: {}]   ;;  %s5010_s12 = inlined_call_operand.vmem [shape: f32[1,12], index: 12, kind: input, shape index: {}]   ;;  %s5011_s13 = inlined_call_operand.vmem [shape: f32[2,12], index: 13, kind: output, shape index: {}]  }
   0x1   :  { %v3327_v0 = vld [vmem:[%s4998_s2 + $0x4] ss:$8 sps:$4 sm:$0xff]   ;;  %3325 = vset.pattern.permute.xlu0 %v3775_v1  ;;  %v3329_v2 = vld [vmem:[%s4998_s2] ss:$8 sps:$4 sm:$0xff]   ;;  %v3330_v3 = vld [vmem:[%s4998_s2 + $0x14] ss:$8 sps:$4 sm:$0xff]   ;;  %v100_v12 = vunpack.c.l.s4 %v3776_v11 }
   0x2   :  { %275 = vmatprep.subr.bf16.mxu0 %v3327_v0  ;;  %v3332_v4 = vld [vmem:[%s4998_s2 + $0x10] ss:$8 sps:$4 sm:$0xff]   ;;  %v3333_v5 = vld [vmem:[%s4998_s2 + $0x24] ss:$8 sps:$4 sm:$0xff]   ;;  %v3335_v6 = vld [vmem:[%s4998_s2 + $0x20] ss:$8 sps:$4 sm:$0xff]  }
   0x3   :  { %276 = vmatpush1.bf16.msra.mxu0 %v3329_v2  ;;  %v3336_v7 = vld [vmem:[%s4998_s2 + $0x34] ss:$8 sps:$4 sm:$0xff]   ;;  %v3338_v8 = vld [vmem:[%s4998_s2 + $0x30] ss:$8 sps:$4 sm:$0xff]   ;;  %v3339_v9 = vld [vmem:[%s4998_s2 + $0x44] ss:$8 sps:$4 sm:$0xff]   ;;  %v101_v16 = vunpack.c.0.s8 %v100_v12 }
   0x4   :  { %277 = vmatprep.subr.bf16.mxu0 %v3330_v3  ;;  %v3341_v13 = vld [vmem:[%s4998_s2 + $0x40] ss:$8 sps:$4 sm:$0xff]   ;;  %v3342_v14 = vld [vmem:[%s4998_s2 + $0x54] ss:$8 sps:$4 sm:$0xff]   ;;  %v3882_v15 = vshrl.u32 %v80_v10, 7 }
   0x5   :  { %v3344_v17 = vld [vmem:[%s4998_s2 + $0x50] ss:$8 sps:$4 sm:$0xff]   ;;  %v3345_v18 = vld [vmem:[%s4998_s2 + $0x64] ss:$8 sps:$4 sm:$0xff]   ;;  %v3347_v22 = vld [vmem:[%s4998_s2 + $0x60] ss:$8 sps:$4 sm:$0xff]  }
   0x6   :  { %v3891_v19 = vsub.s32 %v101_v16, %v3882_v15  ;;  %v3896_v20 = vld.sshfl [vmem:[%s4999_s0] sm:$0x11 pattern:$0x75316420]  ;;  %v3348_v23 = vld [vmem:[%s4998_s2 + $0x74] ss:$8 sps:$4 sm:$0xff]  }
   0x7   :  { %278 = vmatpush1.bf16.msra.mxu0 %v3332_v4  ;;  %v98_v21 = vcombine.high %v3896_v20, %v3896_v20  ;;  %v3350_v25 = vld [vmem:[%s4998_s2 + $0x70] ss:$8 sps:$4 sm:$0xff]   ;;  %v3351_v26 = vld [vmem:[%s4998_s2 + $0x84] ss:$8 sps:$4 sm:$0xff]   ;;  %v3353_v27 = vld [vmem:[%s4998_s2 + $0x80] ss:$8 sps:$4 sm:$0xff]  }
   0x8   :  { %279 = vmatprep.subr.bf16.mxu0 %v3333_v5  ;;  %v3354_v28 = vld [vmem:[%s4998_s2 + $0x94] ss:$8 sps:$4 sm:$0xff]   ;;  %v3356_v29 = vld [vmem:[%s4998_s2 + $0x90] ss:$8 sps:$4 sm:$0xff]   ;;  %v3399_v30 = vld [vmem:[%s5001_s4 + $0x40] sm:$0xff]   ;;  %v105_v55 = vrot.slane %v3896_v20, %v3891_v19 }
   0x9   :  { %v112_v24 = vrot.slane %v98_v21, %v3891_v19  ;;  %v3357_v31 = vld [vmem:[%s4998_s2 + $0xa4] ss:$8 sps:$4 sm:$0xff]   ;;  %3234 = vmatprep.subr.bf16.mxu1 %v3399_v30  ;;  %v3403_v35 = vld [vmem:[%s5001_s4 + $0x50] sm:$0xff]   ;;  %v3359_v36 = vld [vmem:[%s4998_s2 + $0xa0] ss:$8 sps:$4 sm:$0xff]  }
   0xa   :  { %v3400_v32 = vld [vmem:[%s5001_s4] sm:$0xff]   ;;  %v3401_v33 = vld [vmem:[%s5001_s4 + $0x48] sm:$0xff]   ;;  %v3360_v37 = vld [vmem:[%s4998_s2 + $0xb4] ss:$8 sps:$4 sm:$0xff]  }
   0xb   :  { %280 = vmatpush1.bf16.msra.mxu0 %v3335_v6  ;;  %307 = vmatprep.mubr.bf16.mxu0 %v112_v24  ;;  %v3402_v34 = vld [vmem:[%s5001_s4 + $0x8] sm:$0xff]   ;;  %v3404_v38 = vld [vmem:[%s5001_s4 + $0x10] sm:$0xff]   ;;  %v3405_v39 = vld [vmem:[%s5001_s4 + $0x58] sm:$0xff]  }
   0xc   :  { %281 = vmatprep.subr.bf16.mxu0 %v3336_v7  ;;  %3235 = vmatpush3.bf16.msra.mxu1 %v3400_v32  ;;  %v3362_v40 = vld [vmem:[%s4998_s2 + $0xb0] ss:$8 sps:$4 sm:$0xff]   ;;  %v3363_v41 = vld [vmem:[%s4998_s2 + $0xc4] ss:$8 sps:$4 sm:$0xff]   ;;  %v3365_v43 = vld [vmem:[%s4998_s2 + $0xc0] ss:$8 sps:$4 sm:$0xff]  }
   0xd   :  { %3236 = vmatprep.subr.bf16.mxu1 %v3401_v33  ;;  %v3406_v42 = vld [vmem:[%s5001_s4 + $0x18] sm:$0xff]   ;;  %v3407_v44 = vld [vmem:[%s5001_s4 + $0x60] sm:$0xff]   ;;  %v3409_v47 = vld [vmem:[%s5001_s4 + $0x68] sm:$0xff]  }
   0xe   :  { %v3366_v45 = vld [vmem:[%s4998_s2 + $0xd4] ss:$8 sps:$4 sm:$0xff]   ;;  %v3408_v46 = vld [vmem:[%s5001_s4 + $0x20] sm:$0xff]   ;;  %v3368_v48 = vld [vmem:[%s4998_s2 + $0xd0] ss:$8 sps:$4 sm:$0xff]  }
   0xf   :  { %282 = vmatpush1.bf16.msra.mxu0 %v3338_v8  ;;  %v3369_v49 = vld [vmem:[%s4998_s2 + $0xe4] ss:$8 sps:$4 sm:$0xff]   ;;  %v3371_v51 = vld [vmem:[%s4998_s2 + $0xe0] ss:$8 sps:$4 sm:$0xff]   ;;  %v3372_v52 = vld [vmem:[%s4998_s2 + $0xf4] ss:$8 sps:$4 sm:$0xff]  }
  0x10   :  { %283 = vmatprep.subr.bf16.mxu0 %v3339_v9  ;;  %3237 = vmatpush3.bf16.msra.mxu1 %v3402_v34  ;;  %v3410_v50 = vld [vmem:[%s5001_s4 + $0x28] sm:$0xff]   ;;  %v3374_v53 = vld [vmem:[%s4998_s2 + $0xf0] ss:$8 sps:$4 sm:$0xff]   ;;  %v4048_v8 = vld [vmem:[%s5002_s1] sm:$0x1] }
  0x11   :  { %3238 = vmatprep.subr.bf16.mxu1 %v3403_v35  ;;  %v3377_v54 = vld [vmem:[%s5000_s6 + $0xc] ss:$16 sps:$4 sm:$0xff]   ;;  %v3375_v56 = vld [vmem:[%s5000_s6 + $0x8] ss:$16 sps:$4 sm:$0xff]   ;;  %v3411_v9 = vld [vmem:[%s5001_s4 + $0x70] sm:$0xff]  }
  0x12   :  { %v3380_v57 = vld [vmem:[%s5000_s6 + $0x2c] ss:$16 sps:$4 sm:$0xff]   ;;  %v3378_v58 = vld [vmem:[%s5000_s6 + $0x28] ss:$16 sps:$4 sm:$0xff]   ;;  %v3412_v10 = vld [vmem:[%s5001_s4 + $0x30] sm:$0xff]  }
  0x13   :  { %284 = vmatpush1.bf16.msra.mxu0 %v3341_v13  ;;  %v3383_v59 = vld [vmem:[%s5000_s6 + $0x4c] ss:$16 sps:$4 sm:$0xff]   ;;  %v3381_v60 = vld [vmem:[%s5000_s6 + $0x48] ss:$16 sps:$4 sm:$0xff]   ;;  %v3417_v13 = vld [vmem:[%s5000_s6 + $0x4] ss:$16 sps:$4 sm:$0xff]  }
  0x14   :  { %285 = vmatprep.subr.bf16.mxu0 %v3342_v14  ;;  %3239 = vmatpush3.bf16.msra.mxu1 %v3404_v38  ;;  %v3386_v61 = vld [vmem:[%s5000_s6 + $0x6c] ss:$16 sps:$4 sm:$0xff]   ;;  %v3384_v62 = vld [vmem:[%s5000_s6 + $0x68] ss:$16 sps:$4 sm:$0xff]  }
  0x15   :  { %3240 = vmatprep.subr.bf16.mxu1 %v3405_v39  ;;  %v3389_v63 = vld [vmem:[%s5000_s6 + $0x8c] ss:$16 sps:$4 sm:$0xff]   ;;  %v3387_v0 = vld [vmem:[%s5000_s6 + $0x88] ss:$16 sps:$4 sm:$0xff]  }
  0x16   :  { %v3392_v2 = vld [vmem:[%s5000_s6 + $0xac] ss:$16 sps:$4 sm:$0xff]   ;;  %v3390_v3 = vld [vmem:[%s5000_s6 + $0xa8] ss:$16 sps:$4 sm:$0xff]  }
  0x17   :  { %286 = vmatpush1.bf16.msra.mxu0 %v3344_v17  ;;  %v3395_v4 = vld [vmem:[%s5000_s6 + $0xcc] ss:$16 sps:$4 sm:$0xff]   ;;  %v3393_v5 = vld [vmem:[%s5000_s6 + $0xc8] ss:$16 sps:$4 sm:$0xff]  }
  0x18   :  { %287 = vmatprep.subr.bf16.mxu0 %v3345_v18  ;;  %3241 = vmatpush3.bf16.msra.mxu1 %v3406_v42  ;;  %v3398_v6 = vld [vmem:[%s5000_s6 + $0xec] ss:$16 sps:$4 sm:$0xff]   ;;  %v3396_v7 = vld [vmem:[%s5000_s6 + $0xe8] ss:$16 sps:$4 sm:$0xff]  }
  0x19   :  { %3242 = vmatprep.subr.bf16.mxu1 %v3407_v44  ;;  %v3413_v11 = vld [vmem:[%s5001_s4 + $0x78] sm:$0xff]   ;;  %v3444_v17 = vld [vmem:[%s5003_s9 + $0x334] ss:$24 sps:$4 sm:$0xff]   ;;  %v3442_v18 = vld [vmem:[%s5003_s9 + $0x330] ss:$24 sps:$4 sm:$0xff]  }
  0x1a   :  { %v3414_v12 = vld [vmem:[%s5001_s4 + $0x38] sm:$0xff]   ;;  %v3450_v21 = vld [vmem:[%s5003_s9 + $0x394] ss:$24 sps:$4 sm:$0xff]   ;;  %v3460_v30 = vld [vmem:[%s5003_s9 + $0x450] ss:$24 sps:$4 sm:$0xff]  }
  0x1b   :  { %288 = vmatpush1.bf16.msra.mxu0 %v3347_v22  ;;  %v3439_v14 = vld [vmem:[%s5003_s9 + $0x300] ss:$24 sps:$4 sm:$0xff]   ;;  %v3441_v16 = vld [vmem:[%s5003_s9 + $0x304] ss:$24 sps:$4 sm:$0xff]   ;;  %v3448_v22 = vld [vmem:[%s5003_s9 + $0x390] ss:$24 sps:$4 sm:$0xff]  }
  0x1c   :  { %289 = vmatprep.subr.bf16.mxu0 %v3348_v23  ;;  %3243 = vmatpush3.bf16.msra.mxu1 %v3408_v46  ;;  %v3447_v19 = vld [vmem:[%s5003_s9 + $0x364] ss:$24 sps:$4 sm:$0xff]   ;;  %v3445_v20 = vld [vmem:[%s5003_s9 + $0x360] ss:$24 sps:$4 sm:$0xff]   ;;  %v3468_v33 = vld [vmem:[%s5003_s9 + $0x4b4] ss:$24 sps:$4 sm:$0xff]  }
  0x1d   :  { %3244 = vmatprep.subr.bf16.mxu1 %v3409_v47  ;;  %v3453_v23 = vld [vmem:[%s5003_s9 + $0x3c4] ss:$24 sps:$4 sm:$0xff]   ;;  %v3451_v24 = vld [vmem:[%s5003_s9 + $0x3c0] ss:$24 sps:$4 sm:$0xff]   ;;  %v3466_v34 = vld [vmem:[%s5003_s9 + $0x4b0] ss:$24 sps:$4 sm:$0xff]  }
  0x1e   :  { %v3463_v32 = vld [vmem:[%s5003_s9 + $0x480] ss:$24 sps:$4 sm:$0xff]   ;;  %v3471_v35 = vld [vmem:[%s5003_s9 + $0x4e4] ss:$24 sps:$4 sm:$0xff]   ;;  %v3472_v38 = vld [vmem:[%s5003_s9 + $0x510] ss:$24 sps:$4 sm:$0xff]  }
  0x1f   :  { %290 = vmatpush1.bf16.msra.mxu0 %v3350_v25  ;;  %v3456_v25 = vld [vmem:[%s5003_s9 + $0x3f4] ss:$24 sps:$4 sm:$0xff]   ;;  %v3477_v39 = vld [vmem:[%s5003_s9 + $0x544] ss:$24 sps:$4 sm:$0xff]   ;;  %v3478_v42 = vld [vmem:[%s5003_s9 + $0x570] ss:$24 sps:$4 sm:$0xff]  }
  0x20   :  { %291 = vmatprep.subr.bf16.mxu0 %v3351_v26  ;;  %3245 = vmatpush3.bf16.msra.mxu1 %v3410_v50  ;;  %v3454_v26 = vld [vmem:[%s5003_s9 + $0x3f0] ss:$24 sps:$4 sm:$0xff]   ;;  %v3481_v44 = vld [vmem:[%s5003_s9 + $0x5a0] ss:$24 sps:$4 sm:$0xff]   ;;  %v3489_v47 = vld [vmem:[%s5003_s9 + $0x30c] ss:$24 sps:$4 sm:$0xff]  }
  0x21   :  { %3246 = vmatprep.subr.bf16.mxu1 %v3411_v9  ;;  %v3484_v46 = vld [vmem:[%s5003_s9 + $0x5d0] ss:$24 sps:$4 sm:$0xff]   ;;  %v4172_v50 = vsub.s32 1, %v3882_v15  ;;  %v3432_v9 = vld [vmem:[%s5000_s6 + $0xa4] ss:$16 sps:$4 sm:$0xff]  }
  0x23   :  { %292 = vmatpush1.bf16.msra.mxu0 %v3353_v27  ;;  %v3459_v27 = vld [vmem:[%s5003_s9 + $0x424] ss:$24 sps:$4 sm:$0xff]  }
  0x24   :  { %293 = vmatprep.subr.bf16.mxu0 %v3354_v28  ;;  %3247 = vmatpush3.bf16.msra.mxu1 %v3412_v10  ;;  %v3457_v28 = vld [vmem:[%s5003_s9 + $0x420] ss:$24 sps:$4 sm:$0xff]   ;;  %v4208_v10 = vsub.s32 2, %v3882_v15 }
  0x25   :  { %3248 = vmatprep.subr.bf16.mxu1 %v3413_v11  ;;  %v3430_v11 = vld [vmem:[%s5000_s6 + $0xa0] ss:$16 sps:$4 sm:$0xff]  }
  0x27   :  { %294 = vmatpush1.bf16.msra.mxu0 %v3356_v29  ;;  %v3462_v29 = vld [vmem:[%s5003_s9 + $0x454] ss:$24 sps:$4 sm:$0xff]  }
  0x28   :  { %295 = vmatprep.subr.bf16.mxu0 %v3357_v31  ;;  %3249 = vmatpush3.bf16.msra.mxu1 %v3414_v12  ;;  %v3465_v31 = vld [vmem:[%s5003_s9 + $0x484] ss:$24 sps:$4 sm:$0xff]   ;;  %v4216_v12 = vld [vmem:[%s5005_s7] sm:$0xf] }
  0x29   :  { %710 = vmatprep.subr.bf16.mxu1 %v3417_v13  ;;  %v4219_v13 = vsub.s32 3, %v3882_v15 }
  0x2b   :  { %296 = vmatpush1.bf16.msra.mxu0 %v3359_v36  ;;  %v3469_v36 = vld [vmem:[%s5003_s9 + $0x4e0] ss:$24 sps:$4 sm:$0xff]  }
  0x2c   :  { %297 = vmatprep.subr.bf16.mxu0 %v3360_v37  ;;  %v3474_v37 = vld [vmem:[%s5003_s9 + $0x514] ss:$24 sps:$4 sm:$0xff]  }
  0x2f   :  { %298 = vmatpush1.bf16.msra.mxu0 %v3362_v40  ;;  %v3475_v40 = vld [vmem:[%s5003_s9 + $0x540] ss:$24 sps:$4 sm:$0xff]  }
  0x30   :  { %299 = vmatprep.subr.bf16.mxu0 %v3363_v41  ;;  %v3480_v41 = vld [vmem:[%s5003_s9 + $0x574] ss:$24 sps:$4 sm:$0xff]  }
  0x33   :  { %300 = vmatpush1.bf16.msra.mxu0 %v3365_v43  ;;  %v3483_v43 = vld [vmem:[%s5003_s9 + $0x5a4] ss:$24 sps:$4 sm:$0xff]  }
  0x34   :  { %301 = vmatprep.subr.bf16.mxu0 %v3366_v45  ;;  %v3486_v45 = vld [vmem:[%s5003_s9 + $0x5d4] ss:$24 sps:$4 sm:$0xff]  }
  0x37   :  { %302 = vmatpush1.bf16.msra.mxu0 %v3368_v48  ;;  %v4166_v48 = vsub.s32 0, %v3882_v15 }
  0x38   :  { %303 = vmatprep.subr.bf16.mxu0 %v3369_v49  ;;  %v78_v49 = vld [vmem:[%s5004_s3] sm:$0x3] }
  0x3b   :  { %304 = vmatpush1.bf16.msra.mxu0 %v3371_v51  ;;  %v83_v51 = vrot.slane %v78_v49, %v4166_v48 }
  0x3c   :  { %305 = vmatprep.subr.bf16.mxu0 %v3372_v52  ;;  %v87_v52 = vrot.slane %v78_v49, %v4172_v50  ;;  %v3504_v49 = vld [vmem:[%s5003_s9 + $0x3fc] ss:$24 sps:$4 sm:$0xff]  }
  0x3f   :  { %306 = vmatpush1.bf16.msra.mxu0 %v3374_v53 }
  0x40   :  { %751 = vmatprep.subr.bf16.mxu0 %v3377_v54 }
  0x42   :  { %308 = vmatmul.mubr.bf16.vlgmr.msra.gmra.mrb[0].mxu0 %v105_v55 }
  0x43   :  { %752 = vmatpush1.bf16.msra.mxu0 %v3375_v56  ;;  %783 = vmatprep.mubr.bf16.mxu0 %v3775_v1 }
  0x44   :  { %753 = vmatprep.subr.bf16.mxu0 %v3380_v57 }
  0x47   :  { %754 = vmatpush1.bf16.msra.mxu0 %v3378_v58 }
  0x48   :  { %755 = vmatprep.subr.bf16.mxu0 %v3383_v59 }
  0x4b   :  { %756 = vmatpush1.bf16.msra.mxu0 %v3381_v60 }
  0x4c   :  { %757 = vmatprep.subr.bf16.mxu0 %v3386_v61  ;;  %v3415_v61 = vld [vmem:[%s5000_s6] ss:$16 sps:$4 sm:$0xff]  }
  0x4f   :  { %758 = vmatpush1.bf16.msra.mxu0 %v3384_v62  ;;  %v3420_v62 = vld [vmem:[%s5000_s6 + $0x24] ss:$16 sps:$4 sm:$0xff]  }
  0x50   :  { %759 = vmatprep.subr.bf16.mxu0 %v3389_v63 }
  0x53   :  { %760 = vmatpush1.bf16.msra.mxu0 %v3387_v0 }
  0x54   :  { %761 = vmatprep.subr.bf16.mxu0 %v3392_v2  ;;  %v3418_v2 = vld [vmem:[%s5000_s6 + $0x20] ss:$16 sps:$4 sm:$0xff]  }
  0x57   :  { %762 = vmatpush1.bf16.msra.mxu0 %v3390_v3  ;;  %v3423_v3 = vld [vmem:[%s5000_s6 + $0x44] ss:$16 sps:$4 sm:$0xff]  }
  0x58   :  { %763 = vmatprep.subr.bf16.mxu0 %v3395_v4  ;;  %v3421_v4 = vld [vmem:[%s5000_s6 + $0x40] ss:$16 sps:$4 sm:$0xff]  }
  0x5b   :  { %764 = vmatpush1.bf16.msra.mxu0 %v3393_v5  ;;  %v3426_v5 = vld [vmem:[%s5000_s6 + $0x64] ss:$16 sps:$4 sm:$0xff]  }
  0x5c   :  { %765 = vmatprep.subr.bf16.mxu0 %v3398_v6  ;;  %v3429_v6 = vld [vmem:[%s5000_s6 + $0x84] ss:$16 sps:$4 sm:$0xff]  }
  0x5f   :  { %766 = vmatpush1.bf16.msra.mxu0 %v3396_v7  ;;  %v3427_v7 = vld [vmem:[%s5000_s6 + $0x80] ss:$16 sps:$4 sm:$0xff]  }
  0x60   :  { %2133 = vmatprep.subr.bf16.mxu0 %v3441_v16  ;;  %v541_v16 = vrot.slane %v4216_v12, %v4208_v10 }
  0x62   :  { %784 = vmatmul.mubr.bf16.vlgmr.msra.gmra.mrb[4].mxu0 %v4048_v8 }
  0x63   :  { %2134 = vmatpush1.bf16.msra.mxu0 %v3439_v14  ;;  %v3435_v14 = vld [vmem:[%s5000_s6 + $0xc4] ss:$16 sps:$4 sm:$0xff]  }
  0x64   :  { %2135 = vmatprep.subr.bf16.mxu0 %v3444_v17  ;;  %v3433_v17 = vld [vmem:[%s5000_s6 + $0xc0] ss:$16 sps:$4 sm:$0xff]  }
  0x67   :  { %2136 = vmatpush1.bf16.msra.mxu0 %v3442_v18  ;;  %v545_v18 = vrot.slane %v4216_v12, %v4219_v13 }
  0x68   :  { %2137 = vmatprep.subr.bf16.mxu0 %v3447_v19  ;;  %v3438_v19 = vld [vmem:[%s5000_s6 + $0xe4] ss:$16 sps:$4 sm:$0xff]  }
  0x6b   :  { %2138 = vmatpush1.bf16.msra.mxu0 %v3445_v20 }
  0x6c   :  { %2139 = vmatprep.subr.bf16.mxu0 %v3450_v21 }
  0x6f   :  { %2140 = vmatpush1.bf16.msra.mxu0 %v3448_v22 }
  0x70   :  { %2141 = vmatprep.subr.bf16.mxu0 %v3453_v23  ;;  %v3436_v23 = vld [vmem:[%s5000_s6 + $0xe0] ss:$16 sps:$4 sm:$0xff]  }
  0x73   :  { %2142 = vmatpush1.bf16.msra.mxu0 %v3451_v24 }
  0x74   :  { %2143 = vmatprep.subr.bf16.mxu0 %v3456_v25 }
  0x77   :  { %2144 = vmatpush1.bf16.msra.mxu0 %v3454_v26 }
  0x78   :  { %2145 = vmatprep.subr.bf16.mxu0 %v3459_v27  ;;  %v3540_v27 = vld [vmem:[%s5003_s9 + $0x4] ss:$24 sps:$4 sm:$0xff]  }
  0x7b   :  { %2146 = vmatpush1.bf16.msra.mxu0 %v3457_v28 }
  0x7c   :  { %2147 = vmatprep.subr.bf16.mxu0 %v3462_v29 }
  0x7f   :  { %2148 = vmatpush1.bf16.msra.mxu0 %v3460_v30 }
  0x80   :  { %2149 = vmatprep.subr.bf16.mxu0 %v3465_v31 }
  0x83   :  { %2150 = vmatpush1.bf16.msra.mxu0 %v3463_v32  ;;  %v3487_v32 = vld [vmem:[%s5003_s9 + $0x308] ss:$24 sps:$4 sm:$0xff]  }
  0x84   :  { %2151 = vmatprep.subr.bf16.mxu0 %v3468_v33  ;;  %v3492_v33 = vld [vmem:[%s5003_s9 + $0x33c] ss:$24 sps:$4 sm:$0xff]  }
  0x87   :  { %2152 = vmatpush1.bf16.msra.mxu0 %v3466_v34  ;;  %v3538_v34 = vld [vmem:[%s5003_s9] ss:$24 sps:$4 sm:$0xff]  }
  0x88   :  { %2153 = vmatprep.subr.bf16.mxu0 %v3471_v35  ;;  %v3546_v35 = vld [vmem:[%s5003_s9 + $0x34] ss:$24 sps:$4 sm:$0xff]  }
  0x8b   :  { %2154 = vmatpush1.bf16.msra.mxu0 %v3469_v36  ;;  %v3490_v36 = vld [vmem:[%s5003_s9 + $0x338] ss:$24 sps:$4 sm:$0xff]  }
  0x8c   :  { %2155 = vmatprep.subr.bf16.mxu0 %v3474_v37  ;;  %v3495_v37 = vld [vmem:[%s5003_s9 + $0x36c] ss:$24 sps:$4 sm:$0xff]  }
  0x8f   :  { %2156 = vmatpush1.bf16.msra.mxu0 %v3472_v38  ;;  %v3544_v38 = vld [vmem:[%s5003_s9 + $0x30] ss:$24 sps:$4 sm:$0xff]  }
  0x90   :  { %2157 = vmatprep.subr.bf16.mxu0 %v3477_v39  ;;  %v3493_v39 = vld [vmem:[%s5003_s9 + $0x368] ss:$24 sps:$4 sm:$0xff]  }
  0x93   :  { %2158 = vmatpush1.bf16.msra.mxu0 %v3475_v40  ;;  %v3498_v40 = vld [vmem:[%s5003_s9 + $0x39c] ss:$24 sps:$4 sm:$0xff]  }
  0x94   :  { %2159 = vmatprep.subr.bf16.mxu0 %v3480_v41  ;;  %v3550_v41 = vld [vmem:[%s5003_s9 + $0x60] ss:$24 sps:$4 sm:$0xff]  }
  0x97   :  { %2160 = vmatpush1.bf16.msra.mxu0 %v3478_v42  ;;  %v3558_v42 = vld [vmem:[%s5003_s9 + $0x94] ss:$24 sps:$4 sm:$0xff]  }
  0x98   :  { %2161 = vmatprep.subr.bf16.mxu0 %v3483_v43  ;;  %v3496_v43 = vld [vmem:[%s5003_s9 + $0x398] ss:$24 sps:$4 sm:$0xff]  }
  0x9b   :  { %2162 = vmatpush1.bf16.msra.mxu0 %v3481_v44  ;;  %v3501_v44 = vld [vmem:[%s5003_s9 + $0x3cc] ss:$24 sps:$4 sm:$0xff]  }
  0x9c   :  { %2163 = vmatprep.subr.bf16.mxu0 %v3486_v45  ;;  %v3556_v45 = vld [vmem:[%s5003_s9 + $0x90] ss:$24 sps:$4 sm:$0xff]  }
  0x9f   :  { %2164 = vmatpush1.bf16.msra.mxu0 %v3484_v46  ;;  %v3564_v46 = vld [vmem:[%s5003_s9 + $0xc4] ss:$24 sps:$4 sm:$0xff]  }
  0xa0   :  { %2215 = vmatprep.subr.bf16.mxu0 %v3489_v47  ;;  %v3499_v47 = vld [vmem:[%s5003_s9 + $0x3c8] ss:$24 sps:$4 sm:$0xff]  }
 0x115   :  { %v309_v53 = vpop.f32.mrb[0].mxu0 }
 0x116   :  { %v310_v54 = vadd.f32 %v309_v53, %v83_v51  ;;  %v311_v55 = vpop.f32.mrb[1].mxu0  ;;  %v3562_v51 = vld [vmem:[%s5003_s9 + $0xc0] ss:$24 sps:$4 sm:$0xff]  }
 0x117   :  { %v312_v56 = vadd.f32 %v311_v55, %v87_v52  ;;  %v313_v57 = vpop.f32.mrb[2].mxu0  ;;  %v3570_v52 = vld [vmem:[%s5003_s9 + $0xf4] ss:$24 sps:$4 sm:$0xff]   ;;  %v3502_v53 = vld [vmem:[%s5003_s9 + $0x3f8] ss:$24 sps:$4 sm:$0xff]  }
 0x118   :  { %v316_v58 = vmax.f32 %v310_v54, 0.0  ;;  %v314_v59 = vpop.f32.mrb[3].mxu0  ;;  %v3507_v54 = vld [vmem:[%s5003_s9 + $0x42c] ss:$24 sps:$4 sm:$0xff]   ;;  %v3568_v55 = vld [vmem:[%s5003_s9 + $0xf0] ss:$24 sps:$4 sm:$0xff]  }
 0x119   :  { %v317_v60 = vmax.f32 %v312_v56, 0.0  ;;  %v3576_v56 = vld [vmem:[%s5003_s9 + $0x124] ss:$24 sps:$4 sm:$0xff]   ;;  %v3505_v57 = vld [vmem:[%s5003_s9 + $0x428] ss:$24 sps:$4 sm:$0xff]  }
 0x11a   :  { %v318_v0 = vpack.c.bf16 %v316_v58, %v316_v58  ;;  %v3510_v58 = vld [vmem:[%s5003_s9 + $0x45c] ss:$24 sps:$4 sm:$0xff]   ;;  %v3574_v59 = vld [vmem:[%s5003_s9 + $0x120] ss:$24 sps:$4 sm:$0xff]  }
 0x11b   :  { %v319_v63 = vpack.c.bf16 %v317_v60, %v317_v60  ;;  %v3508_v60 = vld [vmem:[%s5003_s9 + $0x458] ss:$24 sps:$4 sm:$0xff]  }
 0x11d   :  { %487 = vmatprep.mubr.bf16.mxu1 %v319_v63  ;;  %v3516_v63 = vld [vmem:[%s5003_s9 + $0x4bc] ss:$24 sps:$4 sm:$0xff]  }
 0x11e   :  { %488 = vmatmul.mubr.bf16.vlgmr.msra.gmra.mrb[0].mxu1 %v318_v0  ;;  %v3514_v0 = vld [vmem:[%s5003_s9 + $0x4b8] ss:$24 sps:$4 sm:$0xff]  }
 0x11f   :  { %711 = vmatpush1.bf16.msra.mxu1 %v3415_v61  ;;  %742 = vmatprep.mubr.bf16.mxu1 %v3775_v1  ;;  %v3424_v1 = vld [vmem:[%s5000_s6 + $0x60] ss:$16 sps:$4 sm:$0xff]   ;;  %v3513_v61 = vld [vmem:[%s5003_s9 + $0x48c] ss:$24 sps:$4 sm:$0xff]  }
 0x120   :  { %712 = vmatprep.subr.bf16.mxu1 %v3420_v62  ;;  %v3511_v62 = vld [vmem:[%s5003_s9 + $0x488] ss:$24 sps:$4 sm:$0xff]  }
 0x123   :  { %713 = vmatpush1.bf16.msra.mxu1 %v3418_v2  ;;  %v3519_v2 = vld [vmem:[%s5003_s9 + $0x4ec] ss:$24 sps:$4 sm:$0xff]  }
 0x124   :  { %714 = vmatprep.subr.bf16.mxu1 %v3423_v3  ;;  %v3517_v3 = vld [vmem:[%s5003_s9 + $0x4e8] ss:$24 sps:$4 sm:$0xff]  }
 0x127   :  { %715 = vmatpush1.bf16.msra.mxu1 %v3421_v4  ;;  %v3522_v4 = vld [vmem:[%s5003_s9 + $0x51c] ss:$24 sps:$4 sm:$0xff]  }
 0x128   :  { %716 = vmatprep.subr.bf16.mxu1 %v3426_v5  ;;  %v3520_v5 = vld [vmem:[%s5003_s9 + $0x518] ss:$24 sps:$4 sm:$0xff]  }
 0x12b   :  { %717 = vmatpush1.bf16.msra.mxu1 %v3424_v1  ;;  %v3525_v1 = vld [vmem:[%s5003_s9 + $0x54c] ss:$24 sps:$4 sm:$0xff]  }
 0x12c   :  { %718 = vmatprep.subr.bf16.mxu1 %v3429_v6  ;;  %v3523_v6 = vld [vmem:[%s5003_s9 + $0x548] ss:$24 sps:$4 sm:$0xff]  }
 0x12f   :  { %719 = vmatpush1.bf16.msra.mxu1 %v3427_v7  ;;  %v3528_v7 = vld [vmem:[%s5003_s9 + $0x57c] ss:$24 sps:$4 sm:$0xff]  }
 0x130   :  { %720 = vmatprep.subr.bf16.mxu1 %v3432_v9  ;;  %v3526_v9 = vld [vmem:[%s5003_s9 + $0x578] ss:$24 sps:$4 sm:$0xff]  }
 0x133   :  { %721 = vmatpush1.bf16.msra.mxu1 %v3430_v11  ;;  %v3531_v11 = vld [vmem:[%s5003_s9 + $0x5ac] ss:$24 sps:$4 sm:$0xff]  }
 0x134   :  { %722 = vmatprep.subr.bf16.mxu1 %v3435_v14  ;;  %v3529_v14 = vld [vmem:[%s5003_s9 + $0x5a8] ss:$24 sps:$4 sm:$0xff]  }
 0x135   :  { %v785_v20 = vpop.f32.mrb[4].mxu0 }
 0x136   :  { %v786_v21 = vadd.f32 %v785_v20, %v541_v16  ;;  %v787_v22 = vpop.f32.mrb[5].mxu0  ;;  %v3582_v16 = vld [vmem:[%s5003_s9 + $0x154] ss:$24 sps:$4 sm:$0xff]   ;;  %v3586_v20 = vld [vmem:[%s5003_s9 + $0x180] ss:$24 sps:$4 sm:$0xff]  }
 0x137   :  { %723 = vmatpush1.bf16.msra.mxu1 %v3433_v17  ;;  %v788_v24 = vadd.f32 %v787_v22, %v545_v18  ;;  %v789_v25 = vpop.f32.mrb[6].mxu0  ;;  %v3534_v17 = vld [vmem:[%s5003_s9 + $0x5dc] ss:$24 sps:$4 sm:$0xff]   ;;  %v3580_v18 = vld [vmem:[%s5003_s9 + $0x150] ss:$24 sps:$4 sm:$0xff]  }
 0x138   :  { %724 = vmatprep.subr.bf16.mxu1 %v3438_v19  ;;  %v794_v26 = vmax.f32 %v786_v21, 0.0  ;;  %v790_v28 = vpop.f32.mrb[7].mxu0  ;;  %v3532_v19 = vld [vmem:[%s5003_s9 + $0x5d8] ss:$24 sps:$4 sm:$0xff]   ;;  %v3588_v21 = vld [vmem:[%s5003_s9 + $0x184] ss:$24 sps:$4 sm:$0xff]  }
 0x139   :  { %v795_v29 = vmax.f32 %v788_v24, 0.0  ;;  %v3537_v22 = vld [vmem:[%s5003_s9 + $0x314] ss:$24 sps:$4 sm:$0xff]   ;;  %v3592_v24 = vld [vmem:[%s5003_s9 + $0x1b0] ss:$24 sps:$4 sm:$0xff]  }
 0x13a   :  { %v4240_v30 = vpack.c.bf16 %v794_v26, %v794_v26  ;;  %v3594_v25 = vld [vmem:[%s5003_s9 + $0x1b4] ss:$24 sps:$4 sm:$0xff]   ;;  %v3543_v26 = vld [vmem:[%s5003_s9 + $0x344] ss:$24 sps:$4 sm:$0xff]   ;;  %v3598_v28 = vld [vmem:[%s5003_s9 + $0x1e0] ss:$24 sps:$4 sm:$0xff]  }
 0x13b   :  { %725 = vmatpush1.bf16.msra.mxu1 %v3436_v23  ;;  %v4242_v31 = vpack.c.bf16 %v795_v29, %v795_v29  ;;  %v3535_v23 = vld [vmem:[%s5003_s9 + $0x310] ss:$24 sps:$4 sm:$0xff]   ;;  %v3541_v29 = vld [vmem:[%s5003_s9 + $0x340] ss:$24 sps:$4 sm:$0xff]  }
 0x13c   :  { %2092 = vmatprep.subr.bf16.mxu1 %v3540_v27  ;;  %v3600_v27 = vld [vmem:[%s5003_s9 + $0x1e4] ss:$24 sps:$4 sm:$0xff]  }
 0x13d   :  { %2165 = vmatprep.mubr.bf16.mxu0 %v4242_v31 }
 0x13e   :  { %743 = vmatmul.mubr.bf16.vlgmr.msra.gmra.mrb[4].mxu1 %v4048_v8  ;;  %2166 = vmatmul.mubr.bf16.vlgmr.msra.gmra.mrb[8].mxu0 %v4240_v30  ;;  %v3552_v8 = vld [vmem:[%s5003_s9 + $0x64] ss:$24 sps:$4 sm:$0xff]  }
 0x13f   :  { %2216 = vmatpush1.bf16.msra.mxu0 %v3487_v32  ;;  %2247 = vmatprep.mubr.bf16.mxu0 %v4242_v31  ;;  %v3606_v32 = vld [vmem:[%s5003_s9 + $0x214] ss:$24 sps:$4 sm:$0xff]  }
 0x140   :  { %2217 = vmatprep.subr.bf16.mxu0 %v3492_v33  ;;  %2093 = vmatpush1.bf16.msra.mxu1 %v3538_v34  ;;  %v3549_v33 = vld [vmem:[%s5003_s9 + $0x374] ss:$24 sps:$4 sm:$0xff]   ;;  %v3604_v34 = vld [vmem:[%s5003_s9 + $0x210] ss:$24 sps:$4 sm:$0xff]  }
 0x141   :  { %2094 = vmatprep.subr.bf16.mxu1 %v3546_v35  ;;  %v3547_v35 = vld [vmem:[%s5003_s9 + $0x370] ss:$24 sps:$4 sm:$0xff]  }
 0x143   :  { %2218 = vmatpush1.bf16.msra.mxu0 %v3490_v36  ;;  %v3612_v36 = vld [vmem:[%s5003_s9 + $0x244] ss:$24 sps:$4 sm:$0xff]  }
 0x144   :  { %2219 = vmatprep.subr.bf16.mxu0 %v3495_v37  ;;  %2095 = vmatpush1.bf16.msra.mxu1 %v3544_v38  ;;  %v3610_v37 = vld [vmem:[%s5003_s9 + $0x240] ss:$24 sps:$4 sm:$0xff]  }
 0x145   :  { %2096 = vmatprep.subr.bf16.mxu1 %v3552_v8  ;;  %v3553_v38 = vld [vmem:[%s5003_s9 + $0x3a0] ss:$24 sps:$4 sm:$0xff]   ;;  %v3618_v8 = vld [vmem:[%s5003_s9 + $0x274] ss:$24 sps:$4 sm:$0xff]  }
 0x147   :  { %2220 = vmatpush1.bf16.msra.mxu0 %v3493_v39  ;;  %v3561_v39 = vld [vmem:[%s5003_s9 + $0x3d4] ss:$24 sps:$4 sm:$0xff]  }
 0x148   :  { %2221 = vmatprep.subr.bf16.mxu0 %v3498_v40  ;;  %2097 = vmatpush1.bf16.msra.mxu1 %v3550_v41  ;;  %v3616_v40 = vld [vmem:[%s5003_s9 + $0x270] ss:$24 sps:$4 sm:$0xff]  }
 0x149   :  { %2098 = vmatprep.subr.bf16.mxu1 %v3558_v42  ;;  %v3559_v41 = vld [vmem:[%s5003_s9 + $0x3d0] ss:$24 sps:$4 sm:$0xff]   ;;  %v3567_v42 = vld [vmem:[%s5003_s9 + $0x404] ss:$24 sps:$4 sm:$0xff]  }
 0x14b   :  { %2222 = vmatpush1.bf16.msra.mxu0 %v3496_v43  ;;  %v3565_v43 = vld [vmem:[%s5003_s9 + $0x400] ss:$24 sps:$4 sm:$0xff]  }
 0x14c   :  { %2223 = vmatprep.subr.bf16.mxu0 %v3501_v44  ;;  %2099 = vmatpush1.bf16.msra.mxu1 %v3556_v45  ;;  %v3624_v44 = vld [vmem:[%s5003_s9 + $0x2a4] ss:$24 sps:$4 sm:$0xff]   ;;  %v3573_v45 = vld [vmem:[%s5003_s9 + $0x434] ss:$24 sps:$4 sm:$0xff]  }
 0x14d   :  { %2100 = vmatprep.subr.bf16.mxu1 %v3564_v46  ;;  %v3622_v46 = vld [vmem:[%s5003_s9 + $0x2a0] ss:$24 sps:$4 sm:$0xff]  }
 0x14f   :  { %2224 = vmatpush1.bf16.msra.mxu0 %v3499_v47  ;;  %v3571_v47 = vld [vmem:[%s5003_s9 + $0x430] ss:$24 sps:$4 sm:$0xff]  }
 0x150   :  { %2225 = vmatprep.subr.bf16.mxu0 %v3504_v49  ;;  %2101 = vmatpush1.bf16.msra.mxu1 %v3562_v51  ;;  %v3630_v49 = vld [vmem:[%s5003_s9 + $0x2d4] ss:$24 sps:$4 sm:$0xff]   ;;  %v3579_v51 = vld [vmem:[%s5003_s9 + $0x464] ss:$24 sps:$4 sm:$0xff]  }
 0x151   :  { %2102 = vmatprep.subr.bf16.mxu1 %v3570_v52  ;;  %v3628_v52 = vld [vmem:[%s5003_s9 + $0x2d0] ss:$24 sps:$4 sm:$0xff]  }
 0x153   :  { %2226 = vmatpush1.bf16.msra.mxu0 %v3502_v53  ;;  %v3577_v53 = vld [vmem:[%s5003_s9 + $0x460] ss:$24 sps:$4 sm:$0xff]  }
 0x154   :  { %2227 = vmatprep.subr.bf16.mxu0 %v3507_v54  ;;  %2103 = vmatpush1.bf16.msra.mxu1 %v3568_v55  ;;  %v3633_v54 = vld [vmem:[%s5003_s9 + $0xc] ss:$24 sps:$4 sm:$0xff]  }
 0x155   :  { %2104 = vmatprep.subr.bf16.mxu1 %v3576_v56  ;;  %v3585_v55 = vld [vmem:[%s5003_s9 + $0x494] ss:$24 sps:$4 sm:$0xff]   ;;  %v3583_v56 = vld [vmem:[%s5003_s9 + $0x490] ss:$24 sps:$4 sm:$0xff]  }
 0x157   :  { %2228 = vmatpush1.bf16.msra.mxu0 %v3505_v57  ;;  %v3591_v57 = vld [vmem:[%s5003_s9 + $0x4c4] ss:$24 sps:$4 sm:$0xff]  }
 0x158   :  { %2229 = vmatprep.subr.bf16.mxu0 %v3510_v58  ;;  %2105 = vmatpush1.bf16.msra.mxu1 %v3574_v59  ;;  %v3589_v58 = vld [vmem:[%s5003_s9 + $0x4c0] ss:$24 sps:$4 sm:$0xff]   ;;  %v3597_v59 = vld [vmem:[%s5003_s9 + $0x4f4] ss:$24 sps:$4 sm:$0xff]  }
 0x159   :  { %2106 = vmatprep.subr.bf16.mxu1 %v3582_v16 }
 0x15b   :  { %2230 = vmatpush1.bf16.msra.mxu0 %v3508_v60  ;;  %v3595_v60 = vld [vmem:[%s5003_s9 + $0x4f0] ss:$24 sps:$4 sm:$0xff]  }
 0x15c   :  { %2231 = vmatprep.subr.bf16.mxu0 %v3513_v61  ;;  %2107 = vmatpush1.bf16.msra.mxu1 %v3580_v18  ;;  %v3603_v61 = vld [vmem:[%s5003_s9 + $0x524] ss:$24 sps:$4 sm:$0xff]  }
 0x15d   :  { %2108 = vmatprep.subr.bf16.mxu1 %v3588_v21 }
 0x15f   :  { %2232 = vmatpush1.bf16.msra.mxu0 %v3511_v62  ;;  %v3601_v62 = vld [vmem:[%s5003_s9 + $0x520] ss:$24 sps:$4 sm:$0xff]  }
 0x160   :  { %2233 = vmatprep.subr.bf16.mxu0 %v3516_v63  ;;  %2109 = vmatpush1.bf16.msra.mxu1 %v3586_v20  ;;  %v3609_v63 = vld [vmem:[%s5003_s9 + $0x554] ss:$24 sps:$4 sm:$0xff]   ;;  %v533_v20 = vrot.slane %v4216_v12, %v4166_v48 }
 0x161   :  { %2110 = vmatprep.subr.bf16.mxu1 %v3594_v25 }
 0x163   :  { %2234 = vmatpush1.bf16.msra.mxu0 %v3514_v0  ;;  %v3607_v0 = vld [vmem:[%s5003_s9 + $0x550] ss:$24 sps:$4 sm:$0xff]  }
 0x164   :  { %2235 = vmatprep.subr.bf16.mxu0 %v3519_v2  ;;  %2111 = vmatpush1.bf16.msra.mxu1 %v3592_v24  ;;  %v3615_v2 = vld [vmem:[%s5003_s9 + $0x584] ss:$24 sps:$4 sm:$0xff]  }
 0x165   :  { %2112 = vmatprep.subr.bf16.mxu1 %v3600_v27 }
 0x167   :  { %2236 = vmatpush1.bf16.msra.mxu0 %v3517_v3  ;;  %v3613_v3 = vld [vmem:[%s5003_s9 + $0x580] ss:$24 sps:$4 sm:$0xff]  }
 0x168   :  { %2237 = vmatprep.subr.bf16.mxu0 %v3522_v4  ;;  %2113 = vmatpush1.bf16.msra.mxu1 %v3598_v28  ;;  %v3621_v4 = vld [vmem:[%s5003_s9 + $0x5b4] ss:$24 sps:$4 sm:$0xff]  }
 0x169   :  { %2114 = vmatprep.subr.bf16.mxu1 %v3606_v32  ;;  %v3631_v32 = vld [vmem:[%s5003_s9 + $0x8] ss:$24 sps:$4 sm:$0xff]  }
 0x16b   :  { %2238 = vmatpush1.bf16.msra.mxu0 %v3520_v5  ;;  %v3619_v5 = vld [vmem:[%s5003_s9 + $0x5b0] ss:$24 sps:$4 sm:$0xff]  }
 0x16c   :  { %2239 = vmatprep.subr.bf16.mxu0 %v3525_v1  ;;  %2115 = vmatpush1.bf16.msra.mxu1 %v3604_v34  ;;  %v3627_v1 = vld [vmem:[%s5003_s9 + $0x5e4] ss:$24 sps:$4 sm:$0xff]   ;;  %v3634_v34 = vld [vmem:[%s5003_s9 + $0x38] ss:$24 sps:$4 sm:$0xff]  }
 0x16d   :  { %2116 = vmatprep.subr.bf16.mxu1 %v3612_v36  ;;  %v3637_v36 = vld [vmem:[%s5003_s9 + $0x68] ss:$24 sps:$4 sm:$0xff]  }
 0x16f   :  { %2240 = vmatpush1.bf16.msra.mxu0 %v3523_v6  ;;  %v3625_v6 = vld [vmem:[%s5003_s9 + $0x5e0] ss:$24 sps:$4 sm:$0xff]  }
 0x170   :  { %2241 = vmatprep.subr.bf16.mxu0 %v3528_v7  ;;  %2117 = vmatpush1.bf16.msra.mxu1 %v3610_v37 }
 0x171   :  { %2118 = vmatprep.subr.bf16.mxu1 %v3618_v8 }
 0x173   :  { %2242 = vmatpush1.bf16.msra.mxu0 %v3526_v9 }
 0x174   :  { %2243 = vmatprep.subr.bf16.mxu0 %v3531_v11  ;;  %2119 = vmatpush1.bf16.msra.mxu1 %v3616_v40  ;;  %v2944_v11 = vld [vmem:[%s5006_s5] ss:$0 sm:$0xff]  ;;  %v3640_v40 = vld [vmem:[%s5003_s9 + $0x98] ss:$24 sps:$4 sm:$0xff]  }
 0x175   :  { %2120 = vmatprep.subr.bf16.mxu1 %v3624_v44  ;;  %v3646_v44 = vld [vmem:[%s5003_s9 + $0xf8] ss:$24 sps:$4 sm:$0xff]  }
 0x177   :  { %2244 = vmatpush1.bf16.msra.mxu0 %v3529_v14 }
 0x178   :  { %2245 = vmatprep.subr.bf16.mxu0 %v3534_v17  ;;  %2121 = vmatpush1.bf16.msra.mxu1 %v3622_v46  ;;  %v3649_v46 = vld [vmem:[%s5003_s9 + $0x128] ss:$24 sps:$4 sm:$0xff]  }
 0x179   :  { %2122 = vmatprep.subr.bf16.mxu1 %v3630_v49  ;;  %v3652_v49 = vld [vmem:[%s5003_s9 + $0x158] ss:$24 sps:$4 sm:$0xff]  }
 0x17b   :  { %2246 = vmatpush1.bf16.msra.mxu0 %v3532_v19  ;;  %v3777_v19 = vmov 1  }
 0x17c   :  { %2297 = vmatprep.subr.bf16.mxu0 %v3537_v22  ;;  %2123 = vmatpush1.bf16.msra.mxu1 %v3628_v52  ;;  %v3655_v52 = vld [vmem:[%s5003_s9 + $0x188] ss:$24 sps:$4 sm:$0xff]  }
 0x17d   :  { %2174 = vmatprep.subr.bf16.mxu1 %v3633_v54  ;;  %v3658_v54 = vld [vmem:[%s5003_s9 + $0x1b8] ss:$24 sps:$4 sm:$0xff]  }
 0x17e   :  { %2248 = vmatmul.mubr.bf16.vlgmr.msra.gmra.mrb[12].mxu0 %v4240_v30 }
 0x17f   :  { %2298 = vmatpush1.bf16.msra.mxu0 %v3535_v23  ;;  %2329 = vmatprep.mubr.bf16.mxu0 %v4242_v31  ;;  %v3555_v31 = vld [vmem:[%s5003_s9 + $0x3a4] ss:$24 sps:$4 sm:$0xff]  }
 0x180   :  { %2299 = vmatprep.subr.bf16.mxu0 %v3543_v26 }
 0x183   :  { %2300 = vmatpush1.bf16.msra.mxu0 %v3541_v29 }
 0x184   :  { %2301 = vmatprep.subr.bf16.mxu0 %v3549_v33 }
 0x187   :  { %2302 = vmatpush1.bf16.msra.mxu0 %v3547_v35  ;;  %v3639_v35 = vld [vmem:[%s5003_s9 + $0x6c] ss:$24 sps:$4 sm:$0xff]  }
 0x188   :  { %2303 = vmatprep.subr.bf16.mxu0 %v3555_v31  ;;  %v3642_v31 = vld [vmem:[%s5003_s9 + $0x9c] ss:$24 sps:$4 sm:$0xff]  }
 0x18b   :  { %2304 = vmatpush1.bf16.msra.mxu0 %v3553_v38 }
 0x18c   :  { %2305 = vmatprep.subr.bf16.mxu0 %v3561_v39 }
 0x18f   :  { %2306 = vmatpush1.bf16.msra.mxu0 %v3559_v41  ;;  %v3645_v41 = vld [vmem:[%s5003_s9 + $0xcc] ss:$24 sps:$4 sm:$0xff]  }
 0x190   :  { %2307 = vmatprep.subr.bf16.mxu0 %v3567_v42  ;;  %v3643_v42 = vld [vmem:[%s5003_s9 + $0xc8] ss:$24 sps:$4 sm:$0xff]  }
 0x193   :  { %2308 = vmatpush1.bf16.msra.mxu0 %v3565_v43  ;;  %v3648_v43 = vld [vmem:[%s5003_s9 + $0xfc] ss:$24 sps:$4 sm:$0xff]  }
 0x194   :  { %2309 = vmatprep.subr.bf16.mxu0 %v3573_v45  ;;  %v3651_v45 = vld [vmem:[%s5003_s9 + $0x12c] ss:$24 sps:$4 sm:$0xff]  }
 0x197   :  { %2310 = vmatpush1.bf16.msra.mxu0 %v3571_v47  ;;  %v3654_v47 = vld [vmem:[%s5003_s9 + $0x15c] ss:$24 sps:$4 sm:$0xff]  }
 0x198   :  { %2311 = vmatprep.subr.bf16.mxu0 %v3579_v51  ;;  %v3657_v51 = vld [vmem:[%s5003_s9 + $0x18c] ss:$24 sps:$4 sm:$0xff]  }
 0x19b   :  { %2312 = vmatpush1.bf16.msra.mxu0 %v3577_v53  ;;  %v3660_v53 = vld [vmem:[%s5003_s9 + $0x1bc] ss:$24 sps:$4 sm:$0xff]  }
 0x19c   :  { %2313 = vmatprep.subr.bf16.mxu0 %v3585_v55  ;;  %v3663_v55 = vld [vmem:[%s5003_s9 + $0x1ec] ss:$24 sps:$4 sm:$0xff]  }
 0x19f   :  { %2314 = vmatpush1.bf16.msra.mxu0 %v3583_v56  ;;  %v3661_v56 = vld [vmem:[%s5003_s9 + $0x1e8] ss:$24 sps:$4 sm:$0xff]  }
 0x1a0   :  { %2315 = vmatprep.subr.bf16.mxu0 %v3591_v57  ;;  %v3666_v57 = vld [vmem:[%s5003_s9 + $0x21c] ss:$24 sps:$4 sm:$0xff]  }
 0x1a3   :  { %2316 = vmatpush1.bf16.msra.mxu0 %v3589_v58  ;;  %v3664_v58 = vld [vmem:[%s5003_s9 + $0x218] ss:$24 sps:$4 sm:$0xff]  }
 0x1a4   :  { %2317 = vmatprep.subr.bf16.mxu0 %v3597_v59  ;;  %v3669_v59 = vld [vmem:[%s5003_s9 + $0x24c] ss:$24 sps:$4 sm:$0xff]  }
 0x1a7   :  { %2318 = vmatpush1.bf16.msra.mxu0 %v3595_v60  ;;  %v3667_v60 = vld [vmem:[%s5003_s9 + $0x248] ss:$24 sps:$4 sm:$0xff]  }
 0x1a8   :  { %2319 = vmatprep.subr.bf16.mxu0 %v3603_v61  ;;  %v3672_v61 = vld [vmem:[%s5003_s9 + $0x27c] ss:$24 sps:$4 sm:$0xff]  }
 0x1ab   :  { %2320 = vmatpush1.bf16.msra.mxu0 %v3601_v62  ;;  %v3670_v62 = vld [vmem:[%s5003_s9 + $0x278] ss:$24 sps:$4 sm:$0xff]  }
 0x1ac   :  { %2321 = vmatprep.subr.bf16.mxu0 %v3609_v63  ;;  %v3675_v63 = vld [vmem:[%s5003_s9 + $0x2ac] ss:$24 sps:$4 sm:$0xff]  }
 0x1af   :  { %2322 = vmatpush1.bf16.msra.mxu0 %v3607_v0  ;;  %v3673_v0 = vld [vmem:[%s5003_s9 + $0x2a8] ss:$24 sps:$4 sm:$0xff]  }
 0x1b0   :  { %2323 = vmatprep.subr.bf16.mxu0 %v3615_v2  ;;  %v3678_v2 = vld [vmem:[%s5003_s9 + $0x2dc] ss:$24 sps:$4 sm:$0xff]  }
 0x1b3   :  { %2324 = vmatpush1.bf16.msra.mxu0 %v3613_v3 }
 0x1b4   :  { %2325 = vmatprep.subr.bf16.mxu0 %v3621_v4 }
 0x1b7   :  { %2326 = vmatpush1.bf16.msra.mxu0 %v3619_v5  ;;  %v3676_v5 = vld [vmem:[%s5003_s9 + $0x2d8] ss:$24 sps:$4 sm:$0xff]  }
 0x1b8   :  { %2327 = vmatprep.subr.bf16.mxu0 %v3627_v1 }
 0x1bb   :  { %2328 = vmatpush1.bf16.msra.mxu0 %v3625_v6  ;;  %v3681_v6 = vld [vmem:[%s5003_s9 + $0x14] ss:$24 sps:$4 sm:$0xff]  }
 0x1be   :  { %2330 = vmatmul.mubr.bf16.vlgmr.msra.gmra.mrb[16].mxu0 %v4240_v30  ;;  %v537_v30 = vrot.slane %v4216_v12, %v4172_v50  ;;  %v3636_v12 = vld [vmem:[%s5003_s9 + $0x3c] ss:$24 sps:$4 sm:$0xff]  }
 0x1f1   :  { %v3250_v7 = vpop.f32.mrb[0].mxu1 }
 0x1f2   :  { %v3251_v9 = vpop.f32.mrb[1].mxu1 }
 0x1f3   :  { %v3252_v14 = vadd.f32 %v3251_v9, %v3250_v7  ;;  %v3253_v16 = vpop.f32.mrb[2].mxu1  ;;  %v3679_v9 = vld [vmem:[%s5003_s9 + $0x10] ss:$24 sps:$4 sm:$0xff]  }
 0x1f4   :  { %v3254_v17 = vpop.f32.mrb[3].mxu1  ;;  %v3687_v16 = vld [vmem:[%s5003_s9 + $0x74] ss:$24 sps:$4 sm:$0xff]  }
 0x1f5   :  { %v490_v18 = vadd.f32 %v3252_v14, %v2944_v11  ;;  %v3684_v11 = vld [vmem:[%s5003_s9 + $0x44] ss:$24 sps:$4 sm:$0xff]   ;;  %v3682_v14 = vld [vmem:[%s5003_s9 + $0x40] ss:$24 sps:$4 sm:$0xff]   ;;  %v3685_v17 = vld [vmem:[%s5003_s9 + $0x70] ss:$24 sps:$4 sm:$0xff]  }
 0x1f7   :  { %801 = vperm.xlu0 %3325, %v490_v18  }
 0x1fb   :  { %3326 = vset.pattern.permute.xlu0 %v3777_v19  ;;  %v3688_v19 = vld [vmem:[%s5003_s9 + $0xa0] ss:$24 sps:$4 sm:$0xff]  }
 0x1fc   :  { %867 = vperm.xlu0 %3326, %v490_v18   ;;  %v3690_v18 = vld [vmem:[%s5003_s9 + $0xa4] ss:$24 sps:$4 sm:$0xff]  }
 0x211   :  { %v744_v21 = vpop.f32.mrb[4].mxu1  ;;  %v4568_v37 = vpop.f32.mrb[8].mxu0 }
 0x212   :  { %v745_v22 = vadd.f32 %v744_v21, %v533_v20  ;;  %v746_v23 = vpop.f32.mrb[5].mxu1  ;;  %v4570_v38 = vpop.f32.mrb[9].mxu0  ;;  %v3693_v20 = vld [vmem:[%s5003_s9 + $0xd4] ss:$24 sps:$4 sm:$0xff]   ;;  %v3696_v21 = vld [vmem:[%s5003_s9 + $0x104] ss:$24 sps:$4 sm:$0xff]  }
 0x213   :  { %v747_v24 = vadd.f32 %v746_v23, %v537_v30  ;;  %v748_v25 = vpop.f32.mrb[6].mxu1  ;;  %v2171_v8 = vpop.f32.mrb[10].mxu0  ;;  %v3691_v30 = vld [vmem:[%s5003_s9 + $0xd0] ss:$24 sps:$4 sm:$0xff]   ;;  %v3694_v23 = vld [vmem:[%s5003_s9 + $0x100] ss:$24 sps:$4 sm:$0xff]  }
 0x214   :  { %v792_v26 = vmax.f32 %v745_v22, 0.0  ;;  %v749_v27 = vpop.f32.mrb[7].mxu1  ;;  %v2172_v39 = vpop.f32.mrb[11].mxu0  ;;  %v796_v22 = vld [vmem:[%s5008_s8] sm:$0x3f]  ;;  %v816_v25 = vsub.s32 4, %v3882_v15 }
 0x215   :  { %v793_v28 = vmax.f32 %v747_v24, 0.0  ;;  %v4692_v24 = vunpack.c.l.bf16 %v796_v22  ;;  %v3699_v27 = vld [vmem:[%s5003_s9 + $0x134] ss:$24 sps:$4 sm:$0xff]   ;;  %v884_v8 = vsub.s32 7, %v3882_v15  ;;  %v3700_v39 = vld [vmem:[%s5003_s9 + $0x160] ss:$24 sps:$4 sm:$0xff]  }
 0x216   :  { %v4548_v33 = vpack.c.bf16 %v792_v26, %v792_v26  ;;  %v820_v26 = vsub.s32 6, %v3882_v15 }
 0x217   :  { %v4543_v29 = vpack.c.bf16 %v793_v28, %v793_v28  ;;  %v798_v28 = vunpack.c.h.bf16 %v796_v22  ;;  %v3748_v22 = vld [vmem:[%s5007_s11 + $0x90] sm:$0xff]  }
 0x219   :  { %2124 = vmatprep.mubr.bf16.mxu1 %v4543_v29 }
 0x21a   :  { %2125 = vmatmul.mubr.bf16.vlgmr.msra.gmra.mrb[8].mxu1 %v4548_v33 }
 0x21b   :  { %2175 = vmatpush1.bf16.msra.mxu1 %v3631_v32  ;;  %2206 = vmatprep.mubr.bf16.mxu1 %v4543_v29  ;;  %v817_v32 = vrot.slane %v4692_v24, %v816_v25 }
 0x21c   :  { %2176 = vmatprep.subr.bf16.mxu1 %v3636_v12  ;;  %v821_v12 = vrot.slane %v4692_v24, %v820_v26  ;;  %v3712_v26 = vld [vmem:[%s5003_s9 + $0x220] ss:$24 sps:$4 sm:$0xff]  }
 0x21f   :  { %2177 = vmatpush1.bf16.msra.mxu1 %v3634_v34  ;;  %v3702_v34 = vld [vmem:[%s5003_s9 + $0x164] ss:$24 sps:$4 sm:$0xff]  }
 0x220   :  { %2178 = vmatprep.subr.bf16.mxu1 %v3639_v35  ;;  %v880_v35 = vsub.s32 5, %v3882_v15 }
 0x223   :  { %2179 = vmatpush1.bf16.msra.mxu1 %v3637_v36  ;;  %v825_v36 = vrot.slane %v798_v28, %v4166_v48 }
 0x224   :  { %2180 = vmatprep.subr.bf16.mxu1 %v3642_v31  ;;  %v829_v31 = vrot.slane %v798_v28, %v4208_v10 }
 0x227   :  { %2181 = vmatpush1.bf16.msra.mxu1 %v3640_v40  ;;  %v847_v40 = vrot.slane %v817_v32, %v4166_v48  ;;  %v3715_v32 = vld [vmem:[%s5003_s9 + $0x250] ss:$24 sps:$4 sm:$0xff]  }
 0x228   :  { %2182 = vmatprep.subr.bf16.mxu1 %v3645_v41  ;;  %v851_v41 = vrot.slane %v821_v12, %v4166_v48  ;;  %v3720_v12 = vld [vmem:[%s5003_s9 + $0x284] ss:$24 sps:$4 sm:$0xff]  }
 0x22b   :  { %2183 = vmatpush1.bf16.msra.mxu1 %v3643_v42  ;;  %v3705_v42 = vld [vmem:[%s5003_s9 + $0x194] ss:$24 sps:$4 sm:$0xff]  }
 0x22c   :  { %2184 = vmatprep.subr.bf16.mxu1 %v3648_v43  ;;  %v881_v43 = vrot.slane %v4692_v24, %v880_v35 }
 0x22f   :  { %2185 = vmatpush1.bf16.msra.mxu1 %v3646_v44  ;;  %v855_v44 = vrot.slane %v825_v36, %v4166_v48  ;;  %v3718_v36 = vld [vmem:[%s5003_s9 + $0x280] ss:$24 sps:$4 sm:$0xff]  }
 0x230   :  { %2186 = vmatprep.subr.bf16.mxu1 %v3651_v45  ;;  %v859_v45 = vrot.slane %v829_v31, %v4166_v48  ;;  %v3723_v31 = vld [vmem:[%s5003_s9 + $0x2b4] ss:$24 sps:$4 sm:$0xff]  }
 0x233   :  { %2187 = vmatpush1.bf16.msra.mxu1 %v3649_v46  ;;  %v885_v46 = vrot.slane %v4692_v24, %v884_v8  ;;  %v3721_v8 = vld [vmem:[%s5003_s9 + $0x2b0] ss:$24 sps:$4 sm:$0xff]  }
 0x234   :  { %2188 = vmatprep.subr.bf16.mxu1 %v3654_v47  ;;  %v889_v47 = vrot.slane %v798_v28, %v4172_v50 }
 0x237   :  { %2189 = vmatpush1.bf16.msra.mxu1 %v3652_v49  ;;  %v893_v49 = vrot.slane %v798_v28, %v4219_v13  ;;  %v3750_v28 = vld [vmem:[%s5007_s11 + $0x98] sm:$0xff]  }
 0x238   :  { %2190 = vmatprep.subr.bf16.mxu1 %v3657_v51 }
 0x23b   :  { %2191 = vmatpush1.bf16.msra.mxu1 %v3655_v52  ;;  %v3703_v52 = vld [vmem:[%s5003_s9 + $0x190] ss:$24 sps:$4 sm:$0xff]  }
 0x23c   :  { %2192 = vmatprep.subr.bf16.mxu1 %v3660_v53 }
 0x23f   :  { %2193 = vmatpush1.bf16.msra.mxu1 %v3658_v54 }
 0x240   :  { %2194 = vmatprep.subr.bf16.mxu1 %v3663_v55  ;;  %v3708_v55 = vld [vmem:[%s5003_s9 + $0x1c4] ss:$24 sps:$4 sm:$0xff]  }
 0x243   :  { %2195 = vmatpush1.bf16.msra.mxu1 %v3661_v56  ;;  %v911_v56 = vrot.slane %v881_v43, %v4172_v50 }
 0x244   :  { %2196 = vmatprep.subr.bf16.mxu1 %v3666_v57 }
 0x247   :  { %2197 = vmatpush1.bf16.msra.mxu1 %v3664_v58 }
 0x248   :  { %2198 = vmatprep.subr.bf16.mxu1 %v3669_v59  ;;  %v915_v59 = vrot.slane %v885_v46, %v4172_v50  ;;  %v3728_v46 = vld [vmem:[%s5007_s11] sm:$0xff]  }
 0x24b   :  { %2199 = vmatpush1.bf16.msra.mxu1 %v3667_v60  ;;  %v919_v60 = vrot.slane %v889_v47, %v4172_v50  ;;  %v3729_v47 = vld [vmem:[%s5007_s11 + $0x48] sm:$0xff]  }
 0x24c   :  { %2200 = vmatprep.subr.bf16.mxu1 %v3672_v61  ;;  %v923_v61 = vrot.slane %v893_v49, %v4172_v50  ;;  %v3730_v49 = vld [vmem:[%s5007_s11 + $0x8] sm:$0xff]  }
 0x24f   :  { %2201 = vmatpush1.bf16.msra.mxu1 %v3670_v62  ;;  %v3743_v62 = vld [vmem:[%s5007_s11 + $0xc0] sm:$0xff]  }
 0x250   :  { %2202 = vmatprep.subr.bf16.mxu1 %v3675_v63  ;;  %v3744_v63 = vld [vmem:[%s5007_s11 + $0x80] sm:$0xff]   ;;  %3278 = vmatprep.subr.bf16.mxu0 %v3743_v62  ;;  %v3740_v62 = vld [vmem:[%s5007_s11 + $0x30] sm:$0xff]  }
 0x251   :  { %v4644_v3 = vpop.f32.mrb[12].mxu0  ;;  %3279 = vmatpush3.bf16.msra.mxu0 %v3744_v63  ;;  %v3741_v63 = vld [vmem:[%s5007_s11 + $0x78] sm:$0xff]  }
 0x252   :  { %v4646_v4 = vpop.f32.mrb[13].mxu0 }
 0x253   :  { %2203 = vmatpush1.bf16.msra.mxu1 %v3673_v0  ;;  %v2253_v1 = vpop.f32.mrb[14].mxu0  ;;  %v3745_v0 = vld [vmem:[%s5007_s11 + $0xc8] sm:$0xff]  }
 0x254   :  { %2204 = vmatprep.subr.bf16.mxu1 %v3678_v2  ;;  %v2254_v7 = vpop.f32.mrb[15].mxu0  ;;  %v3711_v1 = vld [vmem:[%s5003_s9 + $0x1f4] ss:$24 sps:$4 sm:$0xff]   ;;  %3280 = vmatprep.subr.bf16.mxu0 %v3745_v0 }
 0x255   :  { %v3746_v7 = vld [vmem:[%s5007_s11 + $0x88] sm:$0xff]   ;;  %v3755_v0 = vld [vmem:[%s5007_s11 + $0xf0] sm:$0xff]  }
 0x256   :  { %3281 = vmatpush3.bf16.msra.mxu0 %v3746_v7  ;;  %v3758_v7 = vld [vmem:[%s5007_s11 + $0xb8] sm:$0xff]  }
 0x257   :  { %2205 = vmatpush1.bf16.msra.mxu1 %v3676_v5  ;;  %v3706_v5 = vld [vmem:[%s5003_s9 + $0x1c0] ss:$24 sps:$4 sm:$0xff]  }
 0x258   :  { %2256 = vmatprep.subr.bf16.mxu1 %v3681_v6 }
 0x25a   :  { %2207 = vmatmul.mubr.bf16.vlgmr.msra.gmra.mrb[12].mxu1 %v4548_v33 }
 0x25b   :  { %2257 = vmatpush1.bf16.msra.mxu1 %v3679_v9  ;;  %2288 = vmatprep.mubr.bf16.mxu1 %v4543_v29  ;;  %v3697_v29 = vld [vmem:[%s5003_s9 + $0x130] ss:$24 sps:$4 sm:$0xff]  }
 0x25c   :  { %2258 = vmatprep.subr.bf16.mxu1 %v3684_v11 }
 0x25f   :  { %2259 = vmatpush1.bf16.msra.mxu1 %v3682_v14 }
 0x260   :  { %2260 = vmatprep.subr.bf16.mxu1 %v3687_v16  ;;  %v3747_v16 = vld [vmem:[%s5007_s11 + $0xd0] sm:$0xff]  }
 0x261   :  { %3282 = vmatprep.subr.bf16.mxu0 %v3747_v16  ;;  %v809_v16 = vrot.slane %v4692_v24, %v4166_v48 }
 0x262   :  { %3283 = vmatpush3.bf16.msra.mxu0 %v3748_v22 }
 0x263   :  { %2261 = vmatpush1.bf16.msra.mxu1 %v3685_v17 }
 0x264   :  { %2262 = vmatprep.subr.bf16.mxu1 %v3690_v18  ;;  %v3709_v18 = vld [vmem:[%s5003_s9 + $0x1f0] ss:$24 sps:$4 sm:$0xff]  }
 0x267   :  { %2263 = vmatpush1.bf16.msra.mxu1 %v3688_v19 }
 0x268   :  { %2264 = vmatprep.subr.bf16.mxu1 %v3693_v20 }
 0x26b   :  { %2265 = vmatpush1.bf16.msra.mxu1 %v3691_v30 }
 0x26c   :  { %2266 = vmatprep.subr.bf16.mxu1 %v3696_v21  ;;  %v3714_v21 = vld [vmem:[%s5003_s9 + $0x224] ss:$24 sps:$4 sm:$0xff]  }
 0x26f   :  { %2267 = vmatpush1.bf16.msra.mxu1 %v3694_v23  ;;  %v3749_v23 = vld [vmem:[%s5007_s11 + $0xd8] sm:$0xff]  }
 0x270   :  { %2268 = vmatprep.subr.bf16.mxu1 %v3699_v27  ;;  %v3717_v27 = vld [vmem:[%s5003_s9 + $0x254] ss:$24 sps:$4 sm:$0xff]   ;;  %3284 = vmatprep.subr.bf16.mxu0 %v3749_v23  ;;  %v839_v23 = vrot.slane %v809_v16, %v4166_v48 }
 0x271   :  { %3285 = vmatpush3.bf16.msra.mxu0 %v3750_v28  ;;  %v4918_v28 = vld [vmem:[%s5009_s10] sm:$0x3f] }
 0x273   :  { %2269 = vmatpush1.bf16.msra.mxu1 %v3697_v29  ;;  %v3751_v29 = vld [vmem:[%s5007_s11 + $0xe0] sm:$0xff]  }
 0x274   :  { %2270 = vmatprep.subr.bf16.mxu1 %v3702_v34  ;;  %v3752_v34 = vld [vmem:[%s5007_s11 + $0xa0] sm:$0xff]   ;;  %3286 = vmatprep.subr.bf16.mxu0 %v3751_v29 }
 0x275   :  { %3287 = vmatpush3.bf16.msra.mxu0 %v3752_v34 }
 0x276   :  { %v4729_v51 = vpop.permute.xlu0 %801 }
 0x277   :  { %2271 = vmatpush1.bf16.msra.mxu1 %v3700_v39  ;;  %v862_v53 = vmul.f32 %v847_v40, %v4729_v51  ;;  %v863_v54 = vmul.f32 %v851_v41, %v4729_v51  ;;  %v864_v57 = vmul.f32 %v855_v44, %v4729_v51  ;;  %v865_v58 = vmul.f32 %v859_v45, %v4729_v51  ;;  %v3726_v39 = vld [vmem:[%s5003_s9 + $0x2e4] ss:$24 sps:$4 sm:$0xff]  }
 0x278   :  { %2272 = vmatprep.subr.bf16.mxu1 %v3705_v42  ;;  %v3724_v42 = vld [vmem:[%s5003_s9 + $0x2e0] ss:$24 sps:$4 sm:$0xff]  }
 0x279   :  { %v3727_v44 = vld [vmem:[%s5007_s11 + $0x40] sm:$0xff]  }
 0x27b   :  { %2273 = vmatpush1.bf16.msra.mxu1 %v3703_v52  ;;  %v4754_v2 = vpop.permute.xlu0 %867  ;;  %v3731_v52 = vld [vmem:[%s5007_s11 + $0x50] sm:$0xff]  }
 0x27c   :  { %2274 = vmatprep.subr.bf16.mxu1 %v3708_v55  ;;  %v926_v6 = vmul.f32 %v911_v56, %v4754_v2  ;;  %v927_v9 = vmul.f32 %v915_v59, %v4754_v2  ;;  %v928_v11 = vmul.f32 %v919_v60, %v4754_v2  ;;  %v929_v14 = vmul.f32 %v923_v61, %v4754_v2  ;;  %v3735_v55 = vld [vmem:[%s5007_s11 + $0x60] sm:$0xff]   ;;  %v3739_v59 = vld [vmem:[%s5007_s11 + $0x70] sm:$0xff]   ;;  %v3753_v60 = vld [vmem:[%s5007_s11 + $0xe8] sm:$0xff]  }
 0x27d   :  { %v3736_v56 = vld [vmem:[%s5007_s11 + $0x20] sm:$0xff]   ;;  %v3754_v61 = vld [vmem:[%s5007_s11 + $0xa8] sm:$0xff]   ;;  %3288 = vmatprep.subr.bf16.mxu0 %v3753_v60 }
 0x27e   :  { %v4772_v17 = vadd.f32 %v926_v6, %v862_v53  ;;  %v4777_v19 = vadd.f32 %v927_v9, %v863_v54  ;;  %v4779_v20 = vadd.f32 %v928_v11, %v864_v57  ;;  %v4781_v30 = vadd.f32 %v929_v14, %v865_v58  ;;  %v3732_v53 = vld [vmem:[%s5007_s11 + $0x10] sm:$0xff]   ;;  %v3734_v54 = vld [vmem:[%s5007_s11 + $0x18] sm:$0xff]   ;;  %v3737_v57 = vld [vmem:[%s5007_s11 + $0x68] sm:$0xff]   ;;  %3289 = vmatpush3.bf16.msra.mxu0 %v3754_v61 }
 0x27f   :  { %2275 = vmatpush1.bf16.msra.mxu1 %v3706_v5  ;;  %v3738_v58 = vld [vmem:[%s5007_s11 + $0x28] sm:$0xff]   ;;  %v3756_v5 = vld [vmem:[%s5007_s11 + $0xb0] sm:$0xff]   ;;  %3290 = vmatprep.subr.bf16.mxu0 %v3755_v0  ;;  %v3757_v6 = vld [vmem:[%s5007_s11 + $0xf8] sm:$0xff]   ;;  %v873_v11 = vrot.slane %v4692_v24, %v4172_v50  ;;  %v877_v14 = vrot.slane %v4692_v24, %v4219_v13 }
 0x280   :  { %2276 = vmatprep.subr.bf16.mxu1 %v3711_v1  ;;  %v3742_v1 = vld [vmem:[%s5007_s11 + $0x38] sm:$0xff]   ;;  %v3759_v9 = vld [vmem:[%s5007_s11 + $0x140] sm:$0xff]   ;;  %v3770_v60 = vld [vmem:[%s5007_s11 + $0x128] sm:$0xff]  }
 0x281   :  { %v907_v22 = vrot.slane %v877_v14, %v4172_v50  ;;  %v3771_v61 = vld [vmem:[%s5007_s11 + $0x170] sm:$0xff]   ;;  %v3774_v0 = vld [vmem:[%s5007_s11 + $0x138] sm:$0xff]  }
 0x282   :  { %3291 = vmatpush3.bf16.msra.mxu0 %v3756_v5 }
 0x283   :  { %2277 = vmatpush1.bf16.msra.mxu1 %v3709_v18  ;;  %3292 = vmatprep.subr.bf16.mxu0 %v3757_v6  ;;  %v813_v18 = vrot.slane %v4692_v24, %v4208_v10  ;;  %v925_v29 = vmul.f32 %v907_v22, %v4754_v2  ;;  %v2357_v6 = vrot.slane %v4918_v28, %v4208_v10 }
 0x284   :  { %2278 = vmatprep.subr.bf16.mxu1 %v3714_v21  ;;  %v903_v21 = vrot.slane %v873_v11, %v4172_v50  ;;  %v2361_v11 = vrot.slane %v4918_v28, %v4219_v13  ;;  %v2365_v13 = vrot.slane %v4918_v28, %v816_v25 }
 0x286   :  { %3293 = vmatpush3.bf16.msra.mxu0 %v3758_v7 }
 0x287   :  { %2279 = vmatpush1.bf16.msra.mxu1 %v3712_v26  ;;  %v843_v26 = vrot.slane %v813_v18, %v4166_v48 }
 0x288   :  { %2280 = vmatprep.subr.bf16.mxu1 %v3717_v27  ;;  %v924_v27 = vmul.f32 %v903_v21, %v4754_v2 }
 0x28b   :  { %2281 = vmatpush1.bf16.msra.mxu1 %v3715_v32  ;;  %v860_v32 = vmul.f32 %v839_v23, %v4729_v51 }
 0x28c   :  { %2282 = vmatprep.subr.bf16.mxu1 %v3720_v12  ;;  %v861_v12 = vmul.f32 %v843_v26, %v4729_v51 }
 0x28d   :  { %v930_v34 = vadd.f32 %v924_v27, %v860_v32 }
 0x28f   :  { %2283 = vmatpush1.bf16.msra.mxu1 %v3718_v36 }
 0x290   :  { %2284 = vmatprep.subr.bf16.mxu1 %v3723_v31  ;;  %v2349_v31 = vrot.slane %v4918_v28, %v4166_v48  ;;  %v3760_v48 = vld [vmem:[%s5007_s11 + $0x100] sm:$0xff]  }
 0x291   :  { %v4825_v40 = vpop.f32.mrb[16].mxu0 }
 0x292   :  { %v4827_v41 = vpop.f32.mrb[17].mxu0 }
 0x293   :  { %2285 = vmatpush1.bf16.msra.mxu1 %v3721_v8  ;;  %v2335_v43 = vpop.f32.mrb[18].mxu0 }
 0x294   :  { %2286 = vmatprep.subr.bf16.mxu1 %v3726_v39  ;;  %v2336_v45 = vpop.f32.mrb[19].mxu0  ;;  %v931_v39 = vadd.f32 %v925_v29, %v861_v12  ;;  %v2353_v43 = vrot.slane %v4918_v28, %v4172_v50  ;;  %v3762_v50 = vld [vmem:[%s5007_s11 + $0x108] sm:$0xff]  }
 0x297   :  { %2287 = vmatpush1.bf16.msra.mxu1 %v3724_v42 }
 0x298   :  { %3256 = vmatprep.subr.bf16.mxu1 %v3727_v44 }
 0x29a   :  { %2289 = vmatmul.mubr.bf16.vlgmr.msra.gmra.mrb[16].mxu1 %v4548_v33  ;;  %v3733_v33 = vld [vmem:[%s5007_s11 + $0x58] sm:$0xff]  }
 0x29b   :  { %3257 = vmatpush3.bf16.msra.mxu1 %v3728_v46 }
 0x29c   :  { %3258 = vmatprep.subr.bf16.mxu1 %v3729_v47 }
 0x29f   :  { %3259 = vmatpush3.bf16.msra.mxu1 %v3730_v49 }
 0x2a0   :  { %3260 = vmatprep.subr.bf16.mxu1 %v3731_v52 }
 0x2a3   :  { %3261 = vmatpush3.bf16.msra.mxu1 %v3732_v53 }
 0x2a4   :  { %3262 = vmatprep.subr.bf16.mxu1 %v3733_v33  ;;  %v3763_v33 = vld [vmem:[%s5007_s11 + $0x150] sm:$0xff]  }
 0x2a7   :  { %3263 = vmatpush3.bf16.msra.mxu1 %v3734_v54  ;;  %v3764_v54 = vld [vmem:[%s5007_s11 + $0x110] sm:$0xff]  }
 0x2a8   :  { %3264 = vmatprep.subr.bf16.mxu1 %v3735_v55  ;;  %v3765_v55 = vld [vmem:[%s5007_s11 + $0x158] sm:$0xff]  }
 0x2ab   :  { %3265 = vmatpush3.bf16.msra.mxu1 %v3736_v56  ;;  %v3766_v56 = vld [vmem:[%s5007_s11 + $0x118] sm:$0xff]  }
 0x2ac   :  { %3266 = vmatprep.subr.bf16.mxu1 %v3737_v57  ;;  %v3767_v57 = vld [vmem:[%s5007_s11 + $0x160] sm:$0xff]  }
 0x2af   :  { %3267 = vmatpush3.bf16.msra.mxu1 %v3738_v58  ;;  %v3768_v58 = vld [vmem:[%s5007_s11 + $0x120] sm:$0xff]  }
 0x2b0   :  { %3268 = vmatprep.subr.bf16.mxu1 %v3739_v59  ;;  %v3769_v59 = vld [vmem:[%s5007_s11 + $0x168] sm:$0xff]  }
 0x2b3   :  { %3269 = vmatpush3.bf16.msra.mxu1 %v3740_v62  ;;  %v3772_v62 = vld [vmem:[%s5007_s11 + $0x130] sm:$0xff]  }
 0x2b4   :  { %3270 = vmatprep.subr.bf16.mxu1 %v3741_v63  ;;  %v3773_v63 = vld [vmem:[%s5007_s11 + $0x178] sm:$0xff]  }
 0x2b7   :  { %3271 = vmatpush3.bf16.msra.mxu1 %v3742_v1 }
 0x2b8   :  { %3300 = vmatprep.subr.bf16.mxu1 %v3759_v9 }
 0x2ed   :  { %v2126_v24 = vpop.f32.mrb[8].mxu1 }
 0x2ee   :  { %v2168_v36 = vadd.f32 %v4568_v37, %v2126_v24  ;;  %v2128_v8 = vpop.f32.mrb[9].mxu1 }
 0x2ef   :  { %v2170_v42 = vadd.f32 %v4570_v38, %v2128_v8  ;;  %v2130_v44 = vpop.f32.mrb[10].mxu1  ;;  %v3761_v38 = vld [vmem:[%s5007_s11 + $0x148] sm:$0xff]  }
 0x2f0   :  { %v2338_v2 = vadd.f32 %v2168_v36, %v930_v34  ;;  %v2131_v45 = vpop.f32.mrb[11].mxu1 }
 0x2f1   :  { %v2339_v46 = vadd.f32 %v2170_v42, %v931_v39 }
 0x2f2   :  { %v2376_v47 = vadd.f32 %v2349_v31, %v2338_v2 }
 0x2f3   :  { %v2377_v49 = vadd.f32 %v2353_v43, %v2339_v46 }
 0x2f4   :  { %v2382_v51 = vmax.f32 %v2376_v47, 0.0 }
 0x2f5   :  { %v2383_v52 = vmax.f32 %v2377_v49, 0.0 }
 0x2f6   :  { %v2388_v37 = vpack.c.bf16 %v2382_v51, %v2382_v51 }
 0x2f7   :  { %v2389_v53 = vpack.c.bf16 %v2383_v52, %v2383_v52 }
 0x2f9   :  { %2817 = vmatprep.mubr.bf16.mxu1 %v2389_v53 }
 0x2fa   :  { %2818 = vmatmul.mubr.bf16.vlgmr.msra.gmra.mrb[20].mxu1 %v2388_v37 }
 0x2fb   :  { %3301 = vmatpush3.bf16.msra.mxu1 %v3760_v48 }
 0x2fc   :  { %3302 = vmatprep.subr.bf16.mxu1 %v3761_v38 }
 0x2ff   :  { %3303 = vmatpush3.bf16.msra.mxu1 %v3762_v50 }
 0x300   :  { %3304 = vmatprep.subr.bf16.mxu1 %v3763_v33 }
 0x303   :  { %3305 = vmatpush3.bf16.msra.mxu1 %v3764_v54 }
 0x304   :  { %3306 = vmatprep.subr.bf16.mxu1 %v3765_v55 }
 0x307   :  { %3307 = vmatpush3.bf16.msra.mxu1 %v3766_v56 }
 0x308   :  { %3308 = vmatprep.subr.bf16.mxu1 %v3767_v57 }
 0x30b   :  { %3309 = vmatpush3.bf16.msra.mxu1 %v3768_v58 }
 0x30c   :  { %3310 = vmatprep.subr.bf16.mxu1 %v3769_v59 }
 0x30f   :  { %3311 = vmatpush3.bf16.msra.mxu1 %v3770_v60 }
 0x310   :  { %3312 = vmatprep.subr.bf16.mxu1 %v3771_v61 }
 0x313   :  { %3313 = vmatpush3.bf16.msra.mxu1 %v3772_v62 }
 0x314   :  { %3314 = vmatprep.subr.bf16.mxu1 %v3773_v63 }
 0x317   :  { %3315 = vmatpush3.bf16.msra.mxu1 %v3774_v0 }
 0x32d   :  { %v2208_v5 = vpop.f32.mrb[12].mxu1 }
 0x32e   :  { %v2250_v1 = vadd.f32 %v4644_v3, %v2208_v5  ;;  %v2210_v7 = vpop.f32.mrb[13].mxu1 }
 0x32f   :  { %v2252_v9 = vadd.f32 %v4646_v4, %v2210_v7  ;;  %v2212_v14 = vpop.f32.mrb[14].mxu1 }
 0x330   :  { %v2340_v16 = vadd.f32 %v2250_v1, %v4772_v17  ;;  %v2213_v18 = vpop.f32.mrb[15].mxu1 }
 0x331   :  { %v2341_v21 = vadd.f32 %v2252_v9, %v4777_v19  ;;  %v2369_v19 = vrot.slane %v4918_v28, %v880_v35  ;;  %v3185_v35 = vld [vmem:[%s5010_s12] ss:$0 sm:$0xff] }
 0x332   :  { %v2378_v22 = vadd.f32 %v2357_v6, %v2340_v16 }
 0x333   :  { %v2379_v23 = vadd.f32 %v2361_v11, %v2341_v21 }
 0x334   :  { %v2384_v26 = vmax.f32 %v2378_v22, 0.0 }
 0x335   :  { %v2385_v27 = vmax.f32 %v2379_v23, 0.0 }
 0x336   :  { %v2390_v29 = vpack.c.bf16 %v2384_v26, %v2384_v26 }
 0x337   :  { %v2391_v3 = vpack.c.bf16 %v2385_v27, %v2385_v27 }
 0x339   :  { %2857 = vmatprep.mubr.bf16.mxu0 %v2391_v3 }
 0x33a   :  { %2858 = vmatmul.mubr.bf16.vlgmr.msra.gmra.mrb[20].mxu0 %v2390_v29 }
 0x36d   :  { %v2290_v10 = vpop.f32.mrb[16].mxu1 }
 0x36e   :  { %v2332_v4 = vadd.f32 %v4825_v40, %v2290_v10  ;;  %v2292_v32 = vpop.f32.mrb[17].mxu1 }
 0x36f   :  { %v2334_v17 = vadd.f32 %v4827_v41, %v2292_v32  ;;  %v2294_v24 = vpop.f32.mrb[18].mxu1 }
 0x370   :  { %v2342_v12 = vadd.f32 %v2332_v4, %v4779_v20  ;;  %v2295_v34 = vpop.f32.mrb[19].mxu1 }
 0x371   :  { %v2343_v36 = vadd.f32 %v2334_v17, %v4781_v30 }
 0x372   :  { %v2380_v31 = vadd.f32 %v2365_v13, %v2342_v12 }
 0x373   :  { %v2381_v8 = vadd.f32 %v2369_v19, %v2343_v36 }
 0x374   :  { %v2386_v40 = vmax.f32 %v2380_v31, 0.0 }
 0x375   :  { %v2387_v39 = vmax.f32 %v2381_v8, 0.0 }
 0x376   :  { %v2392_v43 = vpack.c.bf16 %v2386_v40, %v2386_v40 }
 0x377   :  { %v2393_v42 = vpack.c.bf16 %v2387_v39, %v2387_v39 }
 0x379   :  { %2897 = vmatprep.mubr.bf16.mxu1 %v2393_v42 }
 0x37a   :  { %2898 = vmatmul.mubr.bf16.vlgmr.msra.gmra.mrb[24].mxu1 %v2392_v43 }
 0x3cd   :  { %v3272_v25 = vpop.f32.mrb[20].mxu1 }
 0x3ce   :  { %v3273_v41 = vpop.f32.mrb[21].mxu1 }
 0x3cf   :  { %v3274_v44 = vadd.f32 %v3273_v41, %v3272_v25  ;;  %v3275_v15 = vpop.f32.mrb[22].mxu1 }
 0x3d0   :  { %v3276_v2 = vpop.f32.mrb[23].mxu1 }
 0x3d1   :  { %v2820_v30 = vadd.f32 %v3274_v44, %v3185_v35 }
 0x40d   :  { %v3294_v20 = vpop.f32.mrb[20].mxu0 }
 0x40e   :  { %v3295_v28 = vpop.f32.mrb[21].mxu0 }
 0x40f   :  { %v3296_v45 = vadd.f32 %v3295_v28, %v3294_v20  ;;  %v3297_v46 = vpop.f32.mrb[22].mxu0 }
 0x410   :  { %v3298_v47 = vpop.f32.mrb[23].mxu0 }
 0x411   :  { %v2860_v49 = vadd.f32 %v3296_v45, %v2820_v30 }
 0x44d   :  { %v3316_v51 = vpop.f32.mrb[24].mxu1 }
 0x44e   :  { %v3317_v52 = vpop.f32.mrb[25].mxu1 }
 0x44f   :  { %v3318_v53 = vadd.f32 %v3317_v52, %v3316_v51  ;;  %v3319_v48 = vpop.f32.mrb[26].mxu1 }
 0x450   :  { %v3320_v37 = vpop.f32.mrb[27].mxu1 }
 0x451   :  { %v2900_v38 = vadd.f32 %v3318_v53, %v2860_v49 }
 0x453   :  { %2906 = vst.msk [vmem:[%s5011_s13] sm:$0x3] %vm2905_vm0, %v2900_v38 }

// kernel: forward.4
= control target key start
LH: loop header
LB: loop body
LE: loop exit
PB: predicated region body
PF: predicated region fallthrough
CT: control target
= control target key end

     0   :  { %s10646_s12 = smov 0   ;;  %s10648_s13 = smov 0   ;;  %s13434_s0 = inlined_call_operand.vmem [shape: bf16[2,6,6,256], index: 0, kind: input, shape index: {}]   ;;  %s13435_s1 = inlined_call_operand.vmem [shape: bf16[25,256,256], index: 1, kind: input, shape index: {}]   ;;  %s13436_s2 = inlined_call_operand.vmem [shape: f32[1,256], index: 2, kind: input, shape index: {}]   ;;  %s13437_s3 = inlined_call_operand.vmem [shape: bf16[2,1,1,256], index: 3, kind: output, shape index: {}]  }
   0x1   :  { %s10650_s14 = smov 0  }
   0x2 LB: > { %s25_s15 = sadd.s32 1, %s10619_s13  ;;  %p7580_p0 = scmp.ge.s32.totalorder %s10623_s14, 1  ;;  %s10623_s14 = sphi %s10650_s14, %s13_s14   ;;  %s10619_s13 = sphi %s10648_s13, %s13439_s13   ;;  %s10615_s12 = sphi %s10646_s12, %s13438_s12  }
   0x3   : > { %p27_p1 = scmp.ge.s32.totalorder %s25_s15, 2  ;;  %p151_p2 = scmp.lt.s32.totalorder %s10623_s14, 3 }
   0x5   : > { %s13441_s15 = smov (%p27_p1, %s25_s15), 0  ;;  %p152_p3 = pnand %p7580_p0, %p151_p2 }
   0x6   : > { %v9389_v0 = vld [vmem:[%s13435_s1 + $0x104] ss:$8 sps:$4 sm:$0xff] (!%p152_p3)   ;;  %v9391_v1 = vld [vmem:[%s13435_s1 + $0x100] ss:$8 sps:$4 sm:$0xff] (!%p152_p3)   ;;  %v9392_v2 = vld [vmem:[%s13435_s1 + $0x114] ss:$8 sps:$4 sm:$0xff] (!%p152_p3)  }
   0x7   : > { %155 = sbr.rel (%p152_p3) target bundleno = 1838 (0x72e), region = 32  ;;  %447 = vmatprep.subr.bf16.mxu0 (!%p152_p3), %v9389_v0  ;;  %712 = vmatprep.subr.bf16.mxu1 (!%p152_p3), %v9389_v0  ;;  %v9394_v3 = vld [vmem:[%s13435_s1 + $0x110] ss:$8 sps:$4 sm:$0xff] (!%p152_p3)   ;;  %v9395_v4 = vld [vmem:[%s13435_s1 + $0x124] ss:$8 sps:$4 sm:$0xff] (!%p152_p3)   ;;  %p178_p4 = scmp.lt.s32.totalorder (!%p152_p3), %s10615_s12, 1 }
   0x8   : > { %448 = vmatpush1.bf16.msra.mxu0 (!%p152_p3), %v9391_v1  ;;  %713 = vmatpush1.bf16.msra.mxu1 (!%p152_p3), %v9391_v1  ;;  %v9397_v5 = vld [vmem:[%s13435_s1 + $0x120] ss:$8 sps:$4 sm:$0xff] (!%p152_p3)   ;;  %v9398_v6 = vld [vmem:[%s13435_s1 + $0x134] ss:$8 sps:$4 sm:$0xff] (!%p152_p3)   ;;  %v9400_v7 = vld [vmem:[%s13435_s1 + $0x130] ss:$8 sps:$4 sm:$0xff] (!%p152_p3)  }
   0x9   : > { %449 = vmatprep.subr.bf16.mxu0 (!%p152_p3), %v9392_v2  ;;  %714 = vmatprep.subr.bf16.mxu1 (!%p152_p3), %v9392_v2  ;;  %v9401_v8 = vld [vmem:[%s13435_s1 + $0x144] ss:$8 sps:$4 sm:$0xff] (!%p152_p3)   ;;  %v9403_v9 = vld [vmem:[%s13435_s1 + $0x140] ss:$8 sps:$4 sm:$0xff] (!%p152_p3)   ;;  %v9404_v10 = vld [vmem:[%s13435_s1 + $0x154] ss:$8 sps:$4 sm:$0xff] (!%p152_p3)  }
   0xa   : > { %v9406_v11 = vld [vmem:[%s13435_s1 + $0x150] ss:$8 sps:$4 sm:$0xff] (!%p152_p3)   ;;  %v9407_v12 = vld [vmem:[%s13435_s1 + $0x164] ss:$8 sps:$4 sm:$0xff] (!%p152_p3)   ;;  %v9409_v14 = vld [vmem:[%s13435_s1 + $0x160] ss:$8 sps:$4 sm:$0xff] (!%p152_p3)  }
   0xb   : > { %v9410_v17 = vld [vmem:[%s13435_s1 + $0x174] ss:$8 sps:$4 sm:$0xff] (!%p152_p3)   ;;  %v9412_v24 = vld [vmem:[%s13435_s1 + $0x170] ss:$8 sps:$4 sm:$0xff] (!%p152_p3)   ;;  %v9413_v25 = vld [vmem:[%s13435_s1 + $0x184] ss:$8 sps:$4 sm:$0xff] (!%p152_p3)  }
   0xc   : > { %450 = vmatpush1.bf16.msra.mxu0 (!%p152_p3), %v9394_v3  ;;  %715 = vmatpush1.bf16.msra.mxu1 (!%p152_p3), %v9394_v3  ;;  %v9415_v29 = vld [vmem:[%s13435_s1 + $0x180] ss:$8 sps:$4 sm:$0xff] (!%p152_p3)   ;;  %v9416_v30 = vld [vmem:[%s13435_s1 + $0x194] ss:$8 sps:$4 sm:$0xff] (!%p152_p3)   ;;  %v9418_v31 = vld [vmem:[%s13435_s1 + $0x190] ss:$8 sps:$4 sm:$0xff] (!%p152_p3)  }
   0xd   : > { %451 = vmatprep.subr.bf16.mxu0 (!%p152_p3), %v9395_v4  ;;  %716 = vmatprep.subr.bf16.mxu1 (!%p152_p3), %v9395_v4  ;;  %v9419_v32 = vld [vmem:[%s13435_s1 + $0x1a4] ss:$8 sps:$4 sm:$0xff] (!%p152_p3)   ;;  %v9421_v33 = vld [vmem:[%s13435_s1 + $0x1a0] ss:$8 sps:$4 sm:$0xff] (!%p152_p3)   ;;  %v9422_v34 = vld [vmem:[%s13435_s1 + $0x1b4] ss:$8 sps:$4 sm:$0xff] (!%p152_p3)  }
   0xe   : > { %s13443_s12 = smov (!%p178_p4, %s10615_s12), 1  ;;  %v9424_v35 = vld [vmem:[%s13435_s1 + $0x1b0] ss:$8 sps:$4 sm:$0xff]   ;;  %v9425_v36 = vld [vmem:[%s13435_s1 + $0x1c4] ss:$8 sps:$4 sm:$0xff]   ;;  %vm7467_vm0 = vcmask 1040384  }
   0xf   : > { %s9363_s7 = smul.u32 48, %s13443_s12  ;;  %v9427_v37 = vld [vmem:[%s13435_s1 + $0x1c0] ss:$8 sps:$4 sm:$0xff]   ;;  %v9428_v38 = vld [vmem:[%s13435_s1 + $0x1d4] ss:$8 sps:$4 sm:$0xff]   ;;  %s7582_s23 = sshll.u32 %s13443_s12, 1 }
  0x10   : > { %452 = vmatpush1.bf16.msra.mxu0 %v9397_v5  ;;  %717 = vmatpush1.bf16.msra.mxu1 %v9397_v5  ;;  %v9430_v41 = vld [vmem:[%s13435_s1 + $0x1d0] ss:$8 sps:$4 sm:$0xff]   ;;  %v9431_v42 = vld [vmem:[%s13435_s1 + $0x1e4] ss:$8 sps:$4 sm:$0xff]   ;;  %v9433_v45 = vld [vmem:[%s13435_s1 + $0x1e0] ss:$8 sps:$4 sm:$0xff]   ;;  %s190_s26 = scalar_lea.vmem %s13437_s3, %s7582_s23 }
  0x11   : > { %453 = vmatprep.subr.bf16.mxu0 %v9398_v6  ;;  %718 = vmatprep.subr.bf16.mxu1 %v9398_v6  ;;  %s10703_s18 = scalar_lea.vmem %s13434_s0, %s9363_s7  ;;  %v9434_v46 = vld [vmem:[%s13435_s1 + $0x1f4] ss:$8 sps:$4 sm:$0xff]   ;;  %v9436_v51 = vld [vmem:[%s13435_s1 + $0x1f0] ss:$8 sps:$4 sm:$0xff]   ;;  %v9441_v52 = vld [vmem:[%s13435_s1 + $0x4] ss:$8 sps:$4 sm:$0xff]  }
  0x12   : > { %v195_v13 = vld [vmem:[%s10703_s18] sm:$0x77]  ;;  %v7583_v16 = vld [vmem:[%s10703_s18 + $0x8] sm:$0x77]  ;;  %v9446_v56 = vld [vmem:[%s13435_s1 + $0x14] ss:$8 sps:$4 sm:$0xff]  }
  0x13   : > { %v10715_v15 = vcombine.high %v195_v13, %v195_v13  ;;  %v10723_v20 = vcombine.high %v7583_v16, %v7583_v16  ;;  %v10774_v39 = vcombine.low %v195_v13, %v195_v13  ;;  %v10776_v40 = vcombine.low %v7583_v16, %v7583_v16  ;;  %v9439_v55 = vld [vmem:[%s13435_s1] ss:$8 sps:$4 sm:$0xff]   ;;  %v9444_v57 = vld [vmem:[%s13435_s1 + $0x10] ss:$8 sps:$4 sm:$0xff]   ;;  %v9449_v58 = vld [vmem:[%s13435_s1 + $0x24] ss:$8 sps:$4 sm:$0xff]  }
  0x14   : > { %454 = vmatpush1.bf16.msra.mxu0 %v9400_v7  ;;  %719 = vmatpush1.bf16.msra.mxu1 %v9400_v7  ;;  %v9447_v59 = vld [vmem:[%s13435_s1 + $0x20] ss:$8 sps:$4 sm:$0xff]   ;;  %v9452_v60 = vld [vmem:[%s13435_s1 + $0x34] ss:$8 sps:$4 sm:$0xff]   ;;  %v9450_v61 = vld [vmem:[%s13435_s1 + $0x30] ss:$8 sps:$4 sm:$0xff]  }
  0x15   : > { %455 = vmatprep.subr.bf16.mxu0 %v9401_v8  ;;  %720 = vmatprep.subr.bf16.mxu1 %v9401_v8  ;;  %v279_v18 = vshrl.u32 %v10715_v15, 16  ;;  %v281_v19 = vshll.u32 %v10715_v15, 16  ;;  %v704_v22 = vshrl.u32 %v10723_v20, 16  ;;  %v706_v23 = vshll.u32 %v10723_v20, 16  ;;  %v9455_v62 = vld [vmem:[%s13435_s1 + $0x44] ss:$8 sps:$4 sm:$0xff]  }
  0x16   : > { %v274_v43 = vshll.u32 %v10774_v39, 16  ;;  %v699_v44 = vshll.u32 %v10776_v40, 16  ;;  %v272_v47 = vshrl.u32 %v10774_v39, 16  ;;  %v697_v49 = vshrl.u32 %v10776_v40, 16  ;;  %v9453_v63 = vld [vmem:[%s13435_s1 + $0x40] ss:$8 sps:$4 sm:$0xff]  }
  0x17   : > { %v283_v21 = vrot.slane %v281_v19, 1  ;;  %v708_v27 = vrot.slane %v706_v23, 1  ;;  %v9458_v0 = vld [vmem:[%s13435_s1 + $0x54] ss:$8 sps:$4 sm:$0xff]   ;;  %v9456_v1 = vld [vmem:[%s13435_s1 + $0x50] ss:$8 sps:$4 sm:$0xff]  }
  0x18   : > { %456 = vmatpush1.bf16.msra.mxu0 %v9403_v9  ;;  %721 = vmatpush1.bf16.msra.mxu1 %v9403_v9  ;;  %v276_v48 = vrot.slane %v274_v43, 1  ;;  %v701_v50 = vrot.slane %v699_v44, 1  ;;  %v9461_v2 = vld [vmem:[%s13435_s1 + $0x64] ss:$8 sps:$4 sm:$0xff]   ;;  %v9459_v3 = vld [vmem:[%s13435_s1 + $0x60] ss:$8 sps:$4 sm:$0xff]  }
  0x19   : > { %457 = vmatprep.subr.bf16.mxu0 %v9404_v10  ;;  %722 = vmatprep.subr.bf16.mxu1 %v9404_v10  ;;  %v284_v26 = vor.u32 %v283_v21, %v279_v18  ;;  %v10741_v28 = vor.u32 %v708_v27, %v704_v22  ;;  %v9464_v4 = vld [vmem:[%s13435_s1 + $0x74] ss:$8 sps:$4 sm:$0xff]   ;;  %v9462_v5 = vld [vmem:[%s13435_s1 + $0x70] ss:$8 sps:$4 sm:$0xff]   ;;  %v9467_v6 = vld [vmem:[%s13435_s1 + $0x84] ss:$8 sps:$4 sm:$0xff]  }
  0x1a   : > { %v277_v53 = vor.u32 %v276_v48, %v272_v47  ;;  %v10808_v54 = vor.u32 %v701_v50, %v697_v49  ;;  %v9465_v7 = vld [vmem:[%s13435_s1 + $0x80] ss:$8 sps:$4 sm:$0xff]   ;;  %v9470_v8 = vld [vmem:[%s13435_s1 + $0x94] ss:$8 sps:$4 sm:$0xff]   ;;  %v9468_v9 = vld [vmem:[%s13435_s1 + $0x90] ss:$8 sps:$4 sm:$0xff]  }
  0x1b   : > { %479 = vmatprep.mubr.bf16.mxu0 %v284_v26  ;;  %744 = vmatprep.mubr.bf16.mxu1 %v10741_v28  ;;  %v9473_v10 = vld [vmem:[%s13435_s1 + $0xa4] ss:$8 sps:$4 sm:$0xff]   ;;  %v9474_v13 = vld [vmem:[%s13435_s1 + $0xb0] ss:$8 sps:$4 sm:$0xff]   ;;  %v9477_v16 = vld [vmem:[%s13435_s1 + $0xc0] ss:$8 sps:$4 sm:$0xff]  }
  0x1c   : > { %458 = vmatpush1.bf16.msra.mxu0 %v9406_v11  ;;  %723 = vmatpush1.bf16.msra.mxu1 %v9406_v11  ;;  %v9471_v11 = vld [vmem:[%s13435_s1 + $0xa0] ss:$8 sps:$4 sm:$0xff]   ;;  %v9480_v21 = vld [vmem:[%s13435_s1 + $0xd0] ss:$8 sps:$4 sm:$0xff]   ;;  %v9488_v26 = vld [vmem:[%s13435_s1 + $0xf4] ss:$8 sps:$4 sm:$0xff]  }
  0x1d   : > { %459 = vmatprep.subr.bf16.mxu0 %v9407_v12  ;;  %724 = vmatprep.subr.bf16.mxu1 %v9407_v12  ;;  %v9476_v12 = vld [vmem:[%s13435_s1 + $0xb4] ss:$8 sps:$4 sm:$0xff]   ;;  %v9486_v27 = vld [vmem:[%s13435_s1 + $0xf0] ss:$8 sps:$4 sm:$0xff]   ;;  %v9509_v48 = vld [vmem:[%s13435_s1 + $0x264] ss:$8 sps:$4 sm:$0xff]  }
  0x1e   : > { %v9507_v50 = vld [vmem:[%s13435_s1 + $0x260] ss:$8 sps:$4 sm:$0xff]   ;;  %vm7468_vm1 = vsmask.f32 256  ;;  %vm7470_vm2 = vcmask 1041409  }
  0x1f   : > { %vm7471_vm3 = vsmask.f32 1280  ;;  %vm7469_vm4 = vmand %vm7467_vm0, %vm7468_vm1 }
  0x20   : > { %460 = vmatpush1.bf16.msra.mxu0 %v9409_v14  ;;  %725 = vmatpush1.bf16.msra.mxu1 %v9409_v14  ;;  %v9479_v14 = vld [vmem:[%s13435_s1 + $0xc4] ss:$8 sps:$4 sm:$0xff]   ;;  %vm7472_vm5 = vmand %vm7470_vm2, %vm7471_vm3 }
  0x21   : > { %461 = vmatprep.subr.bf16.mxu0 %v9410_v17  ;;  %726 = vmatprep.subr.bf16.mxu1 %v9410_v17  ;;  %v9482_v17 = vld [vmem:[%s13435_s1 + $0xd4] ss:$8 sps:$4 sm:$0xff]   ;;  %vm7473_vm6 = vmor %vm7472_vm5, %vm7469_vm4 }
  0x24   : > { %462 = vmatpush1.bf16.msra.mxu0 %v9412_v24  ;;  %727 = vmatpush1.bf16.msra.mxu1 %v9412_v24  ;;  %v9485_v24 = vld [vmem:[%s13435_s1 + $0xe4] ss:$8 sps:$4 sm:$0xff]  }
  0x25   : > { %463 = vmatprep.subr.bf16.mxu0 %v9413_v25  ;;  %728 = vmatprep.subr.bf16.mxu1 %v9413_v25  ;;  %v9483_v25 = vld [vmem:[%s13435_s1 + $0xe0] ss:$8 sps:$4 sm:$0xff]  }
  0x28   : > { %464 = vmatpush1.bf16.msra.mxu0 %v9415_v29  ;;  %729 = vmatpush1.bf16.msra.mxu1 %v9415_v29  ;;  %v9491_v29 = vld [vmem:[%s13435_s1 + $0x204] ss:$8 sps:$4 sm:$0xff]  }
  0x29   : > { %465 = vmatprep.subr.bf16.mxu0 %v9416_v30  ;;  %730 = vmatprep.subr.bf16.mxu1 %v9416_v30  ;;  %v9489_v30 = vld [vmem:[%s13435_s1 + $0x200] ss:$8 sps:$4 sm:$0xff]  }
  0x2c   : > { %466 = vmatpush1.bf16.msra.mxu0 %v9418_v31  ;;  %731 = vmatpush1.bf16.msra.mxu1 %v9418_v31  ;;  %v9494_v31 = vld [vmem:[%s13435_s1 + $0x214] ss:$8 sps:$4 sm:$0xff]  }
  0x2d   : > { %467 = vmatprep.subr.bf16.mxu0 %v9419_v32  ;;  %732 = vmatprep.subr.bf16.mxu1 %v9419_v32  ;;  %v830_v32 = vrot.slane %v10715_v15, 1 }
  0x30   : > { %468 = vmatpush1.bf16.msra.mxu0 %v9421_v33  ;;  %733 = vmatpush1.bf16.msra.mxu1 %v9421_v33  ;;  %v1037_v33 = vrot.slane %v10723_v20, 1 }
  0x31   : > { %469 = vmatprep.subr.bf16.mxu0 %v9422_v34  ;;  %734 = vmatprep.subr.bf16.mxu1 %v9422_v34  ;;  %v9492_v34 = vld [vmem:[%s13435_s1 + $0x210] ss:$8 sps:$4 sm:$0xff]  }
  0x34   : > { %470 = vmatpush1.bf16.msra.mxu0 %v9424_v35  ;;  %735 = vmatpush1.bf16.msra.mxu1 %v9424_v35  ;;  %v9497_v35 = vld [vmem:[%s13435_s1 + $0x224] ss:$8 sps:$4 sm:$0xff]  }
  0x35   : > { %471 = vmatprep.subr.bf16.mxu0 %v9425_v36  ;;  %736 = vmatprep.subr.bf16.mxu1 %v9425_v36  ;;  %v9495_v36 = vld [vmem:[%s13435_s1 + $0x220] ss:$8 sps:$4 sm:$0xff]  }
  0x38   : > { %472 = vmatpush1.bf16.msra.mxu0 %v9427_v37  ;;  %737 = vmatpush1.bf16.msra.mxu1 %v9427_v37  ;;  %v9500_v37 = vld [vmem:[%s13435_s1 + $0x234] ss:$8 sps:$4 sm:$0xff]  }
  0x39   : > { %473 = vmatprep.subr.bf16.mxu0 %v9428_v38  ;;  %738 = vmatprep.subr.bf16.mxu1 %v9428_v38  ;;  %v9498_v38 = vld [vmem:[%s13435_s1 + $0x230] ss:$8 sps:$4 sm:$0xff]  }
  0x3c   : > { %474 = vmatpush1.bf16.msra.mxu0 %v9430_v41  ;;  %739 = vmatpush1.bf16.msra.mxu1 %v9430_v41  ;;  %v9503_v41 = vld [vmem:[%s13435_s1 + $0x244] ss:$8 sps:$4 sm:$0xff]  }
  0x3d   : > { %475 = vmatprep.subr.bf16.mxu0 %v9431_v42  ;;  %740 = vmatprep.subr.bf16.mxu1 %v9431_v42  ;;  %v9501_v42 = vld [vmem:[%s13435_s1 + $0x240] ss:$8 sps:$4 sm:$0xff]  }
  0x40   : > { %476 = vmatpush1.bf16.msra.mxu0 %v9433_v45  ;;  %741 = vmatpush1.bf16.msra.mxu1 %v9433_v45  ;;  %v9506_v45 = vld [vmem:[%s13435_s1 + $0x254] ss:$8 sps:$4 sm:$0xff]  }
  0x41   : > { %477 = vmatprep.subr.bf16.mxu0 %v9434_v46  ;;  %742 = vmatprep.subr.bf16.mxu1 %v9434_v46  ;;  %v9504_v46 = vld [vmem:[%s13435_s1 + $0x250] ss:$8 sps:$4 sm:$0xff]  }
  0x44   : > { %478 = vmatpush1.bf16.msra.mxu0 %v9436_v51  ;;  %743 = vmatpush1.bf16.msra.mxu1 %v9436_v51  ;;  %v9512_v51 = vld [vmem:[%s13435_s1 + $0x274] ss:$8 sps:$4 sm:$0xff]  }
  0x45   : > { %650 = vmatprep.subr.bf16.mxu0 %v9441_v52  ;;  %755 = vmatprep.subr.bf16.mxu1 %v9441_v52  ;;  %v9510_v52 = vld [vmem:[%s13435_s1 + $0x270] ss:$8 sps:$4 sm:$0xff]  }
  0x47   : > { %480 = vmatmul.mubr.bf16.vlgmr.msra.gmra.mrb[0].mxu0 %v277_v53  ;;  %745 = vmatmul.mubr.bf16.vlgmr.msra.gmra.mrb[0].mxu1 %v10808_v54  ;;  %v9515_v53 = vld [vmem:[%s13435_s1 + $0x284] ss:$8 sps:$4 sm:$0xff]  }
  0x48   : > { %651 = vmatpush1.bf16.msra.mxu0 %v9439_v55  ;;  %756 = vmatpush1.bf16.msra.mxu1 %v9439_v55  ;;  %v9513_v55 = vld [vmem:[%s13435_s1 + $0x280] ss:$8 sps:$4 sm:$0xff]  }
  0x49   : > { %652 = vmatprep.subr.bf16.mxu0 %v9446_v56  ;;  %757 = vmatprep.subr.bf16.mxu1 %v9446_v56  ;;  %v9518_v56 = vld [vmem:[%s13435_s1 + $0x294] ss:$8 sps:$4 sm:$0xff]  }
  0x4a   : > { %682 = vmatprep.mubr.bf16.mxu0 %v10715_v15  ;;  %787 = vmatprep.mubr.bf16.mxu1 %v10723_v20 }
  0x4c   : > { %653 = vmatpush1.bf16.msra.mxu0 %v9444_v57  ;;  %758 = vmatpush1.bf16.msra.mxu1 %v9444_v57  ;;  %v9516_v57 = vld [vmem:[%s13435_s1 + $0x290] ss:$8 sps:$4 sm:$0xff]  }
  0x4d   : > { %654 = vmatprep.subr.bf16.mxu0 %v9449_v58  ;;  %759 = vmatprep.subr.bf16.mxu1 %v9449_v58  ;;  %v9521_v58 = vld [vmem:[%s13435_s1 + $0x2a4] ss:$8 sps:$4 sm:$0xff]  }
  0x50   : > { %655 = vmatpush1.bf16.msra.mxu0 %v9447_v59  ;;  %760 = vmatpush1.bf16.msra.mxu1 %v9447_v59  ;;  %v9519_v59 = vld [vmem:[%s13435_s1 + $0x2a0] ss:$8 sps:$4 sm:$0xff]  }
  0x51   : > { %656 = vmatprep.subr.bf16.mxu0 %v9452_v60  ;;  %761 = vmatprep.subr.bf16.mxu1 %v9452_v60  ;;  %v9524_v60 = vld [vmem:[%s13435_s1 + $0x2b4] ss:$8 sps:$4 sm:$0xff]  }
  0x54   : > { %657 = vmatpush1.bf16.msra.mxu0 %v9450_v61  ;;  %762 = vmatpush1.bf16.msra.mxu1 %v9450_v61  ;;  %v9522_v61 = vld [vmem:[%s13435_s1 + $0x2b0] ss:$8 sps:$4 sm:$0xff]  }
  0x55   : > { %658 = vmatprep.subr.bf16.mxu0 %v9455_v62  ;;  %763 = vmatprep.subr.bf16.mxu1 %v9455_v62  ;;  %v9527_v62 = vld [vmem:[%s13435_s1 + $0x2c4] ss:$8 sps:$4 sm:$0xff]  }
  0x58   : > { %659 = vmatpush1.bf16.msra.mxu0 %v9453_v63  ;;  %764 = vmatpush1.bf16.msra.mxu1 %v9453_v63  ;;  %v9525_v63 = vld [vmem:[%s13435_s1 + $0x2c0] ss:$8 sps:$4 sm:$0xff]  }
  0x59   : > { %660 = vmatprep.subr.bf16.mxu0 %v9458_v0  ;;  %765 = vmatprep.subr.bf16.mxu1 %v9458_v0  ;;  %v9530_v0 = vld [vmem:[%s13435_s1 + $0x2d4] ss:$8 sps:$4 sm:$0xff]  }
  0x5c   : > { %661 = vmatpush1.bf16.msra.mxu0 %v9456_v1  ;;  %766 = vmatpush1.bf16.msra.mxu1 %v9456_v1  ;;  %v9528_v1 = vld [vmem:[%s13435_s1 + $0x2d0] ss:$8 sps:$4 sm:$0xff]  }
  0x5d   : > { %662 = vmatprep.subr.bf16.mxu0 %v9461_v2  ;;  %767 = vmatprep.subr.bf16.mxu1 %v9461_v2  ;;  %v9533_v2 = vld [vmem:[%s13435_s1 + $0x2e4] ss:$8 sps:$4 sm:$0xff]  }
  0x60   : > { %663 = vmatpush1.bf16.msra.mxu0 %v9459_v3  ;;  %768 = vmatpush1.bf16.msra.mxu1 %v9459_v3  ;;  %v9531_v3 = vld [vmem:[%s13435_s1 + $0x2e0] ss:$8 sps:$4 sm:$0xff]  }
  0x61   : > { %664 = vmatprep.subr.bf16.mxu0 %v9464_v4  ;;  %769 = vmatprep.subr.bf16.mxu1 %v9464_v4  ;;  %v9536_v4 = vld [vmem:[%s13435_s1 + $0x2f4] ss:$8 sps:$4 sm:$0xff]  }
  0x64   : > { %665 = vmatpush1.bf16.msra.mxu0 %v9462_v5  ;;  %770 = vmatpush1.bf16.msra.mxu1 %v9462_v5  ;;  %v9534_v5 = vld [vmem:[%s13435_s1 + $0x2f0] ss:$8 sps:$4 sm:$0xff]  }
  0x65   : > { %666 = vmatprep.subr.bf16.mxu0 %v9467_v6  ;;  %771 = vmatprep.subr.bf16.mxu1 %v9467_v6  ;;  %v9539_v6 = vld [vmem:[%s13435_s1 + $0x304] ss:$8 sps:$4 sm:$0xff]  }
  0x68   : > { %667 = vmatpush1.bf16.msra.mxu0 %v9465_v7  ;;  %772 = vmatpush1.bf16.msra.mxu1 %v9465_v7  ;;  %v1119_v7 = vrot.slane %v279_v18, 1  ;;  %v9537_v18 = vld [vmem:[%s13435_s1 + $0x300] ss:$8 sps:$4 sm:$0xff]  }
  0x69   : > { %668 = vmatprep.subr.bf16.mxu0 %v9470_v8  ;;  %773 = vmatprep.subr.bf16.mxu1 %v9470_v8  ;;  %v1330_v8 = vrot.slane %v704_v22, 1  ;;  %v9542_v22 = vld [vmem:[%s13435_s1 + $0x314] ss:$8 sps:$4 sm:$0xff]  }
  0x6c   : > { %669 = vmatpush1.bf16.msra.mxu0 %v9468_v9  ;;  %774 = vmatpush1.bf16.msra.mxu1 %v9468_v9  ;;  %v1120_v9 = vrot.slane %v281_v19, 2 }
  0x6d   : > { %670 = vmatprep.subr.bf16.mxu0 %v9473_v10  ;;  %775 = vmatprep.subr.bf16.mxu1 %v9473_v10  ;;  %v1331_v10 = vrot.slane %v706_v23, 2  ;;  %v9540_v23 = vld [vmem:[%s13435_s1 + $0x310] ss:$8 sps:$4 sm:$0xff]  }
  0x6e   : > { %v1121_v19 = vor.u32 %v1120_v9, %v1119_v7  ;;  %v9600_v7 = vld [vmem:[%s13435_s1 + $0x450] ss:$8 sps:$4 sm:$0xff]   ;;  %v9603_v9 = vld [vmem:[%s13435_s1 + $0x460] ss:$8 sps:$4 sm:$0xff]  }
  0x70   : > { %671 = vmatpush1.bf16.msra.mxu0 %v9471_v11  ;;  %776 = vmatpush1.bf16.msra.mxu1 %v9471_v11  ;;  %v829_v11 = vrot.slane %v10774_v39, 1 }
  0x71   : > { %672 = vmatprep.subr.bf16.mxu0 %v9476_v12  ;;  %777 = vmatprep.subr.bf16.mxu1 %v9476_v12  ;;  %v1036_v12 = vrot.slane %v10776_v40, 1 }
  0x74   : > { %673 = vmatpush1.bf16.msra.mxu0 %v9474_v13  ;;  %778 = vmatpush1.bf16.msra.mxu1 %v9474_v13  ;;  %v11027_v13 = vor.u32 %v1331_v10, %v1330_v8  ;;  %v9605_v8 = vld [vmem:[%s13435_s1 + $0x464] ss:$8 sps:$4 sm:$0xff]   ;;  %v9608_v10 = vld [vmem:[%s13435_s1 + $0x474] ss:$8 sps:$4 sm:$0xff]  }
  0x75   : > { %674 = vmatprep.subr.bf16.mxu0 %v9479_v14  ;;  %779 = vmatprep.subr.bf16.mxu1 %v9479_v14  ;;  %v9545_v14 = vld [vmem:[%s13435_s1 + $0x324] ss:$8 sps:$4 sm:$0xff]  }
  0x78   : > { %675 = vmatpush1.bf16.msra.mxu0 %v9477_v16  ;;  %780 = vmatpush1.bf16.msra.mxu1 %v9477_v16  ;;  %v9543_v16 = vld [vmem:[%s13435_s1 + $0x320] ss:$8 sps:$4 sm:$0xff]  }
  0x79   : > { %676 = vmatprep.subr.bf16.mxu0 %v9482_v17  ;;  %781 = vmatprep.subr.bf16.mxu1 %v9482_v17  ;;  %v9548_v17 = vld [vmem:[%s13435_s1 + $0x334] ss:$8 sps:$4 sm:$0xff]  }
  0x7c   : > { %677 = vmatpush1.bf16.msra.mxu0 %v9480_v21  ;;  %782 = vmatpush1.bf16.msra.mxu1 %v9480_v21  ;;  %v9546_v21 = vld [vmem:[%s13435_s1 + $0x330] ss:$8 sps:$4 sm:$0xff]  }
  0x7d   : > { %678 = vmatprep.subr.bf16.mxu0 %v9485_v24  ;;  %783 = vmatprep.subr.bf16.mxu1 %v9485_v24  ;;  %v9551_v24 = vld [vmem:[%s13435_s1 + $0x344] ss:$8 sps:$4 sm:$0xff]  }
  0x80   : > { %679 = vmatpush1.bf16.msra.mxu0 %v9483_v25  ;;  %784 = vmatpush1.bf16.msra.mxu1 %v9483_v25  ;;  %v9549_v25 = vld [vmem:[%s13435_s1 + $0x340] ss:$8 sps:$4 sm:$0xff]  }
  0x81   : > { %680 = vmatprep.subr.bf16.mxu0 %v9488_v26  ;;  %785 = vmatprep.subr.bf16.mxu1 %v9488_v26  ;;  %v9554_v26 = vld [vmem:[%s13435_s1 + $0x354] ss:$8 sps:$4 sm:$0xff]  }
  0x84   : > { %681 = vmatpush1.bf16.msra.mxu0 %v9486_v27  ;;  %786 = vmatpush1.bf16.msra.mxu1 %v9486_v27  ;;  %v9552_v27 = vld [vmem:[%s13435_s1 + $0x350] ss:$8 sps:$4 sm:$0xff]  }
  0x85   : > { %993 = vmatprep.subr.bf16.mxu0 %v9491_v29  ;;  %1040 = vmatprep.subr.bf16.mxu1 %v9491_v29  ;;  %v9557_v29 = vld [vmem:[%s13435_s1 + $0x364] ss:$8 sps:$4 sm:$0xff]  }
  0x87   : > { %683 = vmatmul.mubr.bf16.vlgmr.msra.gmra.mrb[0].mxu0 %v10774_v39  ;;  %788 = vmatmul.mubr.bf16.vlgmr.msra.gmra.mrb[0].mxu1 %v10776_v40 }
  0x88   : > { %994 = vmatpush1.bf16.msra.mxu0 %v9489_v30  ;;  %1041 = vmatpush1.bf16.msra.mxu1 %v9489_v30  ;;  %v9555_v30 = vld [vmem:[%s13435_s1 + $0x360] ss:$8 sps:$4 sm:$0xff]  }
  0x89   : > { %995 = vmatprep.subr.bf16.mxu0 %v9494_v31  ;;  %1042 = vmatprep.subr.bf16.mxu1 %v9494_v31  ;;  %v9560_v31 = vld [vmem:[%s13435_s1 + $0x374] ss:$8 sps:$4 sm:$0xff]  }
  0x8a   : > { %1025 = vmatprep.mubr.bf16.mxu0 %v830_v32  ;;  %1072 = vmatprep.mubr.bf16.mxu1 %v1037_v33  ;;  %v9558_v32 = vld [vmem:[%s13435_s1 + $0x370] ss:$8 sps:$4 sm:$0xff]  }
  0x8c   : > { %996 = vmatpush1.bf16.msra.mxu0 %v9492_v34  ;;  %1043 = vmatpush1.bf16.msra.mxu1 %v9492_v34  ;;  %v9563_v34 = vld [vmem:[%s13435_s1 + $0x384] ss:$8 sps:$4 sm:$0xff]  }
  0x8d   : > { %997 = vmatprep.subr.bf16.mxu0 %v9497_v35  ;;  %1044 = vmatprep.subr.bf16.mxu1 %v9497_v35  ;;  %v9561_v35 = vld [vmem:[%s13435_s1 + $0x380] ss:$8 sps:$4 sm:$0xff]  }
  0x90   : > { %998 = vmatpush1.bf16.msra.mxu0 %v9495_v36  ;;  %1045 = vmatpush1.bf16.msra.mxu1 %v9495_v36  ;;  %v9566_v36 = vld [vmem:[%s13435_s1 + $0x394] ss:$8 sps:$4 sm:$0xff]  }
  0x91   : > { %999 = vmatprep.subr.bf16.mxu0 %v9500_v37  ;;  %1046 = vmatprep.subr.bf16.mxu1 %v9500_v37  ;;  %v9564_v37 = vld [vmem:[%s13435_s1 + $0x390] ss:$8 sps:$4 sm:$0xff]  }
  0x94   : > { %1000 = vmatpush1.bf16.msra.mxu0 %v9498_v38  ;;  %1047 = vmatpush1.bf16.msra.mxu1 %v9498_v38  ;;  %v9569_v38 = vld [vmem:[%s13435_s1 + $0x3a4] ss:$8 sps:$4 sm:$0xff]  }
  0x95   : > { %1001 = vmatprep.subr.bf16.mxu0 %v9503_v41  ;;  %1048 = vmatprep.subr.bf16.mxu1 %v9503_v41  ;;  %v9567_v41 = vld [vmem:[%s13435_s1 + $0x3a0] ss:$8 sps:$4 sm:$0xff]  }
  0x98   : > { %1002 = vmatpush1.bf16.msra.mxu0 %v9501_v42  ;;  %1049 = vmatpush1.bf16.msra.mxu1 %v9501_v42  ;;  %v9572_v42 = vld [vmem:[%s13435_s1 + $0x3b4] ss:$8 sps:$4 sm:$0xff]  }
  0x99   : > { %1003 = vmatprep.subr.bf16.mxu0 %v9506_v45  ;;  %1050 = vmatprep.subr.bf16.mxu1 %v9506_v45  ;;  %v9570_v45 = vld [vmem:[%s13435_s1 + $0x3b0] ss:$8 sps:$4 sm:$0xff]  }
  0x9c   : > { %1004 = vmatpush1.bf16.msra.mxu0 %v9504_v46  ;;  %1051 = vmatpush1.bf16.msra.mxu1 %v9504_v46  ;;  %v9575_v46 = vld [vmem:[%s13435_s1 + $0x3c4] ss:$8 sps:$4 sm:$0xff]  }
  0x9d   : > { %1005 = vmatprep.subr.bf16.mxu0 %v9509_v48  ;;  %1052 = vmatprep.subr.bf16.mxu1 %v9509_v48  ;;  %v9573_v48 = vld [vmem:[%s13435_s1 + $0x3c0] ss:$8 sps:$4 sm:$0xff]  }
  0xa0   : > { %1006 = vmatpush1.bf16.msra.mxu0 %v9507_v50  ;;  %1053 = vmatpush1.bf16.msra.mxu1 %v9507_v50  ;;  %v9578_v50 = vld [vmem:[%s13435_s1 + $0x3d4] ss:$8 sps:$4 sm:$0xff]  }
  0xa1   : > { %1007 = vmatprep.subr.bf16.mxu0 %v9512_v51  ;;  %1054 = vmatprep.subr.bf16.mxu1 %v9512_v51  ;;  %v9576_v51 = vld [vmem:[%s13435_s1 + $0x3d0] ss:$8 sps:$4 sm:$0xff]  }
  0xa4   : > { %1008 = vmatpush1.bf16.msra.mxu0 %v9510_v52  ;;  %1055 = vmatpush1.bf16.msra.mxu1 %v9510_v52  ;;  %v9581_v52 = vld [vmem:[%s13435_s1 + $0x3e4] ss:$8 sps:$4 sm:$0xff]  }
  0xa5   : > { %1009 = vmatprep.subr.bf16.mxu0 %v9515_v53  ;;  %1056 = vmatprep.subr.bf16.mxu1 %v9515_v53  ;;  %v9579_v53 = vld [vmem:[%s13435_s1 + $0x3e0] ss:$8 sps:$4 sm:$0xff]  }
  0xa8   : > { %1010 = vmatpush1.bf16.msra.mxu0 %v9513_v55  ;;  %1057 = vmatpush1.bf16.msra.mxu1 %v9513_v55  ;;  %v9584_v55 = vld [vmem:[%s13435_s1 + $0x3f4] ss:$8 sps:$4 sm:$0xff]  }
  0xa9   : > { %1011 = vmatprep.subr.bf16.mxu0 %v9518_v56  ;;  %1058 = vmatprep.subr.bf16.mxu1 %v9518_v56  ;;  %v1116_v56 = vrot.slane %v272_v47, 1 }
  0xac   : > { %1012 = vmatpush1.bf16.msra.mxu0 %v9516_v57  ;;  %1059 = vmatpush1.bf16.msra.mxu1 %v9516_v57  ;;  %v1327_v57 = vrot.slane %v697_v49, 1 }
  0xad   : > { %1013 = vmatprep.subr.bf16.mxu0 %v9521_v58  ;;  %1060 = vmatprep.subr.bf16.mxu1 %v9521_v58  ;;  %v1117_v58 = vrot.slane %v274_v43, 2  ;;  %v9585_v43 = vld [vmem:[%s13435_s1 + $0x400] ss:$8 sps:$4 sm:$0xff]  }
  0xaf   : > { %v1118_v47 = vor.u32 %v1117_v58, %v1116_v56  ;;  %v9653_v56 = vld [vmem:[%s13435_s1 + $0x564] ss:$8 sps:$4 sm:$0xff]   ;;  %v9656_v58 = vld [vmem:[%s13435_s1 + $0x574] ss:$8 sps:$4 sm:$0xff]  }
  0xb0   : > { %1014 = vmatpush1.bf16.msra.mxu0 %v9519_v59  ;;  %1061 = vmatpush1.bf16.msra.mxu1 %v9519_v59  ;;  %v1328_v59 = vrot.slane %v699_v44, 2  ;;  %v9590_v44 = vld [vmem:[%s13435_s1 + $0x414] ss:$8 sps:$4 sm:$0xff]  }
  0xb1   : > { %1015 = vmatprep.subr.bf16.mxu0 %v9524_v60  ;;  %1062 = vmatprep.subr.bf16.mxu1 %v9524_v60  ;;  %v9582_v60 = vld [vmem:[%s13435_s1 + $0x3f0] ss:$8 sps:$4 sm:$0xff]  }
  0xb2   : > { %v11130_v49 = vor.u32 %v1328_v59, %v1327_v57  ;;  %v9651_v57 = vld [vmem:[%s13435_s1 + $0x560] ss:$8 sps:$4 sm:$0xff]   ;;  %v9654_v59 = vld [vmem:[%s13435_s1 + $0x570] ss:$8 sps:$4 sm:$0xff]  }
  0xb4   : > { %1016 = vmatpush1.bf16.msra.mxu0 %v9522_v61  ;;  %1063 = vmatpush1.bf16.msra.mxu1 %v9522_v61  ;;  %v9587_v61 = vld [vmem:[%s13435_s1 + $0x404] ss:$8 sps:$4 sm:$0xff]  }
  0xb5   : > { %1017 = vmatprep.subr.bf16.mxu0 %v9527_v62  ;;  %1064 = vmatprep.subr.bf16.mxu1 %v9527_v62  ;;  %v1412_v62 = vrot.slane %v10715_v15, 2  ;;  %v9591_v15 = vld [vmem:[%s13435_s1 + $0x420] ss:$8 sps:$4 sm:$0xff]  }
  0xb8   : > { %1018 = vmatpush1.bf16.msra.mxu0 %v9525_v63  ;;  %1065 = vmatpush1.bf16.msra.mxu1 %v9525_v63  ;;  %v1619_v63 = vrot.slane %v10723_v20, 2 }
  0xb9   : > { %1019 = vmatprep.subr.bf16.mxu0 %v9530_v0  ;;  %1066 = vmatprep.subr.bf16.mxu1 %v9530_v0  ;;  %v9588_v0 = vld [vmem:[%s13435_s1 + $0x410] ss:$8 sps:$4 sm:$0xff]  }
  0xbc   : > { %1020 = vmatpush1.bf16.msra.mxu0 %v9528_v1  ;;  %1067 = vmatpush1.bf16.msra.mxu1 %v9528_v1  ;;  %v9593_v1 = vld [vmem:[%s13435_s1 + $0x424] ss:$8 sps:$4 sm:$0xff]  }
  0xbd   : > { %1021 = vmatprep.subr.bf16.mxu0 %v9533_v2  ;;  %1068 = vmatprep.subr.bf16.mxu1 %v9533_v2  ;;  %v9596_v2 = vld [vmem:[%s13435_s1 + $0x434] ss:$8 sps:$4 sm:$0xff]  }
  0xc0   : > { %1022 = vmatpush1.bf16.msra.mxu0 %v9531_v3  ;;  %1069 = vmatpush1.bf16.msra.mxu1 %v9531_v3  ;;  %v9594_v3 = vld [vmem:[%s13435_s1 + $0x430] ss:$8 sps:$4 sm:$0xff]  }
  0xc1   : > { %1023 = vmatprep.subr.bf16.mxu0 %v9536_v4  ;;  %1070 = vmatprep.subr.bf16.mxu1 %v9536_v4  ;;  %v9599_v4 = vld [vmem:[%s13435_s1 + $0x444] ss:$8 sps:$4 sm:$0xff]  }
  0xc4   : > { %1024 = vmatpush1.bf16.msra.mxu0 %v9534_v5  ;;  %1071 = vmatpush1.bf16.msra.mxu1 %v9534_v5  ;;  %v9597_v5 = vld [vmem:[%s13435_s1 + $0x440] ss:$8 sps:$4 sm:$0xff]  }
  0xc5   : > { %1284 = vmatprep.subr.bf16.mxu0 %v9539_v6  ;;  %1335 = vmatprep.subr.bf16.mxu1 %v9539_v6  ;;  %v9602_v6 = vld [vmem:[%s13435_s1 + $0x454] ss:$8 sps:$4 sm:$0xff]  }
  0xc7   : > { %1026 = vmatmul.mubr.bf16.vlgmr.msra.gmra.mrb[0].mxu0 %v829_v11  ;;  %1073 = vmatmul.mubr.bf16.vlgmr.msra.gmra.mrb[0].mxu1 %v1036_v12  ;;  %v9606_v11 = vld [vmem:[%s13435_s1 + $0x470] ss:$8 sps:$4 sm:$0xff]  }
  0xc8   : > { %1285 = vmatpush1.bf16.msra.mxu0 %v9537_v18  ;;  %1336 = vmatpush1.bf16.msra.mxu1 %v9537_v18  ;;  %v9611_v18 = vld [vmem:[%s13435_s1 + $0x484] ss:$8 sps:$4 sm:$0xff]  }
  0xc9   : > { %1286 = vmatprep.subr.bf16.mxu0 %v9542_v22  ;;  %1337 = vmatprep.subr.bf16.mxu1 %v9542_v22  ;;  %v9609_v22 = vld [vmem:[%s13435_s1 + $0x480] ss:$8 sps:$4 sm:$0xff]  }
  0xca   : > { %1316 = vmatprep.mubr.bf16.mxu0 %v1121_v19  ;;  %1367 = vmatprep.mubr.bf16.mxu1 %v11027_v13  ;;  %v9614_v19 = vld [vmem:[%s13435_s1 + $0x494] ss:$8 sps:$4 sm:$0xff]  }
  0xcc   : > { %1287 = vmatpush1.bf16.msra.mxu0 %v9540_v23  ;;  %1338 = vmatpush1.bf16.msra.mxu1 %v9540_v23  ;;  %v9612_v23 = vld [vmem:[%s13435_s1 + $0x490] ss:$8 sps:$4 sm:$0xff]  }
  0xcd   : > { %1288 = vmatprep.subr.bf16.mxu0 %v9545_v14  ;;  %1339 = vmatprep.subr.bf16.mxu1 %v9545_v14  ;;  %v9617_v14 = vld [vmem:[%s13435_s1 + $0x4a4] ss:$8 sps:$4 sm:$0xff]  }
  0xd0   : > { %1289 = vmatpush1.bf16.msra.mxu0 %v9543_v16  ;;  %1340 = vmatpush1.bf16.msra.mxu1 %v9543_v16  ;;  %v9615_v16 = vld [vmem:[%s13435_s1 + $0x4a0] ss:$8 sps:$4 sm:$0xff]  }
  0xd1   : > { %1290 = vmatprep.subr.bf16.mxu0 %v9548_v17  ;;  %1341 = vmatprep.subr.bf16.mxu1 %v9548_v17  ;;  %v9620_v17 = vld [vmem:[%s13435_s1 + $0x4b4] ss:$8 sps:$4 sm:$0xff]  }
  0xd4   : > { %1291 = vmatpush1.bf16.msra.mxu0 %v9546_v21  ;;  %1342 = vmatpush1.bf16.msra.mxu1 %v9546_v21  ;;  %v9618_v21 = vld [vmem:[%s13435_s1 + $0x4b0] ss:$8 sps:$4 sm:$0xff]  }
  0xd5   : > { %1292 = vmatprep.subr.bf16.mxu0 %v9551_v24  ;;  %1343 = vmatprep.subr.bf16.mxu1 %v9551_v24  ;;  %v9623_v24 = vld [vmem:[%s13435_s1 + $0x4c4] ss:$8 sps:$4 sm:$0xff]  }
  0xd8   : > { %1293 = vmatpush1.bf16.msra.mxu0 %v9549_v25  ;;  %1344 = vmatpush1.bf16.msra.mxu1 %v9549_v25  ;;  %v9621_v25 = vld [vmem:[%s13435_s1 + $0x4c0] ss:$8 sps:$4 sm:$0xff]  }
  0xd9   : > { %1294 = vmatprep.subr.bf16.mxu0 %v9554_v26  ;;  %1345 = vmatprep.subr.bf16.mxu1 %v9554_v26  ;;  %v9626_v26 = vld [vmem:[%s13435_s1 + $0x4d4] ss:$8 sps:$4 sm:$0xff]  }
  0xdc   : > { %1295 = vmatpush1.bf16.msra.mxu0 %v9552_v27  ;;  %1346 = vmatpush1.bf16.msra.mxu1 %v9552_v27  ;;  %v9624_v27 = vld [vmem:[%s13435_s1 + $0x4d0] ss:$8 sps:$4 sm:$0xff]  }
  0xdd   : > { %1296 = vmatprep.subr.bf16.mxu0 %v9557_v29  ;;  %1347 = vmatprep.subr.bf16.mxu1 %v9557_v29  ;;  %v9629_v29 = vld [vmem:[%s13435_s1 + $0x4e4] ss:$8 sps:$4 sm:$0xff]  }
  0xe0   : > { %1297 = vmatpush1.bf16.msra.mxu0 %v9555_v30  ;;  %1348 = vmatpush1.bf16.msra.mxu1 %v9555_v30  ;;  %v9627_v30 = vld [vmem:[%s13435_s1 + $0x4e0] ss:$8 sps:$4 sm:$0xff]  }
  0xe1   : > { %1298 = vmatprep.subr.bf16.mxu0 %v9560_v31  ;;  %1349 = vmatprep.subr.bf16.mxu1 %v9560_v31  ;;  %v9632_v31 = vld [vmem:[%s13435_s1 + $0x4f4] ss:$8 sps:$4 sm:$0xff]  }
  0xe4   : > { %1299 = vmatpush1.bf16.msra.mxu0 %v9558_v32  ;;  %1350 = vmatpush1.bf16.msra.mxu1 %v9558_v32  ;;  %v9630_v32 = vld [vmem:[%s13435_s1 + $0x4f0] ss:$8 sps:$4 sm:$0xff]  }
  0xe5   : > { %1300 = vmatprep.subr.bf16.mxu0 %v9563_v34  ;;  %1351 = vmatprep.subr.bf16.mxu1 %v9563_v34  ;;  %v9635_v34 = vld [vmem:[%s13435_s1 + $0x504] ss:$8 sps:$4 sm:$0xff]  }
  0xe8   : > { %1301 = vmatpush1.bf16.msra.mxu0 %v9561_v35  ;;  %1352 = vmatpush1.bf16.msra.mxu1 %v9561_v35  ;;  %v11234_v35 = vld [vmem:[%s10703_s18 + $0x10] sm:$0x77] }
  0xe9   : > { %1302 = vmatprep.subr.bf16.mxu0 %v9566_v36  ;;  %1353 = vmatprep.subr.bf16.mxu1 %v9566_v36  ;;  %v1411_v36 = vrot.slane %v10774_v39, 2  ;;  %v9636_v39 = vld [vmem:[%s13435_s1 + $0x510] ss:$8 sps:$4 sm:$0xff]  }
  0xec   : > { %1303 = vmatpush1.bf16.msra.mxu0 %v9564_v37  ;;  %1354 = vmatpush1.bf16.msra.mxu1 %v9564_v37  ;;  %v1618_v37 = vrot.slane %v10776_v40, 2 }
  0xed   : > { %1304 = vmatprep.subr.bf16.mxu0 %v9569_v38  ;;  %1355 = vmatprep.subr.bf16.mxu1 %v9569_v38  ;;  %v9633_v38 = vld [vmem:[%s13435_s1 + $0x500] ss:$8 sps:$4 sm:$0xff]  }
  0xf0   : > { %1305 = vmatpush1.bf16.msra.mxu0 %v9567_v41  ;;  %1356 = vmatpush1.bf16.msra.mxu1 %v9567_v41  ;;  %v9638_v41 = vld [vmem:[%s13435_s1 + $0x514] ss:$8 sps:$4 sm:$0xff]  }
  0xf1   : > { %1306 = vmatprep.subr.bf16.mxu0 %v9572_v42  ;;  %1357 = vmatprep.subr.bf16.mxu1 %v9572_v42  ;;  %v11246_v42 = vcombine.high %v11234_v35, %v11234_v35 }
  0xf4   : > { %1307 = vmatpush1.bf16.msra.mxu0 %v9570_v45  ;;  %1358 = vmatpush1.bf16.msra.mxu1 %v9570_v45  ;;  %v9641_v45 = vld [vmem:[%s13435_s1 + $0x524] ss:$8 sps:$4 sm:$0xff]  }
  0xf5   : > { %1308 = vmatprep.subr.bf16.mxu0 %v9575_v46  ;;  %1359 = vmatprep.subr.bf16.mxu1 %v9575_v46  ;;  %v9639_v46 = vld [vmem:[%s13435_s1 + $0x520] ss:$8 sps:$4 sm:$0xff]  }
  0xf8   : > { %1309 = vmatpush1.bf16.msra.mxu0 %v9573_v48  ;;  %1360 = vmatpush1.bf16.msra.mxu1 %v9573_v48  ;;  %v9644_v48 = vld [vmem:[%s13435_s1 + $0x534] ss:$8 sps:$4 sm:$0xff]  }
  0xf9   : > { %1310 = vmatprep.subr.bf16.mxu0 %v9578_v50  ;;  %1361 = vmatprep.subr.bf16.mxu1 %v9578_v50  ;;  %v9642_v50 = vld [vmem:[%s13435_s1 + $0x530] ss:$8 sps:$4 sm:$0xff]  }
  0xfc   : > { %1311 = vmatpush1.bf16.msra.mxu0 %v9576_v51  ;;  %1362 = vmatpush1.bf16.msra.mxu1 %v9576_v51  ;;  %v9647_v51 = vld [vmem:[%s13435_s1 + $0x544] ss:$8 sps:$4 sm:$0xff]  }
  0xfd   : > { %1312 = vmatprep.subr.bf16.mxu0 %v9581_v52  ;;  %1363 = vmatprep.subr.bf16.mxu1 %v9581_v52  ;;  %v9645_v52 = vld [vmem:[%s13435_s1 + $0x540] ss:$8 sps:$4 sm:$0xff]  }
 0x100   : > { %1313 = vmatpush1.bf16.msra.mxu0 %v9579_v53  ;;  %1364 = vmatpush1.bf16.msra.mxu1 %v9579_v53  ;;  %v9650_v53 = vld [vmem:[%s13435_s1 + $0x554] ss:$8 sps:$4 sm:$0xff]  }
 0x101   : > { %1314 = vmatprep.subr.bf16.mxu0 %v9584_v55  ;;  %1365 = vmatprep.subr.bf16.mxu1 %v9584_v55  ;;  %v9648_v55 = vld [vmem:[%s13435_s1 + $0x550] ss:$8 sps:$4 sm:$0xff]  }
 0x104   : > { %1315 = vmatpush1.bf16.msra.mxu0 %v9582_v60  ;;  %1366 = vmatpush1.bf16.msra.mxu1 %v9582_v60  ;;  %v9659_v60 = vld [vmem:[%s13435_s1 + $0x584] ss:$8 sps:$4 sm:$0xff]  }
 0x105   : > { %1575 = vmatprep.subr.bf16.mxu0 %v9587_v61  ;;  %1622 = vmatprep.subr.bf16.mxu1 %v9587_v61  ;;  %v9657_v61 = vld [vmem:[%s13435_s1 + $0x580] ss:$8 sps:$4 sm:$0xff]  }
 0x107   : > { %1317 = vmatmul.mubr.bf16.vlgmr.msra.gmra.mrb[0].mxu0 %v1118_v47  ;;  %1368 = vmatmul.mubr.bf16.vlgmr.msra.gmra.mrb[0].mxu1 %v11130_v49  ;;  %v9662_v47 = vld [vmem:[%s13435_s1 + $0x594] ss:$8 sps:$4 sm:$0xff]  }
 0x108   : > { %1576 = vmatpush1.bf16.msra.mxu0 %v9585_v43  ;;  %1623 = vmatpush1.bf16.msra.mxu1 %v9585_v43  ;;  %v9660_v43 = vld [vmem:[%s13435_s1 + $0x590] ss:$8 sps:$4 sm:$0xff]  }
 0x109   : > { %1577 = vmatprep.subr.bf16.mxu0 %v9590_v44  ;;  %1624 = vmatprep.subr.bf16.mxu1 %v9590_v44  ;;  %v9665_v44 = vld [vmem:[%s13435_s1 + $0x5a4] ss:$8 sps:$4 sm:$0xff]  }
 0x10a   : > { %1607 = vmatprep.mubr.bf16.mxu0 %v1412_v62  ;;  %1654 = vmatprep.mubr.bf16.mxu1 %v1619_v63  ;;  %v9663_v62 = vld [vmem:[%s13435_s1 + $0x5a0] ss:$8 sps:$4 sm:$0xff]  }
 0x10c   : > { %1578 = vmatpush1.bf16.msra.mxu0 %v9588_v0  ;;  %1625 = vmatpush1.bf16.msra.mxu1 %v9588_v0  ;;  %v9668_v0 = vld [vmem:[%s13435_s1 + $0x5b4] ss:$8 sps:$4 sm:$0xff]  }
 0x10d   : > { %1579 = vmatprep.subr.bf16.mxu0 %v9593_v1  ;;  %1626 = vmatprep.subr.bf16.mxu1 %v9593_v1  ;;  %v9666_v1 = vld [vmem:[%s13435_s1 + $0x5b0] ss:$8 sps:$4 sm:$0xff]  }
 0x110   : > { %1580 = vmatpush1.bf16.msra.mxu0 %v9591_v15  ;;  %1627 = vmatpush1.bf16.msra.mxu1 %v9591_v15  ;;  %v9671_v15 = vld [vmem:[%s13435_s1 + $0x5c4] ss:$8 sps:$4 sm:$0xff]  }
 0x111   : > { %1581 = vmatprep.subr.bf16.mxu0 %v9596_v2  ;;  %1628 = vmatprep.subr.bf16.mxu1 %v9596_v2  ;;  %v9669_v2 = vld [vmem:[%s13435_s1 + $0x5c0] ss:$8 sps:$4 sm:$0xff]  }
 0x114   : > { %1582 = vmatpush1.bf16.msra.mxu0 %v9594_v3  ;;  %1629 = vmatpush1.bf16.msra.mxu1 %v9594_v3  ;;  %v9674_v3 = vld [vmem:[%s13435_s1 + $0x5d4] ss:$8 sps:$4 sm:$0xff]  }
 0x115   : > { %1583 = vmatprep.subr.bf16.mxu0 %v9599_v4  ;;  %1630 = vmatprep.subr.bf16.mxu1 %v9599_v4  ;;  %v9672_v4 = vld [vmem:[%s13435_s1 + $0x5d0] ss:$8 sps:$4 sm:$0xff]  }
 0x118   : > { %1584 = vmatpush1.bf16.msra.mxu0 %v9597_v5  ;;  %1631 = vmatpush1.bf16.msra.mxu1 %v9597_v5  ;;  %v9677_v5 = vld [vmem:[%s13435_s1 + $0x5e4] ss:$8 sps:$4 sm:$0xff]  }
 0x119   : > { %1585 = vmatprep.subr.bf16.mxu0 %v9602_v6  ;;  %1632 = vmatprep.subr.bf16.mxu1 %v9602_v6  ;;  %v9675_v6 = vld [vmem:[%s13435_s1 + $0x5e0] ss:$8 sps:$4 sm:$0xff]  }
 0x11c   : > { %1586 = vmatpush1.bf16.msra.mxu0 %v9600_v7  ;;  %1633 = vmatpush1.bf16.msra.mxu1 %v9600_v7  ;;  %v9680_v7 = vld [vmem:[%s13435_s1 + $0x5f4] ss:$8 sps:$4 sm:$0xff]  }
 0x11d   : > { %1587 = vmatprep.subr.bf16.mxu0 %v9605_v8  ;;  %1634 = vmatprep.subr.bf16.mxu1 %v9605_v8  ;;  %v2202_v8 = vshll.u32 %v11246_v42, 16 }
 0x120   : > { %1588 = vmatpush1.bf16.msra.mxu0 %v9603_v9  ;;  %1635 = vmatpush1.bf16.msra.mxu1 %v9603_v9  ;;  %v9678_v9 = vld [vmem:[%s13435_s1 + $0x5f0] ss:$8 sps:$4 sm:$0xff]  }
 0x121   : > { %1589 = vmatprep.subr.bf16.mxu0 %v9608_v10  ;;  %1636 = vmatprep.subr.bf16.mxu1 %v9608_v10  ;;  %v9684_v10 = vld [vmem:[%s13435_s1 + $0x604] ss:$8 sps:$4 sm:$0xff]  }
 0x124   : > { %1590 = vmatpush1.bf16.msra.mxu0 %v9606_v11  ;;  %1637 = vmatpush1.bf16.msra.mxu1 %v9606_v11  ;;  %v2200_v11 = vshrl.u32 %v11246_v42, 16 }
 0x125   : > { %1591 = vmatprep.subr.bf16.mxu0 %v9611_v18  ;;  %1638 = vmatprep.subr.bf16.mxu1 %v9611_v18  ;;  %v2204_v18 = vrot.slane %v2202_v8, 1 }
 0x128   : > { %1592 = vmatpush1.bf16.msra.mxu0 %v9609_v22  ;;  %1639 = vmatpush1.bf16.msra.mxu1 %v9609_v22  ;;  %v11348_v22 = vcombine.low %v11234_v35, %v11234_v35  ;;  %v9709_v35 = vld [vmem:[%s13435_s1 + $0x684] ss:$8 sps:$4 sm:$0xff]  }
 0x129   : > { %1593 = vmatprep.subr.bf16.mxu0 %v9614_v19  ;;  %1640 = vmatprep.subr.bf16.mxu1 %v9614_v19  ;;  %v9682_v19 = vld [vmem:[%s13435_s1 + $0x600] ss:$8 sps:$4 sm:$0xff]  }
 0x12c   : > { %1594 = vmatpush1.bf16.msra.mxu0 %v9612_v23  ;;  %1641 = vmatpush1.bf16.msra.mxu1 %v9612_v23  ;;  %v9688_v23 = vld [vmem:[%s13435_s1 + $0x614] ss:$8 sps:$4 sm:$0xff]  }
 0x12d   : > { %1595 = vmatprep.subr.bf16.mxu0 %v9617_v14  ;;  %1642 = vmatprep.subr.bf16.mxu1 %v9617_v14  ;;  %v11358_v14 = vor.u32 %v2204_v18, %v2200_v11  ;;  %v9752_v18 = vld [vmem:[%s13435_s1 + $0x770] ss:$8 sps:$4 sm:$0xff]  }
 0x130   : > { %1596 = vmatpush1.bf16.msra.mxu0 %v9615_v16  ;;  %1643 = vmatpush1.bf16.msra.mxu1 %v9615_v16  ;;  %v9686_v16 = vld [vmem:[%s13435_s1 + $0x610] ss:$8 sps:$4 sm:$0xff]  }
 0x131   : > { %1597 = vmatprep.subr.bf16.mxu0 %v9620_v17  ;;  %1644 = vmatprep.subr.bf16.mxu1 %v9620_v17  ;;  %v9691_v17 = vld [vmem:[%s13435_s1 + $0x624] ss:$8 sps:$4 sm:$0xff]  }
 0x134   : > { %1598 = vmatpush1.bf16.msra.mxu0 %v9618_v21  ;;  %1645 = vmatpush1.bf16.msra.mxu1 %v9618_v21  ;;  %v9689_v21 = vld [vmem:[%s13435_s1 + $0x620] ss:$8 sps:$4 sm:$0xff]  }
 0x135   : > { %1599 = vmatprep.subr.bf16.mxu0 %v9623_v24  ;;  %1646 = vmatprep.subr.bf16.mxu1 %v9623_v24  ;;  %v9694_v24 = vld [vmem:[%s13435_s1 + $0x634] ss:$8 sps:$4 sm:$0xff]  }
 0x138   : > { %1600 = vmatpush1.bf16.msra.mxu0 %v9621_v25  ;;  %1647 = vmatpush1.bf16.msra.mxu1 %v9621_v25  ;;  %v9697_v25 = vld [vmem:[%s13435_s1 + $0x644] ss:$8 sps:$4 sm:$0xff]  }
 0x139   : > { %1601 = vmatprep.subr.bf16.mxu0 %v9626_v26  ;;  %1648 = vmatprep.subr.bf16.mxu1 %v9626_v26  ;;  %v9695_v26 = vld [vmem:[%s13435_s1 + $0x640] ss:$8 sps:$4 sm:$0xff]  }
 0x13c   : > { %1602 = vmatpush1.bf16.msra.mxu0 %v9624_v27  ;;  %1649 = vmatpush1.bf16.msra.mxu1 %v9624_v27  ;;  %v9700_v27 = vld [vmem:[%s13435_s1 + $0x654] ss:$8 sps:$4 sm:$0xff]  }
 0x13d   : > { %1603 = vmatprep.subr.bf16.mxu0 %v9629_v29  ;;  %1650 = vmatprep.subr.bf16.mxu1 %v9629_v29  ;;  %v9698_v29 = vld [vmem:[%s13435_s1 + $0x650] ss:$8 sps:$4 sm:$0xff]  }
 0x140   : > { %1604 = vmatpush1.bf16.msra.mxu0 %v9627_v30  ;;  %1651 = vmatpush1.bf16.msra.mxu1 %v9627_v30  ;;  %v9703_v30 = vld [vmem:[%s13435_s1 + $0x664] ss:$8 sps:$4 sm:$0xff]  }
 0x141   : > { %1605 = vmatprep.subr.bf16.mxu0 %v9632_v31  ;;  %1652 = vmatprep.subr.bf16.mxu1 %v9632_v31  ;;  %v9701_v31 = vld [vmem:[%s13435_s1 + $0x660] ss:$8 sps:$4 sm:$0xff]  }
 0x144   : > { %1606 = vmatpush1.bf16.msra.mxu0 %v9630_v32  ;;  %1653 = vmatpush1.bf16.msra.mxu1 %v9630_v32  ;;  %v9706_v32 = vld [vmem:[%s13435_s1 + $0x674] ss:$8 sps:$4 sm:$0xff]  }
 0x145   : > { %1863 = vmatprep.subr.bf16.mxu0 %v9635_v34  ;;  %1913 = vmatprep.subr.bf16.mxu1 %v9635_v34  ;;  %v9704_v34 = vld [vmem:[%s13435_s1 + $0x670] ss:$8 sps:$4 sm:$0xff]  }
 0x147   : > { %1608 = vmatmul.mubr.bf16.vlgmr.msra.gmra.mrb[0].mxu0 %v1411_v36  ;;  %1655 = vmatmul.mubr.bf16.vlgmr.msra.gmra.mrb[0].mxu1 %v1618_v37  ;;  %v9707_v36 = vld [vmem:[%s13435_s1 + $0x680] ss:$8 sps:$4 sm:$0xff]  }
 0x148   : > { %1864 = vmatpush1.bf16.msra.mxu0 %v9633_v38  ;;  %1914 = vmatpush1.bf16.msra.mxu1 %v9633_v38  ;;  %v9712_v38 = vld [vmem:[%s13435_s1 + $0x694] ss:$8 sps:$4 sm:$0xff]  }
 0x149   : > { %1865 = vmatprep.subr.bf16.mxu0 %v9638_v41  ;;  %1915 = vmatprep.subr.bf16.mxu1 %v9638_v41  ;;  %v9710_v41 = vld [vmem:[%s13435_s1 + $0x690] ss:$8 sps:$4 sm:$0xff]  }
 0x14a   : > { %1895 = vmatprep.mubr.bf16.mxu0 %v10723_v20  ;;  %1945 = vmatprep.mubr.bf16.mxu1 %v11246_v42  ;;  %v9836_v20 = vld [vmem:[%s13435_s1 + $0x930] ss:$8 sps:$4 sm:$0xff]  }
 0x14c   : > { %1866 = vmatpush1.bf16.msra.mxu0 %v9636_v39  ;;  %1916 = vmatpush1.bf16.msra.mxu1 %v9636_v39  ;;  %v9715_v39 = vld [vmem:[%s13435_s1 + $0x6a4] ss:$8 sps:$4 sm:$0xff]  }
 0x14d   : > { %1867 = vmatprep.subr.bf16.mxu0 %v9641_v45  ;;  %1917 = vmatprep.subr.bf16.mxu1 %v9641_v45  ;;  %v9713_v45 = vld [vmem:[%s13435_s1 + $0x6a0] ss:$8 sps:$4 sm:$0xff]  }
 0x150   : > { %1868 = vmatpush1.bf16.msra.mxu0 %v9639_v46  ;;  %1918 = vmatpush1.bf16.msra.mxu1 %v9639_v46  ;;  %v9718_v46 = vld [vmem:[%s13435_s1 + $0x6b4] ss:$8 sps:$4 sm:$0xff]  }
 0x151   : > { %1869 = vmatprep.subr.bf16.mxu0 %v9644_v48  ;;  %1919 = vmatprep.subr.bf16.mxu1 %v9644_v48  ;;  %v9716_v48 = vld [vmem:[%s13435_s1 + $0x6b0] ss:$8 sps:$4 sm:$0xff]  }
 0x154   : > { %1870 = vmatpush1.bf16.msra.mxu0 %v9642_v50  ;;  %1920 = vmatpush1.bf16.msra.mxu1 %v9642_v50  ;;  %v9721_v50 = vld [vmem:[%s13435_s1 + $0x6c4] ss:$8 sps:$4 sm:$0xff]  }
 0x155   : > { %1871 = vmatprep.subr.bf16.mxu0 %v9647_v51  ;;  %1921 = vmatprep.subr.bf16.mxu1 %v9647_v51  ;;  %v9719_v51 = vld [vmem:[%s13435_s1 + $0x6c0] ss:$8 sps:$4 sm:$0xff]  }
 0x158   : > { %1872 = vmatpush1.bf16.msra.mxu0 %v9645_v52  ;;  %1922 = vmatpush1.bf16.msra.mxu1 %v9645_v52  ;;  %v9724_v52 = vld [vmem:[%s13435_s1 + $0x6d4] ss:$8 sps:$4 sm:$0xff]  }
 0x159   : > { %1873 = vmatprep.subr.bf16.mxu0 %v9650_v53  ;;  %1923 = vmatprep.subr.bf16.mxu1 %v9650_v53  ;;  %v9722_v53 = vld [vmem:[%s13435_s1 + $0x6d0] ss:$8 sps:$4 sm:$0xff]  }
 0x15c   : > { %1874 = vmatpush1.bf16.msra.mxu0 %v9648_v55  ;;  %1924 = vmatpush1.bf16.msra.mxu1 %v9648_v55  ;;  %v9727_v55 = vld [vmem:[%s13435_s1 + $0x6e4] ss:$8 sps:$4 sm:$0xff]  }
 0x15d   : > { %1875 = vmatprep.subr.bf16.mxu0 %v9653_v56  ;;  %1925 = vmatprep.subr.bf16.mxu1 %v9653_v56  ;;  %v2195_v56 = vshll.u32 %v11348_v22, 16 }
 0x160   : > { %1876 = vmatpush1.bf16.msra.mxu0 %v9651_v57  ;;  %1926 = vmatpush1.bf16.msra.mxu1 %v9651_v57  ;;  %v9725_v57 = vld [vmem:[%s13435_s1 + $0x6e0] ss:$8 sps:$4 sm:$0xff]  }
 0x161   : > { %1877 = vmatprep.subr.bf16.mxu0 %v9656_v58  ;;  %1927 = vmatprep.subr.bf16.mxu1 %v9656_v58  ;;  %v9730_v58 = vld [vmem:[%s13435_s1 + $0x6f4] ss:$8 sps:$4 sm:$0xff]  }
 0x164   : > { %1878 = vmatpush1.bf16.msra.mxu0 %v9654_v59  ;;  %1928 = vmatpush1.bf16.msra.mxu1 %v9654_v59  ;;  %v2193_v59 = vshrl.u32 %v11348_v22, 16 }
 0x165   : > { %1879 = vmatprep.subr.bf16.mxu0 %v9659_v60  ;;  %1929 = vmatprep.subr.bf16.mxu1 %v9659_v60  ;;  %v2197_v60 = vrot.slane %v2195_v56, 1 }
 0x168   : > { %1880 = vmatpush1.bf16.msra.mxu0 %v9657_v61  ;;  %1930 = vmatpush1.bf16.msra.mxu1 %v9657_v61  ;;  %v9728_v61 = vld [vmem:[%s13435_s1 + $0x6f0] ss:$8 sps:$4 sm:$0xff]  }
 0x169   : > { %1881 = vmatprep.subr.bf16.mxu0 %v9662_v47  ;;  %1931 = vmatprep.subr.bf16.mxu1 %v9662_v47  ;;  %v9733_v47 = vld [vmem:[%s13435_s1 + $0x704] ss:$8 sps:$4 sm:$0xff]  }
 0x16c   : > { %1882 = vmatpush1.bf16.msra.mxu0 %v9660_v43  ;;  %1932 = vmatpush1.bf16.msra.mxu1 %v9660_v43  ;;  %v11460_v43 = vor.u32 %v2197_v60, %v2193_v59  ;;  %v9802_v60 = vld [vmem:[%s13435_s1 + $0x874] ss:$8 sps:$4 sm:$0xff]  }
 0x16d   : > { %1883 = vmatprep.subr.bf16.mxu0 %v9665_v44  ;;  %1933 = vmatprep.subr.bf16.mxu1 %v9665_v44  ;;  %v9731_v44 = vld [vmem:[%s13435_s1 + $0x700] ss:$8 sps:$4 sm:$0xff]  }
 0x170   : > { %1884 = vmatpush1.bf16.msra.mxu0 %v9663_v62  ;;  %1934 = vmatpush1.bf16.msra.mxu1 %v9663_v62  ;;  %v9736_v62 = vld [vmem:[%s13435_s1 + $0x714] ss:$8 sps:$4 sm:$0xff]  }
 0x171   : > { %1885 = vmatprep.subr.bf16.mxu0 %v9668_v0  ;;  %1935 = vmatprep.subr.bf16.mxu1 %v9668_v0  ;;  %v2488_v0 = vrot.slane %v11246_v42, 1 }
 0x174   : > { %1886 = vmatpush1.bf16.msra.mxu0 %v9666_v1  ;;  %1936 = vmatpush1.bf16.msra.mxu1 %v9666_v1  ;;  %v9734_v1 = vld [vmem:[%s13435_s1 + $0x710] ss:$8 sps:$4 sm:$0xff]  }
 0x175   : > { %1887 = vmatprep.subr.bf16.mxu0 %v9671_v15  ;;  %1937 = vmatprep.subr.bf16.mxu1 %v9671_v15  ;;  %v9739_v15 = vld [vmem:[%s13435_s1 + $0x724] ss:$8 sps:$4 sm:$0xff]  }
 0x178   : > { %1888 = vmatpush1.bf16.msra.mxu0 %v9669_v2  ;;  %1938 = vmatpush1.bf16.msra.mxu1 %v9669_v2  ;;  %v9742_v2 = vld [vmem:[%s13435_s1 + $0x734] ss:$8 sps:$4 sm:$0xff]  }
 0x179   : > { %1889 = vmatprep.subr.bf16.mxu0 %v9674_v3  ;;  %1939 = vmatprep.subr.bf16.mxu1 %v9674_v3  ;;  %v9745_v3 = vld [vmem:[%s13435_s1 + $0x744] ss:$8 sps:$4 sm:$0xff]  }
 0x17c   : > { %1890 = vmatpush1.bf16.msra.mxu0 %v9672_v4  ;;  %1940 = vmatpush1.bf16.msra.mxu1 %v9672_v4  ;;  %v9743_v4 = vld [vmem:[%s13435_s1 + $0x740] ss:$8 sps:$4 sm:$0xff]  }
 0x17d   : > { %1891 = vmatprep.subr.bf16.mxu0 %v9677_v5  ;;  %1941 = vmatprep.subr.bf16.mxu1 %v9677_v5  ;;  %v9748_v5 = vld [vmem:[%s13435_s1 + $0x754] ss:$8 sps:$4 sm:$0xff]  }
 0x180   : > { %1892 = vmatpush1.bf16.msra.mxu0 %v9675_v6  ;;  %1942 = vmatpush1.bf16.msra.mxu1 %v9675_v6  ;;  %v9746_v6 = vld [vmem:[%s13435_s1 + $0x750] ss:$8 sps:$4 sm:$0xff]  }
 0x181   : > { %1893 = vmatprep.subr.bf16.mxu0 %v9680_v7  ;;  %1943 = vmatprep.subr.bf16.mxu1 %v9680_v7  ;;  %v9751_v7 = vld [vmem:[%s13435_s1 + $0x764] ss:$8 sps:$4 sm:$0xff]  }
 0x184   : > { %1894 = vmatpush1.bf16.msra.mxu0 %v9678_v9  ;;  %1944 = vmatpush1.bf16.msra.mxu1 %v9678_v9  ;;  %v9749_v9 = vld [vmem:[%s13435_s1 + $0x760] ss:$8 sps:$4 sm:$0xff]  }
 0x185   : > { %2149 = vmatprep.subr.bf16.mxu0 %v9684_v10  ;;  %2208 = vmatprep.subr.bf16.mxu1 %v9684_v10  ;;  %v9754_v10 = vld [vmem:[%s13435_s1 + $0x774] ss:$8 sps:$4 sm:$0xff]  }
 0x187   : > { %1896 = vmatmul.mubr.bf16.vlgmr.msra.gmra.mrb[0].mxu0 %v10776_v40  ;;  %1946 = vmatmul.mubr.bf16.vlgmr.msra.gmra.mrb[0].mxu1 %v11348_v22  ;;  %v9881_v40 = vld [vmem:[%s13435_s1 + $0xa20] ss:$8 sps:$4 sm:$0xff]  }
 0x188   : > { %2150 = vmatpush1.bf16.msra.mxu0 %v9682_v19  ;;  %2209 = vmatpush1.bf16.msra.mxu1 %v9682_v19  ;;  %v9757_v19 = vld [vmem:[%s13435_s1 + $0x784] ss:$8 sps:$4 sm:$0xff]  }
 0x189   : > { %2151 = vmatprep.subr.bf16.mxu0 %v9688_v23  ;;  %2210 = vmatprep.subr.bf16.mxu1 %v9688_v23  ;;  %v9755_v23 = vld [vmem:[%s13435_s1 + $0x780] ss:$8 sps:$4 sm:$0xff]  }
 0x18a   : > { %2181 = vmatprep.mubr.bf16.mxu0 %v10741_v28  ;;  %2240 = vmatprep.mubr.bf16.mxu1 %v11358_v14  ;;  %v9692_v28 = vld [vmem:[%s13435_s1 + $0x630] ss:$8 sps:$4 sm:$0xff]  }
 0x18c   : > { %2152 = vmatpush1.bf16.msra.mxu0 %v9686_v16  ;;  %2211 = vmatpush1.bf16.msra.mxu1 %v9686_v16  ;;  %v9760_v16 = vld [vmem:[%s13435_s1 + $0x794] ss:$8 sps:$4 sm:$0xff]  }
 0x18d   : > { %2153 = vmatprep.subr.bf16.mxu0 %v9691_v17  ;;  %2212 = vmatprep.subr.bf16.mxu1 %v9691_v17  ;;  %v9758_v17 = vld [vmem:[%s13435_s1 + $0x790] ss:$8 sps:$4 sm:$0xff]  }
 0x190   : > { %2154 = vmatpush1.bf16.msra.mxu0 %v9689_v21  ;;  %2213 = vmatpush1.bf16.msra.mxu1 %v9689_v21  ;;  %v9763_v21 = vld [vmem:[%s13435_s1 + $0x7a4] ss:$8 sps:$4 sm:$0xff]  }
 0x191   : > { %2155 = vmatprep.subr.bf16.mxu0 %v9694_v24  ;;  %2214 = vmatprep.subr.bf16.mxu1 %v9694_v24  ;;  %v9761_v24 = vld [vmem:[%s13435_s1 + $0x7a0] ss:$8 sps:$4 sm:$0xff]  }
 0x194   : > { %2156 = vmatpush1.bf16.msra.mxu0 %v9692_v28  ;;  %2215 = vmatpush1.bf16.msra.mxu1 %v9692_v28  ;;  %v9766_v28 = vld [vmem:[%s13435_s1 + $0x7b4] ss:$8 sps:$4 sm:$0xff]  }
 0x195   : > { %2157 = vmatprep.subr.bf16.mxu0 %v9697_v25  ;;  %2216 = vmatprep.subr.bf16.mxu1 %v9697_v25  ;;  %v9764_v25 = vld [vmem:[%s13435_s1 + $0x7b0] ss:$8 sps:$4 sm:$0xff]  }
 0x198   : > { %2158 = vmatpush1.bf16.msra.mxu0 %v9695_v26  ;;  %2217 = vmatpush1.bf16.msra.mxu1 %v9695_v26  ;;  %v9769_v26 = vld [vmem:[%s13435_s1 + $0x7c4] ss:$8 sps:$4 sm:$0xff]  }
 0x199   : > { %2159 = vmatprep.subr.bf16.mxu0 %v9700_v27  ;;  %2218 = vmatprep.subr.bf16.mxu1 %v9700_v27  ;;  %v9767_v27 = vld [vmem:[%s13435_s1 + $0x7c0] ss:$8 sps:$4 sm:$0xff]  }
 0x19c   : > { %2160 = vmatpush1.bf16.msra.mxu0 %v9698_v29  ;;  %2219 = vmatpush1.bf16.msra.mxu1 %v9698_v29  ;;  %v9772_v29 = vld [vmem:[%s13435_s1 + $0x7d4] ss:$8 sps:$4 sm:$0xff]  }
 0x19d   : > { %2161 = vmatprep.subr.bf16.mxu0 %v9703_v30  ;;  %2220 = vmatprep.subr.bf16.mxu1 %v9703_v30  ;;  %v9770_v30 = vld [vmem:[%s13435_s1 + $0x7d0] ss:$8 sps:$4 sm:$0xff]  }
 0x1a0   : > { %2162 = vmatpush1.bf16.msra.mxu0 %v9701_v31  ;;  %2221 = vmatpush1.bf16.msra.mxu1 %v9701_v31  ;;  %v9775_v31 = vld [vmem:[%s13435_s1 + $0x7e4] ss:$8 sps:$4 sm:$0xff]  }
 0x1a1   : > { %2163 = vmatprep.subr.bf16.mxu0 %v9706_v32  ;;  %2222 = vmatprep.subr.bf16.mxu1 %v9706_v32  ;;  %v9773_v32 = vld [vmem:[%s13435_s1 + $0x7e0] ss:$8 sps:$4 sm:$0xff]  }
 0x1a4   : > { %2164 = vmatpush1.bf16.msra.mxu0 %v9704_v34  ;;  %2223 = vmatpush1.bf16.msra.mxu1 %v9704_v34  ;;  %v9778_v34 = vld [vmem:[%s13435_s1 + $0x7f4] ss:$8 sps:$4 sm:$0xff]  }
 0x1a5   : > { %2165 = vmatprep.subr.bf16.mxu0 %v9709_v35  ;;  %2224 = vmatprep.subr.bf16.mxu1 %v9709_v35  ;;  %v9776_v35 = vld [vmem:[%s13435_s1 + $0x7f0] ss:$8 sps:$4 sm:$0xff]  }
 0x1a8   : > { %2166 = vmatpush1.bf16.msra.mxu0 %v9707_v36  ;;  %2225 = vmatpush1.bf16.msra.mxu1 %v9707_v36  ;;  %v9781_v36 = vld [vmem:[%s13435_s1 + $0x804] ss:$8 sps:$4 sm:$0xff]  }
 0x1a9   : > { %2167 = vmatprep.subr.bf16.mxu0 %v9712_v38  ;;  %2226 = vmatprep.subr.bf16.mxu1 %v9712_v38  ;;  %v2773_v38 = vrot.slane %v2200_v11, 1  ;;  %v9787_v11 = vld [vmem:[%s13435_s1 + $0x824] ss:$8 sps:$4 sm:$0xff]  }
 0x1ac   : > { %2168 = vmatpush1.bf16.msra.mxu0 %v9710_v41  ;;  %2227 = vmatpush1.bf16.msra.mxu1 %v9710_v41  ;;  %v2774_v41 = vrot.slane %v2202_v8, 2  ;;  %v9782_v8 = vld [vmem:[%s13435_s1 + $0x810] ss:$8 sps:$4 sm:$0xff]  }
 0x1ad   : > { %2169 = vmatprep.subr.bf16.mxu0 %v9715_v39  ;;  %2228 = vmatprep.subr.bf16.mxu1 %v9715_v39  ;;  %v2487_v39 = vrot.slane %v11348_v22, 1 }
 0x1b0   : > { %2170 = vmatpush1.bf16.msra.mxu0 %v9713_v45  ;;  %2229 = vmatpush1.bf16.msra.mxu1 %v9713_v45  ;;  %v9779_v45 = vld [vmem:[%s13435_s1 + $0x800] ss:$8 sps:$4 sm:$0xff]  }
 0x1b1   : > { %2171 = vmatprep.subr.bf16.mxu0 %v9718_v46  ;;  %2230 = vmatprep.subr.bf16.mxu1 %v9718_v46  ;;  %v9784_v46 = vld [vmem:[%s13435_s1 + $0x814] ss:$8 sps:$4 sm:$0xff]  }
 0x1b4   : > { %2172 = vmatpush1.bf16.msra.mxu0 %v9716_v48  ;;  %2231 = vmatpush1.bf16.msra.mxu1 %v9716_v48  ;;  %v11576_v48 = vor.u32 %v2774_v41, %v2773_v38  ;;  %v9856_v38 = vld [vmem:[%s13435_s1 + $0x994] ss:$8 sps:$4 sm:$0xff]   ;;  %v9854_v41 = vld [vmem:[%s13435_s1 + $0x990] ss:$8 sps:$4 sm:$0xff]  }
 0x1b5   : > { %2173 = vmatprep.subr.bf16.mxu0 %v9721_v50  ;;  %2232 = vmatprep.subr.bf16.mxu1 %v9721_v50  ;;  %v9790_v50 = vld [vmem:[%s13435_s1 + $0x834] ss:$8 sps:$4 sm:$0xff]  }
 0x1b8   : > { %2174 = vmatpush1.bf16.msra.mxu0 %v9719_v51  ;;  %2233 = vmatpush1.bf16.msra.mxu1 %v9719_v51  ;;  %v9793_v51 = vld [vmem:[%s13435_s1 + $0x844] ss:$8 sps:$4 sm:$0xff]  }
 0x1b9   : > { %2175 = vmatprep.subr.bf16.mxu0 %v9724_v52  ;;  %2234 = vmatprep.subr.bf16.mxu1 %v9724_v52  ;;  %v9791_v52 = vld [vmem:[%s13435_s1 + $0x840] ss:$8 sps:$4 sm:$0xff]  }
 0x1bc   : > { %2176 = vmatpush1.bf16.msra.mxu0 %v9722_v53  ;;  %2235 = vmatpush1.bf16.msra.mxu1 %v9722_v53  ;;  %v9796_v53 = vld [vmem:[%s13435_s1 + $0x854] ss:$8 sps:$4 sm:$0xff]  }
 0x1bd   : > { %2177 = vmatprep.subr.bf16.mxu0 %v9727_v55  ;;  %2236 = vmatprep.subr.bf16.mxu1 %v9727_v55  ;;  %v9794_v55 = vld [vmem:[%s13435_s1 + $0x850] ss:$8 sps:$4 sm:$0xff]  }
 0x1c0   : > { %2178 = vmatpush1.bf16.msra.mxu0 %v9725_v57  ;;  %2237 = vmatpush1.bf16.msra.mxu1 %v9725_v57  ;;  %v9799_v57 = vld [vmem:[%s13435_s1 + $0x864] ss:$8 sps:$4 sm:$0xff]  }
 0x1c1   : > { %2179 = vmatprep.subr.bf16.mxu0 %v9730_v58  ;;  %2238 = vmatprep.subr.bf16.mxu1 %v9730_v58  ;;  %v9797_v58 = vld [vmem:[%s13435_s1 + $0x860] ss:$8 sps:$4 sm:$0xff]  }
 0x1c4   : > { %2180 = vmatpush1.bf16.msra.mxu0 %v9728_v61  ;;  %2239 = vmatpush1.bf16.msra.mxu1 %v9728_v61  ;;  %v9800_v61 = vld [vmem:[%s13435_s1 + $0x870] ss:$8 sps:$4 sm:$0xff]  }
 0x1c5   : > { %2444 = vmatprep.subr.bf16.mxu0 %v9733_v47  ;;  %2491 = vmatprep.subr.bf16.mxu1 %v9733_v47  ;;  %v9805_v47 = vld [vmem:[%s13435_s1 + $0x884] ss:$8 sps:$4 sm:$0xff]  }
 0x1c7   : > { %2182 = vmatmul.mubr.bf16.vlgmr.msra.gmra.mrb[0].mxu0 %v10808_v54  ;;  %2241 = vmatmul.mubr.bf16.vlgmr.msra.gmra.mrb[0].mxu1 %v11460_v43  ;;  %v9737_v54 = vld [vmem:[%s13435_s1 + $0x720] ss:$8 sps:$4 sm:$0xff]  }
 0x1c8   : > { %2445 = vmatpush1.bf16.msra.mxu0 %v9731_v44  ;;  %2492 = vmatpush1.bf16.msra.mxu1 %v9731_v44  ;;  %v9803_v44 = vld [vmem:[%s13435_s1 + $0x880] ss:$8 sps:$4 sm:$0xff]  }
 0x1c9   : > { %2446 = vmatprep.subr.bf16.mxu0 %v9736_v62  ;;  %2493 = vmatprep.subr.bf16.mxu1 %v9736_v62  ;;  %v9808_v62 = vld [vmem:[%s13435_s1 + $0x894] ss:$8 sps:$4 sm:$0xff]  }
 0x1ca   : > { %2476 = vmatprep.mubr.bf16.mxu0 %v1037_v33  ;;  %2523 = vmatprep.mubr.bf16.mxu1 %v2488_v0  ;;  %v9740_v33 = vld [vmem:[%s13435_s1 + $0x730] ss:$8 sps:$4 sm:$0xff]  }
 0x1cc   : > { %2447 = vmatpush1.bf16.msra.mxu0 %v9734_v1  ;;  %2494 = vmatpush1.bf16.msra.mxu1 %v9734_v1  ;;  %v9806_v1 = vld [vmem:[%s13435_s1 + $0x890] ss:$8 sps:$4 sm:$0xff]  }
 0x1cd   : > { %2448 = vmatprep.subr.bf16.mxu0 %v9739_v15  ;;  %2495 = vmatprep.subr.bf16.mxu1 %v9739_v15  ;;  %v9811_v15 = vld [vmem:[%s13435_s1 + $0x8a4] ss:$8 sps:$4 sm:$0xff]  }
 0x1d0   : > { %2449 = vmatpush1.bf16.msra.mxu0 %v9737_v54  ;;  %2496 = vmatpush1.bf16.msra.mxu1 %v9737_v54  ;;  %v9809_v54 = vld [vmem:[%s13435_s1 + $0x8a0] ss:$8 sps:$4 sm:$0xff]  }
 0x1d1   : > { %2450 = vmatprep.subr.bf16.mxu0 %v9742_v2  ;;  %2497 = vmatprep.subr.bf16.mxu1 %v9742_v2  ;;  %v9814_v2 = vld [vmem:[%s13435_s1 + $0x8b4] ss:$8 sps:$4 sm:$0xff]  }
 0x1d4   : > { %2451 = vmatpush1.bf16.msra.mxu0 %v9740_v33  ;;  %2498 = vmatpush1.bf16.msra.mxu1 %v9740_v33  ;;  %v9812_v33 = vld [vmem:[%s13435_s1 + $0x8b0] ss:$8 sps:$4 sm:$0xff]  }
 0x1d5   : > { %2452 = vmatprep.subr.bf16.mxu0 %v9745_v3  ;;  %2499 = vmatprep.subr.bf16.mxu1 %v9745_v3  ;;  %v9817_v3 = vld [vmem:[%s13435_s1 + $0x8c4] ss:$8 sps:$4 sm:$0xff]  }
 0x1d8   : > { %2453 = vmatpush1.bf16.msra.mxu0 %v9743_v4  ;;  %2500 = vmatpush1.bf16.msra.mxu1 %v9743_v4  ;;  %v9815_v4 = vld [vmem:[%s13435_s1 + $0x8c0] ss:$8 sps:$4 sm:$0xff]  }
 0x1d9   : > { %2454 = vmatprep.subr.bf16.mxu0 %v9748_v5  ;;  %2501 = vmatprep.subr.bf16.mxu1 %v9748_v5  ;;  %v9820_v5 = vld [vmem:[%s13435_s1 + $0x8d4] ss:$8 sps:$4 sm:$0xff]  }
 0x1dc   : > { %2455 = vmatpush1.bf16.msra.mxu0 %v9746_v6  ;;  %2502 = vmatpush1.bf16.msra.mxu1 %v9746_v6  ;;  %v9818_v6 = vld [vmem:[%s13435_s1 + $0x8d0] ss:$8 sps:$4 sm:$0xff]  }
 0x1dd   : > { %2456 = vmatprep.subr.bf16.mxu0 %v9751_v7  ;;  %2503 = vmatprep.subr.bf16.mxu1 %v9751_v7  ;;  %v9823_v7 = vld [vmem:[%s13435_s1 + $0x8e4] ss:$8 sps:$4 sm:$0xff]  }
 0x1e0   : > { %2457 = vmatpush1.bf16.msra.mxu0 %v9749_v9  ;;  %2504 = vmatpush1.bf16.msra.mxu1 %v9749_v9  ;;  %v9821_v9 = vld [vmem:[%s13435_s1 + $0x8e0] ss:$8 sps:$4 sm:$0xff]  }
 0x1e1   : > { %2458 = vmatprep.subr.bf16.mxu0 %v9754_v10  ;;  %2505 = vmatprep.subr.bf16.mxu1 %v9754_v10  ;;  %v9826_v10 = vld [vmem:[%s13435_s1 + $0x8f4] ss:$8 sps:$4 sm:$0xff]  }
 0x1e4   : > { %2459 = vmatpush1.bf16.msra.mxu0 %v9752_v18  ;;  %2506 = vmatpush1.bf16.msra.mxu1 %v9752_v18  ;;  %v2770_v18 = vrot.slane %v2193_v59, 1  ;;  %v9832_v59 = vld [vmem:[%s13435_s1 + $0x914] ss:$8 sps:$4 sm:$0xff]  }
 0x1e5   : > { %2460 = vmatprep.subr.bf16.mxu0 %v9757_v19  ;;  %2507 = vmatprep.subr.bf16.mxu1 %v9757_v19  ;;  %v2771_v19 = vrot.slane %v2195_v56, 2  ;;  %v9827_v56 = vld [vmem:[%s13435_s1 + $0x900] ss:$8 sps:$4 sm:$0xff]  }
 0x1e8   : > { %2461 = vmatpush1.bf16.msra.mxu0 %v9755_v23  ;;  %2508 = vmatpush1.bf16.msra.mxu1 %v9755_v23  ;;  %v9824_v23 = vld [vmem:[%s13435_s1 + $0x8f0] ss:$8 sps:$4 sm:$0xff]  }
 0x1e9   : > { %2462 = vmatprep.subr.bf16.mxu0 %v9760_v16  ;;  %2509 = vmatprep.subr.bf16.mxu1 %v9760_v16  ;;  %v9829_v16 = vld [vmem:[%s13435_s1 + $0x904] ss:$8 sps:$4 sm:$0xff]  }
 0x1ec   : > { %2463 = vmatpush1.bf16.msra.mxu0 %v9758_v17  ;;  %2510 = vmatpush1.bf16.msra.mxu1 %v9758_v17  ;;  %v11678_v17 = vor.u32 %v2771_v19, %v2770_v18  ;;  %v9899_v18 = vld [vmem:[%s13435_s1 + $0xa80] ss:$8 sps:$4 sm:$0xff]   ;;  %v9904_v19 = vld [vmem:[%s13435_s1 + $0xa94] ss:$8 sps:$4 sm:$0xff]  }
 0x1ed   : > { %2464 = vmatprep.subr.bf16.mxu0 %v9763_v21  ;;  %2511 = vmatprep.subr.bf16.mxu1 %v9763_v21  ;;  %v3058_v21 = vrot.slane %v11246_v42, 2 }
 0x1f0   : > { %2465 = vmatpush1.bf16.msra.mxu0 %v9761_v24  ;;  %2512 = vmatpush1.bf16.msra.mxu1 %v9761_v24  ;;  %v9830_v24 = vld [vmem:[%s13435_s1 + $0x910] ss:$8 sps:$4 sm:$0xff]  }
 0x1f1   : > { %2466 = vmatprep.subr.bf16.mxu0 %v9766_v28  ;;  %2513 = vmatprep.subr.bf16.mxu1 %v9766_v28  ;;  %v9835_v28 = vld [vmem:[%s13435_s1 + $0x924] ss:$8 sps:$4 sm:$0xff]  }
 0x1f4   : > { %2467 = vmatpush1.bf16.msra.mxu0 %v9764_v25  ;;  %2514 = vmatpush1.bf16.msra.mxu1 %v9764_v25  ;;  %v9838_v25 = vld [vmem:[%s13435_s1 + $0x934] ss:$8 sps:$4 sm:$0xff]  }
 0x1f5   : > { %2468 = vmatprep.subr.bf16.mxu0 %v9769_v26  ;;  %2515 = vmatprep.subr.bf16.mxu1 %v9769_v26  ;;  %v9839_v26 = vld [vmem:[%s13435_s1 + $0x940] ss:$8 sps:$4 sm:$0xff]  }
 0x1f8   : > { %2469 = vmatpush1.bf16.msra.mxu0 %v9767_v27  ;;  %2516 = vmatpush1.bf16.msra.mxu1 %v9767_v27  ;;  %v9844_v27 = vld [vmem:[%s13435_s1 + $0x954] ss:$8 sps:$4 sm:$0xff]  }
 0x1f9   : > { %2470 = vmatprep.subr.bf16.mxu0 %v9772_v29  ;;  %2517 = vmatprep.subr.bf16.mxu1 %v9772_v29  ;;  %v9842_v29 = vld [vmem:[%s13435_s1 + $0x950] ss:$8 sps:$4 sm:$0xff]  }
 0x1fc   : > { %2471 = vmatpush1.bf16.msra.mxu0 %v9770_v30  ;;  %2518 = vmatpush1.bf16.msra.mxu1 %v9770_v30  ;;  %v9847_v30 = vld [vmem:[%s13435_s1 + $0x964] ss:$8 sps:$4 sm:$0xff]  }
 0x1fd   : > { %2472 = vmatprep.subr.bf16.mxu0 %v9775_v31  ;;  %2519 = vmatprep.subr.bf16.mxu1 %v9775_v31  ;;  %v9845_v31 = vld [vmem:[%s13435_s1 + $0x960] ss:$8 sps:$4 sm:$0xff]  }
 0x200   : > { %2473 = vmatpush1.bf16.msra.mxu0 %v9773_v32  ;;  %2520 = vmatpush1.bf16.msra.mxu1 %v9773_v32  ;;  %v9850_v32 = vld [vmem:[%s13435_s1 + $0x974] ss:$8 sps:$4 sm:$0xff]  }
 0x201   : > { %2474 = vmatprep.subr.bf16.mxu0 %v9778_v34  ;;  %2521 = vmatprep.subr.bf16.mxu1 %v9778_v34  ;;  %v9848_v34 = vld [vmem:[%s13435_s1 + $0x970] ss:$8 sps:$4 sm:$0xff]  }
 0x204   : > { %2475 = vmatpush1.bf16.msra.mxu0 %v9776_v35  ;;  %2522 = vmatpush1.bf16.msra.mxu1 %v9776_v35  ;;  %v9853_v35 = vld [vmem:[%s13435_s1 + $0x984] ss:$8 sps:$4 sm:$0xff]  }
 0x205   : > { %2727 = vmatprep.subr.bf16.mxu0 %v9781_v36  ;;  %2778 = vmatprep.subr.bf16.mxu1 %v9781_v36  ;;  %v9851_v36 = vld [vmem:[%s13435_s1 + $0x980] ss:$8 sps:$4 sm:$0xff]  }
 0x207   : > { %2477 = vmatmul.mubr.bf16.vlgmr.msra.gmra.mrb[0].mxu0 %v1036_v12  ;;  %2524 = vmatmul.mubr.bf16.vlgmr.msra.gmra.mrb[0].mxu1 %v2487_v39  ;;  %v9785_v12 = vld [vmem:[%s13435_s1 + $0x820] ss:$8 sps:$4 sm:$0xff]  }
 0x208   : > { %2728 = vmatpush1.bf16.msra.mxu0 %v9779_v45  ;;  %2779 = vmatpush1.bf16.msra.mxu1 %v9779_v45  ;;  %v9859_v45 = vld [vmem:[%s13435_s1 + $0x9a4] ss:$8 sps:$4 sm:$0xff]  }
 0x209   : > { %2729 = vmatprep.subr.bf16.mxu0 %v9784_v46  ;;  %2780 = vmatprep.subr.bf16.mxu1 %v9784_v46  ;;  %v9857_v46 = vld [vmem:[%s13435_s1 + $0x9a0] ss:$8 sps:$4 sm:$0xff]  }
 0x20a   : > { %2759 = vmatprep.mubr.bf16.mxu0 %v11027_v13  ;;  %2810 = vmatprep.mubr.bf16.mxu1 %v11576_v48  ;;  %v9788_v13 = vld [vmem:[%s13435_s1 + $0x830] ss:$8 sps:$4 sm:$0xff]  }
 0x20c   : > { %2730 = vmatpush1.bf16.msra.mxu0 %v9782_v8  ;;  %2781 = vmatpush1.bf16.msra.mxu1 %v9782_v8  ;;  %v9862_v8 = vld [vmem:[%s13435_s1 + $0x9b4] ss:$8 sps:$4 sm:$0xff]  }
 0x20d   : > { %2731 = vmatprep.subr.bf16.mxu0 %v9787_v11  ;;  %2782 = vmatprep.subr.bf16.mxu1 %v9787_v11  ;;  %v9860_v11 = vld [vmem:[%s13435_s1 + $0x9b0] ss:$8 sps:$4 sm:$0xff]  }
 0x210   : > { %2732 = vmatpush1.bf16.msra.mxu0 %v9785_v12  ;;  %2783 = vmatpush1.bf16.msra.mxu1 %v9785_v12  ;;  %v9865_v12 = vld [vmem:[%s13435_s1 + $0x9c4] ss:$8 sps:$4 sm:$0xff]  }
 0x211   : > { %2733 = vmatprep.subr.bf16.mxu0 %v9790_v50  ;;  %2784 = vmatprep.subr.bf16.mxu1 %v9790_v50  ;;  %v9863_v50 = vld [vmem:[%s13435_s1 + $0x9c0] ss:$8 sps:$4 sm:$0xff]  }
 0x214   : > { %2734 = vmatpush1.bf16.msra.mxu0 %v9788_v13  ;;  %2785 = vmatpush1.bf16.msra.mxu1 %v9788_v13  ;;  %v9868_v13 = vld [vmem:[%s13435_s1 + $0x9d4] ss:$8 sps:$4 sm:$0xff]  }
 0x215   : > { %2735 = vmatprep.subr.bf16.mxu0 %v9793_v51  ;;  %2786 = vmatprep.subr.bf16.mxu1 %v9793_v51  ;;  %v9866_v51 = vld [vmem:[%s13435_s1 + $0x9d0] ss:$8 sps:$4 sm:$0xff]  }
 0x218   : > { %2736 = vmatpush1.bf16.msra.mxu0 %v9791_v52  ;;  %2787 = vmatpush1.bf16.msra.mxu1 %v9791_v52  ;;  %v9871_v52 = vld [vmem:[%s13435_s1 + $0x9e4] ss:$8 sps:$4 sm:$0xff]  }
 0x219   : > { %2737 = vmatprep.subr.bf16.mxu0 %v9796_v53  ;;  %2788 = vmatprep.subr.bf16.mxu1 %v9796_v53  ;;  %v9869_v53 = vld [vmem:[%s13435_s1 + $0x9e0] ss:$8 sps:$4 sm:$0xff]  }
 0x21c   : > { %2738 = vmatpush1.bf16.msra.mxu0 %v9794_v55  ;;  %2789 = vmatpush1.bf16.msra.mxu1 %v9794_v55  ;;  %v9874_v55 = vld [vmem:[%s13435_s1 + $0x9f4] ss:$8 sps:$4 sm:$0xff]  }
 0x21d   : > { %2739 = vmatprep.subr.bf16.mxu0 %v9799_v57  ;;  %2790 = vmatprep.subr.bf16.mxu1 %v9799_v57  ;;  %v9872_v57 = vld [vmem:[%s13435_s1 + $0x9f0] ss:$8 sps:$4 sm:$0xff]  }
 0x220   : > { %2740 = vmatpush1.bf16.msra.mxu0 %v9797_v58  ;;  %2791 = vmatpush1.bf16.msra.mxu1 %v9797_v58  ;;  %v9877_v58 = vld [vmem:[%s13435_s1 + $0xa04] ss:$8 sps:$4 sm:$0xff]  }
 0x221   : > { %2741 = vmatprep.subr.bf16.mxu0 %v9802_v60  ;;  %2792 = vmatprep.subr.bf16.mxu1 %v9802_v60  ;;  %v3057_v60 = vrot.slane %v11348_v22, 2 }
 0x224   : > { %2742 = vmatpush1.bf16.msra.mxu0 %v9800_v61  ;;  %2793 = vmatpush1.bf16.msra.mxu1 %v9800_v61  ;;  %v11785_v61 = vld [vmem:[%s10703_s18 + $0x18] sm:$0x77] }
 0x225   : > { %2743 = vmatprep.subr.bf16.mxu0 %v9805_v47  ;;  %2794 = vmatprep.subr.bf16.mxu1 %v9805_v47  ;;  %v9875_v47 = vld [vmem:[%s13435_s1 + $0xa00] ss:$8 sps:$4 sm:$0xff]  }
 0x228   : > { %2744 = vmatpush1.bf16.msra.mxu0 %v9803_v44  ;;  %2795 = vmatpush1.bf16.msra.mxu1 %v9803_v44  ;;  %v9880_v44 = vld [vmem:[%s13435_s1 + $0xa14] ss:$8 sps:$4 sm:$0xff]  }
 0x229   : > { %2745 = vmatprep.subr.bf16.mxu0 %v9808_v62  ;;  %2796 = vmatprep.subr.bf16.mxu1 %v9808_v62  ;;  %v11795_v62 = vcombine.high %v11785_v61, %v11785_v61 }
 0x22c   : > { %2746 = vmatpush1.bf16.msra.mxu0 %v9806_v1  ;;  %2797 = vmatpush1.bf16.msra.mxu1 %v9806_v1  ;;  %v9878_v1 = vld [vmem:[%s13435_s1 + $0xa10] ss:$8 sps:$4 sm:$0xff]  }
 0x22d   : > { %2747 = vmatprep.subr.bf16.mxu0 %v9811_v15  ;;  %2798 = vmatprep.subr.bf16.mxu1 %v9811_v15  ;;  %v9883_v15 = vld [vmem:[%s13435_s1 + $0xa24] ss:$8 sps:$4 sm:$0xff]  }
 0x230   : > { %2748 = vmatpush1.bf16.msra.mxu0 %v9809_v54  ;;  %2799 = vmatpush1.bf16.msra.mxu1 %v9809_v54  ;;  %v9884_v54 = vld [vmem:[%s13435_s1 + $0xa30] ss:$8 sps:$4 sm:$0xff]  }
 0x231   : > { %2749 = vmatprep.subr.bf16.mxu0 %v9814_v2  ;;  %2800 = vmatprep.subr.bf16.mxu1 %v9814_v2  ;;  %v9889_v2 = vld [vmem:[%s13435_s1 + $0xa44] ss:$8 sps:$4 sm:$0xff]  }
 0x234   : > { %2750 = vmatpush1.bf16.msra.mxu0 %v9812_v33  ;;  %2801 = vmatpush1.bf16.msra.mxu1 %v9812_v33  ;;  %v9887_v33 = vld [vmem:[%s13435_s1 + $0xa40] ss:$8 sps:$4 sm:$0xff]  }
 0x235   : > { %2751 = vmatprep.subr.bf16.mxu0 %v9817_v3  ;;  %2802 = vmatprep.subr.bf16.mxu1 %v9817_v3  ;;  %v9892_v3 = vld [vmem:[%s13435_s1 + $0xa54] ss:$8 sps:$4 sm:$0xff]  }
 0x238   : > { %2752 = vmatpush1.bf16.msra.mxu0 %v9815_v4  ;;  %2803 = vmatpush1.bf16.msra.mxu1 %v9815_v4  ;;  %v9890_v4 = vld [vmem:[%s13435_s1 + $0xa50] ss:$8 sps:$4 sm:$0xff]  }
 0x239   : > { %2753 = vmatprep.subr.bf16.mxu0 %v9820_v5  ;;  %2804 = vmatprep.subr.bf16.mxu1 %v9820_v5  ;;  %v9895_v5 = vld [vmem:[%s13435_s1 + $0xa64] ss:$8 sps:$4 sm:$0xff]  }
 0x23c   : > { %2754 = vmatpush1.bf16.msra.mxu0 %v9818_v6  ;;  %2805 = vmatpush1.bf16.msra.mxu1 %v9818_v6  ;;  %v9893_v6 = vld [vmem:[%s13435_s1 + $0xa60] ss:$8 sps:$4 sm:$0xff]  }
 0x23d   : > { %2755 = vmatprep.subr.bf16.mxu0 %v9823_v7  ;;  %2806 = vmatprep.subr.bf16.mxu1 %v9823_v7  ;;  %v9898_v7 = vld [vmem:[%s13435_s1 + $0xa74] ss:$8 sps:$4 sm:$0xff]  }
 0x240   : > { %2756 = vmatpush1.bf16.msra.mxu0 %v9821_v9  ;;  %2807 = vmatpush1.bf16.msra.mxu1 %v9821_v9  ;;  %v9896_v9 = vld [vmem:[%s13435_s1 + $0xa70] ss:$8 sps:$4 sm:$0xff]  }
 0x241   : > { %2757 = vmatprep.subr.bf16.mxu0 %v9826_v10  ;;  %2808 = vmatprep.subr.bf16.mxu1 %v9826_v10  ;;  %v9901_v10 = vld [vmem:[%s13435_s1 + $0xa84] ss:$8 sps:$4 sm:$0xff]  }
 0x244   : > { %2758 = vmatpush1.bf16.msra.mxu0 %v9824_v23  ;;  %2809 = vmatpush1.bf16.msra.mxu1 %v9824_v23  ;;  %v9902_v23 = vld [vmem:[%s13435_s1 + $0xa90] ss:$8 sps:$4 sm:$0xff]  }
 0x245   : > { %3014 = vmatprep.subr.bf16.mxu0 %v9829_v16  ;;  %3061 = vmatprep.subr.bf16.mxu1 %v9829_v16  ;;  %v9907_v16 = vld [vmem:[%s13435_s1 + $0xaa4] ss:$8 sps:$4 sm:$0xff]  }
 0x247   : > { %2760 = vmatmul.mubr.bf16.vlgmr.msra.gmra.mrb[0].mxu0 %v11130_v49  ;;  %2811 = vmatmul.mubr.bf16.vlgmr.msra.gmra.mrb[0].mxu1 %v11678_v17  ;;  %v9833_v49 = vld [vmem:[%s13435_s1 + $0x920] ss:$8 sps:$4 sm:$0xff]  }
 0x248   : > { %3015 = vmatpush1.bf16.msra.mxu0 %v9827_v56  ;;  %3062 = vmatpush1.bf16.msra.mxu1 %v9827_v56  ;;  %v9905_v56 = vld [vmem:[%s13435_s1 + $0xaa0] ss:$8 sps:$4 sm:$0xff]  }
 0x249   : > { %3016 = vmatprep.subr.bf16.mxu0 %v9832_v59  ;;  %3063 = vmatprep.subr.bf16.mxu1 %v9832_v59  ;;  %v9910_v59 = vld [vmem:[%s13435_s1 + $0xab4] ss:$8 sps:$4 sm:$0xff]  }
 0x24a   : > { %3046 = vmatprep.mubr.bf16.mxu0 %v1619_v63  ;;  %3093 = vmatprep.mubr.bf16.mxu1 %v3058_v21  ;;  %v9841_v63 = vld [vmem:[%s13435_s1 + $0x944] ss:$8 sps:$4 sm:$0xff]  }
 0x24c   : > { %3017 = vmatpush1.bf16.msra.mxu0 %v9830_v24  ;;  %3064 = vmatpush1.bf16.msra.mxu1 %v9830_v24  ;;  %v9908_v24 = vld [vmem:[%s13435_s1 + $0xab0] ss:$8 sps:$4 sm:$0xff]  }
 0x24d   : > { %3018 = vmatprep.subr.bf16.mxu0 %v9835_v28  ;;  %3065 = vmatprep.subr.bf16.mxu1 %v9835_v28  ;;  %v9913_v28 = vld [vmem:[%s13435_s1 + $0xac4] ss:$8 sps:$4 sm:$0xff]  }
 0x250   : > { %3019 = vmatpush1.bf16.msra.mxu0 %v9833_v49  ;;  %3066 = vmatpush1.bf16.msra.mxu1 %v9833_v49  ;;  %v9911_v49 = vld [vmem:[%s13435_s1 + $0xac0] ss:$8 sps:$4 sm:$0xff]  }
 0x251   : > { %3020 = vmatprep.subr.bf16.mxu0 %v9838_v25  ;;  %3067 = vmatprep.subr.bf16.mxu1 %v9838_v25  ;;  %v9916_v25 = vld [vmem:[%s13435_s1 + $0xad4] ss:$8 sps:$4 sm:$0xff]  }
 0x254   : > { %3021 = vmatpush1.bf16.msra.mxu0 %v9836_v20  ;;  %3068 = vmatpush1.bf16.msra.mxu1 %v9836_v20  ;;  %v9914_v20 = vld [vmem:[%s13435_s1 + $0xad0] ss:$8 sps:$4 sm:$0xff]  }
 0x255   : > { %3022 = vmatprep.subr.bf16.mxu0 %v9841_v63  ;;  %3069 = vmatprep.subr.bf16.mxu1 %v9841_v63  ;;  %v9919_v63 = vld [vmem:[%s13435_s1 + $0xae4] ss:$8 sps:$4 sm:$0xff]  }
 0x258   : > { %3023 = vmatpush1.bf16.msra.mxu0 %v9839_v26  ;;  %3070 = vmatpush1.bf16.msra.mxu1 %v9839_v26  ;;  %v9917_v26 = vld [vmem:[%s13435_s1 + $0xae0] ss:$8 sps:$4 sm:$0xff]  }
 0x259   : > { %3024 = vmatprep.subr.bf16.mxu0 %v9844_v27  ;;  %3071 = vmatprep.subr.bf16.mxu1 %v9844_v27  ;;  %v9922_v27 = vld [vmem:[%s13435_s1 + $0xaf4] ss:$8 sps:$4 sm:$0xff]  }
 0x25c   : > { %3025 = vmatpush1.bf16.msra.mxu0 %v9842_v29  ;;  %3072 = vmatpush1.bf16.msra.mxu1 %v9842_v29  ;;  %v3641_v29 = vshll.u32 %v11795_v62, 16 }
 0x25d   : > { %3026 = vmatprep.subr.bf16.mxu0 %v9847_v30  ;;  %3073 = vmatprep.subr.bf16.mxu1 %v9847_v30  ;;  %v9920_v30 = vld [vmem:[%s13435_s1 + $0xaf0] ss:$8 sps:$4 sm:$0xff]  }
 0x260   : > { %3027 = vmatpush1.bf16.msra.mxu0 %v9845_v31  ;;  %3074 = vmatpush1.bf16.msra.mxu1 %v9845_v31  ;;  %v9926_v31 = vld [vmem:[%s13435_s1 + $0xb04] ss:$8 sps:$4 sm:$0xff]  }
 0x261   : > { %3028 = vmatprep.subr.bf16.mxu0 %v9850_v32  ;;  %3075 = vmatprep.subr.bf16.mxu1 %v9850_v32  ;;  %v3639_v32 = vshrl.u32 %v11795_v62, 16 }
 0x264   : > { %3029 = vmatpush1.bf16.msra.mxu0 %v9848_v34  ;;  %3076 = vmatpush1.bf16.msra.mxu1 %v9848_v34  ;;  %v3643_v34 = vrot.slane %v3641_v29, 1 }
 0x265   : > { %3030 = vmatprep.subr.bf16.mxu0 %v9853_v35  ;;  %3077 = vmatprep.subr.bf16.mxu1 %v9853_v35  ;;  %v11899_v35 = vcombine.low %v11785_v61, %v11785_v61  ;;  %v9949_v61 = vld [vmem:[%s13435_s1 + $0xb80] ss:$8 sps:$4 sm:$0xff]  }
 0x268   : > { %3031 = vmatpush1.bf16.msra.mxu0 %v9851_v36  ;;  %3078 = vmatpush1.bf16.msra.mxu1 %v9851_v36  ;;  %v9924_v36 = vld [vmem:[%s13435_s1 + $0xb00] ss:$8 sps:$4 sm:$0xff]  }
 0x269   : > { %3032 = vmatprep.subr.bf16.mxu0 %v9856_v38  ;;  %3079 = vmatprep.subr.bf16.mxu1 %v9856_v38  ;;  %v9930_v38 = vld [vmem:[%s13435_s1 + $0xb14] ss:$8 sps:$4 sm:$0xff]  }
 0x26c   : > { %3033 = vmatpush1.bf16.msra.mxu0 %v9854_v41  ;;  %3080 = vmatpush1.bf16.msra.mxu1 %v9854_v41  ;;  %v11909_v41 = vor.u32 %v3643_v34, %v3639_v32  ;;  %v9994_v34 = vld [vmem:[%s13435_s1 + $0xc70] ss:$8 sps:$4 sm:$0xff]  }
 0x26d   : > { %3034 = vmatprep.subr.bf16.mxu0 %v9859_v45  ;;  %3081 = vmatprep.subr.bf16.mxu1 %v9859_v45  ;;  %v9928_v45 = vld [vmem:[%s13435_s1 + $0xb10] ss:$8 sps:$4 sm:$0xff]  }
 0x270   : > { %3035 = vmatpush1.bf16.msra.mxu0 %v9857_v46  ;;  %3082 = vmatpush1.bf16.msra.mxu1 %v9857_v46  ;;  %v9933_v46 = vld [vmem:[%s13435_s1 + $0xb24] ss:$8 sps:$4 sm:$0xff]  }
 0x271   : > { %3036 = vmatprep.subr.bf16.mxu0 %v9862_v8  ;;  %3083 = vmatprep.subr.bf16.mxu1 %v9862_v8  ;;  %v9931_v8 = vld [vmem:[%s13435_s1 + $0xb20] ss:$8 sps:$4 sm:$0xff]  }
 0x274   : > { %3037 = vmatpush1.bf16.msra.mxu0 %v9860_v11  ;;  %3084 = vmatpush1.bf16.msra.mxu1 %v9860_v11  ;;  %v9936_v11 = vld [vmem:[%s13435_s1 + $0xb34] ss:$8 sps:$4 sm:$0xff]  }
 0x275   : > { %3038 = vmatprep.subr.bf16.mxu0 %v9865_v12  ;;  %3085 = vmatprep.subr.bf16.mxu1 %v9865_v12  ;;  %v9939_v12 = vld [vmem:[%s13435_s1 + $0xb44] ss:$8 sps:$4 sm:$0xff]  }
 0x278   : > { %3039 = vmatpush1.bf16.msra.mxu0 %v9863_v50  ;;  %3086 = vmatpush1.bf16.msra.mxu1 %v9863_v50  ;;  %v9937_v50 = vld [vmem:[%s13435_s1 + $0xb40] ss:$8 sps:$4 sm:$0xff]  }
 0x279   : > { %3040 = vmatprep.subr.bf16.mxu0 %v9868_v13  ;;  %3087 = vmatprep.subr.bf16.mxu1 %v9868_v13  ;;  %v9942_v13 = vld [vmem:[%s13435_s1 + $0xb54] ss:$8 sps:$4 sm:$0xff]  }
 0x27c   : > { %3041 = vmatpush1.bf16.msra.mxu0 %v9866_v51  ;;  %3088 = vmatpush1.bf16.msra.mxu1 %v9866_v51  ;;  %v9940_v51 = vld [vmem:[%s13435_s1 + $0xb50] ss:$8 sps:$4 sm:$0xff]  }
 0x27d   : > { %3042 = vmatprep.subr.bf16.mxu0 %v9871_v52  ;;  %3089 = vmatprep.subr.bf16.mxu1 %v9871_v52  ;;  %v9945_v52 = vld [vmem:[%s13435_s1 + $0xb64] ss:$8 sps:$4 sm:$0xff]  }
 0x280   : > { %3043 = vmatpush1.bf16.msra.mxu0 %v9869_v53  ;;  %3090 = vmatpush1.bf16.msra.mxu1 %v9869_v53  ;;  %v9943_v53 = vld [vmem:[%s13435_s1 + $0xb60] ss:$8 sps:$4 sm:$0xff]  }
 0x281   : > { %3044 = vmatprep.subr.bf16.mxu0 %v9874_v55  ;;  %3091 = vmatprep.subr.bf16.mxu1 %v9874_v55  ;;  %v9948_v55 = vld [vmem:[%s13435_s1 + $0xb74] ss:$8 sps:$4 sm:$0xff]  }
 0x284   : > { %3045 = vmatpush1.bf16.msra.mxu0 %v9872_v57  ;;  %3092 = vmatpush1.bf16.msra.mxu1 %v9872_v57  ;;  %v9946_v57 = vld [vmem:[%s13435_s1 + $0xb70] ss:$8 sps:$4 sm:$0xff]  }
 0x285   : > { %3302 = vmatprep.subr.bf16.mxu0 %v9877_v58  ;;  %3352 = vmatprep.subr.bf16.mxu1 %v9877_v58  ;;  %v9951_v58 = vld [vmem:[%s13435_s1 + $0xb84] ss:$8 sps:$4 sm:$0xff]  }
 0x287   : > { %3047 = vmatmul.mubr.bf16.vlgmr.msra.gmra.mrb[0].mxu0 %v1618_v37  ;;  %3094 = vmatmul.mubr.bf16.vlgmr.msra.gmra.mrb[0].mxu1 %v3057_v60  ;;  %v9886_v37 = vld [vmem:[%s13435_s1 + $0xa34] ss:$8 sps:$4 sm:$0xff]  }
 0x288   : > { %3303 = vmatpush1.bf16.msra.mxu0 %v9875_v47  ;;  %3353 = vmatpush1.bf16.msra.mxu1 %v9875_v47  ;;  %v9954_v47 = vld [vmem:[%s13435_s1 + $0xb94] ss:$8 sps:$4 sm:$0xff]  }
 0x289   : > { %3304 = vmatprep.subr.bf16.mxu0 %v9880_v44  ;;  %3354 = vmatprep.subr.bf16.mxu1 %v9880_v44  ;;  %v9952_v44 = vld [vmem:[%s13435_s1 + $0xb90] ss:$8 sps:$4 sm:$0xff]  }
 0x28a   : > { %3334 = vmatprep.mubr.bf16.mxu0 %v11246_v42  ;;  %3384 = vmatprep.mubr.bf16.mxu1 %v11795_v62  ;;  %v10078_v42 = vld [vmem:[%s13435_s1 + $0xe30] ss:$8 sps:$4 sm:$0xff]  }
 0x28c   : > { %3305 = vmatpush1.bf16.msra.mxu0 %v9878_v1  ;;  %3355 = vmatpush1.bf16.msra.mxu1 %v9878_v1  ;;  %v9957_v1 = vld [vmem:[%s13435_s1 + $0xba4] ss:$8 sps:$4 sm:$0xff]  }
 0x28d   : > { %3306 = vmatprep.subr.bf16.mxu0 %v9883_v15  ;;  %3356 = vmatprep.subr.bf16.mxu1 %v9883_v15  ;;  %v9955_v15 = vld [vmem:[%s13435_s1 + $0xba0] ss:$8 sps:$4 sm:$0xff]  }
 0x290   : > { %3307 = vmatpush1.bf16.msra.mxu0 %v9881_v40  ;;  %3357 = vmatpush1.bf16.msra.mxu1 %v9881_v40  ;;  %v9960_v40 = vld [vmem:[%s13435_s1 + $0xbb4] ss:$8 sps:$4 sm:$0xff]  }
 0x291   : > { %3308 = vmatprep.subr.bf16.mxu0 %v9886_v37  ;;  %3358 = vmatprep.subr.bf16.mxu1 %v9886_v37  ;;  %v9958_v37 = vld [vmem:[%s13435_s1 + $0xbb0] ss:$8 sps:$4 sm:$0xff]  }
 0x294   : > { %3309 = vmatpush1.bf16.msra.mxu0 %v9884_v54  ;;  %3359 = vmatpush1.bf16.msra.mxu1 %v9884_v54  ;;  %v9963_v54 = vld [vmem:[%s13435_s1 + $0xbc4] ss:$8 sps:$4 sm:$0xff]  }
 0x295   : > { %3310 = vmatprep.subr.bf16.mxu0 %v9889_v2  ;;  %3360 = vmatprep.subr.bf16.mxu1 %v9889_v2  ;;  %v9961_v2 = vld [vmem:[%s13435_s1 + $0xbc0] ss:$8 sps:$4 sm:$0xff]  }
 0x298   : > { %3311 = vmatpush1.bf16.msra.mxu0 %v9887_v33  ;;  %3361 = vmatpush1.bf16.msra.mxu1 %v9887_v33  ;;  %v9966_v33 = vld [vmem:[%s13435_s1 + $0xbd4] ss:$8 sps:$4 sm:$0xff]  }
 0x299   : > { %3312 = vmatprep.subr.bf16.mxu0 %v9892_v3  ;;  %3362 = vmatprep.subr.bf16.mxu1 %v9892_v3  ;;  %v9964_v3 = vld [vmem:[%s13435_s1 + $0xbd0] ss:$8 sps:$4 sm:$0xff]  }
 0x29c   : > { %3313 = vmatpush1.bf16.msra.mxu0 %v9890_v4  ;;  %3363 = vmatpush1.bf16.msra.mxu1 %v9890_v4  ;;  %v9969_v4 = vld [vmem:[%s13435_s1 + $0xbe4] ss:$8 sps:$4 sm:$0xff]  }
 0x29d   : > { %3314 = vmatprep.subr.bf16.mxu0 %v9895_v5  ;;  %3364 = vmatprep.subr.bf16.mxu1 %v9895_v5  ;;  %v3634_v5 = vshll.u32 %v11899_v35, 16 }
 0x2a0   : > { %3315 = vmatpush1.bf16.msra.mxu0 %v9893_v6  ;;  %3365 = vmatpush1.bf16.msra.mxu1 %v9893_v6  ;;  %v9967_v6 = vld [vmem:[%s13435_s1 + $0xbe0] ss:$8 sps:$4 sm:$0xff]  }
 0x2a1   : > { %3316 = vmatprep.subr.bf16.mxu0 %v9898_v7  ;;  %3366 = vmatprep.subr.bf16.mxu1 %v9898_v7  ;;  %v9972_v7 = vld [vmem:[%s13435_s1 + $0xbf4] ss:$8 sps:$4 sm:$0xff]  }
 0x2a4   : > { %3317 = vmatpush1.bf16.msra.mxu0 %v9896_v9  ;;  %3367 = vmatpush1.bf16.msra.mxu1 %v9896_v9  ;;  %v3632_v9 = vshrl.u32 %v11899_v35, 16 }
 0x2a5   : > { %3318 = vmatprep.subr.bf16.mxu0 %v9901_v10  ;;  %3368 = vmatprep.subr.bf16.mxu1 %v9901_v10  ;;  %v3636_v10 = vrot.slane %v3634_v5, 1 }
 0x2a8   : > { %3319 = vmatpush1.bf16.msra.mxu0 %v9899_v18  ;;  %3369 = vmatpush1.bf16.msra.mxu1 %v9899_v18  ;;  %v9970_v18 = vld [vmem:[%s13435_s1 + $0xbf0] ss:$8 sps:$4 sm:$0xff]  }
 0x2a9   : > { %3320 = vmatprep.subr.bf16.mxu0 %v9904_v19  ;;  %3370 = vmatprep.subr.bf16.mxu1 %v9904_v19  ;;  %v9975_v19 = vld [vmem:[%s13435_s1 + $0xc04] ss:$8 sps:$4 sm:$0xff]  }
 0x2ac   : > { %3321 = vmatpush1.bf16.msra.mxu0 %v9902_v23  ;;  %3371 = vmatpush1.bf16.msra.mxu1 %v9902_v23  ;;  %v12011_v23 = vor.u32 %v3636_v10, %v3632_v9  ;;  %v10044_v10 = vld [vmem:[%s13435_s1 + $0xd74] ss:$8 sps:$4 sm:$0xff]  }
 0x2ad   : > { %3322 = vmatprep.subr.bf16.mxu0 %v9907_v16  ;;  %3372 = vmatprep.subr.bf16.mxu1 %v9907_v16  ;;  %v9973_v16 = vld [vmem:[%s13435_s1 + $0xc00] ss:$8 sps:$4 sm:$0xff]  }
 0x2b0   : > { %3323 = vmatpush1.bf16.msra.mxu0 %v9905_v56  ;;  %3373 = vmatpush1.bf16.msra.mxu1 %v9905_v56  ;;  %v9978_v56 = vld [vmem:[%s13435_s1 + $0xc14] ss:$8 sps:$4 sm:$0xff]  }
 0x2b1   : > { %3324 = vmatprep.subr.bf16.mxu0 %v9910_v59  ;;  %3374 = vmatprep.subr.bf16.mxu1 %v9910_v59  ;;  %v3927_v59 = vrot.slane %v11795_v62, 1 }
 0x2b4   : > { %3325 = vmatpush1.bf16.msra.mxu0 %v9908_v24  ;;  %3375 = vmatpush1.bf16.msra.mxu1 %v9908_v24  ;;  %v9976_v24 = vld [vmem:[%s13435_s1 + $0xc10] ss:$8 sps:$4 sm:$0xff]  }
 0x2b5   : > { %3326 = vmatprep.subr.bf16.mxu0 %v9913_v28  ;;  %3376 = vmatprep.subr.bf16.mxu1 %v9913_v28  ;;  %v9981_v28 = vld [vmem:[%s13435_s1 + $0xc24] ss:$8 sps:$4 sm:$0xff]  }
 0x2b8   : > { %3327 = vmatpush1.bf16.msra.mxu0 %v9911_v49  ;;  %3377 = vmatpush1.bf16.msra.mxu1 %v9911_v49  ;;  %v9984_v49 = vld [vmem:[%s13435_s1 + $0xc34] ss:$8 sps:$4 sm:$0xff]  }
 0x2b9   : > { %3328 = vmatprep.subr.bf16.mxu0 %v9916_v25  ;;  %3378 = vmatprep.subr.bf16.mxu1 %v9916_v25  ;;  %v9987_v25 = vld [vmem:[%s13435_s1 + $0xc44] ss:$8 sps:$4 sm:$0xff]  }
 0x2bc   : > { %3329 = vmatpush1.bf16.msra.mxu0 %v9914_v20  ;;  %3379 = vmatpush1.bf16.msra.mxu1 %v9914_v20  ;;  %v9985_v20 = vld [vmem:[%s13435_s1 + $0xc40] ss:$8 sps:$4 sm:$0xff]  }
 0x2bd   : > { %3330 = vmatprep.subr.bf16.mxu0 %v9919_v63  ;;  %3380 = vmatprep.subr.bf16.mxu1 %v9919_v63  ;;  %v9990_v63 = vld [vmem:[%s13435_s1 + $0xc54] ss:$8 sps:$4 sm:$0xff]  }
 0x2c0   : > { %3331 = vmatpush1.bf16.msra.mxu0 %v9917_v26  ;;  %3381 = vmatpush1.bf16.msra.mxu1 %v9917_v26  ;;  %v9988_v26 = vld [vmem:[%s13435_s1 + $0xc50] ss:$8 sps:$4 sm:$0xff]  }
 0x2c1   : > { %3332 = vmatprep.subr.bf16.mxu0 %v9922_v27  ;;  %3382 = vmatprep.subr.bf16.mxu1 %v9922_v27  ;;  %v9993_v27 = vld [vmem:[%s13435_s1 + $0xc64] ss:$8 sps:$4 sm:$0xff]  }
 0x2c4   : > { %3333 = vmatpush1.bf16.msra.mxu0 %v9920_v30  ;;  %3383 = vmatpush1.bf16.msra.mxu1 %v9920_v30  ;;  %v9991_v30 = vld [vmem:[%s13435_s1 + $0xc60] ss:$8 sps:$4 sm:$0xff]  }
 0x2c5   : > { %3588 = vmatprep.subr.bf16.mxu0 %v9926_v31  ;;  %3647 = vmatprep.subr.bf16.mxu1 %v9926_v31  ;;  %v9996_v31 = vld [vmem:[%s13435_s1 + $0xc74] ss:$8 sps:$4 sm:$0xff]  }
 0x2c7   : > { %3335 = vmatmul.mubr.bf16.vlgmr.msra.gmra.mrb[0].mxu0 %v11348_v22  ;;  %3385 = vmatmul.mubr.bf16.vlgmr.msra.gmra.mrb[0].mxu1 %v11899_v35  ;;  %v10123_v22 = vld [vmem:[%s13435_s1 + $0xf20] ss:$8 sps:$4 sm:$0xff]  }
 0x2c8   : > { %3589 = vmatpush1.bf16.msra.mxu0 %v9924_v36  ;;  %3648 = vmatpush1.bf16.msra.mxu1 %v9924_v36  ;;  %v9999_v36 = vld [vmem:[%s13435_s1 + $0xc84] ss:$8 sps:$4 sm:$0xff]  }
 0x2c9   : > { %3590 = vmatprep.subr.bf16.mxu0 %v9930_v38  ;;  %3649 = vmatprep.subr.bf16.mxu1 %v9930_v38  ;;  %v9997_v38 = vld [vmem:[%s13435_s1 + $0xc80] ss:$8 sps:$4 sm:$0xff]  }
 0x2ca   : > { %3620 = vmatprep.mubr.bf16.mxu0 %v11358_v14  ;;  %3679 = vmatprep.mubr.bf16.mxu1 %v11909_v41  ;;  %v9934_v14 = vld [vmem:[%s13435_s1 + $0xb30] ss:$8 sps:$4 sm:$0xff]  }
 0x2cc   : > { %3591 = vmatpush1.bf16.msra.mxu0 %v9928_v45  ;;  %3650 = vmatpush1.bf16.msra.mxu1 %v9928_v45  ;;  %v10002_v45 = vld [vmem:[%s13435_s1 + $0xc94] ss:$8 sps:$4 sm:$0xff]  }
 0x2cd   : > { %3592 = vmatprep.subr.bf16.mxu0 %v9933_v46  ;;  %3651 = vmatprep.subr.bf16.mxu1 %v9933_v46  ;;  %v10000_v46 = vld [vmem:[%s13435_s1 + $0xc90] ss:$8 sps:$4 sm:$0xff]  }
 0x2d0   : > { %3593 = vmatpush1.bf16.msra.mxu0 %v9931_v8  ;;  %3652 = vmatpush1.bf16.msra.mxu1 %v9931_v8  ;;  %v10005_v8 = vld [vmem:[%s13435_s1 + $0xca4] ss:$8 sps:$4 sm:$0xff]  }
 0x2d1   : > { %3594 = vmatprep.subr.bf16.mxu0 %v9936_v11  ;;  %3653 = vmatprep.subr.bf16.mxu1 %v9936_v11  ;;  %v10003_v11 = vld [vmem:[%s13435_s1 + $0xca0] ss:$8 sps:$4 sm:$0xff]  }
 0x2d4   : > { %3595 = vmatpush1.bf16.msra.mxu0 %v9934_v14  ;;  %3654 = vmatpush1.bf16.msra.mxu1 %v9934_v14  ;;  %v10008_v14 = vld [vmem:[%s13435_s1 + $0xcb4] ss:$8 sps:$4 sm:$0xff]  }
 0x2d5   : > { %3596 = vmatprep.subr.bf16.mxu0 %v9939_v12  ;;  %3655 = vmatprep.subr.bf16.mxu1 %v9939_v12  ;;  %v10006_v12 = vld [vmem:[%s13435_s1 + $0xcb0] ss:$8 sps:$4 sm:$0xff]  }
 0x2d8   : > { %3597 = vmatpush1.bf16.msra.mxu0 %v9937_v50  ;;  %3656 = vmatpush1.bf16.msra.mxu1 %v9937_v50  ;;  %v10011_v50 = vld [vmem:[%s13435_s1 + $0xcc4] ss:$8 sps:$4 sm:$0xff]  }
 0x2d9   : > { %3598 = vmatprep.subr.bf16.mxu0 %v9942_v13  ;;  %3657 = vmatprep.subr.bf16.mxu1 %v9942_v13  ;;  %v10009_v13 = vld [vmem:[%s13435_s1 + $0xcc0] ss:$8 sps:$4 sm:$0xff]  }
 0x2dc   : > { %3599 = vmatpush1.bf16.msra.mxu0 %v9940_v51  ;;  %3658 = vmatpush1.bf16.msra.mxu1 %v9940_v51  ;;  %v10014_v51 = vld [vmem:[%s13435_s1 + $0xcd4] ss:$8 sps:$4 sm:$0xff]  }
 0x2dd   : > { %3600 = vmatprep.subr.bf16.mxu0 %v9945_v52  ;;  %3659 = vmatprep.subr.bf16.mxu1 %v9945_v52  ;;  %v10012_v52 = vld [vmem:[%s13435_s1 + $0xcd0] ss:$8 sps:$4 sm:$0xff]  }
 0x2e0   : > { %3601 = vmatpush1.bf16.msra.mxu0 %v9943_v53  ;;  %3660 = vmatpush1.bf16.msra.mxu1 %v9943_v53  ;;  %v10017_v53 = vld [vmem:[%s13435_s1 + $0xce4] ss:$8 sps:$4 sm:$0xff]  }
 0x2e1   : > { %3602 = vmatprep.subr.bf16.mxu0 %v9948_v55  ;;  %3661 = vmatprep.subr.bf16.mxu1 %v9948_v55  ;;  %v10015_v55 = vld [vmem:[%s13435_s1 + $0xce0] ss:$8 sps:$4 sm:$0xff]  }
 0x2e4   : > { %3603 = vmatpush1.bf16.msra.mxu0 %v9946_v57  ;;  %3662 = vmatpush1.bf16.msra.mxu1 %v9946_v57  ;;  %v10020_v57 = vld [vmem:[%s13435_s1 + $0xcf4] ss:$8 sps:$4 sm:$0xff]  }
 0x2e5   : > { %3604 = vmatprep.subr.bf16.mxu0 %v9951_v58  ;;  %3663 = vmatprep.subr.bf16.mxu1 %v9951_v58  ;;  %v10018_v58 = vld [vmem:[%s13435_s1 + $0xcf0] ss:$8 sps:$4 sm:$0xff]  }
 0x2e8   : > { %3605 = vmatpush1.bf16.msra.mxu0 %v9949_v61  ;;  %3664 = vmatpush1.bf16.msra.mxu1 %v9949_v61  ;;  %v10023_v61 = vld [vmem:[%s13435_s1 + $0xd04] ss:$8 sps:$4 sm:$0xff]  }
 0x2e9   : > { %3606 = vmatprep.subr.bf16.mxu0 %v9954_v47  ;;  %3665 = vmatprep.subr.bf16.mxu1 %v9954_v47  ;;  %v4212_v47 = vrot.slane %v3639_v32, 1  ;;  %v10029_v32 = vld [vmem:[%s13435_s1 + $0xd24] ss:$8 sps:$4 sm:$0xff]  }
 0x2ec   : > { %3607 = vmatpush1.bf16.msra.mxu0 %v9952_v44  ;;  %3666 = vmatpush1.bf16.msra.mxu1 %v9952_v44  ;;  %v4213_v44 = vrot.slane %v3641_v29, 2  ;;  %v10024_v29 = vld [vmem:[%s13435_s1 + $0xd10] ss:$8 sps:$4 sm:$0xff]  }
 0x2ed   : > { %3608 = vmatprep.subr.bf16.mxu0 %v9957_v1  ;;  %3667 = vmatprep.subr.bf16.mxu1 %v9957_v1  ;;  %v3926_v1 = vrot.slane %v11899_v35, 1 }
 0x2f0   : > { %3609 = vmatpush1.bf16.msra.mxu0 %v9955_v15  ;;  %3668 = vmatpush1.bf16.msra.mxu1 %v9955_v15  ;;  %v10021_v15 = vld [vmem:[%s13435_s1 + $0xd00] ss:$8 sps:$4 sm:$0xff]  }
 0x2f1   : > { %3610 = vmatprep.subr.bf16.mxu0 %v9960_v40  ;;  %3669 = vmatprep.subr.bf16.mxu1 %v9960_v40  ;;  %v10026_v40 = vld [vmem:[%s13435_s1 + $0xd14] ss:$8 sps:$4 sm:$0xff]  }
 0x2f4   : > { %3611 = vmatpush1.bf16.msra.mxu0 %v9958_v37  ;;  %3670 = vmatpush1.bf16.msra.mxu1 %v9958_v37  ;;  %v12127_v37 = vor.u32 %v4213_v44, %v4212_v47  ;;  %v10098_v47 = vld [vmem:[%s13435_s1 + $0xe94] ss:$8 sps:$4 sm:$0xff]   ;;  %v10096_v44 = vld [vmem:[%s13435_s1 + $0xe90] ss:$8 sps:$4 sm:$0xff]  }
 0x2f5   : > { %3612 = vmatprep.subr.bf16.mxu0 %v9963_v54  ;;  %3671 = vmatprep.subr.bf16.mxu1 %v9963_v54  ;;  %v10032_v54 = vld [vmem:[%s13435_s1 + $0xd34] ss:$8 sps:$4 sm:$0xff]  }
 0x2f8   : > { %3613 = vmatpush1.bf16.msra.mxu0 %v9961_v2  ;;  %3672 = vmatpush1.bf16.msra.mxu1 %v9961_v2  ;;  %v10035_v2 = vld [vmem:[%s13435_s1 + $0xd44] ss:$8 sps:$4 sm:$0xff]  }
 0x2f9   : > { %3614 = vmatprep.subr.bf16.mxu0 %v9966_v33  ;;  %3673 = vmatprep.subr.bf16.mxu1 %v9966_v33  ;;  %v10033_v33 = vld [vmem:[%s13435_s1 + $0xd40] ss:$8 sps:$4 sm:$0xff]  }
 0x2fc   : > { %3615 = vmatpush1.bf16.msra.mxu0 %v9964_v3  ;;  %3674 = vmatpush1.bf16.msra.mxu1 %v9964_v3  ;;  %v10038_v3 = vld [vmem:[%s13435_s1 + $0xd54] ss:$8 sps:$4 sm:$0xff]  }
 0x2fd   : > { %3616 = vmatprep.subr.bf16.mxu0 %v9969_v4  ;;  %3675 = vmatprep.subr.bf16.mxu1 %v9969_v4  ;;  %v10036_v4 = vld [vmem:[%s13435_s1 + $0xd50] ss:$8 sps:$4 sm:$0xff]  }
 0x300   : > { %3617 = vmatpush1.bf16.msra.mxu0 %v9967_v6  ;;  %3676 = vmatpush1.bf16.msra.mxu1 %v9967_v6  ;;  %v10041_v6 = vld [vmem:[%s13435_s1 + $0xd64] ss:$8 sps:$4 sm:$0xff]  }
 0x301   : > { %3618 = vmatprep.subr.bf16.mxu0 %v9972_v7  ;;  %3677 = vmatprep.subr.bf16.mxu1 %v9972_v7  ;;  %v10039_v7 = vld [vmem:[%s13435_s1 + $0xd60] ss:$8 sps:$4 sm:$0xff]  }
 0x304   : > { %3619 = vmatpush1.bf16.msra.mxu0 %v9970_v18  ;;  %3678 = vmatpush1.bf16.msra.mxu1 %v9970_v18  ;;  %v10042_v18 = vld [vmem:[%s13435_s1 + $0xd70] ss:$8 sps:$4 sm:$0xff]  }
 0x305   : > { %3883 = vmatprep.subr.bf16.mxu0 %v9975_v19  ;;  %3930 = vmatprep.subr.bf16.mxu1 %v9975_v19  ;;  %v10047_v19 = vld [vmem:[%s13435_s1 + $0xd84] ss:$8 sps:$4 sm:$0xff]  }
 0x307   : > { %3621 = vmatmul.mubr.bf16.vlgmr.msra.gmra.mrb[0].mxu0 %v11460_v43  ;;  %3680 = vmatmul.mubr.bf16.vlgmr.msra.gmra.mrb[0].mxu1 %v12011_v23  ;;  %v9979_v43 = vld [vmem:[%s13435_s1 + $0xc20] ss:$8 sps:$4 sm:$0xff]  }
 0x308   : > { %3884 = vmatpush1.bf16.msra.mxu0 %v9973_v16  ;;  %3931 = vmatpush1.bf16.msra.mxu1 %v9973_v16  ;;  %v10045_v16 = vld [vmem:[%s13435_s1 + $0xd80] ss:$8 sps:$4 sm:$0xff]  }
 0x309   : > { %3885 = vmatprep.subr.bf16.mxu0 %v9978_v56  ;;  %3932 = vmatprep.subr.bf16.mxu1 %v9978_v56  ;;  %v10050_v56 = vld [vmem:[%s13435_s1 + $0xd94] ss:$8 sps:$4 sm:$0xff]  }
 0x30a   : > { %3915 = vmatprep.mubr.bf16.mxu0 %v2488_v0  ;;  %3962 = vmatprep.mubr.bf16.mxu1 %v3927_v59  ;;  %v9982_v0 = vld [vmem:[%s13435_s1 + $0xc30] ss:$8 sps:$4 sm:$0xff]  }
 0x30c   : > { %3886 = vmatpush1.bf16.msra.mxu0 %v9976_v24  ;;  %3933 = vmatpush1.bf16.msra.mxu1 %v9976_v24  ;;  %v10048_v24 = vld [vmem:[%s13435_s1 + $0xd90] ss:$8 sps:$4 sm:$0xff]  }
 0x30d   : > { %3887 = vmatprep.subr.bf16.mxu0 %v9981_v28  ;;  %3934 = vmatprep.subr.bf16.mxu1 %v9981_v28  ;;  %v10053_v28 = vld [vmem:[%s13435_s1 + $0xda4] ss:$8 sps:$4 sm:$0xff]  }
 0x310   : > { %3888 = vmatpush1.bf16.msra.mxu0 %v9979_v43  ;;  %3935 = vmatpush1.bf16.msra.mxu1 %v9979_v43  ;;  %v10051_v43 = vld [vmem:[%s13435_s1 + $0xda0] ss:$8 sps:$4 sm:$0xff]  }
 0x311   : > { %3889 = vmatprep.subr.bf16.mxu0 %v9984_v49  ;;  %3936 = vmatprep.subr.bf16.mxu1 %v9984_v49  ;;  %v10056_v49 = vld [vmem:[%s13435_s1 + $0xdb4] ss:$8 sps:$4 sm:$0xff]  }
 0x314   : > { %3890 = vmatpush1.bf16.msra.mxu0 %v9982_v0  ;;  %3937 = vmatpush1.bf16.msra.mxu1 %v9982_v0  ;;  %v10054_v0 = vld [vmem:[%s13435_s1 + $0xdb0] ss:$8 sps:$4 sm:$0xff]  }
 0x315   : > { %3891 = vmatprep.subr.bf16.mxu0 %v9987_v25  ;;  %3938 = vmatprep.subr.bf16.mxu1 %v9987_v25  ;;  %v10059_v25 = vld [vmem:[%s13435_s1 + $0xdc4] ss:$8 sps:$4 sm:$0xff]  }
 0x318   : > { %3892 = vmatpush1.bf16.msra.mxu0 %v9985_v20  ;;  %3939 = vmatpush1.bf16.msra.mxu1 %v9985_v20  ;;  %v10057_v20 = vld [vmem:[%s13435_s1 + $0xdc0] ss:$8 sps:$4 sm:$0xff]  }
 0x319   : > { %3893 = vmatprep.subr.bf16.mxu0 %v9990_v63  ;;  %3940 = vmatprep.subr.bf16.mxu1 %v9990_v63  ;;  %v10062_v63 = vld [vmem:[%s13435_s1 + $0xdd4] ss:$8 sps:$4 sm:$0xff]  }
 0x31c   : > { %3894 = vmatpush1.bf16.msra.mxu0 %v9988_v26  ;;  %3941 = vmatpush1.bf16.msra.mxu1 %v9988_v26  ;;  %v10060_v26 = vld [vmem:[%s13435_s1 + $0xdd0] ss:$8 sps:$4 sm:$0xff]  }
 0x31d   : > { %3895 = vmatprep.subr.bf16.mxu0 %v9993_v27  ;;  %3942 = vmatprep.subr.bf16.mxu1 %v9993_v27  ;;  %v10065_v27 = vld [vmem:[%s13435_s1 + $0xde4] ss:$8 sps:$4 sm:$0xff]  }
 0x320   : > { %3896 = vmatpush1.bf16.msra.mxu0 %v9991_v30  ;;  %3943 = vmatpush1.bf16.msra.mxu1 %v9991_v30  ;;  %v10063_v30 = vld [vmem:[%s13435_s1 + $0xde0] ss:$8 sps:$4 sm:$0xff]  }
 0x321   : > { %3897 = vmatprep.subr.bf16.mxu0 %v9996_v31  ;;  %3944 = vmatprep.subr.bf16.mxu1 %v9996_v31  ;;  %v10068_v31 = vld [vmem:[%s13435_s1 + $0xdf4] ss:$8 sps:$4 sm:$0xff]  }
 0x324   : > { %3898 = vmatpush1.bf16.msra.mxu0 %v9994_v34  ;;  %3945 = vmatpush1.bf16.msra.mxu1 %v9994_v34  ;;  %v4209_v34 = vrot.slane %v3632_v9, 1  ;;  %v10074_v9 = vld [vmem:[%s13435_s1 + $0xe14] ss:$8 sps:$4 sm:$0xff]  }
 0x325   : > { %3899 = vmatprep.subr.bf16.mxu0 %v9999_v36  ;;  %3946 = vmatprep.subr.bf16.mxu1 %v9999_v36  ;;  %v4210_v36 = vrot.slane %v3634_v5, 2  ;;  %v10069_v5 = vld [vmem:[%s13435_s1 + $0xe00] ss:$8 sps:$4 sm:$0xff]  }
 0x328   : > { %3900 = vmatpush1.bf16.msra.mxu0 %v9997_v38  ;;  %3947 = vmatpush1.bf16.msra.mxu1 %v9997_v38  ;;  %v10066_v38 = vld [vmem:[%s13435_s1 + $0xdf0] ss:$8 sps:$4 sm:$0xff]  }
 0x329   : > { %3901 = vmatprep.subr.bf16.mxu0 %v10002_v45  ;;  %3948 = vmatprep.subr.bf16.mxu1 %v10002_v45  ;;  %v10071_v45 = vld [vmem:[%s13435_s1 + $0xe04] ss:$8 sps:$4 sm:$0xff]  }
 0x32c   : > { %3902 = vmatpush1.bf16.msra.mxu0 %v10000_v46  ;;  %3949 = vmatpush1.bf16.msra.mxu1 %v10000_v46  ;;  %v12229_v46 = vor.u32 %v4210_v36, %v4209_v34  ;;  %v10141_v34 = vld [vmem:[%s13435_s1 + $0xf80] ss:$8 sps:$4 sm:$0xff]   ;;  %v10146_v36 = vld [vmem:[%s13435_s1 + $0xf94] ss:$8 sps:$4 sm:$0xff]  }
 0x32d   : > { %3903 = vmatprep.subr.bf16.mxu0 %v10005_v8  ;;  %3950 = vmatprep.subr.bf16.mxu1 %v10005_v8  ;;  %v4497_v8 = vrot.slane %v11795_v62, 2 }
 0x330   : > { %3904 = vmatpush1.bf16.msra.mxu0 %v10003_v11  ;;  %3951 = vmatpush1.bf16.msra.mxu1 %v10003_v11  ;;  %v10072_v11 = vld [vmem:[%s13435_s1 + $0xe10] ss:$8 sps:$4 sm:$0xff]  }
 0x331   : > { %3905 = vmatprep.subr.bf16.mxu0 %v10008_v14  ;;  %3952 = vmatprep.subr.bf16.mxu1 %v10008_v14  ;;  %v10077_v14 = vld [vmem:[%s13435_s1 + $0xe24] ss:$8 sps:$4 sm:$0xff]  }
 0x334   : > { %3906 = vmatpush1.bf16.msra.mxu0 %v10006_v12  ;;  %3953 = vmatpush1.bf16.msra.mxu1 %v10006_v12  ;;  %v10080_v12 = vld [vmem:[%s13435_s1 + $0xe34] ss:$8 sps:$4 sm:$0xff]  }
 0x335   : > { %3907 = vmatprep.subr.bf16.mxu0 %v10011_v50  ;;  %3954 = vmatprep.subr.bf16.mxu1 %v10011_v50  ;;  %v10081_v50 = vld [vmem:[%s13435_s1 + $0xe40] ss:$8 sps:$4 sm:$0xff]  }
 0x338   : > { %3908 = vmatpush1.bf16.msra.mxu0 %v10009_v13  ;;  %3955 = vmatpush1.bf16.msra.mxu1 %v10009_v13  ;;  %v10086_v13 = vld [vmem:[%s13435_s1 + $0xe54] ss:$8 sps:$4 sm:$0xff]  }
 0x339   : > { %3909 = vmatprep.subr.bf16.mxu0 %v10014_v51  ;;  %3956 = vmatprep.subr.bf16.mxu1 %v10014_v51  ;;  %v10084_v51 = vld [vmem:[%s13435_s1 + $0xe50] ss:$8 sps:$4 sm:$0xff]  }
 0x33c   : > { %3910 = vmatpush1.bf16.msra.mxu0 %v10012_v52  ;;  %3957 = vmatpush1.bf16.msra.mxu1 %v10012_v52  ;;  %v10089_v52 = vld [vmem:[%s13435_s1 + $0xe64] ss:$8 sps:$4 sm:$0xff]  }
 0x33d   : > { %3911 = vmatprep.subr.bf16.mxu0 %v10017_v53  ;;  %3958 = vmatprep.subr.bf16.mxu1 %v10017_v53  ;;  %v10087_v53 = vld [vmem:[%s13435_s1 + $0xe60] ss:$8 sps:$4 sm:$0xff]  }
 0x340   : > { %3912 = vmatpush1.bf16.msra.mxu0 %v10015_v55  ;;  %3959 = vmatpush1.bf16.msra.mxu1 %v10015_v55  ;;  %v10092_v55 = vld [vmem:[%s13435_s1 + $0xe74] ss:$8 sps:$4 sm:$0xff]  }
 0x341   : > { %3913 = vmatprep.subr.bf16.mxu0 %v10020_v57  ;;  %3960 = vmatprep.subr.bf16.mxu1 %v10020_v57  ;;  %v10090_v57 = vld [vmem:[%s13435_s1 + $0xe70] ss:$8 sps:$4 sm:$0xff]  }
 0x344   : > { %3914 = vmatpush1.bf16.msra.mxu0 %v10018_v58  ;;  %3961 = vmatpush1.bf16.msra.mxu1 %v10018_v58  ;;  %v10095_v58 = vld [vmem:[%s13435_s1 + $0xe84] ss:$8 sps:$4 sm:$0xff]  }
 0x345   : > { %4166 = vmatprep.subr.bf16.mxu0 %v10023_v61  ;;  %4217 = vmatprep.subr.bf16.mxu1 %v10023_v61  ;;  %v10093_v61 = vld [vmem:[%s13435_s1 + $0xe80] ss:$8 sps:$4 sm:$0xff]  }
 0x347   : > { %3916 = vmatmul.mubr.bf16.vlgmr.msra.gmra.mrb[0].mxu0 %v2487_v39  ;;  %3963 = vmatmul.mubr.bf16.vlgmr.msra.gmra.mrb[0].mxu1 %v3926_v1  ;;  %v10027_v39 = vld [vmem:[%s13435_s1 + $0xd20] ss:$8 sps:$4 sm:$0xff]  }
 0x348   : > { %4167 = vmatpush1.bf16.msra.mxu0 %v10021_v15  ;;  %4218 = vmatpush1.bf16.msra.mxu1 %v10021_v15  ;;  %v10101_v15 = vld [vmem:[%s13435_s1 + $0xea4] ss:$8 sps:$4 sm:$0xff]  }
 0x349   : > { %4168 = vmatprep.subr.bf16.mxu0 %v10026_v40  ;;  %4219 = vmatprep.subr.bf16.mxu1 %v10026_v40  ;;  %v10099_v40 = vld [vmem:[%s13435_s1 + $0xea0] ss:$8 sps:$4 sm:$0xff]  }
 0x34a   : > { %4198 = vmatprep.mubr.bf16.mxu0 %v11576_v48  ;;  %4249 = vmatprep.mubr.bf16.mxu1 %v12127_v37  ;;  %v10030_v48 = vld [vmem:[%s13435_s1 + $0xd30] ss:$8 sps:$4 sm:$0xff]  }
 0x34c   : > { %4169 = vmatpush1.bf16.msra.mxu0 %v10024_v29  ;;  %4220 = vmatpush1.bf16.msra.mxu1 %v10024_v29  ;;  %v10104_v29 = vld [vmem:[%s13435_s1 + $0xeb4] ss:$8 sps:$4 sm:$0xff]  }
 0x34d   : > { %4170 = vmatprep.subr.bf16.mxu0 %v10029_v32  ;;  %4221 = vmatprep.subr.bf16.mxu1 %v10029_v32  ;;  %v10102_v32 = vld [vmem:[%s13435_s1 + $0xeb0] ss:$8 sps:$4 sm:$0xff]  }
 0x350   : > { %4171 = vmatpush1.bf16.msra.mxu0 %v10027_v39  ;;  %4222 = vmatpush1.bf16.msra.mxu1 %v10027_v39  ;;  %v10107_v39 = vld [vmem:[%s13435_s1 + $0xec4] ss:$8 sps:$4 sm:$0xff]  }
 0x351   : > { %4172 = vmatprep.subr.bf16.mxu0 %v10032_v54  ;;  %4223 = vmatprep.subr.bf16.mxu1 %v10032_v54  ;;  %v10105_v54 = vld [vmem:[%s13435_s1 + $0xec0] ss:$8 sps:$4 sm:$0xff]  }
 0x354   : > { %4173 = vmatpush1.bf16.msra.mxu0 %v10030_v48  ;;  %4224 = vmatpush1.bf16.msra.mxu1 %v10030_v48  ;;  %v10110_v48 = vld [vmem:[%s13435_s1 + $0xed4] ss:$8 sps:$4 sm:$0xff]  }
 0x355   : > { %4174 = vmatprep.subr.bf16.mxu0 %v10035_v2  ;;  %4225 = vmatprep.subr.bf16.mxu1 %v10035_v2  ;;  %v10108_v2 = vld [vmem:[%s13435_s1 + $0xed0] ss:$8 sps:$4 sm:$0xff]  }
 0x358   : > { %4175 = vmatpush1.bf16.msra.mxu0 %v10033_v33  ;;  %4226 = vmatpush1.bf16.msra.mxu1 %v10033_v33  ;;  %v10113_v33 = vld [vmem:[%s13435_s1 + $0xee4] ss:$8 sps:$4 sm:$0xff]  }
 0x359   : > { %4176 = vmatprep.subr.bf16.mxu0 %v10038_v3  ;;  %4227 = vmatprep.subr.bf16.mxu1 %v10038_v3  ;;  %v10111_v3 = vld [vmem:[%s13435_s1 + $0xee0] ss:$8 sps:$4 sm:$0xff]  }
 0x35c   : > { %4177 = vmatpush1.bf16.msra.mxu0 %v10036_v4  ;;  %4228 = vmatpush1.bf16.msra.mxu1 %v10036_v4  ;;  %v10116_v4 = vld [vmem:[%s13435_s1 + $0xef4] ss:$8 sps:$4 sm:$0xff]  }
 0x35d   : > { %4178 = vmatprep.subr.bf16.mxu0 %v10041_v6  ;;  %4229 = vmatprep.subr.bf16.mxu1 %v10041_v6  ;;  %v10114_v6 = vld [vmem:[%s13435_s1 + $0xef0] ss:$8 sps:$4 sm:$0xff]  }
 0x360   : > { %4179 = vmatpush1.bf16.msra.mxu0 %v10039_v7  ;;  %4230 = vmatpush1.bf16.msra.mxu1 %v10039_v7  ;;  %v10119_v7 = vld [vmem:[%s13435_s1 + $0xf04] ss:$8 sps:$4 sm:$0xff]  }
 0x361   : > { %4180 = vmatprep.subr.bf16.mxu0 %v10044_v10  ;;  %4231 = vmatprep.subr.bf16.mxu1 %v10044_v10  ;;  %v4496_v10 = vrot.slane %v11899_v35, 2 }
 0x364   : > { %4181 = vmatpush1.bf16.msra.mxu0 %v10042_v18  ;;  %4232 = vmatpush1.bf16.msra.mxu1 %v10042_v18  ;;  %v12336_v18 = vld [vmem:[%s10703_s18 + $0x20] sm:$0x77] }
 0x365   : > { %4182 = vmatprep.subr.bf16.mxu0 %v10047_v19  ;;  %4233 = vmatprep.subr.bf16.mxu1 %v10047_v19  ;;  %v10117_v19 = vld [vmem:[%s13435_s1 + $0xf00] ss:$8 sps:$4 sm:$0xff]  }
 0x368   : > { %4183 = vmatpush1.bf16.msra.mxu0 %v10045_v16  ;;  %4234 = vmatpush1.bf16.msra.mxu1 %v10045_v16  ;;  %v10122_v16 = vld [vmem:[%s13435_s1 + $0xf14] ss:$8 sps:$4 sm:$0xff]  }
 0x369   : > { %4184 = vmatprep.subr.bf16.mxu0 %v10050_v56  ;;  %4235 = vmatprep.subr.bf16.mxu1 %v10050_v56  ;;  %v12346_v56 = vcombine.high %v12336_v18, %v12336_v18 }
 0x36c   : > { %4185 = vmatpush1.bf16.msra.mxu0 %v10048_v24  ;;  %4236 = vmatpush1.bf16.msra.mxu1 %v10048_v24  ;;  %v10120_v24 = vld [vmem:[%s13435_s1 + $0xf10] ss:$8 sps:$4 sm:$0xff]  }
 0x36d   : > { %4186 = vmatprep.subr.bf16.mxu0 %v10053_v28  ;;  %4237 = vmatprep.subr.bf16.mxu1 %v10053_v28  ;;  %v10125_v28 = vld [vmem:[%s13435_s1 + $0xf24] ss:$8 sps:$4 sm:$0xff]  }
 0x370   : > { %4187 = vmatpush1.bf16.msra.mxu0 %v10051_v43  ;;  %4238 = vmatpush1.bf16.msra.mxu1 %v10051_v43  ;;  %v10126_v43 = vld [vmem:[%s13435_s1 + $0xf30] ss:$8 sps:$4 sm:$0xff]  }
 0x371   : > { %4188 = vmatprep.subr.bf16.mxu0 %v10056_v49  ;;  %4239 = vmatprep.subr.bf16.mxu1 %v10056_v49  ;;  %v10131_v49 = vld [vmem:[%s13435_s1 + $0xf44] ss:$8 sps:$4 sm:$0xff]  }
 0x374   : > { %4189 = vmatpush1.bf16.msra.mxu0 %v10054_v0  ;;  %4240 = vmatpush1.bf16.msra.mxu1 %v10054_v0  ;;  %v10129_v0 = vld [vmem:[%s13435_s1 + $0xf40] ss:$8 sps:$4 sm:$0xff]  }
 0x375   : > { %4190 = vmatprep.subr.bf16.mxu0 %v10059_v25  ;;  %4241 = vmatprep.subr.bf16.mxu1 %v10059_v25  ;;  %v10134_v25 = vld [vmem:[%s13435_s1 + $0xf54] ss:$8 sps:$4 sm:$0xff]  }
 0x378   : > { %4191 = vmatpush1.bf16.msra.mxu0 %v10057_v20  ;;  %4242 = vmatpush1.bf16.msra.mxu1 %v10057_v20  ;;  %v10132_v20 = vld [vmem:[%s13435_s1 + $0xf50] ss:$8 sps:$4 sm:$0xff]  }
 0x379   : > { %4192 = vmatprep.subr.bf16.mxu0 %v10062_v63  ;;  %4243 = vmatprep.subr.bf16.mxu1 %v10062_v63  ;;  %v10137_v63 = vld [vmem:[%s13435_s1 + $0xf64] ss:$8 sps:$4 sm:$0xff]  }
 0x37c   : > { %4193 = vmatpush1.bf16.msra.mxu0 %v10060_v26  ;;  %4244 = vmatpush1.bf16.msra.mxu1 %v10060_v26  ;;  %v10135_v26 = vld [vmem:[%s13435_s1 + $0xf60] ss:$8 sps:$4 sm:$0xff]  }
 0x37d   : > { %4194 = vmatprep.subr.bf16.mxu0 %v10065_v27  ;;  %4245 = vmatprep.subr.bf16.mxu1 %v10065_v27  ;;  %v10140_v27 = vld [vmem:[%s13435_s1 + $0xf74] ss:$8 sps:$4 sm:$0xff]  }
 0x380   : > { %4195 = vmatpush1.bf16.msra.mxu0 %v10063_v30  ;;  %4246 = vmatpush1.bf16.msra.mxu1 %v10063_v30  ;;  %v10138_v30 = vld [vmem:[%s13435_s1 + $0xf70] ss:$8 sps:$4 sm:$0xff]  }
 0x381   : > { %4196 = vmatprep.subr.bf16.mxu0 %v10068_v31  ;;  %4247 = vmatprep.subr.bf16.mxu1 %v10068_v31  ;;  %v10143_v31 = vld [vmem:[%s13435_s1 + $0xf84] ss:$8 sps:$4 sm:$0xff]  }
 0x384   : > { %4197 = vmatpush1.bf16.msra.mxu0 %v10066_v38  ;;  %4248 = vmatpush1.bf16.msra.mxu1 %v10066_v38  ;;  %v10144_v38 = vld [vmem:[%s13435_s1 + $0xf90] ss:$8 sps:$4 sm:$0xff]  }
 0x385   : > { %4453 = vmatprep.subr.bf16.mxu0 %v10071_v45  ;;  %4500 = vmatprep.subr.bf16.mxu1 %v10071_v45  ;;  %v10149_v45 = vld [vmem:[%s13435_s1 + $0xfa4] ss:$8 sps:$4 sm:$0xff]  }
 0x387   : > { %4199 = vmatmul.mubr.bf16.vlgmr.msra.gmra.mrb[0].mxu0 %v11678_v17  ;;  %4250 = vmatmul.mubr.bf16.vlgmr.msra.gmra.mrb[0].mxu1 %v12229_v46  ;;  %v10075_v17 = vld [vmem:[%s13435_s1 + $0xe20] ss:$8 sps:$4 sm:$0xff]  }
 0x388   : > { %4454 = vmatpush1.bf16.msra.mxu0 %v10069_v5  ;;  %4501 = vmatpush1.bf16.msra.mxu1 %v10069_v5  ;;  %v10147_v5 = vld [vmem:[%s13435_s1 + $0xfa0] ss:$8 sps:$4 sm:$0xff]  }
 0x389   : > { %4455 = vmatprep.subr.bf16.mxu0 %v10074_v9  ;;  %4502 = vmatprep.subr.bf16.mxu1 %v10074_v9  ;;  %v10152_v9 = vld [vmem:[%s13435_s1 + $0xfb4] ss:$8 sps:$4 sm:$0xff]  }
 0x38a   : > { %4485 = vmatprep.mubr.bf16.mxu0 %v3058_v21  ;;  %4532 = vmatprep.mubr.bf16.mxu1 %v4497_v8  ;;  %v10083_v21 = vld [vmem:[%s13435_s1 + $0xe44] ss:$8 sps:$4 sm:$0xff]  }
 0x38c   : > { %4456 = vmatpush1.bf16.msra.mxu0 %v10072_v11  ;;  %4503 = vmatpush1.bf16.msra.mxu1 %v10072_v11  ;;  %v10150_v11 = vld [vmem:[%s13435_s1 + $0xfb0] ss:$8 sps:$4 sm:$0xff]  }
 0x38d   : > { %4457 = vmatprep.subr.bf16.mxu0 %v10077_v14  ;;  %4504 = vmatprep.subr.bf16.mxu1 %v10077_v14  ;;  %v10155_v14 = vld [vmem:[%s13435_s1 + $0xfc4] ss:$8 sps:$4 sm:$0xff]  }
 0x390   : > { %4458 = vmatpush1.bf16.msra.mxu0 %v10075_v17  ;;  %4505 = vmatpush1.bf16.msra.mxu1 %v10075_v17  ;;  %v10153_v17 = vld [vmem:[%s13435_s1 + $0xfc0] ss:$8 sps:$4 sm:$0xff]  }
 0x391   : > { %4459 = vmatprep.subr.bf16.mxu0 %v10080_v12  ;;  %4506 = vmatprep.subr.bf16.mxu1 %v10080_v12  ;;  %v10158_v12 = vld [vmem:[%s13435_s1 + $0xfd4] ss:$8 sps:$4 sm:$0xff]  }
 0x394   : > { %4460 = vmatpush1.bf16.msra.mxu0 %v10078_v42  ;;  %4507 = vmatpush1.bf16.msra.mxu1 %v10078_v42  ;;  %v10156_v42 = vld [vmem:[%s13435_s1 + $0xfd0] ss:$8 sps:$4 sm:$0xff]  }
 0x395   : > { %4461 = vmatprep.subr.bf16.mxu0 %v10083_v21  ;;  %4508 = vmatprep.subr.bf16.mxu1 %v10083_v21  ;;  %v10161_v21 = vld [vmem:[%s13435_s1 + $0xfe4] ss:$8 sps:$4 sm:$0xff]  }
 0x398   : > { %4462 = vmatpush1.bf16.msra.mxu0 %v10081_v50  ;;  %4509 = vmatpush1.bf16.msra.mxu1 %v10081_v50  ;;  %v10159_v50 = vld [vmem:[%s13435_s1 + $0xfe0] ss:$8 sps:$4 sm:$0xff]  }
 0x399   : > { %4463 = vmatprep.subr.bf16.mxu0 %v10086_v13  ;;  %4510 = vmatprep.subr.bf16.mxu1 %v10086_v13  ;;  %v10164_v13 = vld [vmem:[%s13435_s1 + $0xff4] ss:$8 sps:$4 sm:$0xff]  }
 0x39c   : > { %4464 = vmatpush1.bf16.msra.mxu0 %v10084_v51  ;;  %4511 = vmatpush1.bf16.msra.mxu1 %v10084_v51  ;;  %v5080_v51 = vshll.u32 %v12346_v56, 16 }
 0x39d   : > { %4465 = vmatprep.subr.bf16.mxu0 %v10089_v52  ;;  %4512 = vmatprep.subr.bf16.mxu1 %v10089_v52  ;;  %v10162_v52 = vld [vmem:[%s13435_s1 + $0xff0] ss:$8 sps:$4 sm:$0xff]  }
 0x3a0   : > { %4466 = vmatpush1.bf16.msra.mxu0 %v10087_v53  ;;  %4513 = vmatpush1.bf16.msra.mxu1 %v10087_v53  ;;  %v10168_v53 = vld [vmem:[%s13435_s1 + $0x1004] ss:$8 sps:$4 sm:$0xff]  }
 0x3a1   : > { %4467 = vmatprep.subr.bf16.mxu0 %v10092_v55  ;;  %4514 = vmatprep.subr.bf16.mxu1 %v10092_v55  ;;  %v5078_v55 = vshrl.u32 %v12346_v56, 16 }
 0x3a4   : > { %4468 = vmatpush1.bf16.msra.mxu0 %v10090_v57  ;;  %4515 = vmatpush1.bf16.msra.mxu1 %v10090_v57  ;;  %v5082_v57 = vrot.slane %v5080_v51, 1 }
 0x3a5   : > { %4469 = vmatprep.subr.bf16.mxu0 %v10095_v58  ;;  %4516 = vmatprep.subr.bf16.mxu1 %v10095_v58  ;;  %v12450_v58 = vcombine.low %v12336_v18, %v12336_v18  ;;  %v10191_v18 = vld [vmem:[%s13435_s1 + $0x1080] ss:$8 sps:$4 sm:$0xff]  }
 0x3a8   : > { %4470 = vmatpush1.bf16.msra.mxu0 %v10093_v61  ;;  %4517 = vmatpush1.bf16.msra.mxu1 %v10093_v61  ;;  %v10166_v61 = vld [vmem:[%s13435_s1 + $0x1000] ss:$8 sps:$4 sm:$0xff]  }
 0x3a9   : > { %4471 = vmatprep.subr.bf16.mxu0 %v10098_v47  ;;  %4518 = vmatprep.subr.bf16.mxu1 %v10098_v47  ;;  %v10172_v47 = vld [vmem:[%s13435_s1 + $0x1014] ss:$8 sps:$4 sm:$0xff]  }
 0x3ac   : > { %4472 = vmatpush1.bf16.msra.mxu0 %v10096_v44  ;;  %4519 = vmatpush1.bf16.msra.mxu1 %v10096_v44  ;;  %v12460_v44 = vor.u32 %v5082_v57, %v5078_v55  ;;  %v10236_v57 = vld [vmem:[%s13435_s1 + $0x1170] ss:$8 sps:$4 sm:$0xff]  }
 0x3ad   : > { %4473 = vmatprep.subr.bf16.mxu0 %v10101_v15  ;;  %4520 = vmatprep.subr.bf16.mxu1 %v10101_v15  ;;  %v10170_v15 = vld [vmem:[%s13435_s1 + $0x1010] ss:$8 sps:$4 sm:$0xff]  }
 0x3b0   : > { %4474 = vmatpush1.bf16.msra.mxu0 %v10099_v40  ;;  %4521 = vmatpush1.bf16.msra.mxu1 %v10099_v40  ;;  %v10175_v40 = vld [vmem:[%s13435_s1 + $0x1024] ss:$8 sps:$4 sm:$0xff]  }
 0x3b1   : > { %4475 = vmatprep.subr.bf16.mxu0 %v10104_v29  ;;  %4522 = vmatprep.subr.bf16.mxu1 %v10104_v29  ;;  %v10173_v29 = vld [vmem:[%s13435_s1 + $0x1020] ss:$8 sps:$4 sm:$0xff]  }
 0x3b4   : > { %4476 = vmatpush1.bf16.msra.mxu0 %v10102_v32  ;;  %4523 = vmatpush1.bf16.msra.mxu1 %v10102_v32  ;;  %v10178_v32 = vld [vmem:[%s13435_s1 + $0x1034] ss:$8 sps:$4 sm:$0xff]  }
 0x3b5   : > { %4477 = vmatprep.subr.bf16.mxu0 %v10107_v39  ;;  %4524 = vmatprep.subr.bf16.mxu1 %v10107_v39  ;;  %v10181_v39 = vld [vmem:[%s13435_s1 + $0x1044] ss:$8 sps:$4 sm:$0xff]  }
 0x3b8   : > { %4478 = vmatpush1.bf16.msra.mxu0 %v10105_v54  ;;  %4525 = vmatpush1.bf16.msra.mxu1 %v10105_v54  ;;  %v10179_v54 = vld [vmem:[%s13435_s1 + $0x1040] ss:$8 sps:$4 sm:$0xff]  }
 0x3b9   : > { %4479 = vmatprep.subr.bf16.mxu0 %v10110_v48  ;;  %4526 = vmatprep.subr.bf16.mxu1 %v10110_v48  ;;  %v10184_v48 = vld [vmem:[%s13435_s1 + $0x1054] ss:$8 sps:$4 sm:$0xff]  }
 0x3bc   : > { %4480 = vmatpush1.bf16.msra.mxu0 %v10108_v2  ;;  %4527 = vmatpush1.bf16.msra.mxu1 %v10108_v2  ;;  %v10182_v2 = vld [vmem:[%s13435_s1 + $0x1050] ss:$8 sps:$4 sm:$0xff]  }
 0x3bd   : > { %4481 = vmatprep.subr.bf16.mxu0 %v10113_v33  ;;  %4528 = vmatprep.subr.bf16.mxu1 %v10113_v33  ;;  %v10187_v33 = vld [vmem:[%s13435_s1 + $0x1064] ss:$8 sps:$4 sm:$0xff]  }
 0x3c0   : > { %4482 = vmatpush1.bf16.msra.mxu0 %v10111_v3  ;;  %4529 = vmatpush1.bf16.msra.mxu1 %v10111_v3  ;;  %v10185_v3 = vld [vmem:[%s13435_s1 + $0x1060] ss:$8 sps:$4 sm:$0xff]  }
 0x3c1   : > { %4483 = vmatprep.subr.bf16.mxu0 %v10116_v4  ;;  %4530 = vmatprep.subr.bf16.mxu1 %v10116_v4  ;;  %v10190_v4 = vld [vmem:[%s13435_s1 + $0x1074] ss:$8 sps:$4 sm:$0xff]  }
 0x3c4   : > { %4484 = vmatpush1.bf16.msra.mxu0 %v10114_v6  ;;  %4531 = vmatpush1.bf16.msra.mxu1 %v10114_v6  ;;  %v10188_v6 = vld [vmem:[%s13435_s1 + $0x1070] ss:$8 sps:$4 sm:$0xff]  }
 0x3c5   : > { %4741 = vmatprep.subr.bf16.mxu0 %v10119_v7  ;;  %4791 = vmatprep.subr.bf16.mxu1 %v10119_v7  ;;  %v10193_v7 = vld [vmem:[%s13435_s1 + $0x1084] ss:$8 sps:$4 sm:$0xff]  }
 0x3c7   : > { %4486 = vmatmul.mubr.bf16.vlgmr.msra.gmra.mrb[0].mxu0 %v3057_v60  ;;  %4533 = vmatmul.mubr.bf16.vlgmr.msra.gmra.mrb[0].mxu1 %v4496_v10  ;;  %v10128_v60 = vld [vmem:[%s13435_s1 + $0xf34] ss:$8 sps:$4 sm:$0xff]  }
 0x3c8   : > { %4742 = vmatpush1.bf16.msra.mxu0 %v10117_v19  ;;  %4792 = vmatpush1.bf16.msra.mxu1 %v10117_v19  ;;  %v10196_v19 = vld [vmem:[%s13435_s1 + $0x1094] ss:$8 sps:$4 sm:$0xff]  }
 0x3c9   : > { %4743 = vmatprep.subr.bf16.mxu0 %v10122_v16  ;;  %4793 = vmatprep.subr.bf16.mxu1 %v10122_v16  ;;  %v10194_v16 = vld [vmem:[%s13435_s1 + $0x1090] ss:$8 sps:$4 sm:$0xff]  }
 0x3ca   : > { %4773 = vmatprep.mubr.bf16.mxu0 %v11795_v62  ;;  %4823 = vmatprep.mubr.bf16.mxu1 %v12346_v56  ;;  %v10320_v62 = vld [vmem:[%s13435_s1 + $0x1330] ss:$8 sps:$4 sm:$0xff]  }
 0x3cc   : > { %4744 = vmatpush1.bf16.msra.mxu0 %v10120_v24  ;;  %4794 = vmatpush1.bf16.msra.mxu1 %v10120_v24  ;;  %v10199_v24 = vld [vmem:[%s13435_s1 + $0x10a4] ss:$8 sps:$4 sm:$0xff]  }
 0x3cd   : > { %4745 = vmatprep.subr.bf16.mxu0 %v10125_v28  ;;  %4795 = vmatprep.subr.bf16.mxu1 %v10125_v28  ;;  %v10197_v28 = vld [vmem:[%s13435_s1 + $0x10a0] ss:$8 sps:$4 sm:$0xff]  }
 0x3d0   : > { %4746 = vmatpush1.bf16.msra.mxu0 %v10123_v22  ;;  %4796 = vmatpush1.bf16.msra.mxu1 %v10123_v22  ;;  %v10202_v22 = vld [vmem:[%s13435_s1 + $0x10b4] ss:$8 sps:$4 sm:$0xff]  }
 0x3d1   : > { %4747 = vmatprep.subr.bf16.mxu0 %v10128_v60  ;;  %4797 = vmatprep.subr.bf16.mxu1 %v10128_v60  ;;  %v10200_v60 = vld [vmem:[%s13435_s1 + $0x10b0] ss:$8 sps:$4 sm:$0xff]  }
 0x3d4   : > { %4748 = vmatpush1.bf16.msra.mxu0 %v10126_v43  ;;  %4798 = vmatpush1.bf16.msra.mxu1 %v10126_v43  ;;  %v10205_v43 = vld [vmem:[%s13435_s1 + $0x10c4] ss:$8 sps:$4 sm:$0xff]  }
 0x3d5   : > { %4749 = vmatprep.subr.bf16.mxu0 %v10131_v49  ;;  %4799 = vmatprep.subr.bf16.mxu1 %v10131_v49  ;;  %v10203_v49 = vld [vmem:[%s13435_s1 + $0x10c0] ss:$8 sps:$4 sm:$0xff]  }
 0x3d8   : > { %4750 = vmatpush1.bf16.msra.mxu0 %v10129_v0  ;;  %4800 = vmatpush1.bf16.msra.mxu1 %v10129_v0  ;;  %v10208_v0 = vld [vmem:[%s13435_s1 + $0x10d4] ss:$8 sps:$4 sm:$0xff]  }
 0x3d9   : > { %4751 = vmatprep.subr.bf16.mxu0 %v10134_v25  ;;  %4801 = vmatprep.subr.bf16.mxu1 %v10134_v25  ;;  %v10206_v25 = vld [vmem:[%s13435_s1 + $0x10d0] ss:$8 sps:$4 sm:$0xff]  }
 0x3dc   : > { %4752 = vmatpush1.bf16.msra.mxu0 %v10132_v20  ;;  %4802 = vmatpush1.bf16.msra.mxu1 %v10132_v20  ;;  %v10211_v20 = vld [vmem:[%s13435_s1 + $0x10e4] ss:$8 sps:$4 sm:$0xff]  }
 0x3dd   : > { %4753 = vmatprep.subr.bf16.mxu0 %v10137_v63  ;;  %4803 = vmatprep.subr.bf16.mxu1 %v10137_v63  ;;  %v5073_v63 = vshll.u32 %v12450_v58, 16 }
 0x3e0   : > { %4754 = vmatpush1.bf16.msra.mxu0 %v10135_v26  ;;  %4804 = vmatpush1.bf16.msra.mxu1 %v10135_v26  ;;  %v10209_v26 = vld [vmem:[%s13435_s1 + $0x10e0] ss:$8 sps:$4 sm:$0xff]  }
 0x3e1   : > { %4755 = vmatprep.subr.bf16.mxu0 %v10140_v27  ;;  %4805 = vmatprep.subr.bf16.mxu1 %v10140_v27  ;;  %v10214_v27 = vld [vmem:[%s13435_s1 + $0x10f4] ss:$8 sps:$4 sm:$0xff]  }
 0x3e4   : > { %4756 = vmatpush1.bf16.msra.mxu0 %v10138_v30  ;;  %4806 = vmatpush1.bf16.msra.mxu1 %v10138_v30  ;;  %v5071_v30 = vshrl.u32 %v12450_v58, 16 }
 0x3e5   : > { %4757 = vmatprep.subr.bf16.mxu0 %v10143_v31  ;;  %4807 = vmatprep.subr.bf16.mxu1 %v10143_v31  ;;  %v5075_v31 = vrot.slane %v5073_v63, 1 }
 0x3e8   : > { %4758 = vmatpush1.bf16.msra.mxu0 %v10141_v34  ;;  %4808 = vmatpush1.bf16.msra.mxu1 %v10141_v34  ;;  %v10212_v34 = vld [vmem:[%s13435_s1 + $0x10f0] ss:$8 sps:$4 sm:$0xff]  }
 0x3e9   : > { %4759 = vmatprep.subr.bf16.mxu0 %v10146_v36  ;;  %4809 = vmatprep.subr.bf16.mxu1 %v10146_v36  ;;  %v10217_v36 = vld [vmem:[%s13435_s1 + $0x1104] ss:$8 sps:$4 sm:$0xff]  }
 0x3ec   : > { %4760 = vmatpush1.bf16.msra.mxu0 %v10144_v38  ;;  %4810 = vmatpush1.bf16.msra.mxu1 %v10144_v38  ;;  %v12562_v38 = vor.u32 %v5075_v31, %v5071_v30  ;;  %v10286_v31 = vld [vmem:[%s13435_s1 + $0x1274] ss:$8 sps:$4 sm:$0xff]  }
 0x3ed   : > { %4761 = vmatprep.subr.bf16.mxu0 %v10149_v45  ;;  %4811 = vmatprep.subr.bf16.mxu1 %v10149_v45  ;;  %v10215_v45 = vld [vmem:[%s13435_s1 + $0x1100] ss:$8 sps:$4 sm:$0xff]  }
 0x3f0   : > { %4762 = vmatpush1.bf16.msra.mxu0 %v10147_v5  ;;  %4812 = vmatpush1.bf16.msra.mxu1 %v10147_v5  ;;  %v10220_v5 = vld [vmem:[%s13435_s1 + $0x1114] ss:$8 sps:$4 sm:$0xff]  }
 0x3f1   : > { %4763 = vmatprep.subr.bf16.mxu0 %v10152_v9  ;;  %4813 = vmatprep.subr.bf16.mxu1 %v10152_v9  ;;  %v5366_v9 = vrot.slane %v12346_v56, 1 }
 0x3f4   : > { %4764 = vmatpush1.bf16.msra.mxu0 %v10150_v11  ;;  %4814 = vmatpush1.bf16.msra.mxu1 %v10150_v11  ;;  %v10218_v11 = vld [vmem:[%s13435_s1 + $0x1110] ss:$8 sps:$4 sm:$0xff]  }
 0x3f5   : > { %4765 = vmatprep.subr.bf16.mxu0 %v10155_v14  ;;  %4815 = vmatprep.subr.bf16.mxu1 %v10155_v14  ;;  %v10223_v14 = vld [vmem:[%s13435_s1 + $0x1124] ss:$8 sps:$4 sm:$0xff]  }
 0x3f8   : > { %4766 = vmatpush1.bf16.msra.mxu0 %v10153_v17  ;;  %4816 = vmatpush1.bf16.msra.mxu1 %v10153_v17  ;;  %v10226_v17 = vld [vmem:[%s13435_s1 + $0x1134] ss:$8 sps:$4 sm:$0xff]  }
 0x3f9   : > { %4767 = vmatprep.subr.bf16.mxu0 %v10158_v12  ;;  %4817 = vmatprep.subr.bf16.mxu1 %v10158_v12  ;;  %v10229_v12 = vld [vmem:[%s13435_s1 + $0x1144] ss:$8 sps:$4 sm:$0xff]  }
 0x3fc   : > { %4768 = vmatpush1.bf16.msra.mxu0 %v10156_v42  ;;  %4818 = vmatpush1.bf16.msra.mxu1 %v10156_v42  ;;  %v10227_v42 = vld [vmem:[%s13435_s1 + $0x1140] ss:$8 sps:$4 sm:$0xff]  }
 0x3fd   : > { %4769 = vmatprep.subr.bf16.mxu0 %v10161_v21  ;;  %4819 = vmatprep.subr.bf16.mxu1 %v10161_v21  ;;  %v10232_v21 = vld [vmem:[%s13435_s1 + $0x1154] ss:$8 sps:$4 sm:$0xff]  }
 0x400   : > { %4770 = vmatpush1.bf16.msra.mxu0 %v10159_v50  ;;  %4820 = vmatpush1.bf16.msra.mxu1 %v10159_v50  ;;  %v10230_v50 = vld [vmem:[%s13435_s1 + $0x1150] ss:$8 sps:$4 sm:$0xff]  }
 0x401   : > { %4771 = vmatprep.subr.bf16.mxu0 %v10164_v13  ;;  %4821 = vmatprep.subr.bf16.mxu1 %v10164_v13  ;;  %v10235_v13 = vld [vmem:[%s13435_s1 + $0x1164] ss:$8 sps:$4 sm:$0xff]  }
 0x404   : > { %4772 = vmatpush1.bf16.msra.mxu0 %v10162_v52  ;;  %4822 = vmatpush1.bf16.msra.mxu1 %v10162_v52  ;;  %v10233_v52 = vld [vmem:[%s13435_s1 + $0x1160] ss:$8 sps:$4 sm:$0xff]  }
 0x405   : > { %5027 = vmatprep.subr.bf16.mxu0 %v10168_v53  ;;  %5086 = vmatprep.subr.bf16.mxu1 %v10168_v53  ;;  %v10238_v53 = vld [vmem:[%s13435_s1 + $0x1174] ss:$8 sps:$4 sm:$0xff]  }
 0x407   : > { %4774 = vmatmul.mubr.bf16.vlgmr.msra.gmra.mrb[0].mxu0 %v11899_v35  ;;  %4824 = vmatmul.mubr.bf16.vlgmr.msra.gmra.mrb[0].mxu1 %v12450_v58  ;;  %v10365_v35 = vld [vmem:[%s13435_s1 + $0x1420] ss:$8 sps:$4 sm:$0xff]  }
 0x408   : > { %5028 = vmatpush1.bf16.msra.mxu0 %v10166_v61  ;;  %5087 = vmatpush1.bf16.msra.mxu1 %v10166_v61  ;;  %v10241_v61 = vld [vmem:[%s13435_s1 + $0x1184] ss:$8 sps:$4 sm:$0xff]  }
 0x409   : > { %5029 = vmatprep.subr.bf16.mxu0 %v10172_v47  ;;  %5088 = vmatprep.subr.bf16.mxu1 %v10172_v47  ;;  %v10239_v47 = vld [vmem:[%s13435_s1 + $0x1180] ss:$8 sps:$4 sm:$0xff]  }
 0x40a   : > { %5059 = vmatprep.mubr.bf16.mxu0 %v11909_v41  ;;  %5118 = vmatprep.mubr.bf16.mxu1 %v12460_v44  ;;  %v10176_v41 = vld [vmem:[%s13435_s1 + $0x1030] ss:$8 sps:$4 sm:$0xff]  }
 0x40c   : > { %5030 = vmatpush1.bf16.msra.mxu0 %v10170_v15  ;;  %5089 = vmatpush1.bf16.msra.mxu1 %v10170_v15  ;;  %v10244_v15 = vld [vmem:[%s13435_s1 + $0x1194] ss:$8 sps:$4 sm:$0xff]  }
 0x40d   : > { %5031 = vmatprep.subr.bf16.mxu0 %v10175_v40  ;;  %5090 = vmatprep.subr.bf16.mxu1 %v10175_v40  ;;  %v10242_v40 = vld [vmem:[%s13435_s1 + $0x1190] ss:$8 sps:$4 sm:$0xff]  }
 0x410   : > { %5032 = vmatpush1.bf16.msra.mxu0 %v10173_v29  ;;  %5091 = vmatpush1.bf16.msra.mxu1 %v10173_v29  ;;  %v10247_v29 = vld [vmem:[%s13435_s1 + $0x11a4] ss:$8 sps:$4 sm:$0xff]  }
 0x411   : > { %5033 = vmatprep.subr.bf16.mxu0 %v10178_v32  ;;  %5092 = vmatprep.subr.bf16.mxu1 %v10178_v32  ;;  %v10245_v32 = vld [vmem:[%s13435_s1 + $0x11a0] ss:$8 sps:$4 sm:$0xff]  }
 0x414   : > { %5034 = vmatpush1.bf16.msra.mxu0 %v10176_v41  ;;  %5093 = vmatpush1.bf16.msra.mxu1 %v10176_v41  ;;  %v10250_v41 = vld [vmem:[%s13435_s1 + $0x11b4] ss:$8 sps:$4 sm:$0xff]  }
 0x415   : > { %5035 = vmatprep.subr.bf16.mxu0 %v10181_v39  ;;  %5094 = vmatprep.subr.bf16.mxu1 %v10181_v39  ;;  %v10248_v39 = vld [vmem:[%s13435_s1 + $0x11b0] ss:$8 sps:$4 sm:$0xff]  }
 0x418   : > { %5036 = vmatpush1.bf16.msra.mxu0 %v10179_v54  ;;  %5095 = vmatpush1.bf16.msra.mxu1 %v10179_v54  ;;  %v10253_v54 = vld [vmem:[%s13435_s1 + $0x11c4] ss:$8 sps:$4 sm:$0xff]  }
 0x419   : > { %5037 = vmatprep.subr.bf16.mxu0 %v10184_v48  ;;  %5096 = vmatprep.subr.bf16.mxu1 %v10184_v48  ;;  %v10251_v48 = vld [vmem:[%s13435_s1 + $0x11c0] ss:$8 sps:$4 sm:$0xff]  }
 0x41c   : > { %5038 = vmatpush1.bf16.msra.mxu0 %v10182_v2  ;;  %5097 = vmatpush1.bf16.msra.mxu1 %v10182_v2  ;;  %v10256_v2 = vld [vmem:[%s13435_s1 + $0x11d4] ss:$8 sps:$4 sm:$0xff]  }
 0x41d   : > { %5039 = vmatprep.subr.bf16.mxu0 %v10187_v33  ;;  %5098 = vmatprep.subr.bf16.mxu1 %v10187_v33  ;;  %v10254_v33 = vld [vmem:[%s13435_s1 + $0x11d0] ss:$8 sps:$4 sm:$0xff]  }
 0x420   : > { %5040 = vmatpush1.bf16.msra.mxu0 %v10185_v3  ;;  %5099 = vmatpush1.bf16.msra.mxu1 %v10185_v3  ;;  %v10259_v3 = vld [vmem:[%s13435_s1 + $0x11e4] ss:$8 sps:$4 sm:$0xff]  }
 0x421   : > { %5041 = vmatprep.subr.bf16.mxu0 %v10190_v4  ;;  %5100 = vmatprep.subr.bf16.mxu1 %v10190_v4  ;;  %v10257_v4 = vld [vmem:[%s13435_s1 + $0x11e0] ss:$8 sps:$4 sm:$0xff]  }
 0x424   : > { %5042 = vmatpush1.bf16.msra.mxu0 %v10188_v6  ;;  %5101 = vmatpush1.bf16.msra.mxu1 %v10188_v6  ;;  %v10262_v6 = vld [vmem:[%s13435_s1 + $0x11f4] ss:$8 sps:$4 sm:$0xff]  }
 0x425   : > { %5043 = vmatprep.subr.bf16.mxu0 %v10193_v7  ;;  %5102 = vmatprep.subr.bf16.mxu1 %v10193_v7  ;;  %v10260_v7 = vld [vmem:[%s13435_s1 + $0x11f0] ss:$8 sps:$4 sm:$0xff]  }
 0x428   : > { %5044 = vmatpush1.bf16.msra.mxu0 %v10191_v18  ;;  %5103 = vmatpush1.bf16.msra.mxu1 %v10191_v18  ;;  %v10265_v18 = vld [vmem:[%s13435_s1 + $0x1204] ss:$8 sps:$4 sm:$0xff]  }
 0x429   : > { %5045 = vmatprep.subr.bf16.mxu0 %v10196_v19  ;;  %5104 = vmatprep.subr.bf16.mxu1 %v10196_v19  ;;  %v5651_v19 = vrot.slane %v5078_v55, 1  ;;  %v10271_v55 = vld [vmem:[%s13435_s1 + $0x1224] ss:$8 sps:$4 sm:$0xff]  }
 0x42c   : > { %5046 = vmatpush1.bf16.msra.mxu0 %v10194_v16  ;;  %5105 = vmatpush1.bf16.msra.mxu1 %v10194_v16  ;;  %v5652_v16 = vrot.slane %v5080_v51, 2  ;;  %v10266_v51 = vld [vmem:[%s13435_s1 + $0x1210] ss:$8 sps:$4 sm:$0xff]  }
 0x42d   : > { %5047 = vmatprep.subr.bf16.mxu0 %v10199_v24  ;;  %5106 = vmatprep.subr.bf16.mxu1 %v10199_v24  ;;  %v5365_v24 = vrot.slane %v12450_v58, 1 }
 0x430   : > { %5048 = vmatpush1.bf16.msra.mxu0 %v10197_v28  ;;  %5107 = vmatpush1.bf16.msra.mxu1 %v10197_v28  ;;  %v10263_v28 = vld [vmem:[%s13435_s1 + $0x1200] ss:$8 sps:$4 sm:$0xff]  }
 0x431   : > { %5049 = vmatprep.subr.bf16.mxu0 %v10202_v22  ;;  %5108 = vmatprep.subr.bf16.mxu1 %v10202_v22  ;;  %v10268_v22 = vld [vmem:[%s13435_s1 + $0x1214] ss:$8 sps:$4 sm:$0xff]  }
 0x434   : > { %5050 = vmatpush1.bf16.msra.mxu0 %v10200_v60  ;;  %5109 = vmatpush1.bf16.msra.mxu1 %v10200_v60  ;;  %v12678_v60 = vor.u32 %v5652_v16, %v5651_v19  ;;  %v10340_v19 = vld [vmem:[%s13435_s1 + $0x1394] ss:$8 sps:$4 sm:$0xff]   ;;  %v10338_v16 = vld [vmem:[%s13435_s1 + $0x1390] ss:$8 sps:$4 sm:$0xff]  }
 0x435   : > { %5051 = vmatprep.subr.bf16.mxu0 %v10205_v43  ;;  %5110 = vmatprep.subr.bf16.mxu1 %v10205_v43  ;;  %v10274_v43 = vld [vmem:[%s13435_s1 + $0x1234] ss:$8 sps:$4 sm:$0xff]  }
 0x438   : > { %5052 = vmatpush1.bf16.msra.mxu0 %v10203_v49  ;;  %5111 = vmatpush1.bf16.msra.mxu1 %v10203_v49  ;;  %v10277_v49 = vld [vmem:[%s13435_s1 + $0x1244] ss:$8 sps:$4 sm:$0xff]  }
 0x439   : > { %5053 = vmatprep.subr.bf16.mxu0 %v10208_v0  ;;  %5112 = vmatprep.subr.bf16.mxu1 %v10208_v0  ;;  %v10275_v0 = vld [vmem:[%s13435_s1 + $0x1240] ss:$8 sps:$4 sm:$0xff]  }
 0x43c   : > { %5054 = vmatpush1.bf16.msra.mxu0 %v10206_v25  ;;  %5113 = vmatpush1.bf16.msra.mxu1 %v10206_v25  ;;  %v10280_v25 = vld [vmem:[%s13435_s1 + $0x1254] ss:$8 sps:$4 sm:$0xff]  }
 0x43d   : > { %5055 = vmatprep.subr.bf16.mxu0 %v10211_v20  ;;  %5114 = vmatprep.subr.bf16.mxu1 %v10211_v20  ;;  %v10278_v20 = vld [vmem:[%s13435_s1 + $0x1250] ss:$8 sps:$4 sm:$0xff]  }
 0x440   : > { %5056 = vmatpush1.bf16.msra.mxu0 %v10209_v26  ;;  %5115 = vmatpush1.bf16.msra.mxu1 %v10209_v26  ;;  %v10283_v26 = vld [vmem:[%s13435_s1 + $0x1264] ss:$8 sps:$4 sm:$0xff]  }
 0x441   : > { %5057 = vmatprep.subr.bf16.mxu0 %v10214_v27  ;;  %5116 = vmatprep.subr.bf16.mxu1 %v10214_v27  ;;  %v10281_v27 = vld [vmem:[%s13435_s1 + $0x1260] ss:$8 sps:$4 sm:$0xff]  }
 0x444   : > { %5058 = vmatpush1.bf16.msra.mxu0 %v10212_v34  ;;  %5117 = vmatpush1.bf16.msra.mxu1 %v10212_v34  ;;  %v10284_v34 = vld [vmem:[%s13435_s1 + $0x1270] ss:$8 sps:$4 sm:$0xff]  }
 0x445   : > { %5322 = vmatprep.subr.bf16.mxu0 %v10217_v36  ;;  %5369 = vmatprep.subr.bf16.mxu1 %v10217_v36  ;;  %v10289_v36 = vld [vmem:[%s13435_s1 + $0x1284] ss:$8 sps:$4 sm:$0xff]  }
 0x447   : > { %5060 = vmatmul.mubr.bf16.vlgmr.msra.gmra.mrb[0].mxu0 %v12011_v23  ;;  %5119 = vmatmul.mubr.bf16.vlgmr.msra.gmra.mrb[0].mxu1 %v12562_v38  ;;  %v10221_v23 = vld [vmem:[%s13435_s1 + $0x1120] ss:$8 sps:$4 sm:$0xff]  }
 0x448   : > { %5323 = vmatpush1.bf16.msra.mxu0 %v10215_v45  ;;  %5370 = vmatpush1.bf16.msra.mxu1 %v10215_v45  ;;  %v10287_v45 = vld [vmem:[%s13435_s1 + $0x1280] ss:$8 sps:$4 sm:$0xff]  }
 0x449   : > { %5324 = vmatprep.subr.bf16.mxu0 %v10220_v5  ;;  %5371 = vmatprep.subr.bf16.mxu1 %v10220_v5  ;;  %v10292_v5 = vld [vmem:[%s13435_s1 + $0x1294] ss:$8 sps:$4 sm:$0xff]  }
 0x44a   : > { %5354 = vmatprep.mubr.bf16.mxu0 %v3927_v59  ;;  %5401 = vmatprep.mubr.bf16.mxu1 %v5366_v9  ;;  %v10224_v59 = vld [vmem:[%s13435_s1 + $0x1130] ss:$8 sps:$4 sm:$0xff]  }
 0x44c   : > { %5325 = vmatpush1.bf16.msra.mxu0 %v10218_v11  ;;  %5372 = vmatpush1.bf16.msra.mxu1 %v10218_v11  ;;  %v10290_v11 = vld [vmem:[%s13435_s1 + $0x1290] ss:$8 sps:$4 sm:$0xff]  }
 0x44d   : > { %5326 = vmatprep.subr.bf16.mxu0 %v10223_v14  ;;  %5373 = vmatprep.subr.bf16.mxu1 %v10223_v14  ;;  %v10295_v14 = vld [vmem:[%s13435_s1 + $0x12a4] ss:$8 sps:$4 sm:$0xff]  }
 0x450   : > { %5327 = vmatpush1.bf16.msra.mxu0 %v10221_v23  ;;  %5374 = vmatpush1.bf16.msra.mxu1 %v10221_v23  ;;  %v10293_v23 = vld [vmem:[%s13435_s1 + $0x12a0] ss:$8 sps:$4 sm:$0xff]  }
 0x451   : > { %5328 = vmatprep.subr.bf16.mxu0 %v10226_v17  ;;  %5375 = vmatprep.subr.bf16.mxu1 %v10226_v17  ;;  %v10298_v17 = vld [vmem:[%s13435_s1 + $0x12b4] ss:$8 sps:$4 sm:$0xff]  }
 0x454   : > { %5329 = vmatpush1.bf16.msra.mxu0 %v10224_v59  ;;  %5376 = vmatpush1.bf16.msra.mxu1 %v10224_v59  ;;  %v10296_v59 = vld [vmem:[%s13435_s1 + $0x12b0] ss:$8 sps:$4 sm:$0xff]  }
 0x455   : > { %5330 = vmatprep.subr.bf16.mxu0 %v10229_v12  ;;  %5377 = vmatprep.subr.bf16.mxu1 %v10229_v12  ;;  %v10301_v12 = vld [vmem:[%s13435_s1 + $0x12c4] ss:$8 sps:$4 sm:$0xff]  }
 0x458   : > { %5331 = vmatpush1.bf16.msra.mxu0 %v10227_v42  ;;  %5378 = vmatpush1.bf16.msra.mxu1 %v10227_v42  ;;  %v10299_v42 = vld [vmem:[%s13435_s1 + $0x12c0] ss:$8 sps:$4 sm:$0xff]  }
 0x459   : > { %5332 = vmatprep.subr.bf16.mxu0 %v10232_v21  ;;  %5379 = vmatprep.subr.bf16.mxu1 %v10232_v21  ;;  %v10304_v21 = vld [vmem:[%s13435_s1 + $0x12d4] ss:$8 sps:$4 sm:$0xff]  }
 0x45c   : > { %5333 = vmatpush1.bf16.msra.mxu0 %v10230_v50  ;;  %5380 = vmatpush1.bf16.msra.mxu1 %v10230_v50  ;;  %v10302_v50 = vld [vmem:[%s13435_s1 + $0x12d0] ss:$8 sps:$4 sm:$0xff]  }
 0x45d   : > { %5334 = vmatprep.subr.bf16.mxu0 %v10235_v13  ;;  %5381 = vmatprep.subr.bf16.mxu1 %v10235_v13  ;;  %v10307_v13 = vld [vmem:[%s13435_s1 + $0x12e4] ss:$8 sps:$4 sm:$0xff]  }
 0x460   : > { %5335 = vmatpush1.bf16.msra.mxu0 %v10233_v52  ;;  %5382 = vmatpush1.bf16.msra.mxu1 %v10233_v52  ;;  %v10305_v52 = vld [vmem:[%s13435_s1 + $0x12e0] ss:$8 sps:$4 sm:$0xff]  }
 0x461   : > { %5336 = vmatprep.subr.bf16.mxu0 %v10238_v53  ;;  %5383 = vmatprep.subr.bf16.mxu1 %v10238_v53  ;;  %v10310_v53 = vld [vmem:[%s13435_s1 + $0x12f4] ss:$8 sps:$4 sm:$0xff]  }
 0x464   : > { %5337 = vmatpush1.bf16.msra.mxu0 %v10236_v57  ;;  %5384 = vmatpush1.bf16.msra.mxu1 %v10236_v57  ;;  %v5648_v57 = vrot.slane %v5071_v30, 1  ;;  %v10316_v30 = vld [vmem:[%s13435_s1 + $0x1314] ss:$8 sps:$4 sm:$0xff]  }
 0x465   : > { %5338 = vmatprep.subr.bf16.mxu0 %v10241_v61  ;;  %5385 = vmatprep.subr.bf16.mxu1 %v10241_v61  ;;  %v5649_v61 = vrot.slane %v5073_v63, 2  ;;  %v10311_v63 = vld [vmem:[%s13435_s1 + $0x1300] ss:$8 sps:$4 sm:$0xff]  }
 0x468   : > { %5339 = vmatpush1.bf16.msra.mxu0 %v10239_v47  ;;  %5386 = vmatpush1.bf16.msra.mxu1 %v10239_v47  ;;  %v10308_v47 = vld [vmem:[%s13435_s1 + $0x12f0] ss:$8 sps:$4 sm:$0xff]  }
 0x469   : > { %5340 = vmatprep.subr.bf16.mxu0 %v10244_v15  ;;  %5387 = vmatprep.subr.bf16.mxu1 %v10244_v15  ;;  %v10313_v15 = vld [vmem:[%s13435_s1 + $0x1304] ss:$8 sps:$4 sm:$0xff]  }
 0x46c   : > { %5341 = vmatpush1.bf16.msra.mxu0 %v10242_v40  ;;  %5388 = vmatpush1.bf16.msra.mxu1 %v10242_v40  ;;  %v12780_v40 = vor.u32 %v5649_v61, %v5648_v57  ;;  %v10383_v57 = vld [vmem:[%s13435_s1 + $0x1480] ss:$8 sps:$4 sm:$0xff]   ;;  %v10388_v61 = vld [vmem:[%s13435_s1 + $0x1494] ss:$8 sps:$4 sm:$0xff]  }
 0x46d   : > { %5342 = vmatprep.subr.bf16.mxu0 %v10247_v29  ;;  %5389 = vmatprep.subr.bf16.mxu1 %v10247_v29  ;;  %v5936_v29 = vrot.slane %v12346_v56, 2 }
 0x470   : > { %5343 = vmatpush1.bf16.msra.mxu0 %v10245_v32  ;;  %5390 = vmatpush1.bf16.msra.mxu1 %v10245_v32  ;;  %v10314_v32 = vld [vmem:[%s13435_s1 + $0x1310] ss:$8 sps:$4 sm:$0xff]  }
 0x471   : > { %5344 = vmatprep.subr.bf16.mxu0 %v10250_v41  ;;  %5391 = vmatprep.subr.bf16.mxu1 %v10250_v41  ;;  %v10319_v41 = vld [vmem:[%s13435_s1 + $0x1324] ss:$8 sps:$4 sm:$0xff]  }
 0x474   : > { %5345 = vmatpush1.bf16.msra.mxu0 %v10248_v39  ;;  %5392 = vmatpush1.bf16.msra.mxu1 %v10248_v39  ;;  %v10322_v39 = vld [vmem:[%s13435_s1 + $0x1334] ss:$8 sps:$4 sm:$0xff]  }
 0x475   : > { %5346 = vmatprep.subr.bf16.mxu0 %v10253_v54  ;;  %5393 = vmatprep.subr.bf16.mxu1 %v10253_v54  ;;  %v10323_v54 = vld [vmem:[%s13435_s1 + $0x1340] ss:$8 sps:$4 sm:$0xff]  }
 0x478   : > { %5347 = vmatpush1.bf16.msra.mxu0 %v10251_v48  ;;  %5394 = vmatpush1.bf16.msra.mxu1 %v10251_v48  ;;  %v10328_v48 = vld [vmem:[%s13435_s1 + $0x1354] ss:$8 sps:$4 sm:$0xff]  }
 0x479   : > { %5348 = vmatprep.subr.bf16.mxu0 %v10256_v2  ;;  %5395 = vmatprep.subr.bf16.mxu1 %v10256_v2  ;;  %v10326_v2 = vld [vmem:[%s13435_s1 + $0x1350] ss:$8 sps:$4 sm:$0xff]  }
 0x47c   : > { %5349 = vmatpush1.bf16.msra.mxu0 %v10254_v33  ;;  %5396 = vmatpush1.bf16.msra.mxu1 %v10254_v33  ;;  %v10331_v33 = vld [vmem:[%s13435_s1 + $0x1364] ss:$8 sps:$4 sm:$0xff]  }
 0x47d   : > { %5350 = vmatprep.subr.bf16.mxu0 %v10259_v3  ;;  %5397 = vmatprep.subr.bf16.mxu1 %v10259_v3  ;;  %v10329_v3 = vld [vmem:[%s13435_s1 + $0x1360] ss:$8 sps:$4 sm:$0xff]  }
 0x480   : > { %5351 = vmatpush1.bf16.msra.mxu0 %v10257_v4  ;;  %5398 = vmatpush1.bf16.msra.mxu1 %v10257_v4  ;;  %v10334_v4 = vld [vmem:[%s13435_s1 + $0x1374] ss:$8 sps:$4 sm:$0xff]  }
 0x481   : > { %5352 = vmatprep.subr.bf16.mxu0 %v10262_v6  ;;  %5399 = vmatprep.subr.bf16.mxu1 %v10262_v6  ;;  %v10332_v6 = vld [vmem:[%s13435_s1 + $0x1370] ss:$8 sps:$4 sm:$0xff]  }
 0x484   : > { %5353 = vmatpush1.bf16.msra.mxu0 %v10260_v7  ;;  %5400 = vmatpush1.bf16.msra.mxu1 %v10260_v7  ;;  %v10337_v7 = vld [vmem:[%s13435_s1 + $0x1384] ss:$8 sps:$4 sm:$0xff]  }
 0x485   : > { %5605 = vmatprep.subr.bf16.mxu0 %v10265_v18  ;;  %5656 = vmatprep.subr.bf16.mxu1 %v10265_v18  ;;  %v10335_v18 = vld [vmem:[%s13435_s1 + $0x1380] ss:$8 sps:$4 sm:$0xff]  }
 0x487   : > { %5355 = vmatmul.mubr.bf16.vlgmr.msra.gmra.mrb[0].mxu0 %v3926_v1  ;;  %5402 = vmatmul.mubr.bf16.vlgmr.msra.gmra.mrb[0].mxu1 %v5365_v24  ;;  %v10269_v1 = vld [vmem:[%s13435_s1 + $0x1220] ss:$8 sps:$4 sm:$0xff]  }
 0x488   : > { %5606 = vmatpush1.bf16.msra.mxu0 %v10263_v28  ;;  %5657 = vmatpush1.bf16.msra.mxu1 %v10263_v28  ;;  %v10343_v28 = vld [vmem:[%s13435_s1 + $0x13a4] ss:$8 sps:$4 sm:$0xff]  }
 0x489   : > { %5607 = vmatprep.subr.bf16.mxu0 %v10268_v22  ;;  %5658 = vmatprep.subr.bf16.mxu1 %v10268_v22  ;;  %v10341_v22 = vld [vmem:[%s13435_s1 + $0x13a0] ss:$8 sps:$4 sm:$0xff]  }
 0x48a   : > { %5637 = vmatprep.mubr.bf16.mxu0 %v12127_v37  ;;  %5688 = vmatprep.mubr.bf16.mxu1 %v12678_v60  ;;  %v10272_v37 = vld [vmem:[%s13435_s1 + $0x1230] ss:$8 sps:$4 sm:$0xff]  }
 0x48c   : > { %5608 = vmatpush1.bf16.msra.mxu0 %v10266_v51  ;;  %5659 = vmatpush1.bf16.msra.mxu1 %v10266_v51  ;;  %v10346_v51 = vld [vmem:[%s13435_s1 + $0x13b4] ss:$8 sps:$4 sm:$0xff]  }
 0x48d   : > { %5609 = vmatprep.subr.bf16.mxu0 %v10271_v55  ;;  %5660 = vmatprep.subr.bf16.mxu1 %v10271_v55  ;;  %v10344_v55 = vld [vmem:[%s13435_s1 + $0x13b0] ss:$8 sps:$4 sm:$0xff]  }
 0x490   : > { %5610 = vmatpush1.bf16.msra.mxu0 %v10269_v1  ;;  %5661 = vmatpush1.bf16.msra.mxu1 %v10269_v1  ;;  %v10349_v1 = vld [vmem:[%s13435_s1 + $0x13c4] ss:$8 sps:$4 sm:$0xff]  }
 0x491   : > { %5611 = vmatprep.subr.bf16.mxu0 %v10274_v43  ;;  %5662 = vmatprep.subr.bf16.mxu1 %v10274_v43  ;;  %v10347_v43 = vld [vmem:[%s13435_s1 + $0x13c0] ss:$8 sps:$4 sm:$0xff]  }
 0x494   : > { %5612 = vmatpush1.bf16.msra.mxu0 %v10272_v37  ;;  %5663 = vmatpush1.bf16.msra.mxu1 %v10272_v37  ;;  %v10352_v37 = vld [vmem:[%s13435_s1 + $0x13d4] ss:$8 sps:$4 sm:$0xff]  }
 0x495   : > { %5613 = vmatprep.subr.bf16.mxu0 %v10277_v49  ;;  %5664 = vmatprep.subr.bf16.mxu1 %v10277_v49  ;;  %v10350_v49 = vld [vmem:[%s13435_s1 + $0x13d0] ss:$8 sps:$4 sm:$0xff]  }
 0x498   : > { %5614 = vmatpush1.bf16.msra.mxu0 %v10275_v0  ;;  %5665 = vmatpush1.bf16.msra.mxu1 %v10275_v0  ;;  %v10355_v0 = vld [vmem:[%s13435_s1 + $0x13e4] ss:$8 sps:$4 sm:$0xff]  }
 0x499   : > { %5615 = vmatprep.subr.bf16.mxu0 %v10280_v25  ;;  %5666 = vmatprep.subr.bf16.mxu1 %v10280_v25  ;;  %v10353_v25 = vld [vmem:[%s13435_s1 + $0x13e0] ss:$8 sps:$4 sm:$0xff]  }
 0x49c   : > { %5616 = vmatpush1.bf16.msra.mxu0 %v10278_v20  ;;  %5667 = vmatpush1.bf16.msra.mxu1 %v10278_v20  ;;  %v10358_v20 = vld [vmem:[%s13435_s1 + $0x13f4] ss:$8 sps:$4 sm:$0xff]  }
 0x49d   : > { %5617 = vmatprep.subr.bf16.mxu0 %v10283_v26  ;;  %5668 = vmatprep.subr.bf16.mxu1 %v10283_v26  ;;  %v10356_v26 = vld [vmem:[%s13435_s1 + $0x13f0] ss:$8 sps:$4 sm:$0xff]  }
 0x4a0   : > { %5618 = vmatpush1.bf16.msra.mxu0 %v10281_v27  ;;  %5669 = vmatpush1.bf16.msra.mxu1 %v10281_v27  ;;  %v10361_v27 = vld [vmem:[%s13435_s1 + $0x1404] ss:$8 sps:$4 sm:$0xff]  }
 0x4a1   : > { %5619 = vmatprep.subr.bf16.mxu0 %v10286_v31  ;;  %5670 = vmatprep.subr.bf16.mxu1 %v10286_v31  ;;  %v5935_v31 = vrot.slane %v12450_v58, 2 }
 0x4a4   : > { %5620 = vmatpush1.bf16.msra.mxu0 %v10284_v34  ;;  %5671 = vmatpush1.bf16.msra.mxu1 %v10284_v34  ;;  %v12887_v34 = vld [vmem:[%s10703_s18 + $0x28] sm:$0x77] }
 0x4a5   : > { %5621 = vmatprep.subr.bf16.mxu0 %v10289_v36  ;;  %5672 = vmatprep.subr.bf16.mxu1 %v10289_v36  ;;  %v10359_v36 = vld [vmem:[%s13435_s1 + $0x1400] ss:$8 sps:$4 sm:$0xff]  }
 0x4a8   : > { %5622 = vmatpush1.bf16.msra.mxu0 %v10287_v45  ;;  %5673 = vmatpush1.bf16.msra.mxu1 %v10287_v45  ;;  %v10364_v45 = vld [vmem:[%s13435_s1 + $0x1414] ss:$8 sps:$4 sm:$0xff]  }
 0x4a9   : > { %5623 = vmatprep.subr.bf16.mxu0 %v10292_v5  ;;  %5674 = vmatprep.subr.bf16.mxu1 %v10292_v5  ;;  %v12897_v5 = vcombine.high %v12887_v34, %v12887_v34 }
 0x4ac   : > { %5624 = vmatpush1.bf16.msra.mxu0 %v10290_v11  ;;  %5675 = vmatpush1.bf16.msra.mxu1 %v10290_v11  ;;  %v10362_v11 = vld [vmem:[%s13435_s1 + $0x1410] ss:$8 sps:$4 sm:$0xff]  }
 0x4ad   : > { %5625 = vmatprep.subr.bf16.mxu0 %v10295_v14  ;;  %5676 = vmatprep.subr.bf16.mxu1 %v10295_v14  ;;  %v10367_v14 = vld [vmem:[%s13435_s1 + $0x1424] ss:$8 sps:$4 sm:$0xff]  }
 0x4b0   : > { %5626 = vmatpush1.bf16.msra.mxu0 %v10293_v23  ;;  %5677 = vmatpush1.bf16.msra.mxu1 %v10293_v23  ;;  %v10368_v23 = vld [vmem:[%s13435_s1 + $0x1430] ss:$8 sps:$4 sm:$0xff]  }
 0x4b1   : > { %5627 = vmatprep.subr.bf16.mxu0 %v10298_v17  ;;  %5678 = vmatprep.subr.bf16.mxu1 %v10298_v17  ;;  %v10373_v17 = vld [vmem:[%s13435_s1 + $0x1444] ss:$8 sps:$4 sm:$0xff]  }
 0x4b4   : > { %5628 = vmatpush1.bf16.msra.mxu0 %v10296_v59  ;;  %5679 = vmatpush1.bf16.msra.mxu1 %v10296_v59  ;;  %v10371_v59 = vld [vmem:[%s13435_s1 + $0x1440] ss:$8 sps:$4 sm:$0xff]  }
 0x4b5   : > { %5629 = vmatprep.subr.bf16.mxu0 %v10301_v12  ;;  %5680 = vmatprep.subr.bf16.mxu1 %v10301_v12  ;;  %v10376_v12 = vld [vmem:[%s13435_s1 + $0x1454] ss:$8 sps:$4 sm:$0xff]  }
 0x4b8   : > { %5630 = vmatpush1.bf16.msra.mxu0 %v10299_v42  ;;  %5681 = vmatpush1.bf16.msra.mxu1 %v10299_v42  ;;  %v10374_v42 = vld [vmem:[%s13435_s1 + $0x1450] ss:$8 sps:$4 sm:$0xff]  }
 0x4b9   : > { %5631 = vmatprep.subr.bf16.mxu0 %v10304_v21  ;;  %5682 = vmatprep.subr.bf16.mxu1 %v10304_v21  ;;  %v10379_v21 = vld [vmem:[%s13435_s1 + $0x1464] ss:$8 sps:$4 sm:$0xff]  }
 0x4bc   : > { %5632 = vmatpush1.bf16.msra.mxu0 %v10302_v50  ;;  %5683 = vmatpush1.bf16.msra.mxu1 %v10302_v50  ;;  %v10377_v50 = vld [vmem:[%s13435_s1 + $0x1460] ss:$8 sps:$4 sm:$0xff]  }
 0x4bd   : > { %5633 = vmatprep.subr.bf16.mxu0 %v10307_v13  ;;  %5684 = vmatprep.subr.bf16.mxu1 %v10307_v13  ;;  %v10382_v13 = vld [vmem:[%s13435_s1 + $0x1474] ss:$8 sps:$4 sm:$0xff]  }
 0x4c0   : > { %5634 = vmatpush1.bf16.msra.mxu0 %v10305_v52  ;;  %5685 = vmatpush1.bf16.msra.mxu1 %v10305_v52  ;;  %v10380_v52 = vld [vmem:[%s13435_s1 + $0x1470] ss:$8 sps:$4 sm:$0xff]  }
 0x4c1   : > { %5635 = vmatprep.subr.bf16.mxu0 %v10310_v53  ;;  %5686 = vmatprep.subr.bf16.mxu1 %v10310_v53  ;;  %v10385_v53 = vld [vmem:[%s13435_s1 + $0x1484] ss:$8 sps:$4 sm:$0xff]  }
 0x4c4   : > { %5636 = vmatpush1.bf16.msra.mxu0 %v10308_v47  ;;  %5687 = vmatpush1.bf16.msra.mxu1 %v10308_v47  ;;  %v10386_v47 = vld [vmem:[%s13435_s1 + $0x1490] ss:$8 sps:$4 sm:$0xff]  }
 0x4c5   : > { %5892 = vmatprep.subr.bf16.mxu0 %v10313_v15  ;;  %5939 = vmatprep.subr.bf16.mxu1 %v10313_v15  ;;  %v10391_v15 = vld [vmem:[%s13435_s1 + $0x14a4] ss:$8 sps:$4 sm:$0xff]  }
 0x4c7   : > { %5638 = vmatmul.mubr.bf16.vlgmr.msra.gmra.mrb[0].mxu0 %v12229_v46  ;;  %5689 = vmatmul.mubr.bf16.vlgmr.msra.gmra.mrb[0].mxu1 %v12780_v40  ;;  %v10317_v46 = vld [vmem:[%s13435_s1 + $0x1320] ss:$8 sps:$4 sm:$0xff]  }
 0x4c8   : > { %5893 = vmatpush1.bf16.msra.mxu0 %v10311_v63  ;;  %5940 = vmatpush1.bf16.msra.mxu1 %v10311_v63  ;;  %v10389_v63 = vld [vmem:[%s13435_s1 + $0x14a0] ss:$8 sps:$4 sm:$0xff]  }
 0x4c9   : > { %5894 = vmatprep.subr.bf16.mxu0 %v10316_v30  ;;  %5941 = vmatprep.subr.bf16.mxu1 %v10316_v30  ;;  %v10394_v30 = vld [vmem:[%s13435_s1 + $0x14b4] ss:$8 sps:$4 sm:$0xff]  }
 0x4ca   : > { %5924 = vmatprep.mubr.bf16.mxu0 %v4497_v8  ;;  %5971 = vmatprep.mubr.bf16.mxu1 %v5936_v29  ;;  %v10325_v8 = vld [vmem:[%s13435_s1 + $0x1344] ss:$8 sps:$4 sm:$0xff]  }
 0x4cc   : > { %5895 = vmatpush1.bf16.msra.mxu0 %v10314_v32  ;;  %5942 = vmatpush1.bf16.msra.mxu1 %v10314_v32  ;;  %v10392_v32 = vld [vmem:[%s13435_s1 + $0x14b0] ss:$8 sps:$4 sm:$0xff]  }
 0x4cd   : > { %5896 = vmatprep.subr.bf16.mxu0 %v10319_v41  ;;  %5943 = vmatprep.subr.bf16.mxu1 %v10319_v41  ;;  %v10397_v41 = vld [vmem:[%s13435_s1 + $0x14c4] ss:$8 sps:$4 sm:$0xff]  }
 0x4d0   : > { %5897 = vmatpush1.bf16.msra.mxu0 %v10317_v46  ;;  %5944 = vmatpush1.bf16.msra.mxu1 %v10317_v46  ;;  %v10395_v46 = vld [vmem:[%s13435_s1 + $0x14c0] ss:$8 sps:$4 sm:$0xff]  }
 0x4d1   : > { %5898 = vmatprep.subr.bf16.mxu0 %v10322_v39  ;;  %5945 = vmatprep.subr.bf16.mxu1 %v10322_v39  ;;  %v10400_v39 = vld [vmem:[%s13435_s1 + $0x14d4] ss:$8 sps:$4 sm:$0xff]  }
 0x4d4   : > { %5899 = vmatpush1.bf16.msra.mxu0 %v10320_v62  ;;  %5946 = vmatpush1.bf16.msra.mxu1 %v10320_v62  ;;  %v10398_v62 = vld [vmem:[%s13435_s1 + $0x14d0] ss:$8 sps:$4 sm:$0xff]  }
 0x4d5   : > { %5900 = vmatprep.subr.bf16.mxu0 %v10325_v8  ;;  %5947 = vmatprep.subr.bf16.mxu1 %v10325_v8  ;;  %v10403_v8 = vld [vmem:[%s13435_s1 + $0x14e4] ss:$8 sps:$4 sm:$0xff]  }
 0x4d8   : > { %5901 = vmatpush1.bf16.msra.mxu0 %v10323_v54  ;;  %5948 = vmatpush1.bf16.msra.mxu1 %v10323_v54  ;;  %v10401_v54 = vld [vmem:[%s13435_s1 + $0x14e0] ss:$8 sps:$4 sm:$0xff]  }
 0x4d9   : > { %5902 = vmatprep.subr.bf16.mxu0 %v10328_v48  ;;  %5949 = vmatprep.subr.bf16.mxu1 %v10328_v48  ;;  %v10406_v48 = vld [vmem:[%s13435_s1 + $0x14f4] ss:$8 sps:$4 sm:$0xff]  }
 0x4dc   : > { %5903 = vmatpush1.bf16.msra.mxu0 %v10326_v2  ;;  %5950 = vmatpush1.bf16.msra.mxu1 %v10326_v2  ;;  %v6519_v2 = vshll.u32 %v12897_v5, 16 }
 0x4dd   : > { %5904 = vmatprep.subr.bf16.mxu0 %v10331_v33  ;;  %5951 = vmatprep.subr.bf16.mxu1 %v10331_v33  ;;  %v10404_v33 = vld [vmem:[%s13435_s1 + $0x14f0] ss:$8 sps:$4 sm:$0xff]  }
 0x4e0   : > { %5905 = vmatpush1.bf16.msra.mxu0 %v10329_v3  ;;  %5952 = vmatpush1.bf16.msra.mxu1 %v10329_v3  ;;  %v10410_v3 = vld [vmem:[%s13435_s1 + $0x1504] ss:$8 sps:$4 sm:$0xff]  }
 0x4e1   : > { %5906 = vmatprep.subr.bf16.mxu0 %v10334_v4  ;;  %5953 = vmatprep.subr.bf16.mxu1 %v10334_v4  ;;  %v6517_v4 = vshrl.u32 %v12897_v5, 16 }
 0x4e4   : > { %5907 = vmatpush1.bf16.msra.mxu0 %v10332_v6  ;;  %5954 = vmatpush1.bf16.msra.mxu1 %v10332_v6  ;;  %v6521_v6 = vrot.slane %v6519_v2, 1 }
 0x4e5   : > { %5908 = vmatprep.subr.bf16.mxu0 %v10337_v7  ;;  %5955 = vmatprep.subr.bf16.mxu1 %v10337_v7  ;;  %v13001_v7 = vcombine.low %v12887_v34, %v12887_v34  ;;  %v10433_v34 = vld [vmem:[%s13435_s1 + $0x1580] ss:$8 sps:$4 sm:$0xff]  }
 0x4e8   : > { %5909 = vmatpush1.bf16.msra.mxu0 %v10335_v18  ;;  %5956 = vmatpush1.bf16.msra.mxu1 %v10335_v18  ;;  %v10408_v18 = vld [vmem:[%s13435_s1 + $0x1500] ss:$8 sps:$4 sm:$0xff]  }
 0x4e9   : > { %5910 = vmatprep.subr.bf16.mxu0 %v10340_v19  ;;  %5957 = vmatprep.subr.bf16.mxu1 %v10340_v19  ;;  %v10414_v19 = vld [vmem:[%s13435_s1 + $0x1514] ss:$8 sps:$4 sm:$0xff]  }
 0x4ec   : > { %5911 = vmatpush1.bf16.msra.mxu0 %v10338_v16  ;;  %5958 = vmatpush1.bf16.msra.mxu1 %v10338_v16  ;;  %v6522_v16 = vor.u32 %v6521_v6, %v6517_v4  ;;  %v10478_v6 = vld [vmem:[%s13435_s1 + $0x1670] ss:$8 sps:$4 sm:$0xff]  }
 0x4ed   : > { %5912 = vmatprep.subr.bf16.mxu0 %v10343_v28  ;;  %5959 = vmatprep.subr.bf16.mxu1 %v10343_v28  ;;  %v10412_v28 = vld [vmem:[%s13435_s1 + $0x1510] ss:$8 sps:$4 sm:$0xff]  }
 0x4f0   : > { %5913 = vmatpush1.bf16.msra.mxu0 %v10341_v22  ;;  %5960 = vmatpush1.bf16.msra.mxu1 %v10341_v22  ;;  %v10417_v22 = vld [vmem:[%s13435_s1 + $0x1524] ss:$8 sps:$4 sm:$0xff]  }
 0x4f1   : > { %5914 = vmatprep.subr.bf16.mxu0 %v10346_v51  ;;  %5961 = vmatprep.subr.bf16.mxu1 %v10346_v51  ;;  %v10415_v51 = vld [vmem:[%s13435_s1 + $0x1520] ss:$8 sps:$4 sm:$0xff]  }
 0x4f4   : > { %5915 = vmatpush1.bf16.msra.mxu0 %v10344_v55  ;;  %5962 = vmatpush1.bf16.msra.mxu1 %v10344_v55  ;;  %v10420_v55 = vld [vmem:[%s13435_s1 + $0x1534] ss:$8 sps:$4 sm:$0xff]  }
 0x4f5   : > { %5916 = vmatprep.subr.bf16.mxu0 %v10349_v1  ;;  %5963 = vmatprep.subr.bf16.mxu1 %v10349_v1  ;;  %v10418_v1 = vld [vmem:[%s13435_s1 + $0x1530] ss:$8 sps:$4 sm:$0xff]  }
 0x4f8   : > { %5917 = vmatpush1.bf16.msra.mxu0 %v10347_v43  ;;  %5964 = vmatpush1.bf16.msra.mxu1 %v10347_v43  ;;  %v10421_v43 = vld [vmem:[%s13435_s1 + $0x1540] ss:$8 sps:$4 sm:$0xff]  }
 0x4f9   : > { %5918 = vmatprep.subr.bf16.mxu0 %v10352_v37  ;;  %5965 = vmatprep.subr.bf16.mxu1 %v10352_v37  ;;  %v10426_v37 = vld [vmem:[%s13435_s1 + $0x1554] ss:$8 sps:$4 sm:$0xff]  }
 0x4fc   : > { %5919 = vmatpush1.bf16.msra.mxu0 %v10350_v49  ;;  %5966 = vmatpush1.bf16.msra.mxu1 %v10350_v49  ;;  %v10424_v49 = vld [vmem:[%s13435_s1 + $0x1550] ss:$8 sps:$4 sm:$0xff]  }
 0x4fd   : > { %5920 = vmatprep.subr.bf16.mxu0 %v10355_v0  ;;  %5967 = vmatprep.subr.bf16.mxu1 %v10355_v0  ;;  %v10429_v0 = vld [vmem:[%s13435_s1 + $0x1564] ss:$8 sps:$4 sm:$0xff]  }
 0x500   : > { %5921 = vmatpush1.bf16.msra.mxu0 %v10353_v25  ;;  %5968 = vmatpush1.bf16.msra.mxu1 %v10353_v25  ;;  %v10427_v25 = vld [vmem:[%s13435_s1 + $0x1560] ss:$8 sps:$4 sm:$0xff]  }
 0x501   : > { %5922 = vmatprep.subr.bf16.mxu0 %v10358_v20  ;;  %5969 = vmatprep.subr.bf16.mxu1 %v10358_v20  ;;  %v10432_v20 = vld [vmem:[%s13435_s1 + $0x1574] ss:$8 sps:$4 sm:$0xff]  }
 0x504   : > { %5923 = vmatpush1.bf16.msra.mxu0 %v10356_v26  ;;  %5970 = vmatpush1.bf16.msra.mxu1 %v10356_v26  ;;  %v10430_v26 = vld [vmem:[%s13435_s1 + $0x1570] ss:$8 sps:$4 sm:$0xff]  }
 0x505   : > { %6180 = vmatprep.subr.bf16.mxu0 %v10361_v27  ;;  %6230 = vmatprep.subr.bf16.mxu1 %v10361_v27  ;;  %v10435_v27 = vld [vmem:[%s13435_s1 + $0x1584] ss:$8 sps:$4 sm:$0xff]  }
 0x507   : > { %5925 = vmatmul.mubr.bf16.vlgmr.msra.gmra.mrb[0].mxu0 %v4496_v10  ;;  %5972 = vmatmul.mubr.bf16.vlgmr.msra.gmra.mrb[0].mxu1 %v5935_v31  ;;  %v10370_v10 = vld [vmem:[%s13435_s1 + $0x1434] ss:$8 sps:$4 sm:$0xff]  }
 0x508   : > { %6181 = vmatpush1.bf16.msra.mxu0 %v10359_v36  ;;  %6231 = vmatpush1.bf16.msra.mxu1 %v10359_v36  ;;  %v10438_v36 = vld [vmem:[%s13435_s1 + $0x1594] ss:$8 sps:$4 sm:$0xff]  }
 0x509   : > { %6182 = vmatprep.subr.bf16.mxu0 %v10364_v45  ;;  %6232 = vmatprep.subr.bf16.mxu1 %v10364_v45  ;;  %v10436_v45 = vld [vmem:[%s13435_s1 + $0x1590] ss:$8 sps:$4 sm:$0xff]  }
 0x50a   : > { %6212 = vmatprep.mubr.bf16.mxu0 %v12346_v56  ;;  %6262 = vmatprep.mubr.bf16.mxu1 %v12897_v5  ;;  %v10562_v56 = vld [vmem:[%s13435_s1 + $0x1830] ss:$8 sps:$4 sm:$0xff]  }
 0x50c   : > { %6183 = vmatpush1.bf16.msra.mxu0 %v10362_v11  ;;  %6233 = vmatpush1.bf16.msra.mxu1 %v10362_v11  ;;  %v10441_v11 = vld [vmem:[%s13435_s1 + $0x15a4] ss:$8 sps:$4 sm:$0xff]  }
 0x50d   : > { %6184 = vmatprep.subr.bf16.mxu0 %v10367_v14  ;;  %6234 = vmatprep.subr.bf16.mxu1 %v10367_v14  ;;  %v10439_v14 = vld [vmem:[%s13435_s1 + $0x15a0] ss:$8 sps:$4 sm:$0xff]  }
 0x510   : > { %6185 = vmatpush1.bf16.msra.mxu0 %v10365_v35  ;;  %6235 = vmatpush1.bf16.msra.mxu1 %v10365_v35  ;;  %v10444_v35 = vld [vmem:[%s13435_s1 + $0x15b4] ss:$8 sps:$4 sm:$0xff]  }
 0x511   : > { %6186 = vmatprep.subr.bf16.mxu0 %v10370_v10  ;;  %6236 = vmatprep.subr.bf16.mxu1 %v10370_v10  ;;  %v10442_v10 = vld [vmem:[%s13435_s1 + $0x15b0] ss:$8 sps:$4 sm:$0xff]  }
 0x514   : > { %6187 = vmatpush1.bf16.msra.mxu0 %v10368_v23  ;;  %6237 = vmatpush1.bf16.msra.mxu1 %v10368_v23  ;;  %v10447_v23 = vld [vmem:[%s13435_s1 + $0x15c4] ss:$8 sps:$4 sm:$0xff]  }
 0x515   : > { %6188 = vmatprep.subr.bf16.mxu0 %v10373_v17  ;;  %6238 = vmatprep.subr.bf16.mxu1 %v10373_v17  ;;  %v10445_v17 = vld [vmem:[%s13435_s1 + $0x15c0] ss:$8 sps:$4 sm:$0xff]  }
 0x518   : > { %6189 = vmatpush1.bf16.msra.mxu0 %v10371_v59  ;;  %6239 = vmatpush1.bf16.msra.mxu1 %v10371_v59  ;;  %v10450_v59 = vld [vmem:[%s13435_s1 + $0x15d4] ss:$8 sps:$4 sm:$0xff]  }
 0x519   : > { %6190 = vmatprep.subr.bf16.mxu0 %v10376_v12  ;;  %6240 = vmatprep.subr.bf16.mxu1 %v10376_v12  ;;  %v10448_v12 = vld [vmem:[%s13435_s1 + $0x15d0] ss:$8 sps:$4 sm:$0xff]  }
 0x51c   : > { %6191 = vmatpush1.bf16.msra.mxu0 %v10374_v42  ;;  %6241 = vmatpush1.bf16.msra.mxu1 %v10374_v42  ;;  %v10453_v42 = vld [vmem:[%s13435_s1 + $0x15e4] ss:$8 sps:$4 sm:$0xff]  }
 0x51d   : > { %6192 = vmatprep.subr.bf16.mxu0 %v10379_v21  ;;  %6242 = vmatprep.subr.bf16.mxu1 %v10379_v21  ;;  %v6512_v21 = vshll.u32 %v13001_v7, 16 }
 0x520   : > { %6193 = vmatpush1.bf16.msra.mxu0 %v10377_v50  ;;  %6243 = vmatpush1.bf16.msra.mxu1 %v10377_v50  ;;  %v10451_v50 = vld [vmem:[%s13435_s1 + $0x15e0] ss:$8 sps:$4 sm:$0xff]  }
 0x521   : > { %6194 = vmatprep.subr.bf16.mxu0 %v10382_v13  ;;  %6244 = vmatprep.subr.bf16.mxu1 %v10382_v13  ;;  %v10456_v13 = vld [vmem:[%s13435_s1 + $0x15f4] ss:$8 sps:$4 sm:$0xff]  }
 0x524   : > { %6195 = vmatpush1.bf16.msra.mxu0 %v10380_v52  ;;  %6245 = vmatpush1.bf16.msra.mxu1 %v10380_v52  ;;  %v6510_v52 = vshrl.u32 %v13001_v7, 16 }
 0x525   : > { %6196 = vmatprep.subr.bf16.mxu0 %v10385_v53  ;;  %6246 = vmatprep.subr.bf16.mxu1 %v10385_v53  ;;  %v6514_v53 = vrot.slane %v6512_v21, 1 }
 0x528   : > { %6197 = vmatpush1.bf16.msra.mxu0 %v10383_v57  ;;  %6247 = vmatpush1.bf16.msra.mxu1 %v10383_v57  ;;  %v10454_v57 = vld [vmem:[%s13435_s1 + $0x15f0] ss:$8 sps:$4 sm:$0xff]  }
 0x529   : > { %6198 = vmatprep.subr.bf16.mxu0 %v10388_v61  ;;  %6248 = vmatprep.subr.bf16.mxu1 %v10388_v61  ;;  %v10459_v61 = vld [vmem:[%s13435_s1 + $0x1604] ss:$8 sps:$4 sm:$0xff]  }
 0x52c   : > { %6199 = vmatpush1.bf16.msra.mxu0 %v10386_v47  ;;  %6249 = vmatpush1.bf16.msra.mxu1 %v10386_v47  ;;  %v6515_v47 = vor.u32 %v6514_v53, %v6510_v52  ;;  %v10526_v53 = vld [vmem:[%s13435_s1 + $0x1770] ss:$8 sps:$4 sm:$0xff]  }
 0x52d   : > { %6200 = vmatprep.subr.bf16.mxu0 %v10391_v15  ;;  %6250 = vmatprep.subr.bf16.mxu1 %v10391_v15  ;;  %v10457_v15 = vld [vmem:[%s13435_s1 + $0x1600] ss:$8 sps:$4 sm:$0xff]  }
 0x530   : > { %6201 = vmatpush1.bf16.msra.mxu0 %v10389_v63  ;;  %6251 = vmatpush1.bf16.msra.mxu1 %v10389_v63  ;;  %v10462_v63 = vld [vmem:[%s13435_s1 + $0x1614] ss:$8 sps:$4 sm:$0xff]  }
 0x531   : > { %6202 = vmatprep.subr.bf16.mxu0 %v10394_v30  ;;  %6252 = vmatprep.subr.bf16.mxu1 %v10394_v30  ;;  %v6805_v30 = vrot.slane %v12897_v5, 1 }
 0x534   : > { %6203 = vmatpush1.bf16.msra.mxu0 %v10392_v32  ;;  %6253 = vmatpush1.bf16.msra.mxu1 %v10392_v32  ;;  %v10460_v32 = vld [vmem:[%s13435_s1 + $0x1610] ss:$8 sps:$4 sm:$0xff]  }
 0x535   : > { %6204 = vmatprep.subr.bf16.mxu0 %v10397_v41  ;;  %6254 = vmatprep.subr.bf16.mxu1 %v10397_v41  ;;  %v10465_v41 = vld [vmem:[%s13435_s1 + $0x1624] ss:$8 sps:$4 sm:$0xff]  }
 0x538   : > { %6205 = vmatpush1.bf16.msra.mxu0 %v10395_v46  ;;  %6255 = vmatpush1.bf16.msra.mxu1 %v10395_v46  ;;  %v10468_v46 = vld [vmem:[%s13435_s1 + $0x1634] ss:$8 sps:$4 sm:$0xff]  }
 0x539   : > { %6206 = vmatprep.subr.bf16.mxu0 %v10400_v39  ;;  %6256 = vmatprep.subr.bf16.mxu1 %v10400_v39  ;;  %v10466_v39 = vld [vmem:[%s13435_s1 + $0x1630] ss:$8 sps:$4 sm:$0xff]  }
 0x53c   : > { %6207 = vmatpush1.bf16.msra.mxu0 %v10398_v62  ;;  %6257 = vmatpush1.bf16.msra.mxu1 %v10398_v62  ;;  %v10469_v62 = vld [vmem:[%s13435_s1 + $0x1640] ss:$8 sps:$4 sm:$0xff]  }
 0x53d   : > { %6208 = vmatprep.subr.bf16.mxu0 %v10403_v8  ;;  %6258 = vmatprep.subr.bf16.mxu1 %v10403_v8  ;;  %v10474_v8 = vld [vmem:[%s13435_s1 + $0x1654] ss:$8 sps:$4 sm:$0xff]  }
 0x540   : > { %6209 = vmatpush1.bf16.msra.mxu0 %v10401_v54  ;;  %6259 = vmatpush1.bf16.msra.mxu1 %v10401_v54  ;;  %v10472_v54 = vld [vmem:[%s13435_s1 + $0x1650] ss:$8 sps:$4 sm:$0xff]  }
 0x541   : > { %6210 = vmatprep.subr.bf16.mxu0 %v10406_v48  ;;  %6260 = vmatprep.subr.bf16.mxu1 %v10406_v48  ;;  %v10477_v48 = vld [vmem:[%s13435_s1 + $0x1664] ss:$8 sps:$4 sm:$0xff]  }
 0x544   : > { %6211 = vmatpush1.bf16.msra.mxu0 %v10404_v33  ;;  %6261 = vmatpush1.bf16.msra.mxu1 %v10404_v33  ;;  %v10475_v33 = vld [vmem:[%s13435_s1 + $0x1660] ss:$8 sps:$4 sm:$0xff]  }
 0x545   : > { %6466 = vmatprep.subr.bf16.mxu0 %v10410_v3  ;;  %6525 = vmatprep.subr.bf16.mxu1 %v10410_v3  ;;  %v10480_v3 = vld [vmem:[%s13435_s1 + $0x1674] ss:$8 sps:$4 sm:$0xff]  }
 0x547   : > { %6213 = vmatmul.mubr.bf16.vlgmr.msra.gmra.mrb[0].mxu0 %v12450_v58  ;;  %6263 = vmatmul.mubr.bf16.vlgmr.msra.gmra.mrb[0].mxu1 %v13001_v7 }
 0x548   : > { %6467 = vmatpush1.bf16.msra.mxu0 %v10408_v18  ;;  %6526 = vmatpush1.bf16.msra.mxu1 %v10408_v18  ;;  %v10483_v18 = vld [vmem:[%s13435_s1 + $0x1684] ss:$8 sps:$4 sm:$0xff]  }
 0x549   : > { %6468 = vmatprep.subr.bf16.mxu0 %v10414_v19  ;;  %6527 = vmatprep.subr.bf16.mxu1 %v10414_v19  ;;  %v10481_v19 = vld [vmem:[%s13435_s1 + $0x1680] ss:$8 sps:$4 sm:$0xff]  }
 0x54a   : > { %6498 = vmatprep.mubr.bf16.mxu0 %v12460_v44  ;;  %6557 = vmatprep.mubr.bf16.mxu1 %v6522_v16  ;;  %v10423_v44 = vld [vmem:[%s13435_s1 + $0x1544] ss:$8 sps:$4 sm:$0xff]   ;;  %v10486_v16 = vld [vmem:[%s13435_s1 + $0x1694] ss:$8 sps:$4 sm:$0xff]  }
 0x54c   : > { %6469 = vmatpush1.bf16.msra.mxu0 %v10412_v28  ;;  %6528 = vmatpush1.bf16.msra.mxu1 %v10412_v28  ;;  %v10484_v28 = vld [vmem:[%s13435_s1 + $0x1690] ss:$8 sps:$4 sm:$0xff]  }
 0x54d   : > { %6470 = vmatprep.subr.bf16.mxu0 %v10417_v22  ;;  %6529 = vmatprep.subr.bf16.mxu1 %v10417_v22  ;;  %v10489_v22 = vld [vmem:[%s13435_s1 + $0x16a4] ss:$8 sps:$4 sm:$0xff]  }
 0x550   : > { %6471 = vmatpush1.bf16.msra.mxu0 %v10415_v51  ;;  %6530 = vmatpush1.bf16.msra.mxu1 %v10415_v51  ;;  %v10487_v51 = vld [vmem:[%s13435_s1 + $0x16a0] ss:$8 sps:$4 sm:$0xff]  }
 0x551   : > { %6472 = vmatprep.subr.bf16.mxu0 %v10420_v55  ;;  %6531 = vmatprep.subr.bf16.mxu1 %v10420_v55  ;;  %v10492_v55 = vld [vmem:[%s13435_s1 + $0x16b4] ss:$8 sps:$4 sm:$0xff]  }
 0x554   : > { %6473 = vmatpush1.bf16.msra.mxu0 %v10418_v1  ;;  %6532 = vmatpush1.bf16.msra.mxu1 %v10418_v1  ;;  %v10490_v1 = vld [vmem:[%s13435_s1 + $0x16b0] ss:$8 sps:$4 sm:$0xff]  }
 0x555   : > { %6474 = vmatprep.subr.bf16.mxu0 %v10423_v44  ;;  %6533 = vmatprep.subr.bf16.mxu1 %v10423_v44  ;;  %v10495_v44 = vld [vmem:[%s13435_s1 + $0x16c4] ss:$8 sps:$4 sm:$0xff]  }
 0x558   : > { %6475 = vmatpush1.bf16.msra.mxu0 %v10421_v43  ;;  %6534 = vmatpush1.bf16.msra.mxu1 %v10421_v43  ;;  %v10493_v43 = vld [vmem:[%s13435_s1 + $0x16c0] ss:$8 sps:$4 sm:$0xff]  }
 0x559   : > { %6476 = vmatprep.subr.bf16.mxu0 %v10426_v37  ;;  %6535 = vmatprep.subr.bf16.mxu1 %v10426_v37  ;;  %v10498_v37 = vld [vmem:[%s13435_s1 + $0x16d4] ss:$8 sps:$4 sm:$0xff]  }
 0x55c   : > { %6477 = vmatpush1.bf16.msra.mxu0 %v10424_v49  ;;  %6536 = vmatpush1.bf16.msra.mxu1 %v10424_v49  ;;  %v10496_v49 = vld [vmem:[%s13435_s1 + $0x16d0] ss:$8 sps:$4 sm:$0xff]  }
 0x55d   : > { %6478 = vmatprep.subr.bf16.mxu0 %v10429_v0  ;;  %6537 = vmatprep.subr.bf16.mxu1 %v10429_v0  ;;  %v10501_v0 = vld [vmem:[%s13435_s1 + $0x16e4] ss:$8 sps:$4 sm:$0xff]  }
 0x560   : > { %6479 = vmatpush1.bf16.msra.mxu0 %v10427_v25  ;;  %6538 = vmatpush1.bf16.msra.mxu1 %v10427_v25  ;;  %v10499_v25 = vld [vmem:[%s13435_s1 + $0x16e0] ss:$8 sps:$4 sm:$0xff]  }
 0x561   : > { %6480 = vmatprep.subr.bf16.mxu0 %v10432_v20  ;;  %6539 = vmatprep.subr.bf16.mxu1 %v10432_v20  ;;  %v10504_v20 = vld [vmem:[%s13435_s1 + $0x16f4] ss:$8 sps:$4 sm:$0xff]  }
 0x564   : > { %6481 = vmatpush1.bf16.msra.mxu0 %v10430_v26  ;;  %6540 = vmatpush1.bf16.msra.mxu1 %v10430_v26  ;;  %v10502_v26 = vld [vmem:[%s13435_s1 + $0x16f0] ss:$8 sps:$4 sm:$0xff]  }
 0x565   : > { %6482 = vmatprep.subr.bf16.mxu0 %v10435_v27  ;;  %6541 = vmatprep.subr.bf16.mxu1 %v10435_v27  ;;  %v10507_v27 = vld [vmem:[%s13435_s1 + $0x1704] ss:$8 sps:$4 sm:$0xff]  }
 0x568   : > { %6483 = vmatpush1.bf16.msra.mxu0 %v10433_v34  ;;  %6542 = vmatpush1.bf16.msra.mxu1 %v10433_v34  ;;  %v7090_v34 = vrot.slane %v6517_v4, 1  ;;  %v10513_v4 = vld [vmem:[%s13435_s1 + $0x1724] ss:$8 sps:$4 sm:$0xff]  }
 0x569   : > { %6484 = vmatprep.subr.bf16.mxu0 %v10438_v36  ;;  %6543 = vmatprep.subr.bf16.mxu1 %v10438_v36  ;;  %v7091_v36 = vrot.slane %v6519_v2, 2  ;;  %v10508_v2 = vld [vmem:[%s13435_s1 + $0x1710] ss:$8 sps:$4 sm:$0xff]  }
 0x56c   : > { %6485 = vmatpush1.bf16.msra.mxu0 %v10436_v45  ;;  %6544 = vmatpush1.bf16.msra.mxu1 %v10436_v45  ;;  %v6804_v45 = vrot.slane %v13001_v7, 1 }
 0x56d   : > { %6486 = vmatprep.subr.bf16.mxu0 %v10441_v11  ;;  %6545 = vmatprep.subr.bf16.mxu1 %v10441_v11  ;;  %v10505_v11 = vld [vmem:[%s13435_s1 + $0x1700] ss:$8 sps:$4 sm:$0xff]  }
 0x570   : > { %6487 = vmatpush1.bf16.msra.mxu0 %v10439_v14  ;;  %6546 = vmatpush1.bf16.msra.mxu1 %v10439_v14  ;;  %v10510_v14 = vld [vmem:[%s13435_s1 + $0x1714] ss:$8 sps:$4 sm:$0xff]  }
 0x571   : > { %6488 = vmatprep.subr.bf16.mxu0 %v10444_v35  ;;  %6547 = vmatprep.subr.bf16.mxu1 %v10444_v35  ;;  %v7092_v35 = vor.u32 %v7091_v36, %v7090_v34  ;;  %v10588_v34 = vld [vmem:[%s13435_s1 + $0x18b4] ss:$8 sps:$4 sm:$0xff]   ;;  %v10586_v36 = vld [vmem:[%s13435_s1 + $0x18b0] ss:$8 sps:$4 sm:$0xff]  }
 0x574   : > { %6489 = vmatpush1.bf16.msra.mxu0 %v10442_v10  ;;  %6548 = vmatpush1.bf16.msra.mxu1 %v10442_v10  ;;  %v10516_v10 = vld [vmem:[%s13435_s1 + $0x1734] ss:$8 sps:$4 sm:$0xff]  }
 0x575   : > { %6490 = vmatprep.subr.bf16.mxu0 %v10447_v23  ;;  %6549 = vmatprep.subr.bf16.mxu1 %v10447_v23  ;;  %v10514_v23 = vld [vmem:[%s13435_s1 + $0x1730] ss:$8 sps:$4 sm:$0xff]  }
 0x578   : > { %6491 = vmatpush1.bf16.msra.mxu0 %v10445_v17  ;;  %6550 = vmatpush1.bf16.msra.mxu1 %v10445_v17  ;;  %v10517_v17 = vld [vmem:[%s13435_s1 + $0x1740] ss:$8 sps:$4 sm:$0xff]  }
 0x579   : > { %6492 = vmatprep.subr.bf16.mxu0 %v10450_v59  ;;  %6551 = vmatprep.subr.bf16.mxu1 %v10450_v59  ;;  %v10522_v59 = vld [vmem:[%s13435_s1 + $0x1754] ss:$8 sps:$4 sm:$0xff]  }
 0x57c   : > { %6493 = vmatpush1.bf16.msra.mxu0 %v10448_v12  ;;  %6552 = vmatpush1.bf16.msra.mxu1 %v10448_v12  ;;  %v10520_v12 = vld [vmem:[%s13435_s1 + $0x1750] ss:$8 sps:$4 sm:$0xff]  }
 0x57d   : > { %6494 = vmatprep.subr.bf16.mxu0 %v10453_v42  ;;  %6553 = vmatprep.subr.bf16.mxu1 %v10453_v42  ;;  %v10525_v42 = vld [vmem:[%s13435_s1 + $0x1764] ss:$8 sps:$4 sm:$0xff]  }
 0x580   : > { %6495 = vmatpush1.bf16.msra.mxu0 %v10451_v50  ;;  %6554 = vmatpush1.bf16.msra.mxu1 %v10451_v50  ;;  %v10523_v50 = vld [vmem:[%s13435_s1 + $0x1760] ss:$8 sps:$4 sm:$0xff]  }
 0x581   : > { %6496 = vmatprep.subr.bf16.mxu0 %v10456_v13  ;;  %6555 = vmatprep.subr.bf16.mxu1 %v10456_v13  ;;  %v10528_v13 = vld [vmem:[%s13435_s1 + $0x1774] ss:$8 sps:$4 sm:$0xff]  }
 0x584   : > { %6497 = vmatpush1.bf16.msra.mxu0 %v10454_v57  ;;  %6556 = vmatpush1.bf16.msra.mxu1 %v10454_v57  ;;  %v10531_v57 = vld [vmem:[%s13435_s1 + $0x1784] ss:$8 sps:$4 sm:$0xff]  }
 0x585   : > { %6761 = vmatprep.subr.bf16.mxu0 %v10459_v61  ;;  %6808 = vmatprep.subr.bf16.mxu1 %v10459_v61  ;;  %v10529_v61 = vld [vmem:[%s13435_s1 + $0x1780] ss:$8 sps:$4 sm:$0xff]  }
 0x587   : > { %6499 = vmatmul.mubr.bf16.vlgmr.msra.gmra.mrb[0].mxu0 %v12562_v38  ;;  %6558 = vmatmul.mubr.bf16.vlgmr.msra.gmra.mrb[0].mxu1 %v6515_v47  ;;  %v10463_v38 = vld [vmem:[%s13435_s1 + $0x1620] ss:$8 sps:$4 sm:$0xff]   ;;  %v10534_v47 = vld [vmem:[%s13435_s1 + $0x1794] ss:$8 sps:$4 sm:$0xff]  }
 0x588   : > { %6762 = vmatpush1.bf16.msra.mxu0 %v10457_v15  ;;  %6809 = vmatpush1.bf16.msra.mxu1 %v10457_v15  ;;  %v10532_v15 = vld [vmem:[%s13435_s1 + $0x1790] ss:$8 sps:$4 sm:$0xff]  }
 0x589   : > { %6763 = vmatprep.subr.bf16.mxu0 %v10462_v63  ;;  %6810 = vmatprep.subr.bf16.mxu1 %v10462_v63  ;;  %v10537_v63 = vld [vmem:[%s13435_s1 + $0x17a4] ss:$8 sps:$4 sm:$0xff]  }
 0x58a   : > { %6793 = vmatprep.mubr.bf16.mxu0 %v5366_v9  ;;  %6840 = vmatprep.mubr.bf16.mxu1 %v6805_v30  ;;  %v10471_v9 = vld [vmem:[%s13435_s1 + $0x1644] ss:$8 sps:$4 sm:$0xff]   ;;  %v10535_v30 = vld [vmem:[%s13435_s1 + $0x17a0] ss:$8 sps:$4 sm:$0xff]  }
 0x58c   : > { %6764 = vmatpush1.bf16.msra.mxu0 %v10460_v32  ;;  %6811 = vmatpush1.bf16.msra.mxu1 %v10460_v32  ;;  %v10540_v32 = vld [vmem:[%s13435_s1 + $0x17b4] ss:$8 sps:$4 sm:$0xff]  }
 0x58d   : > { %6765 = vmatprep.subr.bf16.mxu0 %v10465_v41  ;;  %6812 = vmatprep.subr.bf16.mxu1 %v10465_v41  ;;  %v10538_v41 = vld [vmem:[%s13435_s1 + $0x17b0] ss:$8 sps:$4 sm:$0xff]  }
 0x590   : > { %6766 = vmatpush1.bf16.msra.mxu0 %v10463_v38  ;;  %6813 = vmatpush1.bf16.msra.mxu1 %v10463_v38  ;;  %v10543_v38 = vld [vmem:[%s13435_s1 + $0x17c4] ss:$8 sps:$4 sm:$0xff]  }
 0x591   : > { %6767 = vmatprep.subr.bf16.mxu0 %v10468_v46  ;;  %6814 = vmatprep.subr.bf16.mxu1 %v10468_v46  ;;  %v10541_v46 = vld [vmem:[%s13435_s1 + $0x17c0] ss:$8 sps:$4 sm:$0xff]  }
 0x594   : > { %6768 = vmatpush1.bf16.msra.mxu0 %v10466_v39  ;;  %6815 = vmatpush1.bf16.msra.mxu1 %v10466_v39  ;;  %v10546_v39 = vld [vmem:[%s13435_s1 + $0x17d4] ss:$8 sps:$4 sm:$0xff]  }
 0x595   : > { %6769 = vmatprep.subr.bf16.mxu0 %v10471_v9  ;;  %6816 = vmatprep.subr.bf16.mxu1 %v10471_v9  ;;  %v10544_v9 = vld [vmem:[%s13435_s1 + $0x17d0] ss:$8 sps:$4 sm:$0xff]  }
 0x598   : > { %6770 = vmatpush1.bf16.msra.mxu0 %v10469_v62  ;;  %6817 = vmatpush1.bf16.msra.mxu1 %v10469_v62  ;;  %v10549_v62 = vld [vmem:[%s13435_s1 + $0x17e4] ss:$8 sps:$4 sm:$0xff]  }
 0x599   : > { %6771 = vmatprep.subr.bf16.mxu0 %v10474_v8  ;;  %6818 = vmatprep.subr.bf16.mxu1 %v10474_v8  ;;  %v10547_v8 = vld [vmem:[%s13435_s1 + $0x17e0] ss:$8 sps:$4 sm:$0xff]  }
 0x59c   : > { %6772 = vmatpush1.bf16.msra.mxu0 %v10472_v54  ;;  %6819 = vmatpush1.bf16.msra.mxu1 %v10472_v54  ;;  %v10552_v54 = vld [vmem:[%s13435_s1 + $0x17f4] ss:$8 sps:$4 sm:$0xff]  }
 0x59d   : > { %6773 = vmatprep.subr.bf16.mxu0 %v10477_v48  ;;  %6820 = vmatprep.subr.bf16.mxu1 %v10477_v48  ;;  %v7087_v48 = vrot.slane %v6510_v52, 1  ;;  %v10553_v52 = vld [vmem:[%s13435_s1 + $0x1800] ss:$8 sps:$4 sm:$0xff]  }
 0x5a0   : > { %6774 = vmatpush1.bf16.msra.mxu0 %v10475_v33  ;;  %6821 = vmatpush1.bf16.msra.mxu1 %v10475_v33  ;;  %v7088_v33 = vrot.slane %v6512_v21, 2  ;;  %v10558_v21 = vld [vmem:[%s13435_s1 + $0x1814] ss:$8 sps:$4 sm:$0xff]  }
 0x5a1   : > { %6775 = vmatprep.subr.bf16.mxu0 %v10480_v3  ;;  %6822 = vmatprep.subr.bf16.mxu1 %v10480_v3  ;;  %v10550_v3 = vld [vmem:[%s13435_s1 + $0x17f0] ss:$8 sps:$4 sm:$0xff]  }
 0x5a4   : > { %6776 = vmatpush1.bf16.msra.mxu0 %v10478_v6  ;;  %6823 = vmatpush1.bf16.msra.mxu1 %v10478_v6  ;;  %v10555_v6 = vld [vmem:[%s13435_s1 + $0x1804] ss:$8 sps:$4 sm:$0xff]  }
 0x5a5   : > { %6777 = vmatprep.subr.bf16.mxu0 %v10483_v18  ;;  %6824 = vmatprep.subr.bf16.mxu1 %v10483_v18  ;;  %v7089_v18 = vor.u32 %v7088_v33, %v7087_v48 }
 0x5a8   : > { %6778 = vmatpush1.bf16.msra.mxu0 %v10481_v19  ;;  %6825 = vmatpush1.bf16.msra.mxu1 %v10481_v19  ;;  %v7375_v19 = vrot.slane %v12897_v5, 2  ;;  %v10564_v5 = vld [vmem:[%s13435_s1 + $0x1834] ss:$8 sps:$4 sm:$0xff]  }
 0x5a9   : > { %6779 = vmatprep.subr.bf16.mxu0 %v10486_v16  ;;  %6826 = vmatprep.subr.bf16.mxu1 %v10486_v16  ;;  %v10556_v16 = vld [vmem:[%s13435_s1 + $0x1810] ss:$8 sps:$4 sm:$0xff]  }
 0x5ac   : > { %6780 = vmatpush1.bf16.msra.mxu0 %v10484_v28  ;;  %6827 = vmatpush1.bf16.msra.mxu1 %v10484_v28  ;;  %v10561_v28 = vld [vmem:[%s13435_s1 + $0x1824] ss:$8 sps:$4 sm:$0xff]  }
 0x5ad   : > { %6781 = vmatprep.subr.bf16.mxu0 %v10489_v22  ;;  %6828 = vmatprep.subr.bf16.mxu1 %v10489_v22  ;;  %v10565_v22 = vld [vmem:[%s13435_s1 + $0x1840] ss:$8 sps:$4 sm:$0xff]  }
 0x5b0   : > { %6782 = vmatpush1.bf16.msra.mxu0 %v10487_v51  ;;  %6829 = vmatpush1.bf16.msra.mxu1 %v10487_v51  ;;  %v10570_v51 = vld [vmem:[%s13435_s1 + $0x1854] ss:$8 sps:$4 sm:$0xff]  }
 0x5b1   : > { %6783 = vmatprep.subr.bf16.mxu0 %v10492_v55  ;;  %6830 = vmatprep.subr.bf16.mxu1 %v10492_v55  ;;  %v10568_v55 = vld [vmem:[%s13435_s1 + $0x1850] ss:$8 sps:$4 sm:$0xff]  }
 0x5b4   : > { %6784 = vmatpush1.bf16.msra.mxu0 %v10490_v1  ;;  %6831 = vmatpush1.bf16.msra.mxu1 %v10490_v1  ;;  %v10573_v1 = vld [vmem:[%s13435_s1 + $0x1864] ss:$8 sps:$4 sm:$0xff]  }
 0x5b5   : > { %6785 = vmatprep.subr.bf16.mxu0 %v10495_v44  ;;  %6832 = vmatprep.subr.bf16.mxu1 %v10495_v44  ;;  %v10571_v44 = vld [vmem:[%s13435_s1 + $0x1860] ss:$8 sps:$4 sm:$0xff]  }
 0x5b8   : > { %6786 = vmatpush1.bf16.msra.mxu0 %v10493_v43  ;;  %6833 = vmatpush1.bf16.msra.mxu1 %v10493_v43  ;;  %v10576_v43 = vld [vmem:[%s13435_s1 + $0x1874] ss:$8 sps:$4 sm:$0xff]  }
 0x5b9   : > { %6787 = vmatprep.subr.bf16.mxu0 %v10498_v37  ;;  %6834 = vmatprep.subr.bf16.mxu1 %v10498_v37  ;;  %v10574_v37 = vld [vmem:[%s13435_s1 + $0x1870] ss:$8 sps:$4 sm:$0xff]  }
 0x5bc   : > { %6788 = vmatpush1.bf16.msra.mxu0 %v10496_v49  ;;  %6835 = vmatpush1.bf16.msra.mxu1 %v10496_v49  ;;  %v10579_v49 = vld [vmem:[%s13435_s1 + $0x1884] ss:$8 sps:$4 sm:$0xff]  }
 0x5bd   : > { %6789 = vmatprep.subr.bf16.mxu0 %v10501_v0  ;;  %6836 = vmatprep.subr.bf16.mxu1 %v10501_v0  ;;  %v10577_v0 = vld [vmem:[%s13435_s1 + $0x1880] ss:$8 sps:$4 sm:$0xff]  }
 0x5c0   : > { %6790 = vmatpush1.bf16.msra.mxu0 %v10499_v25  ;;  %6837 = vmatpush1.bf16.msra.mxu1 %v10499_v25  ;;  %v10582_v25 = vld [vmem:[%s13435_s1 + $0x1894] ss:$8 sps:$4 sm:$0xff]  }
 0x5c1   : > { %6791 = vmatprep.subr.bf16.mxu0 %v10504_v20  ;;  %6838 = vmatprep.subr.bf16.mxu1 %v10504_v20  ;;  %v10580_v20 = vld [vmem:[%s13435_s1 + $0x1890] ss:$8 sps:$4 sm:$0xff]  }
 0x5c4   : > { %6792 = vmatpush1.bf16.msra.mxu0 %v10502_v26  ;;  %6839 = vmatpush1.bf16.msra.mxu1 %v10502_v26  ;;  %v10585_v26 = vld [vmem:[%s13435_s1 + $0x18a4] ss:$8 sps:$4 sm:$0xff]  }
 0x5c5   : > { %7044 = vmatprep.subr.bf16.mxu0 %v10507_v27  ;;  %7095 = vmatprep.subr.bf16.mxu1 %v10507_v27  ;;  %v10583_v27 = vld [vmem:[%s13435_s1 + $0x18a0] ss:$8 sps:$4 sm:$0xff]  }
 0x5c7   : > { %6794 = vmatmul.mubr.bf16.vlgmr.msra.gmra.mrb[0].mxu0 %v5365_v24  ;;  %6841 = vmatmul.mubr.bf16.vlgmr.msra.gmra.mrb[0].mxu1 %v6804_v45  ;;  %v10511_v24 = vld [vmem:[%s13435_s1 + $0x1720] ss:$8 sps:$4 sm:$0xff]   ;;  %v10591_v45 = vld [vmem:[%s13435_s1 + $0x18c4] ss:$8 sps:$4 sm:$0xff]  }
 0x5c8   : > { %7045 = vmatpush1.bf16.msra.mxu0 %v10505_v11  ;;  %7096 = vmatpush1.bf16.msra.mxu1 %v10505_v11  ;;  %v10589_v11 = vld [vmem:[%s13435_s1 + $0x18c0] ss:$8 sps:$4 sm:$0xff]  }
 0x5c9   : > { %7046 = vmatprep.subr.bf16.mxu0 %v10510_v14  ;;  %7097 = vmatprep.subr.bf16.mxu1 %v10510_v14  ;;  %v10594_v14 = vld [vmem:[%s13435_s1 + $0x18d4] ss:$8 sps:$4 sm:$0xff]  }
 0x5ca   : > { %7076 = vmatprep.mubr.bf16.mxu0 %v12678_v60  ;;  %7127 = vmatprep.mubr.bf16.mxu1 %v7092_v35  ;;  %v10519_v60 = vld [vmem:[%s13435_s1 + $0x1744] ss:$8 sps:$4 sm:$0xff]   ;;  %v10592_v35 = vld [vmem:[%s13435_s1 + $0x18d0] ss:$8 sps:$4 sm:$0xff]  }
 0x5cc   : > { %7047 = vmatpush1.bf16.msra.mxu0 %v10508_v2  ;;  %7098 = vmatpush1.bf16.msra.mxu1 %v10508_v2  ;;  %v10597_v2 = vld [vmem:[%s13435_s1 + $0x18e4] ss:$8 sps:$4 sm:$0xff]  }
 0x5cd   : > { %7048 = vmatprep.subr.bf16.mxu0 %v10513_v4  ;;  %7099 = vmatprep.subr.bf16.mxu1 %v10513_v4  ;;  %v10595_v4 = vld [vmem:[%s13435_s1 + $0x18e0] ss:$8 sps:$4 sm:$0xff]  }
 0x5d0   : > { %7049 = vmatpush1.bf16.msra.mxu0 %v10511_v24  ;;  %7100 = vmatpush1.bf16.msra.mxu1 %v10511_v24  ;;  %v10600_v24 = vld [vmem:[%s13435_s1 + $0x18f4] ss:$8 sps:$4 sm:$0xff]  }
 0x5d1   : > { %7050 = vmatprep.subr.bf16.mxu0 %v10516_v10  ;;  %7101 = vmatprep.subr.bf16.mxu1 %v10516_v10  ;;  %v10598_v10 = vld [vmem:[%s13435_s1 + $0x18f0] ss:$8 sps:$4 sm:$0xff]  }
 0x5d4   : > { %7051 = vmatpush1.bf16.msra.mxu0 %v10514_v23  ;;  %7102 = vmatpush1.bf16.msra.mxu1 %v10514_v23  ;;  %v7374_v23 = vrot.slane %v13001_v7, 2 }
 0x5d5   : > { %7052 = vmatprep.subr.bf16.mxu0 %v10519_v60  ;;  %7103 = vmatprep.subr.bf16.mxu1 %v10519_v60  ;;  %v7433_v60 = vlaneseq }
 0x5d8   : > { %7053 = vmatpush1.bf16.msra.mxu0 %v10517_v17  ;;  %7104 = vmatpush1.bf16.msra.mxu1 %v10517_v17  ;;  %v7434_v17 = vshrl.u32 %v7433_v60, 7 }
 0x5d9   : > { %7054 = vmatprep.subr.bf16.mxu0 %v10522_v59  ;;  %7105 = vmatprep.subr.bf16.mxu1 %v10522_v59 }
 0x5da   : > { %v7435_v59 = vsub.s32 0, %v7434_v17 }
 0x5dc   : > { %7055 = vmatpush1.bf16.msra.mxu0 %v10520_v12  ;;  %7106 = vmatpush1.bf16.msra.mxu1 %v10520_v12 }
 0x5dd   : > { %7056 = vmatprep.subr.bf16.mxu0 %v10525_v42  ;;  %7107 = vmatprep.subr.bf16.mxu1 %v10525_v42 }
 0x5e0   : > { %7057 = vmatpush1.bf16.msra.mxu0 %v10523_v50  ;;  %7108 = vmatpush1.bf16.msra.mxu1 %v10523_v50  ;;  %v7431_v50 = vld [vmem:[%s13436_s2] sm:$0x3] }
 0x5e1   : > { %7058 = vmatprep.subr.bf16.mxu0 %v10528_v13  ;;  %7109 = vmatprep.subr.bf16.mxu1 %v10528_v13  ;;  %v7439_v13 = vsub.s32 1, %v7434_v17 }
 0x5e4   : > { %7059 = vmatpush1.bf16.msra.mxu0 %v10526_v53  ;;  %7110 = vmatpush1.bf16.msra.mxu1 %v10526_v53 }
 0x5e5   : > { %7060 = vmatprep.subr.bf16.mxu0 %v10531_v57  ;;  %7111 = vmatprep.subr.bf16.mxu1 %v10531_v57 }
 0x5e8   : > { %7061 = vmatpush1.bf16.msra.mxu0 %v10529_v61  ;;  %7112 = vmatpush1.bf16.msra.mxu1 %v10529_v61 }
 0x5e9   : > { %7062 = vmatprep.subr.bf16.mxu0 %v10534_v47  ;;  %7113 = vmatprep.subr.bf16.mxu1 %v10534_v47  ;;  %v10625_v47 = vmov 1966171168  }
 0x5ec   : > { %7063 = vmatpush1.bf16.msra.mxu0 %v10532_v15  ;;  %7114 = vmatpush1.bf16.msra.mxu1 %v10532_v15  ;;  %v7453_v15 = vunpack.c.l.s4 %v10625_v47 }
 0x5ed   : > { %7064 = vmatprep.subr.bf16.mxu0 %v10537_v63  ;;  %7115 = vmatprep.subr.bf16.mxu1 %v10537_v63 }
 0x5f0   : > { %7065 = vmatpush1.bf16.msra.mxu0 %v10535_v30  ;;  %7116 = vmatpush1.bf16.msra.mxu1 %v10535_v30  ;;  %v7436_v30 = vrot.slane %v7431_v50, %v7435_v59 }
 0x5f1   : > { %7066 = vmatprep.subr.bf16.mxu0 %v10540_v32  ;;  %7117 = vmatprep.subr.bf16.mxu1 %v10540_v32 }
 0x5f4   : > { %7067 = vmatpush1.bf16.msra.mxu0 %v10538_v41  ;;  %7118 = vmatpush1.bf16.msra.mxu1 %v10538_v41 }
 0x5f5   : > { %7068 = vmatprep.subr.bf16.mxu0 %v10543_v38  ;;  %7119 = vmatprep.subr.bf16.mxu1 %v10543_v38 }
 0x5f8   : > { %7069 = vmatpush1.bf16.msra.mxu0 %v10541_v46  ;;  %7120 = vmatpush1.bf16.msra.mxu1 %v10541_v46  ;;  %v7440_v46 = vrot.slane %v7431_v50, %v7439_v13 }
 0x5f9   : > { %7070 = vmatprep.subr.bf16.mxu0 %v10546_v39  ;;  %7121 = vmatprep.subr.bf16.mxu1 %v10546_v39 }
 0x5fc   : > { %7071 = vmatpush1.bf16.msra.mxu0 %v10544_v9  ;;  %7122 = vmatpush1.bf16.msra.mxu1 %v10544_v9 }
 0x5fd   : > { %7072 = vmatprep.subr.bf16.mxu0 %v10549_v62  ;;  %7123 = vmatprep.subr.bf16.mxu1 %v10549_v62  ;;  %v7454_v62 = vunpack.c.0.s8 %v7453_v15 }
 0x600   : > { %7073 = vmatpush1.bf16.msra.mxu0 %v10547_v8  ;;  %7124 = vmatpush1.bf16.msra.mxu1 %v10547_v8 }
 0x601   : > { %7074 = vmatprep.subr.bf16.mxu0 %v10552_v54  ;;  %7125 = vmatprep.subr.bf16.mxu1 %v10552_v54 }
 0x604   : > { %7075 = vmatpush1.bf16.msra.mxu0 %v10550_v3  ;;  %7126 = vmatpush1.bf16.msra.mxu1 %v10550_v3  ;;  %v7457_v3 = vsub.s32 %v7454_v62, %v7434_v17 }
 0x605   : > { %7331 = vmatprep.subr.bf16.mxu0 %v10555_v6  ;;  %7378 = vmatprep.subr.bf16.mxu1 %v10555_v6 }
 0x607   : > { %7077 = vmatmul.mubr.bf16.vlgmr.msra.gmra.mrb[0].mxu0 %v12780_v40  ;;  %7128 = vmatmul.mubr.bf16.vlgmr.msra.gmra.mrb[0].mxu1 %v7089_v18  ;;  %v10559_v40 = vld [vmem:[%s13435_s1 + $0x1820] ss:$8 sps:$4 sm:$0xff]  }
 0x608   : > { %7332 = vmatpush1.bf16.msra.mxu0 %v10553_v52  ;;  %7379 = vmatpush1.bf16.msra.mxu1 %v10553_v52  ;;  %v7474_v52 = vld [vmem:[%s190_s26] sm:$0x3] }
 0x609   : > { %7333 = vmatprep.subr.bf16.mxu0 %v10558_v21  ;;  %7380 = vmatprep.subr.bf16.mxu1 %v10558_v21 }
 0x60a   : > { %7363 = vmatprep.mubr.bf16.mxu0 %v5936_v29  ;;  %7410 = vmatprep.mubr.bf16.mxu1 %v7375_v19  ;;  %v10567_v29 = vld [vmem:[%s13435_s1 + $0x1844] ss:$8 sps:$4 sm:$0xff]  }
 0x60c   : > { %7334 = vmatpush1.bf16.msra.mxu0 %v10556_v16  ;;  %7381 = vmatpush1.bf16.msra.mxu1 %v10556_v16 }
 0x60d   : > { %7335 = vmatprep.subr.bf16.mxu0 %v10561_v28  ;;  %7382 = vmatprep.subr.bf16.mxu1 %v10561_v28 }
 0x610   : > { %7336 = vmatpush1.bf16.msra.mxu0 %v10559_v40  ;;  %7383 = vmatpush1.bf16.msra.mxu1 %v10559_v40 }
 0x611   : > { %7337 = vmatprep.subr.bf16.mxu0 %v10564_v5  ;;  %7384 = vmatprep.subr.bf16.mxu1 %v10564_v5 }
 0x614   : > { %7338 = vmatpush1.bf16.msra.mxu0 %v10562_v56  ;;  %7385 = vmatpush1.bf16.msra.mxu1 %v10562_v56 }
 0x615   : > { %7339 = vmatprep.subr.bf16.mxu0 %v10567_v29  ;;  %7386 = vmatprep.subr.bf16.mxu1 %v10567_v29 }
 0x618   : > { %7340 = vmatpush1.bf16.msra.mxu0 %v10565_v22  ;;  %7387 = vmatpush1.bf16.msra.mxu1 %v10565_v22 }
 0x619   : > { %7341 = vmatprep.subr.bf16.mxu0 %v10570_v51  ;;  %7388 = vmatprep.subr.bf16.mxu1 %v10570_v51 }
 0x61c   : > { %7342 = vmatpush1.bf16.msra.mxu0 %v10568_v55  ;;  %7389 = vmatpush1.bf16.msra.mxu1 %v10568_v55 }
 0x61d   : > { %7343 = vmatprep.subr.bf16.mxu0 %v10573_v1  ;;  %7390 = vmatprep.subr.bf16.mxu1 %v10573_v1 }
 0x620   : > { %7344 = vmatpush1.bf16.msra.mxu0 %v10571_v44  ;;  %7391 = vmatpush1.bf16.msra.mxu1 %v10571_v44 }
 0x621   : > { %7345 = vmatprep.subr.bf16.mxu0 %v10576_v43  ;;  %7392 = vmatprep.subr.bf16.mxu1 %v10576_v43 }
 0x624   : > { %7346 = vmatpush1.bf16.msra.mxu0 %v10574_v37  ;;  %7393 = vmatpush1.bf16.msra.mxu1 %v10574_v37 }
 0x625   : > { %7347 = vmatprep.subr.bf16.mxu0 %v10579_v49  ;;  %7394 = vmatprep.subr.bf16.mxu1 %v10579_v49 }
 0x628   : > { %7348 = vmatpush1.bf16.msra.mxu0 %v10577_v0  ;;  %7395 = vmatpush1.bf16.msra.mxu1 %v10577_v0 }
 0x629   : > { %7349 = vmatprep.subr.bf16.mxu0 %v10582_v25  ;;  %7396 = vmatprep.subr.bf16.mxu1 %v10582_v25 }
 0x62c   : > { %7350 = vmatpush1.bf16.msra.mxu0 %v10580_v20  ;;  %7397 = vmatpush1.bf16.msra.mxu1 %v10580_v20 }
 0x62d   : > { %7351 = vmatprep.subr.bf16.mxu0 %v10585_v26  ;;  %7398 = vmatprep.subr.bf16.mxu1 %v10585_v26 }
 0x630   : > { %7352 = vmatpush1.bf16.msra.mxu0 %v10583_v27  ;;  %7399 = vmatpush1.bf16.msra.mxu1 %v10583_v27 }
 0x631   : > { %7353 = vmatprep.subr.bf16.mxu0 %v10588_v34  ;;  %7400 = vmatprep.subr.bf16.mxu1 %v10588_v34 }
 0x634   : > { %7354 = vmatpush1.bf16.msra.mxu0 %v10586_v36  ;;  %7401 = vmatpush1.bf16.msra.mxu1 %v10586_v36 }
 0x635   : > { %7355 = vmatprep.subr.bf16.mxu0 %v10591_v45  ;;  %7402 = vmatprep.subr.bf16.mxu1 %v10591_v45 }
 0x638   : > { %7356 = vmatpush1.bf16.msra.mxu0 %v10589_v11  ;;  %7403 = vmatpush1.bf16.msra.mxu1 %v10589_v11 }
 0x639   : > { %7357 = vmatprep.subr.bf16.mxu0 %v10594_v14  ;;  %7404 = vmatprep.subr.bf16.mxu1 %v10594_v14 }
 0x63c   : > { %7358 = vmatpush1.bf16.msra.mxu0 %v10592_v35  ;;  %7405 = vmatpush1.bf16.msra.mxu1 %v10592_v35 }
 0x63d   : > { %7359 = vmatprep.subr.bf16.mxu0 %v10597_v2  ;;  %7406 = vmatprep.subr.bf16.mxu1 %v10597_v2 }
 0x640   : > { %7360 = vmatpush1.bf16.msra.mxu0 %v10595_v4  ;;  %7407 = vmatpush1.bf16.msra.mxu1 %v10595_v4 }
 0x641   : > { %7361 = vmatprep.subr.bf16.mxu0 %v10600_v24  ;;  %7408 = vmatprep.subr.bf16.mxu1 %v10600_v24 }
 0x644   : > { %7362 = vmatpush1.bf16.msra.mxu0 %v10598_v10  ;;  %7409 = vmatpush1.bf16.msra.mxu1 %v10598_v10 }
 0x647   : > { %7364 = vmatmul.mubr.bf16.vlgmr.msra.gmra.mrb[0].mxu0 %v5935_v31  ;;  %7411 = vmatmul.mubr.bf16.vlgmr.msra.gmra.mrb[0].mxu1 %v7374_v23 }
 0x71a   : > { %v7365_v12 = vpop.f32.mrb[0].mxu0  ;;  %v7412_v42 = vpop.f32.mrb[0].mxu1 }
 0x71b   : > { %v7421_v53 = vmax.f32 %v7365_v12, %v7412_v42  ;;  %v7367_v57 = vpop.f32.mrb[1].mxu0  ;;  %v7414_v61 = vpop.f32.mrb[1].mxu1 }
 0x71c   : > { %v7422_v7 = vmax.f32 %v7367_v57, %v7414_v61  ;;  %v7369_v63 = vpop.f32.mrb[2].mxu0  ;;  %v7416_v58 = vpop.f32.mrb[2].mxu1 }
 0x71d   : > { %v7425_v31 = vrot.slane %v7421_v53, 1  ;;  %v7370_v32 = vpop.f32.mrb[3].mxu0  ;;  %v7417_v41 = vpop.f32.mrb[3].mxu1 }
 0x71e   : > { %v7426_v38 = vrot.slane %v7422_v7, 1 }
 0x71f   : > { %v7429_v39 = vmax.f32 %v7421_v53, %v7425_v31 }
 0x720   : > { %v7430_v9 = vmax.f32 %v7422_v7, %v7426_v38 }
 0x721   : > { %v7443_v8 = vadd.f32 %v7436_v30, %v7429_v39 }
 0x722   : > { %v7444_v54 = vadd.f32 %v7440_v46, %v7430_v9 }
 0x723   : > { %v7445_v48 = vmax.f32 %v7443_v8, 0.0 }
 0x724   : > { %v7446_v33 = vmax.f32 %v7444_v54, 0.0 }
 0x726   : > { %v9168_v6 = vpack.c.bf16 %v7446_v33, %v7445_v48 }
 0x728   : > { %v7458_v18 = vrot.slane %v9168_v6, %v7457_v3 }
 0x72a   : > { %v7465_v21 = vrot.slane %v7458_v18, %v7457_v3 }
 0x72c   : > { %v7475_v19 = vsel %vm7473_vm6, %v7465_v21, %v7474_v52 }
 0x72d   : > { %7476 = vst [vmem:[%s190_s26] sm:$0x3] %v7475_v19 }
 0x72e PF: > { %s13_s14 = sadd.s32 1, %s10623_s14   ;;  %s13438_s12 = smov %s10619_s13 }
 0x72f   : > { %p10_p5 = scmp.ge.s32.totalorder %s13_s14, 4   ;;  %s13439_s13 = smov %s13441_s15 }
 0x731   :  { %12 = sbr.rel (!%p10_p5) target bundleno = 2 (0x2), region = 92 }

</bundles_post_ra>
